<compile_context>
chip_gen: v5e
topology: v5e:2x2
jax: 0.10.0
libtpu: 0.0.40
codegen_flags: <defaults>
</compile_context>

<pallas_src>
import functools

import jax
import jax.numpy as jnp
from jax import lax
from jax.experimental import pallas as pl
from jax.experimental.pallas import tpu as pltpu

_D_IN, _D_H1, _D_H2, _D_H3 = 2048, 512, 256, 16
_D_H3_PAD = 128   # layer-3 features zero-padded up to one full lane tile


def _round_up(n, m):
    return ((n + m - 1) // m) * m


def _tpu_limits():
    """(max_bm, vmem_limit_bytes, two_tensorcores) for the local TPU generation."""
    try:
        kind = jax.devices()[0].device_kind.lower()
    except Exception:
        kind = ""
    if "v7" in kind:
        return 1024, 48 * 1024 * 1024, True     # 64 MiB VMEM, 2 TCs per chip
    if "v6" in kind or "v5" in kind:
        return 2048, 64 * 1024 * 1024, False    # 128 MiB VMEM, 1 TC
    return 1024, 48 * 1024 * 1024, False        # unknown: conservative


def mlp_lipo_kernel(x_ref,
                    w1_ref, b1_ref,
                    w2_ref, b2_ref,
                    w3_ref, b3_ref,
                    w4_ref, b4_ref,
                    o_ref):
    """One (bm, 2048) tile of the batch -> one lane-dense (1, bm) output row."""
    cdt = w1_ref.dtype  # MXU operand dtype (bfloat16 or float32)

    # Cast x inside the kernel (no extra wrapper-side HBM pass); no-op if x is already cdt.
    x = x_ref[...].astype(cdt)                                        # (bm, 2048)

    # Layer 1: 2048 -> 512, ReLU.  (f32 accumulation on the MXU.)
    h = jnp.dot(x, w1_ref[...], preferred_element_type=jnp.float32) + b1_ref[...]
    h = jnp.maximum(h, 0.0)
    # TODO(synk): training-mode dropout (p=0.2) not implemented; identity == eval().

    # Layer 2: 512 -> 256, ReLU.
    h = jnp.dot(h.astype(cdt), w2_ref[...],
                preferred_element_type=jnp.float32) + b2_ref[...]
    h = jnp.maximum(h, 0.0)

    # Layer 3: 256 -> 16 (zero-padded to 128 so everything stays lane-tile aligned).
    h = jnp.dot(h.astype(cdt), w3_ref[...],
                preferred_element_type=jnp.float32) + b3_ref[...]
    h = jnp.maximum(h, 0.0)                                           # (bm, 128)

    # Layer 4: 16 -> 1 (padded weight row).  (1,128) contracted with (bm,128) on the
    # feature axis: Mosaic folds the operand transpose into the MXU op and the result
    # is the lane-dense (1, bm) row directly (unmasked output store).
    y = lax.dot_general(w4_ref[...], h.astype(cdt),
                        dimension_numbers=(((1,), (1,)), ((), ())),
                        preferred_element_type=jnp.float32) + b4_ref[...]   # (1, bm)

    o_ref[...] = y.astype(o_ref.dtype)


@functools.partial(jax.jit,
                   static_argnames=("block_m", "use_bf16", "single_buffer_weights"))
def _mlp_lipo_forward(x, params, block_m, use_bf16, single_buffer_weights):
    w1, b1, w2, b2, w3, b3, w4, b4 = params
    B, F = x.shape
    assert F == _D_IN

    max_bm, vmem_limit, two_tc = _tpu_limits()

    if B >= 128:
        # MXU-aligned batch tile; the last grid block may be partial (no full-array pad).
        bm = max(128, (min(block_m, max_bm) // 128) * 128)
        if two_tc and _round_up(B, 128) >= 256:
            # Ensure >=2 grid steps so dimension_semantics=("parallel",) can use both TCs.
            bm = min(bm, _round_up(pl.cdiv(B, 2), 128))
        bm = min(bm, (B // 128) * 128)          # never larger than the batch
        n_blocks = pl.cdiv(B, bm)
    else:
        # Tiny batch: a single sublane-aligned tile covering the whole batch.
        B_pad = _round_up(B, 8)
        if B_pad != B:
            x = jnp.pad(x, ((0, B_pad - B), (0, 0)))   # tiny array, negligible cost
        bm = B_pad
        n_blocks = 1

    # Zero-pad layer 3/4 to a full 128-lane tile (padded columns stay exactly 0).
    pad3 = _D_H3_PAD - _D_H3
    w3p = jnp.pad(w3, ((0, 0), (0, pad3)))                       # (256, 128)
    b3p = jnp.pad(b3, ((0, 0), (0, pad3)))                       # (1, 128)
    w4p = jnp.pad(w4.reshape(1, _D_H3), ((0, 0), (0, pad3)))     # (1, 128) row
    b4p = b4.reshape(1, 1)                                       # (1, 1)

    cdt = jnp.bfloat16 if use_bf16 else jnp.float32
    # Note: x is NOT cast here (kernel casts it; avoids an extra HBM read+write pass).
    w1c, w2c, w3c, w4c = (w1.astype(cdt), w2.astype(cdt),
                          w3p.astype(cdt), w4p.astype(cdt))
    b1f = b1.astype(jnp.float32)
    b2f = b2.astype(jnp.float32)
    b3f = b3p.astype(jnp.float32)
    b4f = b4p.astype(jnp.float32)

    # Weights/biases are grid-invariant -> single buffering is a minor VMEM saving.
    wmode = pl.Buffered(1) if single_buffer_weights else None
    resident = lambda shape: pl.BlockSpec(shape, lambda i: (0, 0),
                                          pipeline_mode=wmode)

    out = pl.pallas_call(
        mlp_lipo_kernel,
        out_shape=jax.ShapeDtypeStruct((n_blocks, 1, bm), jnp.float32),
        grid_spec=pltpu.PrefetchScalarGridSpec(
            num_scalar_prefetch=0,
            grid=(n_blocks,),
            in_specs=[
                pl.BlockSpec((bm, _D_IN), lambda i: (i, 0)),          # x tile (streamed)
                resident((_D_IN, _D_H1)),      resident((1, _D_H1)),  # W1, b1
                resident((_D_H1, _D_H2)),      resident((1, _D_H2)),  # W2, b2
                resident((_D_H2, _D_H3_PAD)),  resident((1, _D_H3_PAD)),  # W3p, b3p
                resident((1, _D_H3_PAD)),      resident((1, 1)),      # W4 row, b4
            ],
            # Lane-dense output: one (1, bm) row per grid step.
            out_specs=pl.BlockSpec((None, 1, bm), lambda i: (i, 0, 0)),
        ),
        compiler_params=pltpu.CompilerParams(
            dimension_semantics=("parallel",),
            vmem_limit_bytes=vmem_limit,
        ),
    )(x, w1c, b1f, w2c, b2f, w3c, b3f, w4c, b4f)

    return out.reshape(n_blocks * bm)[:B]


def mlp_lipo_forward(x, params, block_m=1024, use_bf16=True):
    """x: (B, 2048).  Returns (B,) float32, matching model(x).squeeze(1) in eval mode."""
    try:
        return _mlp_lipo_forward(x, params, block_m, use_bf16, True)
    except Exception:
        # Fallback for JAX builds that reject single-buffered (pl.Buffered(1)) BlockSpecs.
        return _mlp_lipo_forward(x, params, block_m, use_bf16, False)


def init_params(key):
    """Uniform init like PyTorch's default nn.Linear; weights stored as (in, out)."""
    dims = [(_D_IN, _D_H1), (_D_H1, _D_H2), (_D_H2, _D_H3), (_D_H3, 1)]
    params = []
    keys = jax.random.split(key, 2 * len(dims))
    for li, (fan_in, fan_out) in enumerate(dims):
        bound = 1.0 / (fan_in ** 0.5)
        w = jax.random.uniform(keys[2 * li], (fan_in, fan_out),
                               minval=-bound, maxval=bound, dtype=jnp.float32)
        b = jax.random.uniform(keys[2 * li + 1], (1, fan_out),
                               minval=-bound, maxval=bound, dtype=jnp.float32)
        params += [w, b]
    return tuple(params)


def reference_forward(x, params, use_bf16=True):
    """Pure-JAX reference applying the same input/weight rounding as the kernel."""
    w1, b1, w2, b2, w3, b3, w4, b4 = params
    cdt = jnp.bfloat16 if use_bf16 else jnp.float32
    f32 = jnp.float32
    h = jnp.dot(x.astype(cdt), w1.astype(cdt), preferred_element_type=f32) + b1
    h = jnp.maximum(h, 0.0)
    h = jnp.dot(h.astype(cdt), w2.astype(cdt), preferred_element_type=f32) + b2
    h = jnp.maximum(h, 0.0)
    h = jnp.dot(h.astype(cdt), w3.astype(cdt), preferred_element_type=f32) + b3
    h = jnp.maximum(h, 0.0)
    h = jnp.dot(h.astype(cdt), w4.astype(cdt), preferred_element_type=f32) + b4
    return h[:, 0]


if __name__ == "__main__":
    key = jax.random.PRNGKey(0)
    kx, kp = jax.random.split(key)
    params = init_params(kp)

    # 1) Tiny batch (single sublane-aligned tile path), bf16 compute.
    B = 16
    x = jax.random.normal(kx, (B, _D_IN), dtype=jnp.float32)
    y = jax.block_until_ready(mlp_lipo_forward(x, params))
    y_ref = reference_forward(x, params, use_bf16=True)
    assert y.shape == (B,)
    assert jnp.allclose(y, y_ref, atol=1e-3, rtol=1e-3), (
        float(jnp.max(jnp.abs(y - y_ref))))

    # 2) Exact f32 path (no bf16 rounding) against the f32 reference.
    y32 = jax.block_until_ready(mlp_lipo_forward(x, params, use_bf16=False))
    y32_ref = reference_forward(x, params, use_bf16=False)
    assert jnp.allclose(y32, y32_ref, atol=1e-3, rtol=1e-3), (
        float(jnp.max(jnp.abs(y32 - y32_ref))))

    # 3) Batch that is not a multiple of the tile: exercises the partial last block
    #    (no full-array pad pass) and the [:B] slice.
    B2 = 200
    x2 = jax.random.normal(jax.random.fold_in(kx, 1), (B2, _D_IN), dtype=jnp.float32)
    y2 = jax.block_until_ready(mlp_lipo_forward(x2, params))
    y2_ref = reference_forward(x2, params, use_bf16=True)
    assert y2.shape == (B2,)
    assert jnp.allclose(y2, y2_ref, atol=1e-3, rtol=1e-3), (
        float(jnp.max(jnp.abs(y2 - y2_ref))))

    print("KERNEL_OK")
</pallas_src>

<mosaic_0001>
module attributes {stable_mosaic.version = 11 : i64} {
  func.func @mlp_lipo_kernel(%arg0: i32, %arg1: memref<16x2048xf32, #tpu.memory_space<vmem>>, %arg2: memref<2048x512xbf16, #tpu.memory_space<vmem>>, %arg3: memref<1x512xf32, #tpu.memory_space<vmem>>, %arg4: memref<512x256xbf16, #tpu.memory_space<vmem>>, %arg5: memref<1x256xf32, #tpu.memory_space<vmem>>, %arg6: memref<256x128xbf16, #tpu.memory_space<vmem>>, %arg7: memref<1x128xf32, #tpu.memory_space<vmem>>, %arg8: memref<1x128xbf16, #tpu.memory_space<vmem>>, %arg9: memref<1x1xf32, #tpu.memory_space<vmem>>, %arg10: memref<1x1x16xf32, #tpu.memory_space<vmem>>) attributes {dimension_semantics = [#tpu.dimension_semantics<parallel>], iteration_bounds = array<i64: 1>, scalar_prefetch = 0 : i64, scratch_operands = 0 : i64, tpu.core_type = #tpu.core_type<tc>, window_params = [{transform_indices = @transform_0, window_bounds = array<i64: 16, 2048>}, {pipeline_mode = #tpu.pipeline_mode<synchronous>, transform_indices = @transform_1, window_bounds = array<i64: 2048, 512>}, {pipeline_mode = #tpu.pipeline_mode<synchronous>, transform_indices = @transform_2, window_bounds = array<i64: 1, 512>}, {pipeline_mode = #tpu.pipeline_mode<synchronous>, transform_indices = @transform_3, window_bounds = array<i64: 512, 256>}, {pipeline_mode = #tpu.pipeline_mode<synchronous>, transform_indices = @transform_4, window_bounds = array<i64: 1, 256>}, {pipeline_mode = #tpu.pipeline_mode<synchronous>, transform_indices = @transform_5, window_bounds = array<i64: 256, 128>}, {pipeline_mode = #tpu.pipeline_mode<synchronous>, transform_indices = @transform_6, window_bounds = array<i64: 1, 128>}, {pipeline_mode = #tpu.pipeline_mode<synchronous>, transform_indices = @transform_7, window_bounds = array<i64: 1, 128>}, {pipeline_mode = #tpu.pipeline_mode<synchronous>, transform_indices = @transform_8, window_bounds = array<i64: 1, 1>}, {transform_indices = @transform_9, window_bounds = array<i64: 1, 1, 16>}]} {
    %c0 = arith.constant 0 : index
    %c0_0 = arith.constant 0 : index
    %0 = vector.load %arg1[%c0, %c0_0] : memref<16x2048xf32, #tpu.memory_space<vmem>>, vector<16x2048xf32>
    %1 = arith.truncf %0 : vector<16x2048xf32> to vector<16x2048xbf16>
    %c0_1 = arith.constant 0 : index
    %c0_2 = arith.constant 0 : index
    %2 = vector.load %arg2[%c0_1, %c0_2] : memref<2048x512xbf16, #tpu.memory_space<vmem>>, vector<2048x512xbf16>
    %cst = arith.constant dense<0.000000e+00> : vector<16x512xf32>
    %3 = tpu.matmul %1, %2, %cst {dimension_numbers = #tpu.dot_dimension_numbers<[1], [0], [0], [1], [0, 0, 1, 1], [], []>} : vector<16x2048xbf16>, vector<2048x512xbf16>, vector<16x512xf32> -> vector<16x512xf32>
    %c0_3 = arith.constant 0 : index
    %c0_4 = arith.constant 0 : index
    %4 = vector.load %arg3[%c0_3, %c0_4] : memref<1x512xf32, #tpu.memory_space<vmem>>, vector<1x512xf32>
    %5 = vector.broadcast %4 : vector<1x512xf32> to vector<16x512xf32>
    %6 = arith.addf %3, %5 : vector<16x512xf32>
    %cst_5 = arith.constant 0.000000e+00 : f32
    %7 = vector.broadcast %cst_5 : f32 to vector<16x512xf32>
    %8 = arith.maximumf %6, %7 : vector<16x512xf32>
    %9 = arith.truncf %8 : vector<16x512xf32> to vector<16x512xbf16>
    %c0_6 = arith.constant 0 : index
    %c0_7 = arith.constant 0 : index
    %10 = vector.load %arg4[%c0_6, %c0_7] : memref<512x256xbf16, #tpu.memory_space<vmem>>, vector<512x256xbf16>
    %cst_8 = arith.constant dense<0.000000e+00> : vector<16x256xf32>
    %11 = tpu.matmul %9, %10, %cst_8 {dimension_numbers = #tpu.dot_dimension_numbers<[1], [0], [0], [1], [0, 0, 1, 1], [], []>} : vector<16x512xbf16>, vector<512x256xbf16>, vector<16x256xf32> -> vector<16x256xf32>
    %c0_9 = arith.constant 0 : index
    %c0_10 = arith.constant 0 : index
    %12 = vector.load %arg5[%c0_9, %c0_10] : memref<1x256xf32, #tpu.memory_space<vmem>>, vector<1x256xf32>
    %13 = vector.broadcast %12 : vector<1x256xf32> to vector<16x256xf32>
    %14 = arith.addf %11, %13 : vector<16x256xf32>
    %cst_11 = arith.constant 0.000000e+00 : f32
    %15 = vector.broadcast %cst_11 : f32 to vector<16x256xf32>
    %16 = arith.maximumf %14, %15 : vector<16x256xf32>
    %17 = arith.truncf %16 : vector<16x256xf32> to vector<16x256xbf16>
    %c0_12 = arith.constant 0 : index
    %c0_13 = arith.constant 0 : index
    %18 = vector.load %arg6[%c0_12, %c0_13] : memref<256x128xbf16, #tpu.memory_space<vmem>>, vector<256x128xbf16>
    %cst_14 = arith.constant dense<0.000000e+00> : vector<16x128xf32>
    %19 = tpu.matmul %17, %18, %cst_14 {dimension_numbers = #tpu.dot_dimension_numbers<[1], [0], [0], [1], [0, 0, 1, 1], [], []>} : vector<16x256xbf16>, vector<256x128xbf16>, vector<16x128xf32> -> vector<16x128xf32>
    %c0_15 = arith.constant 0 : index
    %c0_16 = arith.constant 0 : index
    %20 = vector.load %arg7[%c0_15, %c0_16] : memref<1x128xf32, #tpu.memory_space<vmem>>, vector<1x128xf32>
    %21 = vector.broadcast %20 : vector<1x128xf32> to vector<16x128xf32>
    %22 = arith.addf %19, %21 : vector<16x128xf32>
    %cst_17 = arith.constant 0.000000e+00 : f32
    %23 = vector.broadcast %cst_17 : f32 to vector<16x128xf32>
    %24 = arith.maximumf %22, %23 : vector<16x128xf32>
    %c0_18 = arith.constant 0 : index
    %c0_19 = arith.constant 0 : index
    %25 = vector.load %arg8[%c0_18, %c0_19] : memref<1x128xbf16, #tpu.memory_space<vmem>>, vector<1x128xbf16>
    %26 = arith.truncf %24 : vector<16x128xf32> to vector<16x128xbf16>
    %cst_20 = arith.constant dense<0.000000e+00> : vector<1x16xf32>
    %27 = tpu.matmul %25, %26, %cst_20 {dimension_numbers = #tpu.dot_dimension_numbers<[1], [1], [0], [0], [0, 0, 1, 0], [], []>} : vector<1x128xbf16>, vector<16x128xbf16>, vector<1x16xf32> -> vector<1x16xf32>
    %c0_21 = arith.constant 0 : index
    %c0_22 = arith.constant 0 : index
    %28 = vector.load %arg9[%c0_21, %c0_22] : memref<1x1xf32, #tpu.memory_space<vmem>>, vector<1x1xf32>
    %29 = vector.broadcast %28 : vector<1x1xf32> to vector<1x16xf32>
    %30 = arith.addf %27, %29 : vector<1x16xf32>
    %c0_23 = arith.constant 0 : index
    %c0_24 = arith.constant 0 : index
    %c0_25 = arith.constant 0 : index
    %31 = vector.load %arg10[%c0_23, %c0_24, %c0_25] : memref<1x1x16xf32, #tpu.memory_space<vmem>>, vector<1x1x16xf32>
    %32 = vector.shape_cast %31 : vector<1x1x16xf32> to vector<1x16xf32>
    %33 = vector.shape_cast %30 : vector<1x16xf32> to vector<1x1x16xf32>
    tpu.vector_store %arg10[%c0_23, %c0_24, %c0_25], %33 {strides = array<i32>} : memref<1x1x16xf32, #tpu.memory_space<vmem>>, vector<1x1x16xf32>,
    return
  }
  func.func @transform_0(%arg0: i32) -> (i32, i32) {
    %c0_i32 = arith.constant 0 : i32
    %c0_i32_0 = arith.constant 0 : i32
    return %arg0, %c0_i32 : i32, i32
  }
  func.func @transform_1(%arg0: i32) -> (i32, i32) {
    %c0_i32 = arith.constant 0 : i32
    %c0_i32_0 = arith.constant 0 : i32
    %c0_i32_1 = arith.constant 0 : i32
    return %c0_i32, %c0_i32_0 : i32, i32
  }
  func.func @transform_2(%arg0: i32) -> (i32, i32) {
    %c0_i32 = arith.constant 0 : i32
    %c0_i32_0 = arith.constant 0 : i32
    %c0_i32_1 = arith.constant 0 : i32
    return %c0_i32, %c0_i32_0 : i32, i32
  }
  func.func @transform_3(%arg0: i32) -> (i32, i32) {
    %c0_i32 = arith.constant 0 : i32
    %c0_i32_0 = arith.constant 0 : i32
    %c0_i32_1 = arith.constant 0 : i32
    return %c0_i32, %c0_i32_0 : i32, i32
  }
  func.func @transform_4(%arg0: i32) -> (i32, i32) {
    %c0_i32 = arith.constant 0 : i32
    %c0_i32_0 = arith.constant 0 : i32
    %c0_i32_1 = arith.constant 0 : i32
    return %c0_i32, %c0_i32_0 : i32, i32
  }
  func.func @transform_5(%arg0: i32) -> (i32, i32) {
    %c0_i32 = arith.constant 0 : i32
    %c0_i32_0 = arith.constant 0 : i32
    %c0_i32_1 = arith.constant 0 : i32
    return %c0_i32, %c0_i32_0 : i32, i32
  }
  func.func @transform_6(%arg0: i32) -> (i32, i32) {
    %c0_i32 = arith.constant 0 : i32
    %c0_i32_0 = arith.constant 0 : i32
    %c0_i32_1 = arith.constant 0 : i32
    return %c0_i32, %c0_i32_0 : i32, i32
  }
  func.func @transform_7(%arg0: i32) -> (i32, i32) {
    %c0_i32 = arith.constant 0 : i32
    %c0_i32_0 = arith.constant 0 : i32
    %c0_i32_1 = arith.constant 0 : i32
    return %c0_i32, %c0_i32_0 : i32, i32
  }
  func.func @transform_8(%arg0: i32) -> (i32, i32) {
    %c0_i32 = arith.constant 0 : i32
    %c0_i32_0 = arith.constant 0 : i32
    %c0_i32_1 = arith.constant 0 : i32
    return %c0_i32, %c0_i32_0 : i32, i32
  }
  func.func @transform_9(%arg0: i32) -> (i32, i32, i32) {
    %c0_i32 = arith.constant 0 : i32
    %c0_i32_0 = arith.constant 0 : i32
    %c0_i32_1 = arith.constant 0 : i32
    return %arg0, %c0_i32, %c0_i32_0 : i32, i32, i32
  }
}

module attributes {stable_mosaic.version = 11 : i64} {
  func.func @mlp_lipo_kernel(%arg0: i32, %arg1: memref<16x2048xf32, #tpu.memory_space<vmem>>, %arg2: memref<2048x512xbf16, #tpu.memory_space<vmem>>, %arg3: memref<1x512xf32, #tpu.memory_space<vmem>>, %arg4: memref<512x256xbf16, #tpu.memory_space<vmem>>, %arg5: memref<1x256xf32, #tpu.memory_space<vmem>>, %arg6: memref<256x128xbf16, #tpu.memory_space<vmem>>, %arg7: memref<1x128xf32, #tpu.memory_space<vmem>>, %arg8: memref<1x128xbf16, #tpu.memory_space<vmem>>, %arg9: memref<1x1xf32, #tpu.memory_space<vmem>>, %arg10: memref<1x1x16xf32, #tpu.memory_space<vmem>>) attributes {dimension_semantics = [#tpu.dimension_semantics<parallel>], iteration_bounds = array<i64: 1>, scalar_prefetch = 0 : i64, scratch_operands = 0 : i64, tpu.core_type = #tpu.core_type<tc>, window_params = [{transform_indices = @transform_0, window_bounds = array<i64: 16, 2048>}, {pipeline_mode = #tpu.pipeline_mode<synchronous>, transform_indices = @transform_1, window_bounds = array<i64: 2048, 512>}, {pipeline_mode = #tpu.pipeline_mode<synchronous>, transform_indices = @transform_2, window_bounds = array<i64: 1, 512>}, {pipeline_mode = #tpu.pipeline_mode<synchronous>, transform_indices = @transform_3, window_bounds = array<i64: 512, 256>}, {pipeline_mode = #tpu.pipeline_mode<synchronous>, transform_indices = @transform_4, window_bounds = array<i64: 1, 256>}, {pipeline_mode = #tpu.pipeline_mode<synchronous>, transform_indices = @transform_5, window_bounds = array<i64: 256, 128>}, {pipeline_mode = #tpu.pipeline_mode<synchronous>, transform_indices = @transform_6, window_bounds = array<i64: 1, 128>}, {pipeline_mode = #tpu.pipeline_mode<synchronous>, transform_indices = @transform_7, window_bounds = array<i64: 1, 128>}, {pipeline_mode = #tpu.pipeline_mode<synchronous>, transform_indices = @transform_8, window_bounds = array<i64: 1, 1>}, {transform_indices = @transform_9, window_bounds = array<i64: 1, 1, 16>}]} {
    %c0 = arith.constant 0 : index
    %c0_0 = arith.constant 0 : index
    %0 = vector.load %arg1[%c0, %c0_0] : memref<16x2048xf32, #tpu.memory_space<vmem>>, vector<16x2048xf32>
    %1 = arith.truncf %0 : vector<16x2048xf32> to vector<16x2048xbf16>
    %c0_1 = arith.constant 0 : index
    %c0_2 = arith.constant 0 : index
    %2 = vector.load %arg2[%c0_1, %c0_2] : memref<2048x512xbf16, #tpu.memory_space<vmem>>, vector<2048x512xbf16>
    %cst = arith.constant dense<0.000000e+00> : vector<16x512xf32>
    %3 = tpu.matmul %1, %2, %cst {dimension_numbers = #tpu.dot_dimension_numbers<[1], [0], [0], [1], [0, 0, 1, 1], [], []>} : vector<16x2048xbf16>, vector<2048x512xbf16>, vector<16x512xf32> -> vector<16x512xf32>
    %c0_3 = arith.constant 0 : index
    %c0_4 = arith.constant 0 : index
    %4 = vector.load %arg3[%c0_3, %c0_4] : memref<1x512xf32, #tpu.memory_space<vmem>>, vector<1x512xf32>
    %5 = vector.broadcast %4 : vector<1x512xf32> to vector<16x512xf32>
    %6 = arith.addf %3, %5 : vector<16x512xf32>
    %cst_5 = arith.constant 0.000000e+00 : f32
    %7 = vector.broadcast %cst_5 : f32 to vector<16x512xf32>
    %8 = arith.maximumf %6, %7 : vector<16x512xf32>
    %9 = arith.truncf %8 : vector<16x512xf32> to vector<16x512xbf16>
    %c0_6 = arith.constant 0 : index
    %c0_7 = arith.constant 0 : index
    %10 = vector.load %arg4[%c0_6, %c0_7] : memref<512x256xbf16, #tpu.memory_space<vmem>>, vector<512x256xbf16>
    %cst_8 = arith.constant dense<0.000000e+00> : vector<16x256xf32>
    %11 = tpu.matmul %9, %10, %cst_8 {dimension_numbers = #tpu.dot_dimension_numbers<[1], [0], [0], [1], [0, 0, 1, 1], [], []>} : vector<16x512xbf16>, vector<512x256xbf16>, vector<16x256xf32> -> vector<16x256xf32>
    %c0_9 = arith.constant 0 : index
    %c0_10 = arith.constant 0 : index
    %12 = vector.load %arg5[%c0_9, %c0_10] : memref<1x256xf32, #tpu.memory_space<vmem>>, vector<1x256xf32>
    %13 = vector.broadcast %12 : vector<1x256xf32> to vector<16x256xf32>
    %14 = arith.addf %11, %13 : vector<16x256xf32>
    %cst_11 = arith.constant 0.000000e+00 : f32
    %15 = vector.broadcast %cst_11 : f32 to vector<16x256xf32>
    %16 = arith.maximumf %14, %15 : vector<16x256xf32>
    %17 = arith.truncf %16 : vector<16x256xf32> to vector<16x256xbf16>
    %c0_12 = arith.constant 0 : index
    %c0_13 = arith.constant 0 : index
    %18 = vector.load %arg6[%c0_12, %c0_13] : memref<256x128xbf16, #tpu.memory_space<vmem>>, vector<256x128xbf16>
    %cst_14 = arith.constant dense<0.000000e+00> : vector<16x128xf32>
    %19 = tpu.matmul %17, %18, %cst_14 {dimension_numbers = #tpu.dot_dimension_numbers<[1], [0], [0], [1], [0, 0, 1, 1], [], []>} : vector<16x256xbf16>, vector<256x128xbf16>, vector<16x128xf32> -> vector<16x128xf32>
    %c0_15 = arith.constant 0 : index
    %c0_16 = arith.constant 0 : index
    %20 = vector.load %arg7[%c0_15, %c0_16] : memref<1x128xf32, #tpu.memory_space<vmem>>, vector<1x128xf32>
    %21 = vector.broadcast %20 : vector<1x128xf32> to vector<16x128xf32>
    %22 = arith.addf %19, %21 : vector<16x128xf32>
    %cst_17 = arith.constant 0.000000e+00 : f32
    %23 = vector.broadcast %cst_17 : f32 to vector<16x128xf32>
    %24 = arith.maximumf %22, %23 : vector<16x128xf32>
    %c0_18 = arith.constant 0 : index
    %c0_19 = arith.constant 0 : index
    %25 = vector.load %arg8[%c0_18, %c0_19] : memref<1x128xbf16, #tpu.memory_space<vmem>>, vector<1x128xbf16>
    %26 = arith.truncf %24 : vector<16x128xf32> to vector<16x128xbf16>
    %cst_20 = arith.constant dense<0.000000e+00> : vector<1x16xf32>
    %27 = tpu.matmul %25, %26, %cst_20 {dimension_numbers = #tpu.dot_dimension_numbers<[1], [1], [0], [0], [0, 0, 1, 0], [], []>} : vector<1x128xbf16>, vector<16x128xbf16>, vector<1x16xf32> -> vector<1x16xf32>
    %c0_21 = arith.constant 0 : index
    %c0_22 = arith.constant 0 : index
    %28 = vector.load %arg9[%c0_21, %c0_22] : memref<1x1xf32, #tpu.memory_space<vmem>>, vector<1x1xf32>
    %29 = vector.broadcast %28 : vector<1x1xf32> to vector<1x16xf32>
    %30 = arith.addf %27, %29 : vector<1x16xf32>
    %c0_23 = arith.constant 0 : index
    %c0_24 = arith.constant 0 : index
    %c0_25 = arith.constant 0 : index
    %31 = vector.load %arg10[%c0_23, %c0_24, %c0_25] : memref<1x1x16xf32, #tpu.memory_space<vmem>>, vector<1x1x16xf32>
    %32 = vector.shape_cast %31 : vector<1x1x16xf32> to vector<1x16xf32>
    %33 = vector.shape_cast %30 : vector<1x16xf32> to vector<1x1x16xf32>
    tpu.vector_store %arg10[%c0_23, %c0_24, %c0_25], %33 {strides = array<i32>} : memref<1x1x16xf32, #tpu.memory_space<vmem>>, vector<1x1x16xf32>,
    return
  }
  func.func @transform_0(%arg0: i32) -> (i32, i32) {
    %c0_i32 = arith.constant 0 : i32
    %c0_i32_0 = arith.constant 0 : i32
    return %arg0, %c0_i32 : i32, i32
  }
  func.func @transform_1(%arg0: i32) -> (i32, i32) {
    %c0_i32 = arith.constant 0 : i32
    %c0_i32_0 = arith.constant 0 : i32
    %c0_i32_1 = arith.constant 0 : i32
    return %c0_i32, %c0_i32_0 : i32, i32
  }
  func.func @transform_2(%arg0: i32) -> (i32, i32) {
    %c0_i32 = arith.constant 0 : i32
    %c0_i32_0 = arith.constant 0 : i32
    %c0_i32_1 = arith.constant 0 : i32
    return %c0_i32, %c0_i32_0 : i32, i32
  }
  func.func @transform_3(%arg0: i32) -> (i32, i32) {
    %c0_i32 = arith.constant 0 : i32
    %c0_i32_0 = arith.constant 0 : i32
    %c0_i32_1 = arith.constant 0 : i32
    return %c0_i32, %c0_i32_0 : i32, i32
  }
  func.func @transform_4(%arg0: i32) -> (i32, i32) {
    %c0_i32 = arith.constant 0 : i32
    %c0_i32_0 = arith.constant 0 : i32
    %c0_i32_1 = arith.constant 0 : i32
    return %c0_i32, %c0_i32_0 : i32, i32
  }
  func.func @transform_5(%arg0: i32) -> (i32, i32) {
    %c0_i32 = arith.constant 0 : i32
    %c0_i32_0 = arith.constant 0 : i32
    %c0_i32_1 = arith.constant 0 : i32
    return %c0_i32, %c0_i32_0 : i32, i32
  }
  func.func @transform_6(%arg0: i32) -> (i32, i32) {
    %c0_i32 = arith.constant 0 : i32
    %c0_i32_0 = arith.constant 0 : i32
    %c0_i32_1 = arith.constant 0 : i32
    return %c0_i32, %c0_i32_0 : i32, i32
  }
  func.func @transform_7(%arg0: i32) -> (i32, i32) {
    %c0_i32 = arith.constant 0 : i32
    %c0_i32_0 = arith.constant 0 : i32
    %c0_i32_1 = arith.constant 0 : i32
    return %c0_i32, %c0_i32_0 : i32, i32
  }
  func.func @transform_8(%arg0: i32) -> (i32, i32) {
    %c0_i32 = arith.constant 0 : i32
    %c0_i32_0 = arith.constant 0 : i32
    %c0_i32_1 = arith.constant 0 : i32
    return %c0_i32, %c0_i32_0 : i32, i32
  }
  func.func @transform_9(%arg0: i32) -> (i32, i32, i32) {
    %c0_i32 = arith.constant 0 : i32
    %c0_i32_0 = arith.constant 0 : i32
    %c0_i32_1 = arith.constant 0 : i32
    return %arg0, %c0_i32, %c0_i32_0 : i32, i32, i32
  }
}

</mosaic_0001>

<bundles_post_ra>
// kernel: _mlp_lipo_forward.1
= control target key start
LH: loop header
LB: loop body
LE: loop exit
PB: predicated region body
PF: predicated region fallthrough
CT: control target
= control target key end

     0   :  { %s11731_s0 = inlined_call_operand.vmem [shape: f32[16,2048], index: 0, kind: input, shape index: {}]   ;;  %s11732_s1 = inlined_call_operand.vmem [shape: bf16[2048,512], index: 1, kind: input, shape index: {}]   ;;  %s11733_s2 = inlined_call_operand.vmem [shape: f32[1,512], index: 2, kind: input, shape index: {}]   ;;  %s11734_s3 = inlined_call_operand.vmem [shape: bf16[512,256], index: 3, kind: input, shape index: {}]   ;;  %s11735_s4 = inlined_call_operand.vmem [shape: f32[1,256], index: 4, kind: input, shape index: {}]   ;;  %s11736_s5 = inlined_call_operand.vmem [shape: bf16[256,128], index: 5, kind: input, shape index: {}]   ;;  %s11737_s6 = inlined_call_operand.vmem [shape: f32[1,128], index: 6, kind: input, shape index: {}]   ;;  %s11738_s7 = inlined_call_operand.vmem [shape: bf16[1,128], index: 7, kind: input, shape index: {}]   ;;  %s11739_s8 = inlined_call_operand.<no memory space> [shape: f32[1,1], index: 8, kind: input, shape index: {}]   ;;  %s11740_s9 = inlined_call_operand.hbm [shape: f32[1,1,16], index: 9, kind: output, shape index: {}]  }
   0x1   :  { %v14_v0 = vstv %s11739_s8 }
   0x2   :  { %15 = vst [vmem:[#allocation2] sm:$0x1] %v14_v0 }
   0x3   :  { %v4898_v1 = vld [vmem:[%s11732_s1 + $0xe0] sm:$0xf]  ;;  %v7182_v2 = vld [vmem:[%s11732_s1 + $0xec] sm:$0xf0] }
   0x4   :  { %v5026_v3 = vld [vmem:[%s11732_s1 + $0x1e0] sm:$0xf]  ;;  %v4899_v4 = vor.u32 %v7182_v2, %v4898_v1  ;;  %v7214_v5 = vld [vmem:[%s11732_s1 + $0x1ec] sm:$0xf0] }
   0x5   :  { %v5154_v6 = vld [vmem:[%s11732_s1 + $0x2e0] sm:$0xf]  ;;  %v7246_v7 = vld [vmem:[%s11732_s1 + $0x2ec] sm:$0xf0]  ;;  %v5027_v8 = vor.u32 %v7214_v5, %v5026_v3 }
   0x6   :  { %v5155_v9 = vor.u32 %v7246_v7, %v5154_v6  ;;  %v5282_v10 = vld [vmem:[%s11732_s1 + $0x3e0] sm:$0xf]  ;;  %v7278_v11 = vld [vmem:[%s11732_s1 + $0x3ec] sm:$0xf0]  ;;  %3166 = vmatpush.bf16.msra.mxu0 %v4899_v4 }
   0x7   :  { %v4882_v12 = vld [vmem:[%s11732_s1 + $0xc0] sm:$0xf]  ;;  %v5283_v13 = vor.u32 %v7278_v11, %v5282_v10  ;;  %v7178_v14 = vld [vmem:[%s11732_s1 + $0xcc] sm:$0xf0]  ;;  %3180 = vmatpush.bf16.msra.mxu1 %v5027_v8 }
   0x8   :  { %v5010_v15 = vld [vmem:[%s11732_s1 + $0x1c0] sm:$0xf]  ;;  %v7210_v16 = vld [vmem:[%s11732_s1 + $0x1cc] sm:$0xf0]  ;;  %3194 = vmatpush.bf16.msra.mxu2 %v5155_v9  ;;  %v4883_v17 = vor.u32 %v7178_v14, %v4882_v12 }
   0x9   :  { %v5011_v18 = vor.u32 %v7210_v16, %v5010_v15  ;;  %v5138_v19 = vld [vmem:[%s11732_s1 + $0x2c0] sm:$0xf]  ;;  %v7242_v20 = vld [vmem:[%s11732_s1 + $0x2cc] sm:$0xf0]  ;;  %3208 = vmatpush.bf16.msra.mxu3 %v5283_v13 }
   0xa   :  { %v5266_v21 = vld [vmem:[%s11732_s1 + $0x3c0] sm:$0xf]  ;;  %v5139_v22 = vor.u32 %v7242_v20, %v5138_v19  ;;  %v7274_v23 = vld [vmem:[%s11732_s1 + $0x3cc] sm:$0xf0]  ;;  %3167 = vmatpush.bf16.msra.mxu0 %v4883_v17 }
   0xb   :  { %v4866_v24 = vld [vmem:[%s11732_s1 + $0xa0] sm:$0xf]  ;;  %v7174_v25 = vld [vmem:[%s11732_s1 + $0xac] sm:$0xf0]  ;;  %v5267_v26 = vor.u32 %v7274_v23, %v5266_v21  ;;  %3181 = vmatpush.bf16.msra.mxu1 %v5011_v18 }
   0xc   :  { %v4994_v27 = vld [vmem:[%s11732_s1 + $0x1a0] sm:$0xf]  ;;  %v7206_v28 = vld [vmem:[%s11732_s1 + $0x1ac] sm:$0xf0]  ;;  %v4867_v30 = vor.u32 %v7174_v25, %v4866_v24  ;;  %3195 = vmatpush.bf16.msra.mxu2 %v5139_v22 }
   0xd   :  { %v5122_v29 = vld [vmem:[%s11732_s1 + $0x2a0] sm:$0xf]  ;;  %v7238_v31 = vld [vmem:[%s11732_s1 + $0x2ac] sm:$0xf0]  ;;  %v4995_v34 = vor.u32 %v7206_v28, %v4994_v27  ;;  %3209 = vmatpush.bf16.msra.mxu3 %v5267_v26 }
   0xe   :  { %v5250_v32 = vld [vmem:[%s11732_s1 + $0x3a0] sm:$0xf]  ;;  %v7270_v33 = vld [vmem:[%s11732_s1 + $0x3ac] sm:$0xf0]  ;;  %v5123_v35 = vor.u32 %v7238_v31, %v5122_v29  ;;  %3168 = vmatpush.bf16.msra.mxu0 %v4867_v30 }
   0xf   :  { %v4850_v36 = vld [vmem:[%s11732_s1 + $0x80] sm:$0xf]  ;;  %v7170_v37 = vld [vmem:[%s11732_s1 + $0x8c] sm:$0xf0]  ;;  %v5251_v39 = vor.u32 %v7270_v33, %v5250_v32  ;;  %3182 = vmatpush.bf16.msra.mxu1 %v4995_v34 }
  0x10   :  { %v4978_v38 = vld [vmem:[%s11732_s1 + $0x180] sm:$0xf]  ;;  %v7202_v40 = vld [vmem:[%s11732_s1 + $0x18c] sm:$0xf0]  ;;  %v4851_v45 = vor.u32 %v7170_v37, %v4850_v36  ;;  %3196 = vmatpush.bf16.msra.mxu2 %v5123_v35 }
  0x11   :  { %v5106_v41 = vld [vmem:[%s11732_s1 + $0x280] sm:$0xf]  ;;  %v7234_v42 = vld [vmem:[%s11732_s1 + $0x28c] sm:$0xf0]  ;;  %v4979_v46 = vor.u32 %v7202_v40, %v4978_v38  ;;  %3210 = vmatpush.bf16.msra.mxu3 %v5251_v39 }
  0x12   :  { %v5234_v43 = vld [vmem:[%s11732_s1 + $0x380] sm:$0xf]  ;;  %v7266_v44 = vld [vmem:[%s11732_s1 + $0x38c] sm:$0xf0]  ;;  %v5107_v47 = vor.u32 %v7234_v42, %v5106_v41  ;;  %3169 = vmatpush.bf16.msra.mxu0 %v4851_v45 }
  0x13   :  { %v4834_v48 = vld [vmem:[%s11732_s1 + $0x60] sm:$0xf]  ;;  %v7166_v49 = vld [vmem:[%s11732_s1 + $0x6c] sm:$0xf0]  ;;  %v5235_v51 = vor.u32 %v7266_v44, %v5234_v43  ;;  %3183 = vmatpush.bf16.msra.mxu1 %v4979_v46 }
  0x14   :  { %v4962_v50 = vld [vmem:[%s11732_s1 + $0x160] sm:$0xf]  ;;  %v7198_v52 = vld [vmem:[%s11732_s1 + $0x16c] sm:$0xf0]  ;;  %v4835_v57 = vor.u32 %v7166_v49, %v4834_v48  ;;  %3197 = vmatpush.bf16.msra.mxu2 %v5107_v47 }
  0x15   :  { %v5090_v53 = vld [vmem:[%s11732_s1 + $0x260] sm:$0xf]  ;;  %v7230_v54 = vld [vmem:[%s11732_s1 + $0x26c] sm:$0xf0]  ;;  %v4963_v58 = vor.u32 %v7198_v52, %v4962_v50  ;;  %3211 = vmatpush.bf16.msra.mxu3 %v5235_v51 }
  0x16   :  { %v5218_v55 = vld [vmem:[%s11732_s1 + $0x360] sm:$0xf]  ;;  %v7262_v56 = vld [vmem:[%s11732_s1 + $0x36c] sm:$0xf0]  ;;  %v5091_v59 = vor.u32 %v7230_v54, %v5090_v53  ;;  %3170 = vmatpush.bf16.msra.mxu0 %v4835_v57 }
  0x17   :  { %v4818_v60 = vld [vmem:[%s11732_s1 + $0x40] sm:$0xf]  ;;  %v7162_v61 = vld [vmem:[%s11732_s1 + $0x4c] sm:$0xf0]  ;;  %v5219_v63 = vor.u32 %v7262_v56, %v5218_v55  ;;  %3184 = vmatpush.bf16.msra.mxu1 %v4963_v58 }
  0x18   :  { %v4946_v62 = vld [vmem:[%s11732_s1 + $0x140] sm:$0xf]  ;;  %v7194_v0 = vld [vmem:[%s11732_s1 + $0x14c] sm:$0xf0]  ;;  %v4819_v5 = vor.u32 %v7162_v61, %v4818_v60  ;;  %3198 = vmatpush.bf16.msra.mxu2 %v5091_v59 }
  0x19   :  { %v5074_v1 = vld [vmem:[%s11732_s1 + $0x240] sm:$0xf]  ;;  %v7226_v2 = vld [vmem:[%s11732_s1 + $0x24c] sm:$0xf0]  ;;  %v4947_v6 = vor.u32 %v7194_v0, %v4946_v62  ;;  %3212 = vmatpush.bf16.msra.mxu3 %v5219_v63 }
  0x1a   :  { %v5202_v3 = vld [vmem:[%s11732_s1 + $0x340] sm:$0xf]  ;;  %v7258_v4 = vld [vmem:[%s11732_s1 + $0x34c] sm:$0xf0]  ;;  %v5075_v7 = vor.u32 %v7226_v2, %v5074_v1  ;;  %3171 = vmatpush.bf16.msra.mxu0 %v4819_v5 }
  0x1b   :  { %v4802_v8 = vld [vmem:[%s11732_s1 + $0x20] sm:$0xf]  ;;  %v7158_v9 = vld [vmem:[%s11732_s1 + $0x2c] sm:$0xf0]  ;;  %v5203_v11 = vor.u32 %v7258_v4, %v5202_v3  ;;  %3185 = vmatpush.bf16.msra.mxu1 %v4947_v6 }
  0x1c   :  { %v4930_v10 = vld [vmem:[%s11732_s1 + $0x120] sm:$0xf]  ;;  %v7190_v12 = vld [vmem:[%s11732_s1 + $0x12c] sm:$0xf0]  ;;  %v4803_v17 = vor.u32 %v7158_v9, %v4802_v8  ;;  %3199 = vmatpush.bf16.msra.mxu2 %v5075_v7  ;;  %v37_v7 = vld [vmem:[%s11731_s0 + $0x8] sm:$0xff] }
  0x1d   :  { %v5058_v13 = vld [vmem:[%s11732_s1 + $0x220] sm:$0xf]  ;;  %v7222_v14 = vld [vmem:[%s11732_s1 + $0x22c] sm:$0xf0]  ;;  %v4931_v20 = vor.u32 %v7190_v12, %v4930_v10  ;;  %3213 = vmatpush.bf16.msra.mxu3 %v5203_v11  ;;  %v53_v8 = vld [vmem:[%s11731_s0 + $0x88] sm:$0xff] }
  0x1e   :  { %v5186_v15 = vld [vmem:[%s11732_s1 + $0x320] sm:$0xf]  ;;  %v7254_v16 = vld [vmem:[%s11732_s1 + $0x32c] sm:$0xf0]  ;;  %v5059_v21 = vor.u32 %v7222_v14, %v5058_v13  ;;  %3172 = vmatpush.bf16.msra.mxu0 %v4803_v17  ;;  %v39_v9 = vld [vmem:[%s11731_s0 + $0x18] sm:$0xff]  ;;  %v8122_v11 = vpack.c.bf16 %v53_v8, %v37_v7 }
  0x1f   :  { %v4786_v18 = vld [vmem:[%s11732_s1] sm:$0xf]  ;;  %v7154_v19 = vld [vmem:[%s11732_s1 + $0xc] sm:$0xf0]  ;;  %v5187_v25 = vor.u32 %v7254_v16, %v5186_v15  ;;  %3186 = vmatpush.bf16.msra.mxu1 %v4931_v20  ;;  %v55_v12 = vld [vmem:[%s11731_s0 + $0x98] sm:$0xff] }
  0x20   :  { %v4914_v22 = vld [vmem:[%s11732_s1 + $0x100] sm:$0xf]  ;;  %v7186_v23 = vld [vmem:[%s11732_s1 + $0x10c] sm:$0xf0]  ;;  %v4787_v32 = vor.u32 %v7154_v19, %v4786_v18  ;;  %3200 = vmatpush.bf16.msra.mxu2 %v5059_v21  ;;  %v8136_v18 = vpack.c.bf16 %v55_v12, %v39_v9 }
  0x21   :  { %v5042_v24 = vld [vmem:[%s11732_s1 + $0x200] sm:$0xf]  ;;  %v7218_v26 = vld [vmem:[%s11732_s1 + $0x20c] sm:$0xf0]  ;;  %v4915_v36 = vor.u32 %v7186_v23, %v4914_v22  ;;  %3214 = vmatpush.bf16.msra.mxu3 %v5187_v25 }
  0x22   :  { %v5170_v27 = vld [vmem:[%s11732_s1 + $0x300] sm:$0xf]  ;;  %v7250_v28 = vld [vmem:[%s11732_s1 + $0x30c] sm:$0xf0]  ;;  %v5043_v37 = vor.u32 %v7218_v26, %v5042_v24  ;;  %3173 = vmatpush.bf16.msra.mxu0 %v4787_v32 }
  0x23   :  { %v5410_v29 = vld [vmem:[%s11732_s1 + $0x4e0] sm:$0xf]  ;;  %v7310_v30 = vld [vmem:[%s11732_s1 + $0x4ec] sm:$0xf0]  ;;  %v5171_v40 = vor.u32 %v7250_v28, %v5170_v27  ;;  %3187 = vmatpush.bf16.msra.mxu1 %v4915_v36 }
  0x24   :  { %v5538_v31 = vld [vmem:[%s11732_s1 + $0x5e0] sm:$0xf]  ;;  %v7342_v33 = vld [vmem:[%s11732_s1 + $0x5ec] sm:$0xf0]  ;;  %v5411_v41 = vor.u32 %v7310_v30, %v5410_v29  ;;  %3201 = vmatpush.bf16.msra.mxu2 %v5043_v37 }
  0x25   :  { %v5666_v34 = vld [vmem:[%s11732_s1 + $0x6e0] sm:$0xf]  ;;  %v7374_v35 = vld [vmem:[%s11732_s1 + $0x6ec] sm:$0xf0]  ;;  %v5539_v44 = vor.u32 %v7342_v33, %v5538_v31  ;;  %3215 = vmatpush.bf16.msra.mxu3 %v5171_v40 }
  0x26   :  { %v5794_v38 = vld [vmem:[%s11732_s1 + $0x7e0] sm:$0xf]  ;;  %v7406_v39 = vld [vmem:[%s11732_s1 + $0x7ec] sm:$0xf0]  ;;  %v5667_v45 = vor.u32 %v7374_v35, %v5666_v34  ;;  %3222 = vmatpush.bf16.msrb.mxu0 %v5411_v41  ;;  %3188 = vmatmul.bf16.vlgmr.msra.gmra.mxu1 %v8122_v11 }
  0x27   :  { %v5394_v42 = vld [vmem:[%s11732_s1 + $0x4c0] sm:$0xf]  ;;  %v7306_v43 = vld [vmem:[%s11732_s1 + $0x4cc] sm:$0xf0]  ;;  %v5795_v49 = vor.u32 %v7406_v39, %v5794_v38  ;;  %3236 = vmatpush.bf16.msrb.mxu1 %v5539_v44 }
  0x28   :  { %v5522_v46 = vld [vmem:[%s11732_s1 + $0x5c0] sm:$0xf]  ;;  %v7338_v47 = vld [vmem:[%s11732_s1 + $0x5cc] sm:$0xf0]  ;;  %v5395_v56 = vor.u32 %v7306_v43, %v5394_v42  ;;  %3250 = vmatpush.bf16.msrb.mxu2 %v5667_v45  ;;  %3216 = vmatmul.bf16.vlgmr.msra.gmra.mxu3 %v8136_v18 }
  0x29   :  { %v5650_v48 = vld [vmem:[%s11732_s1 + $0x6c0] sm:$0xf]  ;;  %v7370_v50 = vld [vmem:[%s11732_s1 + $0x6cc] sm:$0xf0]  ;;  %v5523_v61 = vor.u32 %v7338_v47, %v5522_v46  ;;  %3264 = vmatpush.bf16.msrb.mxu3 %v5795_v49 }
  0x2a   :  { %v5778_v51 = vld [vmem:[%s11732_s1 + $0x7c0] sm:$0xf]  ;;  %v7402_v52 = vld [vmem:[%s11732_s1 + $0x7cc] sm:$0xf0]  ;;  %v5651_v62 = vor.u32 %v7370_v50, %v5650_v48  ;;  %3223 = vmatpush.bf16.msrb.mxu0 %v5395_v56 }
  0x2b   :  { %v36_v53 = vld [vmem:[%s11731_s0] sm:$0xff]  ;;  %v38_v55 = vld [vmem:[%s11731_s0 + $0x10] sm:$0xff]  ;;  %v5779_v3 = vor.u32 %v7402_v52, %v5778_v51  ;;  %3237 = vmatpush.bf16.msrb.mxu1 %v5523_v61 }
  0x2c   :  { %v52_v54 = vld [vmem:[%s11731_s0 + $0x80] sm:$0xff]  ;;  %v7302_v58 = vld [vmem:[%s11732_s1 + $0x4ac] sm:$0xf0]  ;;  %3251 = vmatpush.bf16.msrb.mxu2 %v5651_v62 }
  0x2d   :  { %v5378_v57 = vld [vmem:[%s11732_s1 + $0x4a0] sm:$0xf]  ;;  %v8086_v59 = vpack.c.bf16 %v52_v54, %v36_v53  ;;  %v54_v60 = vld [vmem:[%s11731_s0 + $0x90] sm:$0xff]  ;;  %3265 = vmatpush.bf16.msrb.mxu3 %v5779_v3 }
  0x2e   :  { %v5506_v63 = vld [vmem:[%s11732_s1 + $0x5a0] sm:$0xf]  ;;  %v7334_v0 = vld [vmem:[%s11732_s1 + $0x5ac] sm:$0xf0]  ;;  %v8100_v2 = vpack.c.bf16 %v54_v60, %v38_v55  ;;  %v5379_v10 = vor.u32 %v7302_v58, %v5378_v57 }
  0x2f   :  { %v5634_v1 = vld [vmem:[%s11732_s1 + $0x6a0] sm:$0xf]  ;;  %v7366_v4 = vld [vmem:[%s11732_s1 + $0x6ac] sm:$0xf0]  ;;  %3174 = vmatmul.bf16.vlgmr.msra.gmra.mxu0 %v8086_v59  ;;  %v5507_v13 = vor.u32 %v7334_v0, %v5506_v63 }
  0x30   :  { %v5762_v5 = vld [vmem:[%s11732_s1 + $0x7a0] sm:$0xf]  ;;  %v7398_v6 = vld [vmem:[%s11732_s1 + $0x7ac] sm:$0xf0]  ;;  %3202 = vmatmul.bf16.vlgmr.msra.gmra.mxu2 %v8100_v2  ;;  %v5635_v14 = vor.u32 %v7366_v4, %v5634_v1  ;;  %3224 = vmatpush.bf16.msrb.mxu0 %v5379_v10 }
  0x31   :  { %v5362_v15 = vld [vmem:[%s11732_s1 + $0x480] sm:$0xf]  ;;  %v7298_v16 = vld [vmem:[%s11732_s1 + $0x48c] sm:$0xf0]  ;;  %v5763_v19 = vor.u32 %v7398_v6, %v5762_v5  ;;  %3238 = vmatpush.bf16.msrb.mxu1 %v5507_v13 }
  0x32   :  { %v5490_v17 = vld [vmem:[%s11732_s1 + $0x580] sm:$0xf]  ;;  %v7330_v20 = vld [vmem:[%s11732_s1 + $0x58c] sm:$0xf0]  ;;  %v5363_v25 = vor.u32 %v7298_v16, %v5362_v15  ;;  %3252 = vmatpush.bf16.msrb.mxu2 %v5635_v14 }
  0x33   :  { %v5618_v21 = vld [vmem:[%s11732_s1 + $0x680] sm:$0xf]  ;;  %v7362_v22 = vld [vmem:[%s11732_s1 + $0x68c] sm:$0xf0]  ;;  %v5491_v26 = vor.u32 %v7330_v20, %v5490_v17  ;;  %3266 = vmatpush.bf16.msrb.mxu3 %v5763_v19 }
  0x34   :  { %v5746_v23 = vld [vmem:[%s11732_s1 + $0x780] sm:$0xf]  ;;  %v7394_v24 = vld [vmem:[%s11732_s1 + $0x78c] sm:$0xf0]  ;;  %v5619_v27 = vor.u32 %v7362_v22, %v5618_v21  ;;  %3225 = vmatpush.bf16.msrb.mxu0 %v5363_v25 }
  0x35   :  { %v5346_v28 = vld [vmem:[%s11732_s1 + $0x460] sm:$0xf]  ;;  %v7294_v29 = vld [vmem:[%s11732_s1 + $0x46c] sm:$0xf0]  ;;  %v5747_v31 = vor.u32 %v7394_v24, %v5746_v23  ;;  %3239 = vmatpush.bf16.msrb.mxu1 %v5491_v26 }
  0x36   :  { %v5474_v30 = vld [vmem:[%s11732_s1 + $0x560] sm:$0xf]  ;;  %v7326_v32 = vld [vmem:[%s11732_s1 + $0x56c] sm:$0xf0]  ;;  %v5347_v37 = vor.u32 %v7294_v29, %v5346_v28  ;;  %3253 = vmatpush.bf16.msrb.mxu2 %v5619_v27  ;;  %v41_v28 = vld [vmem:[%s11731_s0 + $0x28] sm:$0xff] }
  0x37   :  { %v5602_v33 = vld [vmem:[%s11732_s1 + $0x660] sm:$0xf]  ;;  %v7358_v34 = vld [vmem:[%s11732_s1 + $0x66c] sm:$0xf0]  ;;  %v5475_v38 = vor.u32 %v7326_v32, %v5474_v30  ;;  %3267 = vmatpush.bf16.msrb.mxu3 %v5747_v31  ;;  %v57_v31 = vld [vmem:[%s11731_s0 + $0xa8] sm:$0xff] }
  0x38   :  { %v5730_v35 = vld [vmem:[%s11732_s1 + $0x760] sm:$0xf]  ;;  %v7390_v36 = vld [vmem:[%s11732_s1 + $0x76c] sm:$0xf0]  ;;  %v5603_v39 = vor.u32 %v7358_v34, %v5602_v33  ;;  %3226 = vmatpush.bf16.msrb.mxu0 %v5347_v37  ;;  %v43_v32 = vld [vmem:[%s11731_s0 + $0x38] sm:$0xff] }
  0x39   :  { %v5330_v40 = vld [vmem:[%s11732_s1 + $0x440] sm:$0xf]  ;;  %v7290_v41 = vld [vmem:[%s11732_s1 + $0x44c] sm:$0xf0]  ;;  %v5731_v43 = vor.u32 %v7390_v36, %v5730_v35  ;;  %3240 = vmatpush.bf16.msrb.mxu1 %v5475_v38  ;;  %v59_v33 = vld [vmem:[%s11731_s0 + $0xb8] sm:$0xff] }
  0x3a   :  { %v5458_v42 = vld [vmem:[%s11732_s1 + $0x540] sm:$0xf]  ;;  %v7322_v44 = vld [vmem:[%s11732_s1 + $0x54c] sm:$0xf0]  ;;  %v5331_v49 = vor.u32 %v7290_v41, %v5330_v40  ;;  %3254 = vmatpush.bf16.msrb.mxu2 %v5603_v39 }
  0x3b   :  { %v5586_v45 = vld [vmem:[%s11732_s1 + $0x640] sm:$0xf]  ;;  %v7354_v46 = vld [vmem:[%s11732_s1 + $0x64c] sm:$0xf0]  ;;  %v5459_v51 = vor.u32 %v7322_v44, %v5458_v42  ;;  %3268 = vmatpush.bf16.msrb.mxu3 %v5731_v43 }
  0x3c   :  { %v5714_v47 = vld [vmem:[%s11732_s1 + $0x740] sm:$0xf]  ;;  %v7386_v48 = vld [vmem:[%s11732_s1 + $0x74c] sm:$0xf0]  ;;  %v5587_v52 = vor.u32 %v7354_v46, %v5586_v45  ;;  %3227 = vmatpush.bf16.msrb.mxu0 %v5331_v49  ;;  %v8321_v45 = vpack.c.bf16 %v57_v31, %v41_v28 }
  0x3d   :  { %v5314_v50 = vld [vmem:[%s11732_s1 + $0x420] sm:$0xf]  ;;  %v7286_v53 = vld [vmem:[%s11732_s1 + $0x42c] sm:$0xf0]  ;;  %v5715_v56 = vor.u32 %v7386_v48, %v5714_v47  ;;  %3241 = vmatpush.bf16.msrb.mxu1 %v5459_v51  ;;  %v8329_v48 = vpack.c.bf16 %v59_v33, %v43_v32 }
  0x3e   :  { %v5442_v54 = vld [vmem:[%s11732_s1 + $0x520] sm:$0xf]  ;;  %v7318_v55 = vld [vmem:[%s11732_s1 + $0x52c] sm:$0xf0]  ;;  %v5315_v0 = vor.u32 %v7286_v53, %v5314_v50  ;;  %3255 = vmatpush.bf16.msrb.mxu2 %v5587_v52 }
  0x3f   :  { %v5570_v57 = vld [vmem:[%s11732_s1 + $0x620] sm:$0xf]  ;;  %v7350_v58 = vld [vmem:[%s11732_s1 + $0x62c] sm:$0xf0]  ;;  %v5443_v6 = vor.u32 %v7318_v55, %v5442_v54  ;;  %3269 = vmatpush.bf16.msrb.mxu3 %v5715_v56 }
  0x40   :  { %v5698_v60 = vld [vmem:[%s11732_s1 + $0x720] sm:$0xf]  ;;  %v7382_v61 = vld [vmem:[%s11732_s1 + $0x72c] sm:$0xf0]  ;;  %v5571_v7 = vor.u32 %v7350_v58, %v5570_v57  ;;  %3228 = vmatpush.bf16.msrb.mxu0 %v5315_v0 }
  0x41   :  { %v5298_v62 = vld [vmem:[%s11732_s1 + $0x400] sm:$0xf]  ;;  %v7282_v63 = vld [vmem:[%s11732_s1 + $0x40c] sm:$0xf0]  ;;  %v5699_v12 = vor.u32 %v7382_v61, %v5698_v60  ;;  %3242 = vmatpush.bf16.msrb.mxu1 %v5443_v6 }
  0x42   :  { %v5426_v1 = vld [vmem:[%s11732_s1 + $0x500] sm:$0xf]  ;;  %v7314_v3 = vld [vmem:[%s11732_s1 + $0x50c] sm:$0xf0]  ;;  %v5299_v20 = vor.u32 %v7282_v63, %v5298_v62  ;;  %3256 = vmatpush.bf16.msrb.mxu2 %v5571_v7 }
  0x43   :  { %v5554_v4 = vld [vmem:[%s11732_s1 + $0x600] sm:$0xf]  ;;  %v7346_v5 = vld [vmem:[%s11732_s1 + $0x60c] sm:$0xf0]  ;;  %v5427_v24 = vor.u32 %v7314_v3, %v5426_v1  ;;  %3270 = vmatpush.bf16.msrb.mxu3 %v5699_v12 }
  0x44   :  { %v5682_v8 = vld [vmem:[%s11732_s1 + $0x700] sm:$0xf]  ;;  %v7378_v9 = vld [vmem:[%s11732_s1 + $0x70c] sm:$0xf0]  ;;  %v5555_v25 = vor.u32 %v7346_v5, %v5554_v4  ;;  %3229 = vmatpush.bf16.msrb.mxu0 %v5299_v20 }
  0x45   :  { %v5922_v10 = vld [vmem:[%s11732_s1 + $0x8e0] sm:$0xf]  ;;  %v7438_v13 = vld [vmem:[%s11732_s1 + $0x8ec] sm:$0xf0]  ;;  %v5683_v29 = vor.u32 %v7378_v9, %v5682_v8  ;;  %3243 = vmatpush.bf16.msrb.mxu1 %v5427_v24 }
  0x46   :  { %v6050_v14 = vld [vmem:[%s11732_s1 + $0x9e0] sm:$0xf]  ;;  %v7470_v15 = vld [vmem:[%s11732_s1 + $0x9ec] sm:$0xf0]  ;;  %v5923_v30 = vor.u32 %v7438_v13, %v5922_v10  ;;  %3257 = vmatpush.bf16.msrb.mxu2 %v5555_v25 }
  0x47   :  { %v6178_v16 = vld [vmem:[%s11732_s1 + $0xae0] sm:$0xf]  ;;  %v7502_v17 = vld [vmem:[%s11732_s1 + $0xaec] sm:$0xf0]  ;;  %v6051_v34 = vor.u32 %v7470_v15, %v6050_v14  ;;  %3271 = vmatpush.bf16.msrb.mxu3 %v5683_v29 }
  0x48   :  { %v6306_v19 = vld [vmem:[%s11732_s1 + $0xbe0] sm:$0xf]  ;;  %v7534_v21 = vld [vmem:[%s11732_s1 + $0xbec] sm:$0xf0]  ;;  %v6179_v35 = vor.u32 %v7502_v17, %v6178_v16  ;;  %3278 = vmatpush.bf16.msra.mxu0 %v5923_v30  ;;  %3244 = vmatmul.bf16.vlgmr.msrb.gmra.mxu1 %v8321_v45 }
  0x49   :  { %v40_v22 = vld [vmem:[%s11731_s0 + $0x20] sm:$0xff]  ;;  %v42_v26 = vld [vmem:[%s11731_s0 + $0x30] sm:$0xff]  ;;  %v6307_v39 = vor.u32 %v7534_v21, %v6306_v19  ;;  %3292 = vmatpush.bf16.msra.mxu1 %v6051_v34 }
  0x4a   :  { %v56_v23 = vld [vmem:[%s11731_s0 + $0xa0] sm:$0xff]  ;;  %v58_v27 = vld [vmem:[%s11731_s0 + $0xb0] sm:$0xff]  ;;  %3306 = vmatpush.bf16.msra.mxu2 %v6179_v35  ;;  %3272 = vmatmul.bf16.vlgmr.msrb.gmra.mxu3 %v8329_v48 }
  0x4b   :  { %v5906_v36 = vld [vmem:[%s11732_s1 + $0x8c0] sm:$0xf]  ;;  %v7434_v37 = vld [vmem:[%s11732_s1 + $0x8cc] sm:$0xf0]  ;;  %v8308_v40 = vpack.c.bf16 %v56_v23, %v40_v22  ;;  %v8319_v44 = vpack.c.bf16 %v58_v27, %v42_v26  ;;  %3320 = vmatpush.bf16.msra.mxu3 %v6307_v39 }
  0x4c   :  { %v6034_v38 = vld [vmem:[%s11732_s1 + $0x9c0] sm:$0xf]  ;;  %v7466_v41 = vld [vmem:[%s11732_s1 + $0x9cc] sm:$0xf0]  ;;  %v5907_v49 = vor.u32 %v7434_v37, %v5906_v36 }
  0x4d   :  { %v6162_v42 = vld [vmem:[%s11732_s1 + $0xac0] sm:$0xf]  ;;  %v7498_v43 = vld [vmem:[%s11732_s1 + $0xacc] sm:$0xf0]  ;;  %v6035_v50 = vor.u32 %v7466_v41, %v6034_v38  ;;  %3230 = vmatmul.bf16.vlgmr.msrb.gmra.mxu0 %v8308_v40  ;;  %3258 = vmatmul.bf16.vlgmr.msrb.gmra.mxu2 %v8319_v44 }
  0x4e   :  { %v6290_v46 = vld [vmem:[%s11732_s1 + $0xbc0] sm:$0xf]  ;;  %v7530_v47 = vld [vmem:[%s11732_s1 + $0xbcc] sm:$0xf0]  ;;  %v6163_v51 = vor.u32 %v7498_v43, %v6162_v42  ;;  %3279 = vmatpush.bf16.msra.mxu0 %v5907_v49 }
  0x4f   :  { %v5890_v52 = vld [vmem:[%s11732_s1 + $0x8a0] sm:$0xf]  ;;  %v7430_v53 = vld [vmem:[%s11732_s1 + $0x8ac] sm:$0xf0]  ;;  %v6291_v55 = vor.u32 %v7530_v47, %v6290_v46  ;;  %3293 = vmatpush.bf16.msra.mxu1 %v6035_v50 }
  0x50   :  { %v6018_v54 = vld [vmem:[%s11732_s1 + $0x9a0] sm:$0xf]  ;;  %v7462_v56 = vld [vmem:[%s11732_s1 + $0x9ac] sm:$0xf0]  ;;  %v5891_v62 = vor.u32 %v7430_v53, %v5890_v52  ;;  %3307 = vmatpush.bf16.msra.mxu2 %v6163_v51 }
  0x51   :  { %v6146_v57 = vld [vmem:[%s11732_s1 + $0xaa0] sm:$0xf]  ;;  %v7494_v58 = vld [vmem:[%s11732_s1 + $0xaac] sm:$0xf0]  ;;  %v6019_v63 = vor.u32 %v7462_v56, %v6018_v54  ;;  %3321 = vmatpush.bf16.msra.mxu3 %v6291_v55 }
  0x52   :  { %v6274_v60 = vld [vmem:[%s11732_s1 + $0xba0] sm:$0xf]  ;;  %v7526_v61 = vld [vmem:[%s11732_s1 + $0xbac] sm:$0xf0]  ;;  %v6147_v0 = vor.u32 %v7494_v58, %v6146_v57  ;;  %3280 = vmatpush.bf16.msra.mxu0 %v5891_v62 }
  0x53   :  { %v5874_v1 = vld [vmem:[%s11732_s1 + $0x880] sm:$0xf]  ;;  %v7426_v3 = vld [vmem:[%s11732_s1 + $0x88c] sm:$0xf0]  ;;  %v6275_v5 = vor.u32 %v7526_v61, %v6274_v60  ;;  %3294 = vmatpush.bf16.msra.mxu1 %v6019_v63 }
  0x54   :  { %v6002_v4 = vld [vmem:[%s11732_s1 + $0x980] sm:$0xf]  ;;  %v7458_v6 = vld [vmem:[%s11732_s1 + $0x98c] sm:$0xf0]  ;;  %v5875_v12 = vor.u32 %v7426_v3, %v5874_v1  ;;  %3308 = vmatpush.bf16.msra.mxu2 %v6147_v0 }
  0x55   :  { %v6130_v7 = vld [vmem:[%s11732_s1 + $0xa80] sm:$0xf]  ;;  %v7490_v8 = vld [vmem:[%s11732_s1 + $0xa8c] sm:$0xf0]  ;;  %v6003_v13 = vor.u32 %v7458_v6, %v6002_v4  ;;  %3322 = vmatpush.bf16.msra.mxu3 %v6275_v5 }
  0x56   :  { %v6258_v9 = vld [vmem:[%s11732_s1 + $0xb80] sm:$0xf]  ;;  %v7522_v10 = vld [vmem:[%s11732_s1 + $0xb8c] sm:$0xf0]  ;;  %v6131_v14 = vor.u32 %v7490_v8, %v6130_v7  ;;  %3281 = vmatpush.bf16.msra.mxu0 %v5875_v12 }
  0x57   :  { %v5858_v15 = vld [vmem:[%s11732_s1 + $0x860] sm:$0xf]  ;;  %v7422_v16 = vld [vmem:[%s11732_s1 + $0x86c] sm:$0xf0]  ;;  %v6259_v19 = vor.u32 %v7522_v10, %v6258_v9  ;;  %3295 = vmatpush.bf16.msra.mxu1 %v6003_v13 }
  0x58   :  { %v5986_v17 = vld [vmem:[%s11732_s1 + $0x960] sm:$0xf]  ;;  %v7454_v20 = vld [vmem:[%s11732_s1 + $0x96c] sm:$0xf0]  ;;  %v5859_v25 = vor.u32 %v7422_v16, %v5858_v15  ;;  %3309 = vmatpush.bf16.msra.mxu2 %v6131_v14 }
  0x59   :  { %v6114_v21 = vld [vmem:[%s11732_s1 + $0xa60] sm:$0xf]  ;;  %v7486_v22 = vld [vmem:[%s11732_s1 + $0xa6c] sm:$0xf0]  ;;  %v5987_v26 = vor.u32 %v7454_v20, %v5986_v17  ;;  %3323 = vmatpush.bf16.msra.mxu3 %v6259_v19  ;;  %v45_v20 = vld [vmem:[%s11731_s0 + $0x48] sm:$0xff] }
  0x5a   :  { %v6242_v23 = vld [vmem:[%s11732_s1 + $0xb60] sm:$0xf]  ;;  %v7518_v24 = vld [vmem:[%s11732_s1 + $0xb6c] sm:$0xf0]  ;;  %v6115_v27 = vor.u32 %v7486_v22, %v6114_v21  ;;  %3282 = vmatpush.bf16.msra.mxu0 %v5859_v25  ;;  %v63_v25 = vld [vmem:[%s11731_s0 + $0xd8] sm:$0xff] }
  0x5b   :  { %v5842_v28 = vld [vmem:[%s11732_s1 + $0x840] sm:$0xf]  ;;  %v7418_v29 = vld [vmem:[%s11732_s1 + $0x84c] sm:$0xf0]  ;;  %v6243_v31 = vor.u32 %v7518_v24, %v6242_v23  ;;  %3296 = vmatpush.bf16.msra.mxu1 %v5987_v26  ;;  %v61_v23 = vld [vmem:[%s11731_s0 + $0xc8] sm:$0xff] }
  0x5c   :  { %v5970_v30 = vld [vmem:[%s11732_s1 + $0x940] sm:$0xf]  ;;  %v7450_v32 = vld [vmem:[%s11732_s1 + $0x94c] sm:$0xf0]  ;;  %v5843_v37 = vor.u32 %v7418_v29, %v5842_v28  ;;  %3310 = vmatpush.bf16.msra.mxu2 %v6115_v27  ;;  %v47_v24 = vld [vmem:[%s11731_s0 + $0x58] sm:$0xff] }
  0x5d   :  { %v6098_v33 = vld [vmem:[%s11732_s1 + $0xa40] sm:$0xf]  ;;  %v7482_v34 = vld [vmem:[%s11732_s1 + $0xa4c] sm:$0xf0]  ;;  %v5971_v39 = vor.u32 %v7450_v32, %v5970_v30  ;;  %3324 = vmatpush.bf16.msra.mxu3 %v6243_v31 }
  0x5e   :  { %v6226_v35 = vld [vmem:[%s11732_s1 + $0xb40] sm:$0xf]  ;;  %v7514_v36 = vld [vmem:[%s11732_s1 + $0xb4c] sm:$0xf0]  ;;  %v6099_v41 = vor.u32 %v7482_v34, %v6098_v33  ;;  %3283 = vmatpush.bf16.msra.mxu0 %v5843_v37  ;;  %v8549_v37 = vpack.c.bf16 %v61_v23, %v45_v20 }
  0x5f   :  { %v5826_v38 = vld [vmem:[%s11732_s1 + $0x820] sm:$0xf]  ;;  %v7414_v42 = vld [vmem:[%s11732_s1 + $0x82c] sm:$0xf0]  ;;  %v6227_v47 = vor.u32 %v7514_v36, %v6226_v35  ;;  %3297 = vmatpush.bf16.msra.mxu1 %v5971_v39 }
  0x60   :  { %v5954_v43 = vld [vmem:[%s11732_s1 + $0x920] sm:$0xf]  ;;  %v7446_v46 = vld [vmem:[%s11732_s1 + $0x92c] sm:$0xf0]  ;;  %v5827_v55 = vor.u32 %v7414_v42, %v5826_v38  ;;  %3311 = vmatpush.bf16.msra.mxu2 %v6099_v41  ;;  %v8557_v41 = vpack.c.bf16 %v63_v25, %v47_v24 }
  0x61   :  { %v6082_v49 = vld [vmem:[%s11732_s1 + $0xa20] sm:$0xf]  ;;  %v7478_v50 = vld [vmem:[%s11732_s1 + $0xa2c] sm:$0xf0]  ;;  %v5955_v61 = vor.u32 %v7446_v46, %v5954_v43  ;;  %3325 = vmatpush.bf16.msra.mxu3 %v6227_v47 }
  0x62   :  { %v6210_v51 = vld [vmem:[%s11732_s1 + $0xb20] sm:$0xf]  ;;  %v7510_v52 = vld [vmem:[%s11732_s1 + $0xb2c] sm:$0xf0]  ;;  %v6083_v62 = vor.u32 %v7478_v50, %v6082_v49  ;;  %3284 = vmatpush.bf16.msra.mxu0 %v5827_v55 }
  0x63   :  { %v5810_v53 = vld [vmem:[%s11732_s1 + $0x800] sm:$0xf]  ;;  %v7410_v54 = vld [vmem:[%s11732_s1 + $0x80c] sm:$0xf0]  ;;  %v6211_v3 = vor.u32 %v7510_v52, %v6210_v51  ;;  %3298 = vmatpush.bf16.msra.mxu1 %v5955_v61 }
  0x64   :  { %v5938_v56 = vld [vmem:[%s11732_s1 + $0x900] sm:$0xf]  ;;  %v7442_v57 = vld [vmem:[%s11732_s1 + $0x90c] sm:$0xf0]  ;;  %v5811_v10 = vor.u32 %v7410_v54, %v5810_v53  ;;  %3312 = vmatpush.bf16.msra.mxu2 %v6083_v62 }
  0x65   :  { %v6066_v58 = vld [vmem:[%s11732_s1 + $0xa00] sm:$0xf]  ;;  %v7474_v60 = vld [vmem:[%s11732_s1 + $0xa0c] sm:$0xf0]  ;;  %v5939_v15 = vor.u32 %v7442_v57, %v5938_v56  ;;  %3326 = vmatpush.bf16.msra.mxu3 %v6211_v3 }
  0x66   :  { %v6194_v63 = vld [vmem:[%s11732_s1 + $0xb00] sm:$0xf]  ;;  %v7506_v0 = vld [vmem:[%s11732_s1 + $0xb0c] sm:$0xf0]  ;;  %v6067_v16 = vor.u32 %v7474_v60, %v6066_v58  ;;  %3285 = vmatpush.bf16.msra.mxu0 %v5811_v10 }
  0x67   :  { %v6434_v1 = vld [vmem:[%s11732_s1 + $0xce0] sm:$0xf]  ;;  %v7566_v4 = vld [vmem:[%s11732_s1 + $0xcec] sm:$0xf0]  ;;  %v6195_v21 = vor.u32 %v7506_v0, %v6194_v63  ;;  %3299 = vmatpush.bf16.msra.mxu1 %v5939_v15 }
  0x68   :  { %v6562_v5 = vld [vmem:[%s11732_s1 + $0xde0] sm:$0xf]  ;;  %v7598_v6 = vld [vmem:[%s11732_s1 + $0xdec] sm:$0xf0]  ;;  %v6435_v22 = vor.u32 %v7566_v4, %v6434_v1  ;;  %3313 = vmatpush.bf16.msra.mxu2 %v6067_v16 }
  0x69   :  { %v6690_v7 = vld [vmem:[%s11732_s1 + $0xee0] sm:$0xf]  ;;  %v7630_v8 = vld [vmem:[%s11732_s1 + $0xeec] sm:$0xf0]  ;;  %v6563_v26 = vor.u32 %v7598_v6, %v6562_v5  ;;  %3327 = vmatpush.bf16.msra.mxu3 %v6195_v21 }
  0x6a   :  { %v6818_v9 = vld [vmem:[%s11732_s1 + $0xfe0] sm:$0xf]  ;;  %v7662_v12 = vld [vmem:[%s11732_s1 + $0xfec] sm:$0xf0]  ;;  %v6691_v27 = vor.u32 %v7630_v8, %v6690_v7  ;;  %3334 = vmatpush.bf16.msrb.mxu0 %v6435_v22  ;;  %3300 = vmatmul.bf16.vlgmr.msra.gmra.mxu1 %v8549_v37 }
  0x6b   :  { %v44_v13 = vld [vmem:[%s11731_s0 + $0x40] sm:$0xff]  ;;  %v46_v17 = vld [vmem:[%s11731_s0 + $0x50] sm:$0xff]  ;;  %v6819_v31 = vor.u32 %v7662_v12, %v6818_v9  ;;  %3348 = vmatpush.bf16.msrb.mxu1 %v6563_v26 }
  0x6c   :  { %v60_v14 = vld [vmem:[%s11731_s0 + $0xc0] sm:$0xff]  ;;  %v62_v19 = vld [vmem:[%s11731_s0 + $0xd0] sm:$0xff]  ;;  %3362 = vmatpush.bf16.msrb.mxu2 %v6691_v27  ;;  %3328 = vmatmul.bf16.vlgmr.msra.gmra.mxu3 %v8557_v41 }
  0x6d   :  { %v6418_v28 = vld [vmem:[%s11732_s1 + $0xcc0] sm:$0xf]  ;;  %v7562_v29 = vld [vmem:[%s11732_s1 + $0xccc] sm:$0xf0]  ;;  %v8536_v32 = vpack.c.bf16 %v60_v14, %v44_v13  ;;  %v8547_v36 = vpack.c.bf16 %v62_v19, %v46_v17  ;;  %3376 = vmatpush.bf16.msrb.mxu3 %v6819_v31 }
  0x6e   :  { %v6546_v30 = vld [vmem:[%s11732_s1 + $0xdc0] sm:$0xf]  ;;  %v7594_v33 = vld [vmem:[%s11732_s1 + $0xdcc] sm:$0xf0]  ;;  %v6419_v42 = vor.u32 %v7562_v29, %v6418_v28 }
  0x6f   :  { %v6674_v34 = vld [vmem:[%s11732_s1 + $0xec0] sm:$0xf]  ;;  %v7626_v35 = vld [vmem:[%s11732_s1 + $0xecc] sm:$0xf0]  ;;  %v6547_v43 = vor.u32 %v7594_v33, %v6546_v30  ;;  %3286 = vmatmul.bf16.vlgmr.msra.gmra.mxu0 %v8536_v32  ;;  %3314 = vmatmul.bf16.vlgmr.msra.gmra.mxu2 %v8547_v36 }
  0x70   :  { %v6802_v38 = vld [vmem:[%s11732_s1 + $0xfc0] sm:$0xf]  ;;  %v7658_v39 = vld [vmem:[%s11732_s1 + $0xfcc] sm:$0xf0]  ;;  %v6675_v46 = vor.u32 %v7626_v35, %v6674_v34  ;;  %3335 = vmatpush.bf16.msrb.mxu0 %v6419_v42 }
  0x71   :  { %v6402_v47 = vld [vmem:[%s11732_s1 + $0xca0] sm:$0xf]  ;;  %v7558_v49 = vld [vmem:[%s11732_s1 + $0xcac] sm:$0xf0]  ;;  %v6803_v51 = vor.u32 %v7658_v39, %v6802_v38  ;;  %3349 = vmatpush.bf16.msrb.mxu1 %v6547_v43 }
  0x72   :  { %v6530_v50 = vld [vmem:[%s11732_s1 + $0xda0] sm:$0xf]  ;;  %v7590_v52 = vld [vmem:[%s11732_s1 + $0xdac] sm:$0xf0]  ;;  %v6403_v57 = vor.u32 %v7558_v49, %v6402_v47  ;;  %3363 = vmatpush.bf16.msrb.mxu2 %v6675_v46 }
  0x73   :  { %v6658_v53 = vld [vmem:[%s11732_s1 + $0xea0] sm:$0xf]  ;;  %v7622_v54 = vld [vmem:[%s11732_s1 + $0xeac] sm:$0xf0]  ;;  %v6531_v58 = vor.u32 %v7590_v52, %v6530_v50  ;;  %3377 = vmatpush.bf16.msrb.mxu3 %v6803_v51 }
  0x74   :  { %v6786_v55 = vld [vmem:[%s11732_s1 + $0xfa0] sm:$0xf]  ;;  %v7654_v56 = vld [vmem:[%s11732_s1 + $0xfac] sm:$0xf0]  ;;  %v6659_v60 = vor.u32 %v7622_v54, %v6658_v53  ;;  %3336 = vmatpush.bf16.msrb.mxu0 %v6403_v57 }
  0x75   :  { %v6386_v61 = vld [vmem:[%s11732_s1 + $0xc80] sm:$0xf]  ;;  %v7554_v62 = vld [vmem:[%s11732_s1 + $0xc8c] sm:$0xf0]  ;;  %v6787_v0 = vor.u32 %v7654_v56, %v6786_v55  ;;  %3350 = vmatpush.bf16.msrb.mxu1 %v6531_v58 }
  0x76   :  { %v6514_v63 = vld [vmem:[%s11732_s1 + $0xd80] sm:$0xf]  ;;  %v7586_v1 = vld [vmem:[%s11732_s1 + $0xd8c] sm:$0xf0]  ;;  %v6387_v7 = vor.u32 %v7554_v62, %v6386_v61  ;;  %3364 = vmatpush.bf16.msrb.mxu2 %v6659_v60 }
  0x77   :  { %v6642_v3 = vld [vmem:[%s11732_s1 + $0xe80] sm:$0xf]  ;;  %v7618_v4 = vld [vmem:[%s11732_s1 + $0xe8c] sm:$0xf0]  ;;  %v6515_v8 = vor.u32 %v7586_v1, %v6514_v63  ;;  %3378 = vmatpush.bf16.msrb.mxu3 %v6787_v0 }
  0x78   :  { %v6770_v5 = vld [vmem:[%s11732_s1 + $0xf80] sm:$0xf]  ;;  %v7650_v6 = vld [vmem:[%s11732_s1 + $0xf8c] sm:$0xf0]  ;;  %v6643_v9 = vor.u32 %v7618_v4, %v6642_v3  ;;  %3337 = vmatpush.bf16.msrb.mxu0 %v6387_v7 }
  0x79   :  { %v6370_v10 = vld [vmem:[%s11732_s1 + $0xc60] sm:$0xf]  ;;  %v7550_v12 = vld [vmem:[%s11732_s1 + $0xc6c] sm:$0xf0]  ;;  %v6771_v14 = vor.u32 %v7650_v6, %v6770_v5  ;;  %3351 = vmatpush.bf16.msrb.mxu1 %v6515_v8 }
  0x7a   :  { %v6498_v13 = vld [vmem:[%s11732_s1 + $0xd60] sm:$0xf]  ;;  %v7582_v15 = vld [vmem:[%s11732_s1 + $0xd6c] sm:$0xf0]  ;;  %v6371_v21 = vor.u32 %v7550_v12, %v6370_v10  ;;  %3365 = vmatpush.bf16.msrb.mxu2 %v6643_v9 }
  0x7b   :  { %v6626_v16 = vld [vmem:[%s11732_s1 + $0xe60] sm:$0xf]  ;;  %v7614_v17 = vld [vmem:[%s11732_s1 + $0xe6c] sm:$0xf0]  ;;  %v6499_v22 = vor.u32 %v7582_v15, %v6498_v13  ;;  %3379 = vmatpush.bf16.msrb.mxu3 %v6771_v14 }
  0x7c   :  { %v6754_v19 = vld [vmem:[%s11732_s1 + $0xf60] sm:$0xf]  ;;  %v7646_v20 = vld [vmem:[%s11732_s1 + $0xf6c] sm:$0xf0]  ;;  %v6627_v23 = vor.u32 %v7614_v17, %v6626_v16  ;;  %3338 = vmatpush.bf16.msrb.mxu0 %v6371_v21 }
  0x7d   :  { %v6354_v24 = vld [vmem:[%s11732_s1 + $0xc40] sm:$0xf]  ;;  %v7546_v25 = vld [vmem:[%s11732_s1 + $0xc4c] sm:$0xf0]  ;;  %v6755_v27 = vor.u32 %v7646_v20, %v6754_v19  ;;  %3352 = vmatpush.bf16.msrb.mxu1 %v6499_v22 }
  0x7e   :  { %v6482_v26 = vld [vmem:[%s11732_s1 + $0xd40] sm:$0xf]  ;;  %v7578_v28 = vld [vmem:[%s11732_s1 + $0xd4c] sm:$0xf0]  ;;  %v6355_v34 = vor.u32 %v7546_v25, %v6354_v24  ;;  %3366 = vmatpush.bf16.msrb.mxu2 %v6627_v23 }
  0x7f   :  { %v6610_v29 = vld [vmem:[%s11732_s1 + $0xe40] sm:$0xf]  ;;  %v7610_v30 = vld [vmem:[%s11732_s1 + $0xe4c] sm:$0xf0]  ;;  %v6483_v39 = vor.u32 %v7578_v28, %v6482_v26  ;;  %3380 = vmatpush.bf16.msrb.mxu3 %v6755_v27 }
  0x80   :  { %v6738_v31 = vld [vmem:[%s11732_s1 + $0xf40] sm:$0xf]  ;;  %v7642_v33 = vld [vmem:[%s11732_s1 + $0xf4c] sm:$0xf0]  ;;  %v6611_v42 = vor.u32 %v7610_v30, %v6610_v29 }
  0x81   :  { %v6338_v35 = vld [vmem:[%s11732_s1 + $0xc20] sm:$0xf]  ;;  %v7542_v38 = vld [vmem:[%s11732_s1 + $0xc2c] sm:$0xf0]  ;;  %v6739_v49 = vor.u32 %v7642_v33, %v6738_v31 }
  0x82   :  { %v6466_v43 = vld [vmem:[%s11732_s1 + $0xd20] sm:$0xf]  ;;  %v7574_v46 = vld [vmem:[%s11732_s1 + $0xd2c] sm:$0xf0] }
  0x83   :  { %v6594_v47 = vld [vmem:[%s11732_s1 + $0xe20] sm:$0xf]  ;;  %v7606_v50 = vld [vmem:[%s11732_s1 + $0xe2c] sm:$0xf0] }
  0x84   :  { %v6722_v51 = vld [vmem:[%s11732_s1 + $0xf20] sm:$0xf]  ;;  %v7638_v52 = vld [vmem:[%s11732_s1 + $0xf2c] sm:$0xf0] }
  0x85   :  { %v6322_v53 = vld [vmem:[%s11732_s1 + $0xc00] sm:$0xf]  ;;  %v7538_v54 = vld [vmem:[%s11732_s1 + $0xc0c] sm:$0xf0] }
  0x86   :  { %16 = vsyncpa [#allocation4], 0  ;;  %3339 = vmatpush.bf16.msrb.mxu0 %v6355_v34  ;;  %v6339_v55 = vor.u32 %v7542_v38, %v6338_v35  ;;  %v6450_v56 = vld [vmem:[%s11732_s1 + $0xd00] sm:$0xf]  ;;  %v7570_v57 = vld [vmem:[%s11732_s1 + $0xd0c] sm:$0xf0]  ;;  %3353 = vmatpush.bf16.msrb.mxu1 %v6483_v39  ;;  %v6467_v61 = vor.u32 %v7574_v46, %v6466_v43  ;;  %v6595_v62 = vor.u32 %v7606_v50, %v6594_v47 }
  0x87   :  { %v6578_v58 = vld [vmem:[%s11732_s1 + $0xe00] sm:$0xf]  ;;  %v7602_v60 = vld [vmem:[%s11732_s1 + $0xe0c] sm:$0xf0]  ;;  %3367 = vmatpush.bf16.msrb.mxu2 %v6611_v42  ;;  %v7180_v1 = vld [vmem:[%s11732_s1 + $0xe4] sm:$0xf]  ;;  %3381 = vmatpush.bf16.msrb.mxu3 %v6739_v49  ;;  %v6723_v3 = vor.u32 %v7638_v52, %v6722_v51  ;;  %v6323_v10 = vor.u32 %v7538_v54, %v6322_v53  ;;  %v6451_v15 = vor.u32 %v7570_v57, %v6450_v56 }
  0x88   :  { %v6706_v63 = vld [vmem:[%s11732_s1 + $0xf00] sm:$0xf]  ;;  %v7634_v0 = vld [vmem:[%s11732_s1 + $0xf0c] sm:$0xf0]  ;;  %v4900_v4 = vld [vmem:[%s11732_s1 + $0xf0] sm:$0xf0]  ;;  %v6579_v16 = vor.u32 %v7602_v60, %v6578_v58 }
  0x89   :  { %v7212_v5 = vld [vmem:[%s11732_s1 + $0x1e4] sm:$0xf]  ;;  %v5028_v6 = vld [vmem:[%s11732_s1 + $0x1f0] sm:$0xf0]  ;;  %v49_v20 = vld [vmem:[%s11731_s0 + $0x68] sm:$0xff]  ;;  %v6707_v21 = vor.u32 %v7634_v0, %v6706_v63  ;;  %v4903_v22 = vor.u32 %v7180_v1, %v4900_v4  ;;  %s4775_s26 = sshll.u32 %s11740_s9, 4  ;;  %s4776_s26 = int_to_ptr.hbm [resolvable:$true] %s4775_s26 }
  0x8a   :  { %v7244_v7 = vld [vmem:[%s11732_s1 + $0x2e4] sm:$0xf]  ;;  %v5156_v8 = vld [vmem:[%s11732_s1 + $0x2f0] sm:$0xf0]  ;;  %3340 = vmatpush.bf16.msrb.mxu0 %v6339_v55  ;;  %3354 = vmatpush.bf16.msrb.mxu1 %v6467_v61  ;;  %v65_v23 = vld [vmem:[%s11731_s0 + $0xe8] sm:$0xff]  ;;  %v5031_v26 = vor.u32 %v7212_v5, %v5028_v6  ;;  %vm4766_vm0 = vcmask 122880  }
  0x8b   :  { %v7276_v9 = vld [vmem:[%s11732_s1 + $0x3e4] sm:$0xf]  ;;  %v5284_v12 = vld [vmem:[%s11732_s1 + $0x3f0] sm:$0xf0]  ;;  %3368 = vmatpush.bf16.msrb.mxu2 %v6595_v62  ;;  %3382 = vmatpush.bf16.msrb.mxu3 %v6723_v3  ;;  %v51_v24 = vld [vmem:[%s11731_s0 + $0x78] sm:$0xff]  ;;  %v5159_v27 = vor.u32 %v7244_v7, %v5156_v8  ;;  %v8777_v42 = vpack.c.bf16 %v65_v23, %v49_v20 }
  0x8c   :  { %v48_v13 = vld [vmem:[%s11731_s0 + $0x60] sm:$0xff]  ;;  %v50_v17 = vld [vmem:[%s11731_s0 + $0x70] sm:$0xff]  ;;  %v67_v25 = vld [vmem:[%s11731_s0 + $0xf8] sm:$0xff]  ;;  %v5287_v31 = vor.u32 %v7276_v9, %v5284_v12 }
  0x8d   :  { %v64_v14 = vld [vmem:[%s11731_s0 + $0xe0] sm:$0xff]  ;;  %v66_v19 = vld [vmem:[%s11731_s0 + $0xf0] sm:$0xff]  ;;  %v8785_v47 = vpack.c.bf16 %v67_v25, %v51_v24 }
  0x8e   :  { %v7176_v28 = vld [vmem:[%s11732_s1 + $0xc4] sm:$0xf]  ;;  %v4884_v29 = vld [vmem:[%s11732_s1 + $0xd0] sm:$0xf0]  ;;  %3341 = vmatpush.bf16.msrb.mxu0 %v6323_v10  ;;  %v8764_v33 = vpack.c.bf16 %v64_v14, %v48_v13  ;;  %3355 = vmatpush.bf16.msrb.mxu1 %v6451_v15  ;;  %v8775_v39 = vpack.c.bf16 %v66_v19, %v50_v17 }
  0x8f   :  { %v7208_v30 = vld [vmem:[%s11732_s1 + $0x1c4] sm:$0xf]  ;;  %v5012_v34 = vld [vmem:[%s11732_s1 + $0x1d0] sm:$0xf0]  ;;  %3369 = vmatpush.bf16.msrb.mxu2 %v6579_v16  ;;  %3383 = vmatpush.bf16.msrb.mxu3 %v6707_v21  ;;  %v4887_v49 = vor.u32 %v7176_v28, %v4884_v29 }
  0x90   :  { %v7240_v35 = vld [vmem:[%s11732_s1 + $0x2c4] sm:$0xf]  ;;  %v5140_v38 = vld [vmem:[%s11732_s1 + $0x2d0] sm:$0xf0]  ;;  %v5015_v50 = vor.u32 %v7208_v30, %v5012_v34 }
  0x91   :  { %v7272_v43 = vld [vmem:[%s11732_s1 + $0x3c4] sm:$0xf]  ;;  %v5268_v46 = vld [vmem:[%s11732_s1 + $0x3d0] sm:$0xf0]  ;;  %v5143_v51 = vor.u32 %v7240_v35, %v5140_v38  ;;  %3342 = vmatmul.bf16.vlgmr.msrb.gmra.mxu0 %v8764_v33  ;;  %3356 = vmatmul.bf16.vlgmr.msrb.gmra.mxu1 %v8777_v42 }
  0x92   :  { %3390 = vmatpush.bf16.msra.mxu0 %v4903_v22  ;;  %3404 = vmatpush.bf16.msra.mxu1 %v5031_v26  ;;  %v7172_v52 = vld [vmem:[%s11732_s1 + $0xa4] sm:$0xf]  ;;  %v4868_v53 = vld [vmem:[%s11732_s1 + $0xb0] sm:$0xf0]  ;;  %v5271_v55 = vor.u32 %v7272_v43, %v5268_v46 }
  0x93   :  { %3418 = vmatpush.bf16.msra.mxu2 %v5159_v27  ;;  %v7204_v54 = vld [vmem:[%s11732_s1 + $0x1a4] sm:$0xf]  ;;  %3432 = vmatpush.bf16.msra.mxu3 %v5287_v31  ;;  %v4996_v56 = vld [vmem:[%s11732_s1 + $0x1b0] sm:$0xf0]  ;;  %v4871_v62 = vor.u32 %v7172_v52, %v4868_v53 }
  0x94   :  { %v7236_v57 = vld [vmem:[%s11732_s1 + $0x2a4] sm:$0xf]  ;;  %v5124_v58 = vld [vmem:[%s11732_s1 + $0x2b0] sm:$0xf0]  ;;  %3370 = vmatmul.bf16.vlgmr.msrb.gmra.mxu2 %v8775_v39  ;;  %3384 = vmatmul.bf16.vlgmr.msrb.gmra.mxu3 %v8785_v47  ;;  %v4999_v63 = vor.u32 %v7204_v54, %v4996_v56 }
  0x95   :  { %v7268_v60 = vld [vmem:[%s11732_s1 + $0x3a4] sm:$0xf]  ;;  %v5252_v61 = vld [vmem:[%s11732_s1 + $0x3b0] sm:$0xf0]  ;;  %v5127_v0 = vor.u32 %v7236_v57, %v5124_v58 }
  0x96   :  { %3391 = vmatpush.bf16.msra.mxu0 %v4887_v49  ;;  %3405 = vmatpush.bf16.msra.mxu1 %v5015_v50  ;;  %v7168_v1 = vld [vmem:[%s11732_s1 + $0x84] sm:$0xf]  ;;  %v4852_v3 = vld [vmem:[%s11732_s1 + $0x90] sm:$0xf0]  ;;  %v5255_v5 = vor.u32 %v7268_v60, %v5252_v61 }
  0x97   :  { %3419 = vmatpush.bf16.msra.mxu2 %v5143_v51  ;;  %v7200_v4 = vld [vmem:[%s11732_s1 + $0x184] sm:$0xf]  ;;  %3433 = vmatpush.bf16.msra.mxu3 %v5271_v55  ;;  %v4980_v6 = vld [vmem:[%s11732_s1 + $0x190] sm:$0xf0]  ;;  %v4855_v12 = vor.u32 %v7168_v1, %v4852_v3 }
  0x98   :  { %v7232_v7 = vld [vmem:[%s11732_s1 + $0x284] sm:$0xf]  ;;  %v5108_v8 = vld [vmem:[%s11732_s1 + $0x290] sm:$0xf0]  ;;  %v4983_v13 = vor.u32 %v7200_v4, %v4980_v6 }
  0x99   :  { %v7264_v9 = vld [vmem:[%s11732_s1 + $0x384] sm:$0xf]  ;;  %v5236_v10 = vld [vmem:[%s11732_s1 + $0x390] sm:$0xf0]  ;;  %v5111_v14 = vor.u32 %v7232_v7, %v5108_v8 }
  0x9a   :  { %3392 = vmatpush.bf16.msra.mxu0 %v4871_v62  ;;  %3406 = vmatpush.bf16.msra.mxu1 %v4999_v63  ;;  %v7164_v15 = vld [vmem:[%s11732_s1 + $0x64] sm:$0xf]  ;;  %v4836_v16 = vld [vmem:[%s11732_s1 + $0x70] sm:$0xf0]  ;;  %v5239_v19 = vor.u32 %v7264_v9, %v5236_v10 }
  0x9b   :  { %3420 = vmatpush.bf16.msra.mxu2 %v5127_v0  ;;  %v7196_v17 = vld [vmem:[%s11732_s1 + $0x164] sm:$0xf]  ;;  %3434 = vmatpush.bf16.msra.mxu3 %v5255_v5  ;;  %v4964_v20 = vld [vmem:[%s11732_s1 + $0x170] sm:$0xf0]  ;;  %v4839_v25 = vor.u32 %v7164_v15, %v4836_v16 }
  0x9c   :  { %v7228_v21 = vld [vmem:[%s11732_s1 + $0x264] sm:$0xf]  ;;  %v5092_v22 = vld [vmem:[%s11732_s1 + $0x270] sm:$0xf0]  ;;  %v4967_v26 = vor.u32 %v7196_v17, %v4964_v20 }
  0x9d   :  { %v7260_v23 = vld [vmem:[%s11732_s1 + $0x364] sm:$0xf]  ;;  %v5220_v24 = vld [vmem:[%s11732_s1 + $0x370] sm:$0xf0]  ;;  %v5095_v27 = vor.u32 %v7228_v21, %v5092_v22 }
  0x9e   :  { %3393 = vmatpush.bf16.msra.mxu0 %v4855_v12  ;;  %3407 = vmatpush.bf16.msra.mxu1 %v4983_v13  ;;  %v7160_v28 = vld [vmem:[%s11732_s1 + $0x44] sm:$0xf]  ;;  %v4820_v29 = vld [vmem:[%s11732_s1 + $0x50] sm:$0xf0]  ;;  %v5223_v31 = vor.u32 %v7260_v23, %v5220_v24 }
  0x9f   :  { %3421 = vmatpush.bf16.msra.mxu2 %v5111_v14  ;;  %v7192_v30 = vld [vmem:[%s11732_s1 + $0x144] sm:$0xf]  ;;  %3435 = vmatpush.bf16.msra.mxu3 %v5239_v19  ;;  %v4948_v34 = vld [vmem:[%s11732_s1 + $0x150] sm:$0xf0]  ;;  %v4823_v49 = vor.u32 %v7160_v28, %v4820_v29 }
  0xa0   :  { %v7224_v35 = vld [vmem:[%s11732_s1 + $0x244] sm:$0xf]  ;;  %v5076_v38 = vld [vmem:[%s11732_s1 + $0x250] sm:$0xf0]  ;;  %v4951_v50 = vor.u32 %v7192_v30, %v4948_v34 }
  0xa1   :  { %v7256_v43 = vld [vmem:[%s11732_s1 + $0x344] sm:$0xf]  ;;  %v5204_v46 = vld [vmem:[%s11732_s1 + $0x350] sm:$0xf0]  ;;  %v5079_v51 = vor.u32 %v7224_v35, %v5076_v38 }
  0xa2   :  { %3394 = vmatpush.bf16.msra.mxu0 %v4839_v25  ;;  %3408 = vmatpush.bf16.msra.mxu1 %v4967_v26  ;;  %v7156_v52 = vld [vmem:[%s11732_s1 + $0x24] sm:$0xf]  ;;  %v4804_v53 = vld [vmem:[%s11732_s1 + $0x30] sm:$0xf0]  ;;  %v5207_v55 = vor.u32 %v7256_v43, %v5204_v46 }
  0xa3   :  { %3422 = vmatpush.bf16.msra.mxu2 %v5095_v27  ;;  %v7188_v54 = vld [vmem:[%s11732_s1 + $0x124] sm:$0xf]  ;;  %3436 = vmatpush.bf16.msra.mxu3 %v5223_v31  ;;  %v4932_v56 = vld [vmem:[%s11732_s1 + $0x130] sm:$0xf0]  ;;  %v4807_v62 = vor.u32 %v7156_v52, %v4804_v53 }
  0xa4   :  { %v7220_v57 = vld [vmem:[%s11732_s1 + $0x224] sm:$0xf]  ;;  %v5060_v58 = vld [vmem:[%s11732_s1 + $0x230] sm:$0xf0]  ;;  %v4935_v1 = vor.u32 %v7188_v54, %v4932_v56 }
  0xa5   :  { %v7252_v60 = vld [vmem:[%s11732_s1 + $0x324] sm:$0xf]  ;;  %v5188_v61 = vld [vmem:[%s11732_s1 + $0x330] sm:$0xf0]  ;;  %v5063_v3 = vor.u32 %v7220_v57, %v5060_v58 }
  0xa6   :  { %3395 = vmatpush.bf16.msra.mxu0 %v4823_v49  ;;  %v7152_v63 = vld [vmem:[%s11732_s1 + $0x4] sm:$0xf]  ;;  %v4788_v0 = vld [vmem:[%s11732_s1 + $0x10] sm:$0xf0]  ;;  %3409 = vmatpush.bf16.msra.mxu1 %v4951_v50  ;;  %v5191_v7 = vor.u32 %v7252_v60, %v5188_v61 }
  0xa7   :  { %3423 = vmatpush.bf16.msra.mxu2 %v5079_v51  ;;  %v7184_v4 = vld [vmem:[%s11732_s1 + $0x104] sm:$0xf]  ;;  %v4916_v5 = vld [vmem:[%s11732_s1 + $0x110] sm:$0xf0]  ;;  %3437 = vmatpush.bf16.msra.mxu3 %v5207_v55  ;;  %v4791_v15 = vor.u32 %v7152_v63, %v4788_v0  ;;  %v8995_v55 = vld [vmem:[%s11733_s2] sm:$0xf] }
  0xa8   :  { %v7216_v6 = vld [vmem:[%s11732_s1 + $0x204] sm:$0xf]  ;;  %v5044_v8 = vld [vmem:[%s11732_s1 + $0x210] sm:$0xf0]  ;;  %v4919_v20 = vor.u32 %v7184_v4, %v4916_v5  ;;  %v11741_v0 = vperm.slane %v8995_v55, 0 }
  0xa9   :  { %v7248_v9 = vld [vmem:[%s11732_s1 + $0x304] sm:$0xf]  ;;  %v5172_v10 = vld [vmem:[%s11732_s1 + $0x310] sm:$0xf0]  ;;  %v5047_v21 = vor.u32 %v7216_v6, %v5044_v8 }
  0xaa   :  { %v7308_v12 = vld [vmem:[%s11732_s1 + $0x4e4] sm:$0xf]  ;;  %v5412_v13 = vld [vmem:[%s11732_s1 + $0x4f0] sm:$0xf0]  ;;  %3396 = vmatpush.bf16.msra.mxu0 %v4807_v62  ;;  %3410 = vmatpush.bf16.msra.mxu1 %v4935_v1  ;;  %v5175_v24 = vor.u32 %v7248_v9, %v5172_v10 }
  0xab   :  { %v7340_v14 = vld [vmem:[%s11732_s1 + $0x5e4] sm:$0xf]  ;;  %v5540_v16 = vld [vmem:[%s11732_s1 + $0x5f0] sm:$0xf0]  ;;  %3424 = vmatpush.bf16.msra.mxu2 %v5063_v3  ;;  %3438 = vmatpush.bf16.msra.mxu3 %v5191_v7  ;;  %v5415_v25 = vor.u32 %v7308_v12, %v5412_v13 }
  0xac   :  { %v7372_v17 = vld [vmem:[%s11732_s1 + $0x6e4] sm:$0xf]  ;;  %v5668_v19 = vld [vmem:[%s11732_s1 + $0x6f0] sm:$0xf0]  ;;  %v5543_v26 = vor.u32 %v7340_v14, %v5540_v16  ;;  %v3175_v14 = vpop.f32.mrf.mxu0 }
  0xad   :  { %v7404_v22 = vld [vmem:[%s11732_s1 + $0x7e4] sm:$0xf]  ;;  %v5796_v23 = vld [vmem:[%s11732_s1 + $0x7f0] sm:$0xf0]  ;;  %v5671_v27 = vor.u32 %v7372_v17, %v5668_v19  ;;  %v3176_v16 = vadd.f32 %v3175_v14, %v11741_v0 }
  0xae   :  { %v7304_v28 = vld [vmem:[%s11732_s1 + $0x4c4] sm:$0xf]  ;;  %v5396_v29 = vld [vmem:[%s11732_s1 + $0x4d0] sm:$0xf0]  ;;  %3397 = vmatpush.bf16.msra.mxu0 %v4791_v15  ;;  %v5799_v31 = vor.u32 %v7404_v22, %v5796_v23  ;;  %3411 = vmatpush.bf16.msra.mxu1 %v4919_v20 }
  0xaf   :  { %v7336_v30 = vld [vmem:[%s11732_s1 + $0x5c4] sm:$0xf]  ;;  %v5524_v34 = vld [vmem:[%s11732_s1 + $0x5d0] sm:$0xf0]  ;;  %3425 = vmatpush.bf16.msra.mxu2 %v5047_v21  ;;  %3439 = vmatpush.bf16.msra.mxu3 %v5175_v24  ;;  %v5399_v49 = vor.u32 %v7304_v28, %v5396_v29  ;;  %v3189_v29 = vpop.f32.mrf.mxu1 }
  0xb0   :  { %v7368_v35 = vld [vmem:[%s11732_s1 + $0x6c4] sm:$0xf]  ;;  %v5652_v38 = vld [vmem:[%s11732_s1 + $0x6d0] sm:$0xf0]  ;;  %v5527_v51 = vor.u32 %v7336_v30, %v5524_v34 }
  0xb1   :  { %v7400_v43 = vld [vmem:[%s11732_s1 + $0x7c4] sm:$0xf]  ;;  %v5780_v46 = vld [vmem:[%s11732_s1 + $0x7d0] sm:$0xf0]  ;;  %v5655_v52 = vor.u32 %v7368_v35, %v5652_v38  ;;  %3398 = vmatmul.bf16.vlgmr.msra.gmra.mxu0 %v8086_v59  ;;  %3412 = vmatmul.bf16.vlgmr.msra.gmra.mxu1 %v8122_v11 }
  0xb2   :  { %3446 = vmatpush.bf16.msrb.mxu0 %v5415_v25  ;;  %v7300_v50 = vld [vmem:[%s11732_s1 + $0x4a4] sm:$0xf]  ;;  %3460 = vmatpush.bf16.msrb.mxu1 %v5543_v26  ;;  %v5380_v53 = vld [vmem:[%s11732_s1 + $0x4b0] sm:$0xf0]  ;;  %v5783_v56 = vor.u32 %v7400_v43, %v5780_v46 }
  0xb3   :  { %3474 = vmatpush.bf16.msrb.mxu2 %v5671_v27  ;;  %v7332_v54 = vld [vmem:[%s11732_s1 + $0x5a4] sm:$0xf]  ;;  %3488 = vmatpush.bf16.msrb.mxu3 %v5799_v31  ;;  %v5508_v57 = vld [vmem:[%s11732_s1 + $0x5b0] sm:$0xf0]  ;;  %v5383_v63 = vor.u32 %v7300_v50, %v5380_v53  ;;  %v3190_v31 = vadd.f32 %v3189_v29, %v3176_v16  ;;  %v3203_v53 = vpop.f32.mrf.mxu2 }
  0xb4   :  { %v7364_v58 = vld [vmem:[%s11732_s1 + $0x6a4] sm:$0xf]  ;;  %v5636_v60 = vld [vmem:[%s11732_s1 + $0x6b0] sm:$0xf0]  ;;  %3426 = vmatmul.bf16.vlgmr.msra.gmra.mxu2 %v8100_v2  ;;  %3440 = vmatmul.bf16.vlgmr.msra.gmra.mxu3 %v8136_v18  ;;  %v5511_v1 = vor.u32 %v7332_v54, %v5508_v57 }
  0xb5   :  { %v7396_v61 = vld [vmem:[%s11732_s1 + $0x7a4] sm:$0xf]  ;;  %v5764_v62 = vld [vmem:[%s11732_s1 + $0x7b0] sm:$0xf0]  ;;  %v5639_v3 = vor.u32 %v7364_v58, %v5636_v60  ;;  %v3204_v57 = vadd.f32 %v3203_v53, %v3190_v31 }
  0xb6   :  { %3447 = vmatpush.bf16.msrb.mxu0 %v5399_v49  ;;  %3461 = vmatpush.bf16.msrb.mxu1 %v5527_v51  ;;  %v7296_v4 = vld [vmem:[%s11732_s1 + $0x484] sm:$0xf]  ;;  %v5364_v5 = vld [vmem:[%s11732_s1 + $0x490] sm:$0xf0]  ;;  %v5767_v7 = vor.u32 %v7396_v61, %v5764_v62 }
  0xb7   :  { %3475 = vmatpush.bf16.msrb.mxu2 %v5655_v52  ;;  %v7328_v6 = vld [vmem:[%s11732_s1 + $0x584] sm:$0xf]  ;;  %3489 = vmatpush.bf16.msrb.mxu3 %v5783_v56  ;;  %v5492_v8 = vld [vmem:[%s11732_s1 + $0x590] sm:$0xf0]  ;;  %v5367_v15 = vor.u32 %v7296_v4, %v5364_v5 }
  0xb8   :  { %v7360_v9 = vld [vmem:[%s11732_s1 + $0x684] sm:$0xf]  ;;  %v5620_v10 = vld [vmem:[%s11732_s1 + $0x690] sm:$0xf0]  ;;  %v5495_v17 = vor.u32 %v7328_v6, %v5492_v8 }
  0xb9   :  { %v7392_v12 = vld [vmem:[%s11732_s1 + $0x784] sm:$0xf]  ;;  %v5748_v13 = vld [vmem:[%s11732_s1 + $0x790] sm:$0xf0]  ;;  %v5623_v19 = vor.u32 %v7360_v9, %v5620_v10 }
  0xba   :  { %3448 = vmatpush.bf16.msrb.mxu0 %v5383_v63  ;;  %3462 = vmatpush.bf16.msrb.mxu1 %v5511_v1  ;;  %v7292_v20 = vld [vmem:[%s11732_s1 + $0x464] sm:$0xf]  ;;  %v5348_v21 = vld [vmem:[%s11732_s1 + $0x470] sm:$0xf0]  ;;  %v5751_v23 = vor.u32 %v7392_v12, %v5748_v13 }
  0xbb   :  { %3476 = vmatpush.bf16.msrb.mxu2 %v5639_v3  ;;  %v7324_v22 = vld [vmem:[%s11732_s1 + $0x564] sm:$0xf]  ;;  %3490 = vmatpush.bf16.msrb.mxu3 %v5767_v7  ;;  %v5476_v24 = vld [vmem:[%s11732_s1 + $0x570] sm:$0xf0]  ;;  %v5351_v30 = vor.u32 %v7292_v20, %v5348_v21  ;;  %v3217_v7 = vpop.f32.mrf.mxu3 }
  0xbc   :  { %v7356_v25 = vld [vmem:[%s11732_s1 + $0x664] sm:$0xf]  ;;  %v5604_v26 = vld [vmem:[%s11732_s1 + $0x670] sm:$0xf0]  ;;  %v5479_v34 = vor.u32 %v7324_v22, %v5476_v24  ;;  %v9115_v10 = vadd.f32 %v3217_v7, %v3204_v57 }
  0xbd   :  { %v7388_v27 = vld [vmem:[%s11732_s1 + $0x764] sm:$0xf]  ;;  %v5732_v28 = vld [vmem:[%s11732_s1 + $0x770] sm:$0xf0]  ;;  %v5607_v35 = vor.u32 %v7356_v25, %v5604_v26 }
  0xbe   :  { %3449 = vmatpush.bf16.msrb.mxu0 %v5367_v15  ;;  %3463 = vmatpush.bf16.msrb.mxu1 %v5495_v17  ;;  %v7288_v38 = vld [vmem:[%s11732_s1 + $0x444] sm:$0xf]  ;;  %v5332_v43 = vld [vmem:[%s11732_s1 + $0x450] sm:$0xf0]  ;;  %v5735_v49 = vor.u32 %v7388_v27, %v5732_v28 }
  0xbf   :  { %3477 = vmatpush.bf16.msrb.mxu2 %v5623_v19  ;;  %v7320_v46 = vld [vmem:[%s11732_s1 + $0x544] sm:$0xf]  ;;  %3491 = vmatpush.bf16.msrb.mxu3 %v5751_v23  ;;  %v5460_v50 = vld [vmem:[%s11732_s1 + $0x550] sm:$0xf0]  ;;  %v5335_v58 = vor.u32 %v7288_v38, %v5332_v43 }
  0xc0   :  { %v7352_v51 = vld [vmem:[%s11732_s1 + $0x644] sm:$0xf]  ;;  %v5588_v52 = vld [vmem:[%s11732_s1 + $0x650] sm:$0xf0]  ;;  %v5463_v60 = vor.u32 %v7320_v46, %v5460_v50 }
  0xc1   :  { %v7384_v54 = vld [vmem:[%s11732_s1 + $0x744] sm:$0xf]  ;;  %v5716_v56 = vld [vmem:[%s11732_s1 + $0x750] sm:$0xf0]  ;;  %v5591_v61 = vor.u32 %v7352_v51, %v5588_v52  ;;  %v9165_v52 = vpop.f32.mrf.mxu0 }
  0xc2   :  { %3450 = vmatpush.bf16.msrb.mxu0 %v5351_v30  ;;  %3464 = vmatpush.bf16.msrb.mxu1 %v5479_v34  ;;  %v7284_v62 = vld [vmem:[%s11732_s1 + $0x424] sm:$0xf]  ;;  %v5316_v63 = vld [vmem:[%s11732_s1 + $0x430] sm:$0xf0]  ;;  %v5719_v3 = vor.u32 %v7384_v54, %v5716_v56 }
  0xc3   :  { %3478 = vmatpush.bf16.msrb.mxu2 %v5607_v35  ;;  %v7316_v1 = vld [vmem:[%s11732_s1 + $0x524] sm:$0xf]  ;;  %3492 = vmatpush.bf16.msrb.mxu3 %v5735_v49  ;;  %v5444_v4 = vld [vmem:[%s11732_s1 + $0x530] sm:$0xf0]  ;;  %v5319_v12 = vor.u32 %v7284_v62, %v5316_v63 }
  0xc4   :  { %v7348_v5 = vld [vmem:[%s11732_s1 + $0x624] sm:$0xf]  ;;  %v5572_v6 = vld [vmem:[%s11732_s1 + $0x630] sm:$0xf0]  ;;  %v5447_v15 = vor.u32 %v7316_v1, %v5444_v4  ;;  %v9191_v1 = vpop.f32.mrf.mxu1 }
  0xc5   :  { %v7380_v8 = vld [vmem:[%s11732_s1 + $0x724] sm:$0xf]  ;;  %v5700_v9 = vld [vmem:[%s11732_s1 + $0x730] sm:$0xf0]  ;;  %v5575_v16 = vor.u32 %v7348_v5, %v5572_v6 }
  0xc6   :  { %3451 = vmatpush.bf16.msrb.mxu0 %v5335_v58  ;;  %v7280_v13 = vld [vmem:[%s11732_s1 + $0x404] sm:$0xf]  ;;  %v5300_v14 = vld [vmem:[%s11732_s1 + $0x410] sm:$0xf0]  ;;  %3465 = vmatpush.bf16.msrb.mxu1 %v5463_v60  ;;  %v5703_v21 = vor.u32 %v7380_v8, %v5700_v9 }
  0xc7   :  { %3479 = vmatpush.bf16.msrb.mxu2 %v5591_v61  ;;  %v7312_v17 = vld [vmem:[%s11732_s1 + $0x504] sm:$0xf]  ;;  %v5428_v19 = vld [vmem:[%s11732_s1 + $0x510] sm:$0xf0]  ;;  %3493 = vmatpush.bf16.msrb.mxu3 %v5719_v3  ;;  %v5303_v28 = vor.u32 %v7280_v13, %v5300_v14 }
  0xc8   :  { %v7344_v20 = vld [vmem:[%s11732_s1 + $0x604] sm:$0xf]  ;;  %v5556_v22 = vld [vmem:[%s11732_s1 + $0x610] sm:$0xf0]  ;;  %v5431_v34 = vor.u32 %v7312_v17, %v5428_v19  ;;  %v9221_v19 = vpop.f32.mrf.mxu2 }
  0xc9   :  { %v7376_v23 = vld [vmem:[%s11732_s1 + $0x704] sm:$0xf]  ;;  %v5684_v24 = vld [vmem:[%s11732_s1 + $0x710] sm:$0xf0]  ;;  %v5559_v35 = vor.u32 %v7344_v20, %v5556_v22 }
  0xca   :  { %v7436_v25 = vld [vmem:[%s11732_s1 + $0x8e4] sm:$0xf]  ;;  %v5924_v26 = vld [vmem:[%s11732_s1 + $0x8f0] sm:$0xf0]  ;;  %3452 = vmatpush.bf16.msrb.mxu0 %v5319_v12  ;;  %3466 = vmatpush.bf16.msrb.mxu1 %v5447_v15  ;;  %v5687_v46 = vor.u32 %v7376_v23, %v5684_v24 }
  0xcb   :  { %v7468_v27 = vld [vmem:[%s11732_s1 + $0x9e4] sm:$0xf]  ;;  %v6052_v29 = vld [vmem:[%s11732_s1 + $0x9f0] sm:$0xf0]  ;;  %3480 = vmatpush.bf16.msrb.mxu2 %v5575_v16  ;;  %3494 = vmatpush.bf16.msrb.mxu3 %v5703_v21  ;;  %v5927_v49 = vor.u32 %v7436_v25, %v5924_v26  ;;  %v9232_v26 = vpop.f32.mrf.mxu3 }
  0xcc   :  { %v7500_v30 = vld [vmem:[%s11732_s1 + $0xae4] sm:$0xf]  ;;  %v6180_v31 = vld [vmem:[%s11732_s1 + $0xaf0] sm:$0xf0]  ;;  %v6055_v50 = vor.u32 %v7468_v27, %v6052_v29 }
  0xcd   :  { %v7532_v38 = vld [vmem:[%s11732_s1 + $0xbe4] sm:$0xf]  ;;  %v6308_v43 = vld [vmem:[%s11732_s1 + $0xbf0] sm:$0xf0]  ;;  %v6183_v51 = vor.u32 %v7500_v30, %v6180_v31  ;;  %v3231_v30 = vpop.f32.mrf.mxu0 }
  0xce   :  { %v7432_v53 = vld [vmem:[%s11732_s1 + $0x8c4] sm:$0xf]  ;;  %v5908_v54 = vld [vmem:[%s11732_s1 + $0x8d0] sm:$0xf0]  ;;  %3453 = vmatpush.bf16.msrb.mxu0 %v5303_v28  ;;  %v6311_v57 = vor.u32 %v7532_v38, %v6308_v43  ;;  %3467 = vmatpush.bf16.msrb.mxu1 %v5431_v34 }
  0xcf   :  { %v7464_v56 = vld [vmem:[%s11732_s1 + $0x9c4] sm:$0xf]  ;;  %v6036_v58 = vld [vmem:[%s11732_s1 + $0x9d0] sm:$0xf0]  ;;  %3481 = vmatpush.bf16.msrb.mxu2 %v5559_v35  ;;  %3495 = vmatpush.bf16.msrb.mxu3 %v5687_v46  ;;  %v5911_v3 = vor.u32 %v7432_v53, %v5908_v54  ;;  %v3232_v35 = vadd.f32 %v3231_v30, %v9115_v10 }
  0xd0   :  { %v7496_v60 = vld [vmem:[%s11732_s1 + $0xac4] sm:$0xf]  ;;  %v6164_v61 = vld [vmem:[%s11732_s1 + $0xad0] sm:$0xf0]  ;;  %v6039_v4 = vor.u32 %v7464_v56, %v6036_v58 }
  0xd1   :  { %v7528_v62 = vld [vmem:[%s11732_s1 + $0xbc4] sm:$0xf]  ;;  %v6292_v63 = vld [vmem:[%s11732_s1 + $0xbd0] sm:$0xf0]  ;;  %v6167_v5 = vor.u32 %v7496_v60, %v6164_v61  ;;  %3454 = vmatmul.bf16.vlgmr.msrb.gmra.mxu0 %v8308_v40  ;;  %3468 = vmatmul.bf16.vlgmr.msrb.gmra.mxu1 %v8321_v45 }
  0xd2   :  { %3502 = vmatpush.bf16.msra.mxu0 %v5927_v49  ;;  %3516 = vmatpush.bf16.msra.mxu1 %v6055_v50  ;;  %v7428_v6 = vld [vmem:[%s11732_s1 + $0x8a4] sm:$0xf]  ;;  %v5892_v7 = vld [vmem:[%s11732_s1 + $0x8b0] sm:$0xf0]  ;;  %v6295_v9 = vor.u32 %v7528_v62, %v6292_v63  ;;  %v3245_v49 = vpop.f32.mrf.mxu1 }
  0xd3   :  { %3530 = vmatpush.bf16.msra.mxu2 %v6183_v51  ;;  %v7460_v8 = vld [vmem:[%s11732_s1 + $0x9a4] sm:$0xf]  ;;  %3544 = vmatpush.bf16.msra.mxu3 %v6311_v57  ;;  %v6020_v12 = vld [vmem:[%s11732_s1 + $0x9b0] sm:$0xf0]  ;;  %v5895_v17 = vor.u32 %v7428_v6, %v5892_v7  ;;  %v3246_v54 = vadd.f32 %v3245_v49, %v3232_v35 }
  0xd4   :  { %v7492_v13 = vld [vmem:[%s11732_s1 + $0xaa4] sm:$0xf]  ;;  %v6148_v14 = vld [vmem:[%s11732_s1 + $0xab0] sm:$0xf0]  ;;  %3482 = vmatmul.bf16.vlgmr.msrb.gmra.mxu2 %v8319_v44  ;;  %3496 = vmatmul.bf16.vlgmr.msrb.gmra.mxu3 %v8329_v48  ;;  %v6023_v20 = vor.u32 %v7460_v8, %v6020_v12  ;;  %v3259_v8 = vpop.f32.mrf.mxu2 }
  0xd5   :  { %v7524_v15 = vld [vmem:[%s11732_s1 + $0xba4] sm:$0xf]  ;;  %v6276_v16 = vld [vmem:[%s11732_s1 + $0xbb0] sm:$0xf0]  ;;  %v6151_v21 = vor.u32 %v7492_v13, %v6148_v14  ;;  %v3260_v14 = vadd.f32 %v3259_v8, %v3246_v54 }
  0xd6   :  { %3503 = vmatpush.bf16.msra.mxu0 %v5911_v3  ;;  %3517 = vmatpush.bf16.msra.mxu1 %v6039_v4  ;;  %v7424_v22 = vld [vmem:[%s11732_s1 + $0x884] sm:$0xf]  ;;  %v5876_v23 = vld [vmem:[%s11732_s1 + $0x890] sm:$0xf0]  ;;  %v6279_v25 = vor.u32 %v7524_v15, %v6276_v16 }
  0xd7   :  { %3531 = vmatpush.bf16.msra.mxu2 %v6167_v5  ;;  %v7456_v24 = vld [vmem:[%s11732_s1 + $0x984] sm:$0xf]  ;;  %3545 = vmatpush.bf16.msra.mxu3 %v6295_v9  ;;  %v6004_v27 = vld [vmem:[%s11732_s1 + $0x990] sm:$0xf0]  ;;  %v5879_v38 = vor.u32 %v7424_v22, %v5876_v23 }
  0xd8   :  { %v7488_v28 = vld [vmem:[%s11732_s1 + $0xa84] sm:$0xf]  ;;  %v6132_v29 = vld [vmem:[%s11732_s1 + $0xa90] sm:$0xf0]  ;;  %v6007_v43 = vor.u32 %v7456_v24, %v6004_v27 }
  0xd9   :  { %v7520_v31 = vld [vmem:[%s11732_s1 + $0xb84] sm:$0xf]  ;;  %v6260_v34 = vld [vmem:[%s11732_s1 + $0xb90] sm:$0xf0]  ;;  %v6135_v46 = vor.u32 %v7488_v28, %v6132_v29 }
  0xda   :  { %3504 = vmatpush.bf16.msra.mxu0 %v5895_v17  ;;  %3518 = vmatpush.bf16.msra.mxu1 %v6023_v20  ;;  %v7420_v50 = vld [vmem:[%s11732_s1 + $0x864] sm:$0xf]  ;;  %v5860_v51 = vld [vmem:[%s11732_s1 + $0x870] sm:$0xf0]  ;;  %v6263_v10 = vor.u32 %v7520_v31, %v6260_v34  ;;  %v3273_v17 = vpop.f32.mrf.mxu3 }
  0xdb   :  { %3532 = vmatpush.bf16.msra.mxu2 %v6151_v21  ;;  %v7452_v53 = vld [vmem:[%s11732_s1 + $0x964] sm:$0xf]  ;;  %3546 = vmatpush.bf16.msra.mxu3 %v6279_v25  ;;  %v5988_v56 = vld [vmem:[%s11732_s1 + $0x970] sm:$0xf0]  ;;  %v5863_v62 = vor.u32 %v7420_v50, %v5860_v51  ;;  %v9298_v21 = vadd.f32 %v3273_v17, %v3260_v14 }
  0xdc   :  { %v7484_v57 = vld [vmem:[%s11732_s1 + $0xa64] sm:$0xf]  ;;  %v6116_v58 = vld [vmem:[%s11732_s1 + $0xa70] sm:$0xf0]  ;;  %v5991_v63 = vor.u32 %v7452_v53, %v5988_v56 }
  0xdd   :  { %v7516_v60 = vld [vmem:[%s11732_s1 + $0xb64] sm:$0xf]  ;;  %v6244_v61 = vld [vmem:[%s11732_s1 + $0xb70] sm:$0xf0]  ;;  %v6119_v3 = vor.u32 %v7484_v57, %v6116_v58 }
  0xde   :  { %3505 = vmatpush.bf16.msra.mxu0 %v5879_v38  ;;  %3519 = vmatpush.bf16.msra.mxu1 %v6007_v43  ;;  %v7416_v4 = vld [vmem:[%s11732_s1 + $0x844] sm:$0xf]  ;;  %v5844_v5 = vld [vmem:[%s11732_s1 + $0x850] sm:$0xf0]  ;;  %v6247_v7 = vor.u32 %v7516_v60, %v6244_v61 }
  0xdf   :  { %3533 = vmatpush.bf16.msra.mxu2 %v6135_v46  ;;  %v7448_v6 = vld [vmem:[%s11732_s1 + $0x944] sm:$0xf]  ;;  %3547 = vmatpush.bf16.msra.mxu3 %v6263_v10  ;;  %v5972_v9 = vld [vmem:[%s11732_s1 + $0x950] sm:$0xf0]  ;;  %v5847_v20 = vor.u32 %v7416_v4, %v5844_v5 }
  0xe0   :  { %v7480_v12 = vld [vmem:[%s11732_s1 + $0xa44] sm:$0xf]  ;;  %v6100_v13 = vld [vmem:[%s11732_s1 + $0xa50] sm:$0xf0]  ;;  %v5975_v22 = vor.u32 %v7448_v6, %v5972_v9 }
  0xe1   :  { %v7512_v15 = vld [vmem:[%s11732_s1 + $0xb44] sm:$0xf]  ;;  %v6228_v16 = vld [vmem:[%s11732_s1 + $0xb50] sm:$0xf0]  ;;  %v6103_v23 = vor.u32 %v7480_v12, %v6100_v13 }
  0xe2   :  { %3506 = vmatpush.bf16.msra.mxu0 %v5863_v62  ;;  %3520 = vmatpush.bf16.msra.mxu1 %v5991_v63  ;;  %v7412_v24 = vld [vmem:[%s11732_s1 + $0x824] sm:$0xf]  ;;  %v5828_v25 = vld [vmem:[%s11732_s1 + $0x830] sm:$0xf0]  ;;  %v6231_v28 = vor.u32 %v7512_v15, %v6228_v16 }
  0xe3   :  { %3534 = vmatpush.bf16.msra.mxu2 %v6119_v3  ;;  %v7444_v27 = vld [vmem:[%s11732_s1 + $0x924] sm:$0xf]  ;;  %3548 = vmatpush.bf16.msra.mxu3 %v6247_v7  ;;  %v5956_v29 = vld [vmem:[%s11732_s1 + $0x930] sm:$0xf0]  ;;  %v5831_v38 = vor.u32 %v7412_v24, %v5828_v25 }
  0xe4   :  { %v7476_v30 = vld [vmem:[%s11732_s1 + $0xa24] sm:$0xf]  ;;  %v6084_v31 = vld [vmem:[%s11732_s1 + $0xa30] sm:$0xf0]  ;;  %v5959_v49 = vor.u32 %v7444_v27, %v5956_v29  ;;  %v9390_v27 = vpop.f32.mrf.mxu0 }
  0xe5   :  { %v7508_v34 = vld [vmem:[%s11732_s1 + $0xb24] sm:$0xf]  ;;  %v6212_v35 = vld [vmem:[%s11732_s1 + $0xb30] sm:$0xf0]  ;;  %v6087_v50 = vor.u32 %v7476_v30, %v6084_v31  ;;  %v9398_v30 = vpop.f32.mrf.mxu1 }
  0xe6   :  { %3507 = vmatpush.bf16.msra.mxu0 %v5847_v20  ;;  %v7408_v43 = vld [vmem:[%s11732_s1 + $0x804] sm:$0xf]  ;;  %v5812_v46 = vld [vmem:[%s11732_s1 + $0x810] sm:$0xf0]  ;;  %3521 = vmatpush.bf16.msra.mxu1 %v5975_v22  ;;  %v6215_v54 = vor.u32 %v7508_v34, %v6212_v35 }
  0xe7   :  { %3535 = vmatpush.bf16.msra.mxu2 %v6103_v23  ;;  %v7440_v51 = vld [vmem:[%s11732_s1 + $0x904] sm:$0xf]  ;;  %v5940_v53 = vld [vmem:[%s11732_s1 + $0x910] sm:$0xf0]  ;;  %3549 = vmatpush.bf16.msra.mxu3 %v6231_v28  ;;  %v5815_v63 = vor.u32 %v7408_v43, %v5812_v46 }
  0xe8   :  { %v7472_v10 = vld [vmem:[%s11732_s1 + $0xa04] sm:$0xf]  ;;  %v6068_v56 = vld [vmem:[%s11732_s1 + $0xa10] sm:$0xf0]  ;;  %v5943_v6 = vor.u32 %v7440_v51, %v5940_v53 }
  0xe9   :  { %v7504_v57 = vld [vmem:[%s11732_s1 + $0xb04] sm:$0xf]  ;;  %v6196_v58 = vld [vmem:[%s11732_s1 + $0xb10] sm:$0xf0]  ;;  %v6071_v7 = vor.u32 %v7472_v10, %v6068_v56 }
  0xea   :  { %v7564_v60 = vld [vmem:[%s11732_s1 + $0xce4] sm:$0xf]  ;;  %v6436_v61 = vld [vmem:[%s11732_s1 + $0xcf0] sm:$0xf0]  ;;  %3508 = vmatpush.bf16.msra.mxu0 %v5831_v38  ;;  %3522 = vmatpush.bf16.msra.mxu1 %v5959_v49  ;;  %v6199_v12 = vor.u32 %v7504_v57, %v6196_v58 }
  0xeb   :  { %v7596_v62 = vld [vmem:[%s11732_s1 + $0xde4] sm:$0xf]  ;;  %v6564_v3 = vld [vmem:[%s11732_s1 + $0xdf0] sm:$0xf0]  ;;  %3536 = vmatpush.bf16.msra.mxu2 %v6087_v50  ;;  %3550 = vmatpush.bf16.msra.mxu3 %v6215_v54  ;;  %v6439_v13 = vor.u32 %v7564_v60, %v6436_v61 }
  0xec   :  { %v7628_v4 = vld [vmem:[%s11732_s1 + $0xee4] sm:$0xf]  ;;  %v6692_v5 = vld [vmem:[%s11732_s1 + $0xef0] sm:$0xf0]  ;;  %v6567_v14 = vor.u32 %v7596_v62, %v6564_v3 }
  0xed   :  { %v7660_v8 = vld [vmem:[%s11732_s1 + $0xfe4] sm:$0xf]  ;;  %v6820_v9 = vld [vmem:[%s11732_s1 + $0xff0] sm:$0xf0]  ;;  %v6695_v15 = vor.u32 %v7628_v4, %v6692_v5 }
  0xee   :  { %v7560_v16 = vld [vmem:[%s11732_s1 + $0xcc4] sm:$0xf]  ;;  %v6420_v17 = vld [vmem:[%s11732_s1 + $0xcd0] sm:$0xf0]  ;;  %3509 = vmatpush.bf16.msra.mxu0 %v5815_v63  ;;  %v6823_v22 = vor.u32 %v7660_v8, %v6820_v9  ;;  %3523 = vmatpush.bf16.msra.mxu1 %v5943_v6  ;;  %v9437_v63 = vpop.f32.mrf.mxu2  ;;  %v3287_v8 = vpop.f32.mrf.mxu0 }
  0xef   :  { %v7592_v20 = vld [vmem:[%s11732_s1 + $0xdc4] sm:$0xf]  ;;  %v6548_v23 = vld [vmem:[%s11732_s1 + $0xdd0] sm:$0xf0]  ;;  %3537 = vmatpush.bf16.msra.mxu2 %v6071_v7  ;;  %3551 = vmatpush.bf16.msra.mxu3 %v6199_v12  ;;  %v6423_v31 = vor.u32 %v7560_v16, %v6420_v17  ;;  %v9448_v7 = vpop.f32.mrf.mxu3 }
  0xf0   :  { %v7624_v24 = vld [vmem:[%s11732_s1 + $0xec4] sm:$0xf]  ;;  %v6676_v25 = vld [vmem:[%s11732_s1 + $0xed0] sm:$0xf0]  ;;  %v6551_v34 = vor.u32 %v7592_v20, %v6548_v23 }
  0xf1   :  { %v7656_v28 = vld [vmem:[%s11732_s1 + $0xfc4] sm:$0xf]  ;;  %v6804_v29 = vld [vmem:[%s11732_s1 + $0xfd0] sm:$0xf0]  ;;  %v6679_v35 = vor.u32 %v7624_v24, %v6676_v25  ;;  %3510 = vmatmul.bf16.vlgmr.msra.gmra.mxu0 %v8536_v32  ;;  %3524 = vmatmul.bf16.vlgmr.msra.gmra.mxu1 %v8549_v37 }
  0xf2   :  { %3558 = vmatpush.bf16.msrb.mxu0 %v6439_v13  ;;  %3572 = vmatpush.bf16.msrb.mxu1 %v6567_v14  ;;  %v7556_v38 = vld [vmem:[%s11732_s1 + $0xca4] sm:$0xf]  ;;  %v6404_v43 = vld [vmem:[%s11732_s1 + $0xcb0] sm:$0xf0]  ;;  %v6807_v49 = vor.u32 %v7656_v28, %v6804_v29  ;;  %v3288_v13 = vadd.f32 %v3287_v8, %v9298_v21 }
  0xf3   :  { %3586 = vmatpush.bf16.msrb.mxu2 %v6695_v15  ;;  %v7588_v46 = vld [vmem:[%s11732_s1 + $0xda4] sm:$0xf]  ;;  %3600 = vmatpush.bf16.msrb.mxu3 %v6823_v22  ;;  %v6532_v50 = vld [vmem:[%s11732_s1 + $0xdb0] sm:$0xf0]  ;;  %v6407_v56 = vor.u32 %v7556_v38, %v6404_v43  ;;  %v3301_v15 = vpop.f32.mrf.mxu1 }
  0xf4   :  { %v7620_v51 = vld [vmem:[%s11732_s1 + $0xea4] sm:$0xf]  ;;  %v6660_v53 = vld [vmem:[%s11732_s1 + $0xeb0] sm:$0xf0]  ;;  %3538 = vmatmul.bf16.vlgmr.msra.gmra.mxu2 %v8547_v36  ;;  %3552 = vmatmul.bf16.vlgmr.msra.gmra.mxu3 %v8557_v41  ;;  %v6535_v57 = vor.u32 %v7588_v46, %v6532_v50  ;;  %v3302_v24 = vadd.f32 %v3301_v15, %v3288_v13 }
  0xf5   :  { %v7652_v10 = vld [vmem:[%s11732_s1 + $0xfa4] sm:$0xf]  ;;  %v6788_v54 = vld [vmem:[%s11732_s1 + $0xfb0] sm:$0xf0]  ;;  %v6663_v58 = vor.u32 %v7620_v51, %v6660_v53 }
  0xf6   :  { %3559 = vmatpush.bf16.msrb.mxu0 %v6423_v31  ;;  %3573 = vmatpush.bf16.msrb.mxu1 %v6551_v34  ;;  %v7552_v60 = vld [vmem:[%s11732_s1 + $0xc84] sm:$0xf]  ;;  %v6388_v61 = vld [vmem:[%s11732_s1 + $0xc90] sm:$0xf0]  ;;  %v6791_v3 = vor.u32 %v7652_v10, %v6788_v54  ;;  %v3315_v53 = vpop.f32.mrf.mxu2 }
  0xf7   :  { %3587 = vmatpush.bf16.msrb.mxu2 %v6679_v35  ;;  %v7584_v62 = vld [vmem:[%s11732_s1 + $0xd84] sm:$0xf]  ;;  %3601 = vmatpush.bf16.msrb.mxu3 %v6807_v49  ;;  %v6516_v4 = vld [vmem:[%s11732_s1 + $0xd90] sm:$0xf0]  ;;  %v6391_v14 = vor.u32 %v7552_v60, %v6388_v61 }
  0xf8   :  { %v7616_v5 = vld [vmem:[%s11732_s1 + $0xe84] sm:$0xf]  ;;  %v6644_v6 = vld [vmem:[%s11732_s1 + $0xe90] sm:$0xf0]  ;;  %v6519_v16 = vor.u32 %v7584_v62, %v6516_v4 }
  0xf9   :  { %v7648_v9 = vld [vmem:[%s11732_s1 + $0xf84] sm:$0xf]  ;;  %v6772_v12 = vld [vmem:[%s11732_s1 + $0xf90] sm:$0xf0]  ;;  %v6647_v17 = vor.u32 %v7616_v5, %v6644_v6 }
  0xfa   :  { %3560 = vmatpush.bf16.msrb.mxu0 %v6407_v56  ;;  %3574 = vmatpush.bf16.msrb.mxu1 %v6535_v57  ;;  %v7548_v20 = vld [vmem:[%s11732_s1 + $0xc64] sm:$0xf]  ;;  %v6372_v22 = vld [vmem:[%s11732_s1 + $0xc70] sm:$0xf0]  ;;  %v6775_v21 = vor.u32 %v7648_v9, %v6772_v12  ;;  %v3316_v57 = vadd.f32 %v3315_v53, %v3302_v24  ;;  %v5162_v53 = vld [vmem:[%s11732_s1 + $0x2e8] sm:$0xf] }
  0xfb   :  { %3588 = vmatpush.bf16.msrb.mxu2 %v6663_v58  ;;  %v7580_v23 = vld [vmem:[%s11732_s1 + $0xd64] sm:$0xf]  ;;  %3602 = vmatpush.bf16.msrb.mxu3 %v6791_v3  ;;  %v6500_v25 = vld [vmem:[%s11732_s1 + $0xd70] sm:$0xf0]  ;;  %v6375_v35 = vor.u32 %v7548_v20, %v6372_v22  ;;  %v3329_v58 = vpop.f32.mrf.mxu3 }
  0xfc   :  { %v7612_v28 = vld [vmem:[%s11732_s1 + $0xe64] sm:$0xf]  ;;  %v6628_v29 = vld [vmem:[%s11732_s1 + $0xe70] sm:$0xf0]  ;;  %v6503_v38 = vor.u32 %v7580_v23, %v6500_v25  ;;  %v9505_v3 = vadd.f32 %v3329_v58, %v3316_v57  ;;  %v5290_v57 = vld [vmem:[%s11732_s1 + $0x3e8] sm:$0xf] }
  0xfd   :  { %v7644_v31 = vld [vmem:[%s11732_s1 + $0xf64] sm:$0xf]  ;;  %v6756_v34 = vld [vmem:[%s11732_s1 + $0xf70] sm:$0xf0]  ;;  %v6631_v43 = vor.u32 %v7612_v28, %v6628_v29  ;;  %v7279_v58 = vld [vmem:[%s11732_s1 + $0x3f4] sm:$0xf0] }
  0xfe   :  { %3561 = vmatpush.bf16.msrb.mxu0 %v6391_v14  ;;  %3575 = vmatpush.bf16.msrb.mxu1 %v6519_v16  ;;  %v7544_v46 = vld [vmem:[%s11732_s1 + $0xc44] sm:$0xf]  ;;  %v6356_v49 = vld [vmem:[%s11732_s1 + $0xc50] sm:$0xf0]  ;;  %v6759_v51 = vor.u32 %v7644_v31, %v6756_v34 }
  0xff   :  { %3589 = vmatpush.bf16.msrb.mxu2 %v6647_v17  ;;  %v7576_v50 = vld [vmem:[%s11732_s1 + $0xd44] sm:$0xf]  ;;  %3603 = vmatpush.bf16.msrb.mxu3 %v6775_v21  ;;  %v6484_v10 = vld [vmem:[%s11732_s1 + $0xd50] sm:$0xf0]  ;;  %v6359_v62 = vor.u32 %v7544_v46, %v6356_v49  ;;  %v7183_v46 = vld [vmem:[%s11732_s1 + $0xf4] sm:$0xf0] }
 0x100   :  { %v7608_v54 = vld [vmem:[%s11732_s1 + $0xe44] sm:$0xf]  ;;  %v6612_v56 = vld [vmem:[%s11732_s1 + $0xe50] sm:$0xf0]  ;;  %v6487_v4 = vor.u32 %v7576_v50, %v6484_v10  ;;  %v5034_v49 = vld [vmem:[%s11732_s1 + $0x1e8] sm:$0xf] }
 0x101   :  { %v7640_v60 = vld [vmem:[%s11732_s1 + $0xf44] sm:$0xf]  ;;  %v6740_v61 = vld [vmem:[%s11732_s1 + $0xf50] sm:$0xf0]  ;;  %v6615_v5 = vor.u32 %v7608_v54, %v6612_v56  ;;  %v7247_v10 = vld [vmem:[%s11732_s1 + $0x2f4] sm:$0xf0] }
 0x102   :  { %3562 = vmatpush.bf16.msrb.mxu0 %v6375_v35  ;;  %3576 = vmatpush.bf16.msrb.mxu1 %v6503_v38  ;;  %v7540_v6 = vld [vmem:[%s11732_s1 + $0xc24] sm:$0xf]  ;;  %v6340_v8 = vld [vmem:[%s11732_s1 + $0xc30] sm:$0xf0]  ;;  %v6743_v12 = vor.u32 %v7640_v60, %v6740_v61 }
 0x103   :  { %3590 = vmatpush.bf16.msrb.mxu2 %v6631_v43  ;;  %v7572_v9 = vld [vmem:[%s11732_s1 + $0xd24] sm:$0xf]  ;;  %3604 = vmatpush.bf16.msrb.mxu3 %v6759_v51  ;;  %v6468_v13 = vld [vmem:[%s11732_s1 + $0xd30] sm:$0xf0]  ;;  %v6343_v20 = vor.u32 %v7540_v6, %v6340_v8  ;;  %v4906_v43 = vld [vmem:[%s11732_s1 + $0xe8] sm:$0xf] }
 0x104   :  { %v7604_v14 = vld [vmem:[%s11732_s1 + $0xe24] sm:$0xf]  ;;  %v6596_v15 = vld [vmem:[%s11732_s1 + $0xe30] sm:$0xf0]  ;;  %v6471_v21 = vor.u32 %v7572_v9, %v6468_v13  ;;  %v7215_v51 = vld [vmem:[%s11732_s1 + $0x1f4] sm:$0xf0]  ;;  %v4907_v61 = vor.u32 %v7183_v46, %v4906_v43  ;;  %v5291_v9 = vor.u32 %v7279_v58, %v5290_v57 }
 0x105   :  { %v7636_v16 = vld [vmem:[%s11732_s1 + $0xf24] sm:$0xf]  ;;  %v6724_v17 = vld [vmem:[%s11732_s1 + $0xf30] sm:$0xf0]  ;;  %v6599_v24 = vor.u32 %v7604_v14, %v6596_v15  ;;  %v7179_v6 = vld [vmem:[%s11732_s1 + $0xd4] sm:$0xf0]  ;;  %v9597_v15 = vpop.f32.mrf.mxu0 }
 0x106   :  { %3563 = vmatpush.bf16.msrb.mxu0 %v6359_v62  ;;  %v7536_v22 = vld [vmem:[%s11732_s1 + $0xc04] sm:$0xf]  ;;  %v6324_v23 = vld [vmem:[%s11732_s1 + $0xc10] sm:$0xf0]  ;;  %3577 = vmatpush.bf16.msrb.mxu1 %v6487_v4  ;;  %v6727_v31 = vor.u32 %v7636_v16, %v6724_v17  ;;  %v5035_v62 = vor.u32 %v7215_v51, %v5034_v49  ;;  %v5163_v4 = vor.u32 %v7247_v10, %v5162_v53  ;;  %v5018_v8 = vld [vmem:[%s11732_s1 + $0x1c8] sm:$0xf] }
 0x107   :  { %3591 = vmatpush.bf16.msrb.mxu2 %v6615_v5  ;;  %v7568_v25 = vld [vmem:[%s11732_s1 + $0xd04] sm:$0xf]  ;;  %v6452_v28 = vld [vmem:[%s11732_s1 + $0xd10] sm:$0xf0]  ;;  %3605 = vmatpush.bf16.msrb.mxu3 %v6743_v12  ;;  %v6327_v50 = vor.u32 %v7536_v22, %v6324_v23  ;;  %v4890_v5 = vld [vmem:[%s11732_s1 + $0xc8] sm:$0xf] }
 0x108   :  { %v7600_v29 = vld [vmem:[%s11732_s1 + $0xe04] sm:$0xf]  ;;  %v6580_v34 = vld [vmem:[%s11732_s1 + $0xe10] sm:$0xf0]  ;;  %v6455_v54 = vor.u32 %v7568_v25, %v6452_v28  ;;  %v7211_v12 = vld [vmem:[%s11732_s1 + $0x1d4] sm:$0xf0]  ;;  %v4891_v22 = vor.u32 %v7179_v6, %v4890_v5 }
 0x109   :  { %v7632_v35 = vld [vmem:[%s11732_s1 + $0xf04] sm:$0xf]  ;;  %v6708_v38 = vld [vmem:[%s11732_s1 + $0xf10] sm:$0xf0]  ;;  %v6583_v56 = vor.u32 %v7600_v29, %v6580_v34  ;;  %v5146_v13 = vld [vmem:[%s11732_s1 + $0x2c8] sm:$0xf]  ;;  %v5019_v23 = vor.u32 %v7211_v12, %v5018_v8 }
 0x10a   :  { %3564 = vmatpush.bf16.msrb.mxu0 %v6343_v20  ;;  %3578 = vmatpush.bf16.msrb.mxu1 %v6471_v21  ;;  %v6711_v60 = vor.u32 %v7632_v35, %v6708_v38  ;;  %v7243_v14 = vld [vmem:[%s11732_s1 + $0x2d4] sm:$0xf0]  ;;  %v5274_v16 = vld [vmem:[%s11732_s1 + $0x3c8] sm:$0xf]  ;;  %v9605_v20 = vpop.f32.mrf.mxu1 }
 0x10b   :  { %3592 = vmatpush.bf16.msrb.mxu2 %v6599_v24  ;;  %3606 = vmatpush.bf16.msrb.mxu3 %v6727_v31  ;;  %v7275_v17 = vld [vmem:[%s11732_s1 + $0x3d4] sm:$0xf0]  ;;  %v5147_v21 = vor.u32 %v7243_v14, %v5146_v13  ;;  %v4874_v24 = vld [vmem:[%s11732_s1 + $0xa8] sm:$0xf] }
 0x10c   :  { %v7175_v25 = vld [vmem:[%s11732_s1 + $0xb4] sm:$0xf0]  ;;  %v5002_v28 = vld [vmem:[%s11732_s1 + $0x1a8] sm:$0xf]  ;;  %v5275_v29 = vor.u32 %v7275_v17, %v5274_v16 }
 0x10d   :  { %v7207_v31 = vld [vmem:[%s11732_s1 + $0x1b4] sm:$0xf0]  ;;  %v5130_v34 = vld [vmem:[%s11732_s1 + $0x2a8] sm:$0xf]  ;;  %v4875_v46 = vor.u32 %v7175_v25, %v4874_v24 }
 0x10e   :  { %3565 = vmatpush.bf16.msrb.mxu0 %v6327_v50  ;;  %3579 = vmatpush.bf16.msrb.mxu1 %v6455_v54  ;;  %v7239_v35 = vld [vmem:[%s11732_s1 + $0x2b4] sm:$0xf0]  ;;  %v5258_v38 = vld [vmem:[%s11732_s1 + $0x3a8] sm:$0xf]  ;;  %v5003_v49 = vor.u32 %v7207_v31, %v5002_v28  ;;  %v9644_v54 = vpop.f32.mrf.mxu2 }
 0x10f   :  { %3593 = vmatpush.bf16.msrb.mxu2 %v6583_v56  ;;  %3607 = vmatpush.bf16.msrb.mxu3 %v6711_v60  ;;  %v7271_v43 = vld [vmem:[%s11732_s1 + $0x3b4] sm:$0xf0]  ;;  %v5131_v50 = vor.u32 %v7239_v35, %v5130_v34  ;;  %v4858_v51 = vld [vmem:[%s11732_s1 + $0x88] sm:$0xf] }
 0x110   :  { %v7171_v53 = vld [vmem:[%s11732_s1 + $0x94] sm:$0xf0]  ;;  %v4986_v10 = vld [vmem:[%s11732_s1 + $0x188] sm:$0xf]  ;;  %v5259_v56 = vor.u32 %v7271_v43, %v5258_v38 }
 0x111   :  { %3566 = vmatmul.bf16.vlgmr.msrb.gmra.mxu0 %v8764_v33  ;;  %3580 = vmatmul.bf16.vlgmr.msrb.gmra.mxu1 %v8777_v42  ;;  %v7203_v57 = vld [vmem:[%s11732_s1 + $0x194] sm:$0xf0]  ;;  %v5114_v58 = vld [vmem:[%s11732_s1 + $0x288] sm:$0xf]  ;;  %v4859_v8 = vor.u32 %v7171_v53, %v4858_v51 }
 0x112   :  { %3614 = vmatpush.bf16.msra.mxu0 %v4907_v61  ;;  %3628 = vmatpush.bf16.msra.mxu1 %v5035_v62  ;;  %v7235_v60 = vld [vmem:[%s11732_s1 + $0x294] sm:$0xf0]  ;;  %v9655_v61 = vpop.f32.mrf.mxu3  ;;  %v3343_v62 = vpop.f32.mrf.mxu0  ;;  %v4987_v12 = vor.u32 %v7203_v57, %v4986_v10  ;;  %v4842_v14 = vld [vmem:[%s11732_s1 + $0x68] sm:$0xf] }
 0x113   :  { %3642 = vmatpush.bf16.msra.mxu2 %v5163_v4  ;;  %3656 = vmatpush.bf16.msra.mxu3 %v5291_v9  ;;  %v5242_v4 = vld [vmem:[%s11732_s1 + $0x388] sm:$0xf]  ;;  %v7267_v5 = vld [vmem:[%s11732_s1 + $0x394] sm:$0xf0]  ;;  %v3344_v6 = vadd.f32 %v3343_v62, %v9505_v3  ;;  %v3357_v9 = vpop.f32.mrf.mxu1  ;;  %v5115_v13 = vor.u32 %v7235_v60, %v5114_v58 }
 0x114   :  { %3594 = vmatmul.bf16.vlgmr.msrb.gmra.mxu2 %v8775_v39  ;;  %3608 = vmatmul.bf16.vlgmr.msrb.gmra.mxu3 %v8785_v47  ;;  %v7167_v16 = vld [vmem:[%s11732_s1 + $0x74] sm:$0xf0]  ;;  %v4970_v17 = vld [vmem:[%s11732_s1 + $0x168] sm:$0xf]  ;;  %v5243_v3 = vor.u32 %v7267_v5, %v5242_v4 }
 0x115   :  { %v7231_v24 = vld [vmem:[%s11732_s1 + $0x274] sm:$0xf0]  ;;  %v5226_v25 = vld [vmem:[%s11732_s1 + $0x368] sm:$0xf] }
 0x116   :  { %3615 = vmatpush.bf16.msra.mxu0 %v4891_v22  ;;  %3629 = vmatpush.bf16.msra.mxu1 %v5019_v23  ;;  %v3358_v22 = vadd.f32 %v3357_v9, %v3344_v6  ;;  %v7199_v23 = vld [vmem:[%s11732_s1 + $0x174] sm:$0xf0]  ;;  %v4826_v35 = vld [vmem:[%s11732_s1 + $0x48] sm:$0xf] }
 0x117   :  { %3643 = vmatpush.bf16.msra.mxu2 %v5147_v21  ;;  %3657 = vmatpush.bf16.msra.mxu3 %v5275_v29  ;;  %v5098_v21 = vld [vmem:[%s11732_s1 + $0x268] sm:$0xf]  ;;  %v7263_v28 = vld [vmem:[%s11732_s1 + $0x374] sm:$0xf0]  ;;  %v4843_v29 = vor.u32 %v7167_v16, %v4842_v14  ;;  %v4971_v31 = vor.u32 %v7199_v23, %v4970_v17 }
 0x118   :  { %v5099_v34 = vor.u32 %v7231_v24, %v5098_v21  ;;  %v7163_v38 = vld [vmem:[%s11732_s1 + $0x54] sm:$0xf0]  ;;  %v4954_v43 = vld [vmem:[%s11732_s1 + $0x148] sm:$0xf] }
 0x119   :  { %v5082_v51 = vld [vmem:[%s11732_s1 + $0x248] sm:$0xf]  ;;  %v7227_v53 = vld [vmem:[%s11732_s1 + $0x254] sm:$0xf0]  ;;  %v4827_v60 = vor.u32 %v7163_v38, %v4826_v35 }
 0x11a   :  { %3616 = vmatpush.bf16.msra.mxu0 %v4875_v46  ;;  %3630 = vmatpush.bf16.msra.mxu1 %v5003_v49  ;;  %v5227_v46 = vor.u32 %v7263_v28, %v5226_v25  ;;  %v3371_v49 = vpop.f32.mrf.mxu2  ;;  %v5210_v57 = vld [vmem:[%s11732_s1 + $0x348] sm:$0xf]  ;;  %v7259_v58 = vld [vmem:[%s11732_s1 + $0x354] sm:$0xf0]  ;;  %v5083_v5 = vor.u32 %v7227_v53, %v5082_v51 }
 0x11b   :  { %3644 = vmatpush.bf16.msra.mxu2 %v5131_v50  ;;  %3658 = vmatpush.bf16.msra.mxu3 %v5259_v56  ;;  %v7195_v50 = vld [vmem:[%s11732_s1 + $0x154] sm:$0xf0]  ;;  %v3372_v10 = vadd.f32 %v3371_v49, %v3358_v22  ;;  %v3385_v56 = vpop.f32.mrf.mxu3  ;;  %v4810_v6 = vld [vmem:[%s11732_s1 + $0x28] sm:$0xf] }
 0x11c   :  { %v4955_v4 = vor.u32 %v7195_v50, %v4954_v43  ;;  %v4938_v9 = vld [vmem:[%s11732_s1 + $0x128] sm:$0xf]  ;;  %v7223_v16 = vld [vmem:[%s11732_s1 + $0x234] sm:$0xf0] }
 0x11d   :  { %v9712_v62 = vadd.f32 %v3385_v56, %v3372_v10  ;;  %v5066_v14 = vld [vmem:[%s11732_s1 + $0x228] sm:$0xf]  ;;  %v7155_v21 = vld [vmem:[%s11732_s1 + $0x14] sm:$0xf0] }
 0x11e   :  { %3617 = vmatpush.bf16.msra.mxu0 %v4859_v8  ;;  %3631 = vmatpush.bf16.msra.mxu1 %v4987_v12  ;;  %v7159_v8 = vld [vmem:[%s11732_s1 + $0x34] sm:$0xf0]  ;;  %v5211_v12 = vor.u32 %v7259_v58, %v5210_v57  ;;  %v5194_v17 = vld [vmem:[%s11732_s1 + $0x328] sm:$0xf]  ;;  %v5067_v25 = vor.u32 %v7223_v16, %v5066_v14 }
 0x11f   :  { %3645 = vmatpush.bf16.msra.mxu2 %v5115_v13  ;;  %3659 = vmatpush.bf16.msra.mxu3 %v5243_v3  ;;  %v7191_v13 = vld [vmem:[%s11732_s1 + $0x134] sm:$0xf0]  ;;  %v4811_v22 = vor.u32 %v7159_v8, %v4810_v6  ;;  %v4794_v23 = vld [vmem:[%s11732_s1 + $0x8] sm:$0xf] }
 0x120   :  { %v7255_v3 = vld [vmem:[%s11732_s1 + $0x334] sm:$0xf0]  ;;  %v4939_v24 = vor.u32 %v7191_v13, %v4938_v9  ;;  %v4922_v28 = vld [vmem:[%s11732_s1 + $0x108] sm:$0xf]  ;;  %v4795_v51 = vor.u32 %v7155_v21, %v4794_v23  ;;  %v9804_v23 = vpop.f32.mrf.mxu0 }
 0x121   :  { %v7219_v35 = vld [vmem:[%s11732_s1 + $0x214] sm:$0xf0]  ;;  %v5178_v38 = vld [vmem:[%s11732_s1 + $0x308] sm:$0xf] }
 0x122   :  { %3618 = vmatpush.bf16.msra.mxu0 %v4843_v29  ;;  %3632 = vmatpush.bf16.msra.mxu1 %v4971_v31  ;;  %v7187_v29 = vld [vmem:[%s11732_s1 + $0x114] sm:$0xf0]  ;;  %v5050_v31 = vld [vmem:[%s11732_s1 + $0x208] sm:$0xf] }
 0x123   :  { %3646 = vmatpush.bf16.msra.mxu2 %v5099_v34  ;;  %3660 = vmatpush.bf16.msra.mxu3 %v5227_v46  ;;  %v5195_v34 = vor.u32 %v7255_v3, %v5194_v17  ;;  %v7251_v43 = vld [vmem:[%s11732_s1 + $0x314] sm:$0xf0]  ;;  %v5418_v46 = vld [vmem:[%s11732_s1 + $0x4e8] sm:$0xf]  ;;  %v4923_v57 = vor.u32 %v7187_v29, %v4922_v28  ;;  %v5051_v58 = vor.u32 %v7219_v35, %v5050_v31  ;;  %v9812_v28 = vpop.f32.mrf.mxu1 }
 0x124   :  { %v7311_v49 = vld [vmem:[%s11732_s1 + $0x4f4] sm:$0xf0]  ;;  %v5546_v50 = vld [vmem:[%s11732_s1 + $0x5e8] sm:$0xf] }
 0x125   :  { %v7343_v53 = vld [vmem:[%s11732_s1 + $0x5f4] sm:$0xf0]  ;;  %v5674_v10 = vld [vmem:[%s11732_s1 + $0x6e8] sm:$0xf]  ;;  %v5419_v6 = vor.u32 %v7311_v49, %v5418_v46 }
 0x126   :  { %3619 = vmatpush.bf16.msra.mxu0 %v4827_v60  ;;  %3633 = vmatpush.bf16.msra.mxu1 %v4955_v4  ;;  %v7375_v56 = vld [vmem:[%s11732_s1 + $0x6f4] sm:$0xf0]  ;;  %v5802_v60 = vld [vmem:[%s11732_s1 + $0x7e8] sm:$0xf]  ;;  %v5547_v8 = vor.u32 %v7343_v53, %v5546_v50 }
 0x127   :  { %3647 = vmatpush.bf16.msra.mxu2 %v5083_v5  ;;  %3661 = vmatpush.bf16.msra.mxu3 %v5211_v12  ;;  %v7407_v4 = vld [vmem:[%s11732_s1 + $0x7f4] sm:$0xf0]  ;;  %v5179_v5 = vor.u32 %v7251_v43, %v5178_v38  ;;  %v5675_v9 = vor.u32 %v7375_v56, %v5674_v10  ;;  %v5402_v12 = vld [vmem:[%s11732_s1 + $0x4c8] sm:$0xf]  ;;  %v9845_v56 = vld [vmem:[%s11733_s2] sm:$0xf] }
 0x128   :  { %v7307_v13 = vld [vmem:[%s11732_s1 + $0x4d4] sm:$0xf0]  ;;  %v5530_v14 = vld [vmem:[%s11732_s1 + $0x5c8] sm:$0xf]  ;;  %v5803_v16 = vor.u32 %v7407_v4, %v5802_v60 }
 0x129   :  { %v7339_v17 = vld [vmem:[%s11732_s1 + $0x5d4] sm:$0xf0]  ;;  %v5658_v3 = vld [vmem:[%s11732_s1 + $0x6c8] sm:$0xf] }
 0x12a   :  { %3620 = vmatpush.bf16.msra.mxu0 %v4811_v22  ;;  %3634 = vmatpush.bf16.msra.mxu1 %v4939_v24  ;;  %v7371_v22 = vld [vmem:[%s11732_s1 + $0x6d4] sm:$0xf0]  ;;  %v5786_v21 = vld [vmem:[%s11732_s1 + $0x7c8] sm:$0xf]  ;;  %v5531_v29 = vor.u32 %v7339_v17, %v5530_v14 }
 0x12b   :  { %3648 = vmatpush.bf16.msra.mxu2 %v5067_v25  ;;  %3662 = vmatpush.bf16.msra.mxu3 %v5195_v34  ;;  %v7403_v24 = vld [vmem:[%s11732_s1 + $0x7d4] sm:$0xf0]  ;;  %v5403_v25 = vor.u32 %v7307_v13, %v5402_v12  ;;  %v5659_v31 = vor.u32 %v7371_v22, %v5658_v3  ;;  %v5386_v34 = vld [vmem:[%s11732_s1 + $0x4a8] sm:$0xf]  ;;  %v9874_v22 = vpop.f32.mrf.mxu3 }
 0x12c   :  { %v7303_v35 = vld [vmem:[%s11732_s1 + $0x4b4] sm:$0xf0]  ;;  %v5514_v38 = vld [vmem:[%s11732_s1 + $0x5a8] sm:$0xf]  ;;  %v5787_v43 = vor.u32 %v7403_v24, %v5786_v21 }
 0x12d   :  { %v7335_v46 = vld [vmem:[%s11732_s1 + $0x5b4] sm:$0xf0]  ;;  %v5642_v49 = vld [vmem:[%s11732_s1 + $0x6a8] sm:$0xf]  ;;  %v5387_v10 = vor.u32 %v7303_v35, %v5386_v34 }
 0x12e   :  { %3621 = vmatpush.bf16.msra.mxu0 %v4795_v51  ;;  %3635 = vmatpush.bf16.msra.mxu1 %v4923_v57  ;;  %v7367_v50 = vld [vmem:[%s11732_s1 + $0x6b4] sm:$0xf0]  ;;  %v5770_v51 = vld [vmem:[%s11732_s1 + $0x7a8] sm:$0xf]  ;;  %v11742_v57 = vperm.slane %v9845_v56, 1  ;;  %v3399_v3 = vpop.f32.mrf.mxu0 }
 0x12f   :  { %3649 = vmatpush.bf16.msra.mxu2 %v5051_v58  ;;  %3663 = vmatpush.bf16.msra.mxu3 %v5179_v5  ;;  %v7399_v53 = vld [vmem:[%s11732_s1 + $0x7b4] sm:$0xf0]  ;;  %v5515_v58 = vor.u32 %v7335_v46, %v5514_v38  ;;  %v5643_v60 = vor.u32 %v7367_v50, %v5642_v49  ;;  %v5370_v4 = vld [vmem:[%s11732_s1 + $0x488] sm:$0xf]  ;;  %v3413_v38 = vpop.f32.mrf.mxu1 }
 0x130   :  { %v7299_v5 = vld [vmem:[%s11732_s1 + $0x494] sm:$0xf0]  ;;  %v5626_v13 = vld [vmem:[%s11732_s1 + $0x688] sm:$0xf]  ;;  %v3400_v24 = vadd.f32 %v3399_v3, %v11742_v57 }
 0x131   :  { %3622 = vmatmul.bf16.vlgmr.msra.gmra.mxu0 %v8086_v59  ;;  %3636 = vmatmul.bf16.vlgmr.msra.gmra.mxu1 %v8122_v11  ;;  %v7331_v12 = vld [vmem:[%s11732_s1 + $0x594] sm:$0xf0]  ;;  %v5371_v21 = vor.u32 %v7299_v5, %v5370_v4  ;;  %v5482_v35 = vld [vmem:[%s11732_s1 + $0x568] sm:$0xf] }
 0x132   :  { %3670 = vmatpush.bf16.msrb.mxu0 %v5419_v6  ;;  %3684 = vmatpush.bf16.msrb.mxu1 %v5547_v8  ;;  %v5498_v6 = vld [vmem:[%s11732_s1 + $0x588] sm:$0xf]  ;;  %v9857_v8 = vpop.f32.mrf.mxu2  ;;  %v7363_v14 = vld [vmem:[%s11732_s1 + $0x694] sm:$0xf0] }
 0x133   :  { %3698 = vmatpush.bf16.msrb.mxu2 %v5675_v9  ;;  %3712 = vmatpush.bf16.msrb.mxu3 %v5803_v16  ;;  %v5771_v9 = vor.u32 %v7399_v53, %v5770_v51  ;;  %v5754_v16 = vld [vmem:[%s11732_s1 + $0x788] sm:$0xf]  ;;  %v7395_v17 = vld [vmem:[%s11732_s1 + $0x794] sm:$0xf0]  ;;  %v3414_v51 = vadd.f32 %v3413_v38, %v3400_v24 }
 0x134   :  { %3650 = vmatmul.bf16.vlgmr.msra.gmra.mxu2 %v8100_v2  ;;  %3664 = vmatmul.bf16.vlgmr.msra.gmra.mxu3 %v8136_v18  ;;  %v7295_v34 = vld [vmem:[%s11732_s1 + $0x474] sm:$0xf0]  ;;  %v5610_v49 = vld [vmem:[%s11732_s1 + $0x668] sm:$0xf] }
 0x135   :  { %v7327_v46 = vld [vmem:[%s11732_s1 + $0x574] sm:$0xf0]  ;;  %v5738_v53 = vld [vmem:[%s11732_s1 + $0x768] sm:$0xf] }
 0x136   :  { %3671 = vmatpush.bf16.msrb.mxu0 %v5403_v25  ;;  %3685 = vmatpush.bf16.msrb.mxu1 %v5531_v29  ;;  %v5499_v25 = vor.u32 %v7331_v12, %v5498_v6  ;;  %v5627_v29 = vor.u32 %v7363_v14, %v5626_v13  ;;  %v7359_v50 = vld [vmem:[%s11732_s1 + $0x674] sm:$0xf0]  ;;  %v5338_v5 = vld [vmem:[%s11732_s1 + $0x448] sm:$0xf] }
 0x137   :  { %3699 = vmatpush.bf16.msrb.mxu2 %v5659_v31  ;;  %3713 = vmatpush.bf16.msrb.mxu3 %v5787_v43  ;;  %v5354_v31 = vld [vmem:[%s11732_s1 + $0x468] sm:$0xf]  ;;  %v5755_v43 = vor.u32 %v7395_v17, %v5754_v16  ;;  %v5611_v4 = vor.u32 %v7359_v50, %v5610_v49  ;;  %v7291_v6 = vld [vmem:[%s11732_s1 + $0x454] sm:$0xf0] }
 0x138   :  { %v7323_v13 = vld [vmem:[%s11732_s1 + $0x554] sm:$0xf0]  ;;  %v5594_v14 = vld [vmem:[%s11732_s1 + $0x648] sm:$0xf] }
 0x139   :  { %v7355_v16 = vld [vmem:[%s11732_s1 + $0x654] sm:$0xf0]  ;;  %v5722_v3 = vld [vmem:[%s11732_s1 + $0x748] sm:$0xf] }
 0x13a   :  { %3672 = vmatpush.bf16.msrb.mxu0 %v5387_v10  ;;  %3686 = vmatpush.bf16.msrb.mxu1 %v5515_v58  ;;  %v7391_v10 = vld [vmem:[%s11732_s1 + $0x774] sm:$0xf0]  ;;  %v5355_v58 = vor.u32 %v7295_v34, %v5354_v31  ;;  %v3427_v17 = vpop.f32.mrf.mxu2  ;;  %v5595_v34 = vor.u32 %v7355_v16, %v5594_v14  ;;  %v5562_v14 = vld [vmem:[%s11732_s1 + $0x608] sm:$0xf] }
 0x13b   :  { %3700 = vmatpush.bf16.msrb.mxu2 %v5643_v60  ;;  %3714 = vmatpush.bf16.msrb.mxu3 %v5771_v9  ;;  %v5483_v60 = vor.u32 %v7327_v46, %v5482_v35  ;;  %v5466_v9 = vld [vmem:[%s11732_s1 + $0x548] sm:$0xf]  ;;  %v5739_v12 = vor.u32 %v7391_v10, %v5738_v53  ;;  %v3428_v24 = vadd.f32 %v3427_v17, %v3414_v51  ;;  %v7287_v38 = vld [vmem:[%s11732_s1 + $0x434] sm:$0xf0] }
 0x13c   :  { %v5467_v31 = vor.u32 %v7323_v13, %v5466_v9  ;;  %v5322_v35 = vld [vmem:[%s11732_s1 + $0x428] sm:$0xf]  ;;  %v7319_v50 = vld [vmem:[%s11732_s1 + $0x534] sm:$0xf0] }
 0x13d   :  { %v5578_v51 = vld [vmem:[%s11732_s1 + $0x628] sm:$0xf]  ;;  %v7351_v53 = vld [vmem:[%s11732_s1 + $0x634] sm:$0xf0] }
 0x13e   :  { %3673 = vmatpush.bf16.msrb.mxu0 %v5371_v21  ;;  %3687 = vmatpush.bf16.msrb.mxu1 %v5499_v25  ;;  %v7387_v21 = vld [vmem:[%s11732_s1 + $0x754] sm:$0xf0]  ;;  %v5339_v25 = vor.u32 %v7291_v6, %v5338_v5  ;;  %v5706_v10 = vld [vmem:[%s11732_s1 + $0x728] sm:$0xf]  ;;  %v5579_v9 = vor.u32 %v7351_v53, %v5578_v51 }
 0x13f   :  { %3701 = vmatpush.bf16.msrb.mxu2 %v5627_v29  ;;  %3715 = vmatpush.bf16.msrb.mxu3 %v5755_v43  ;;  %v3441_v29 = vpop.f32.mrf.mxu3  ;;  %v5450_v43 = vld [vmem:[%s11732_s1 + $0x528] sm:$0xf]  ;;  %v5723_v49 = vor.u32 %v7387_v21, %v5722_v3  ;;  %v7283_v5 = vld [vmem:[%s11732_s1 + $0x414] sm:$0xf0] }
 0x140   :  { %v9935_v46 = vadd.f32 %v3441_v29, %v3428_v24  ;;  %v5451_v6 = vor.u32 %v7319_v50, %v5450_v43  ;;  %v7315_v13 = vld [vmem:[%s11732_s1 + $0x514] sm:$0xf0]  ;;  %v5690_v3 = vld [vmem:[%s11732_s1 + $0x708] sm:$0xf] }
 0x141   :  { %v7347_v17 = vld [vmem:[%s11732_s1 + $0x614] sm:$0xf0]  ;;  %v5930_v24 = vld [vmem:[%s11732_s1 + $0x8e8] sm:$0xf] }
 0x142   :  { %3674 = vmatpush.bf16.msrb.mxu0 %v5355_v58  ;;  %3688 = vmatpush.bf16.msrb.mxu1 %v5483_v60  ;;  %v7383_v58 = vld [vmem:[%s11732_s1 + $0x734] sm:$0xf0]  ;;  %v5323_v60 = vor.u32 %v7287_v38, %v5322_v35  ;;  %v6058_v29 = vld [vmem:[%s11732_s1 + $0x9e8] sm:$0xf] }
 0x143   :  { %3702 = vmatpush.bf16.msrb.mxu2 %v5611_v4  ;;  %3716 = vmatpush.bf16.msrb.mxu3 %v5739_v12  ;;  %v5306_v4 = vld [vmem:[%s11732_s1 + $0x408] sm:$0xf]  ;;  %v5707_v16 = vor.u32 %v7383_v58, %v5706_v10  ;;  %v7379_v21 = vld [vmem:[%s11732_s1 + $0x714] sm:$0xf0] }
 0x144   :  { %v5434_v12 = vld [vmem:[%s11732_s1 + $0x508] sm:$0xf]  ;;  %v7503_v38 = vld [vmem:[%s11732_s1 + $0xaf4] sm:$0xf0]  ;;  %v5691_v53 = vor.u32 %v7379_v21, %v5690_v3  ;;  %v10026_v21 = vpop.f32.mrf.mxu1 }
 0x145   :  { %v6186_v35 = vld [vmem:[%s11732_s1 + $0xae8] sm:$0xf]  ;;  %v5435_v43 = vor.u32 %v7315_v13, %v5434_v12  ;;  %v7535_v51 = vld [vmem:[%s11732_s1 + $0xbf4] sm:$0xf0] }
 0x146   :  { %3675 = vmatpush.bf16.msrb.mxu0 %v5339_v25  ;;  %3689 = vmatpush.bf16.msrb.mxu1 %v5467_v31  ;;  %v7439_v25 = vld [vmem:[%s11732_s1 + $0x8f4] sm:$0xf0]  ;;  %v5307_v31 = vor.u32 %v7283_v5, %v5306_v4  ;;  %v6314_v50 = vld [vmem:[%s11732_s1 + $0xbe8] sm:$0xf]  ;;  %v10000_v4 = vpop.f32.mrf.mxu0 }
 0x147   :  { %3703 = vmatpush.bf16.msrb.mxu2 %v5595_v34  ;;  %3717 = vmatpush.bf16.msrb.mxu3 %v5723_v49  ;;  %v7471_v34 = vld [vmem:[%s11732_s1 + $0x9f4] sm:$0xf0]  ;;  %v5563_v49 = vor.u32 %v7347_v17, %v5562_v14  ;;  %v5931_v10 = vor.u32 %v7439_v25, %v5930_v24  ;;  %v5914_v5 = vld [vmem:[%s11732_s1 + $0x8c8] sm:$0xf]  ;;  %v6315_v12 = vor.u32 %v7535_v51, %v6314_v50 }
 0x148   :  { %v6059_v58 = vor.u32 %v7471_v34, %v6058_v29  ;;  %v7467_v13 = vld [vmem:[%s11732_s1 + $0x9d4] sm:$0xf0]  ;;  %v6170_v14 = vld [vmem:[%s11732_s1 + $0xac8] sm:$0xf] }
 0x149   :  { %v6298_v17 = vld [vmem:[%s11732_s1 + $0xbc8] sm:$0xf]  ;;  %v7531_v3 = vld [vmem:[%s11732_s1 + $0xbd4] sm:$0xf0] }
 0x14a   :  { %3676 = vmatpush.bf16.msrb.mxu0 %v5323_v60  ;;  %3690 = vmatpush.bf16.msrb.mxu1 %v5451_v6  ;;  %v6187_v60 = vor.u32 %v7503_v38, %v6186_v35  ;;  %v7435_v6 = vld [vmem:[%s11732_s1 + $0x8d4] sm:$0xf0]  ;;  %v6026_v35 = vld [vmem:[%s11732_s1 + $0x9a8] sm:$0xf]  ;;  %v6299_v38 = vor.u32 %v7531_v3, %v6298_v17 }
 0x14b   :  { %3704 = vmatpush.bf16.msrb.mxu2 %v5579_v9  ;;  %3718 = vmatpush.bf16.msrb.mxu3 %v5707_v16  ;;  %v6042_v9 = vld [vmem:[%s11732_s1 + $0x9c8] sm:$0xf]  ;;  %v7499_v16 = vld [vmem:[%s11732_s1 + $0xad4] sm:$0xf0]  ;;  %v5915_v24 = vor.u32 %v7435_v6, %v5914_v5 }
 0x14c   :  { %v6043_v25 = vor.u32 %v7467_v13, %v6042_v9  ;;  %v6171_v29 = vor.u32 %v7499_v16, %v6170_v14  ;;  %v7431_v34 = vld [vmem:[%s11732_s1 + $0x8b4] sm:$0xf0]  ;;  %v6282_v51 = vld [vmem:[%s11732_s1 + $0xba8] sm:$0xf]  ;;  %v10067_v14 = vpop.f32.mrf.mxu3 }
 0x14d   :  { %v7495_v50 = vld [vmem:[%s11732_s1 + $0xab4] sm:$0xf0]  ;;  %v5882_v6 = vld [vmem:[%s11732_s1 + $0x888] sm:$0xf] }
 0x14e   :  { %3677 = vmatpush.bf16.msrb.mxu0 %v5307_v31  ;;  %3691 = vmatpush.bf16.msrb.mxu1 %v5435_v43  ;;  %v5898_v31 = vld [vmem:[%s11732_s1 + $0x8a8] sm:$0xf]  ;;  %v7463_v43 = vld [vmem:[%s11732_s1 + $0x9b4] sm:$0xf0] }
 0x14f   :  { %3705 = vmatpush.bf16.msrb.mxu2 %v5563_v49  ;;  %3719 = vmatpush.bf16.msrb.mxu3 %v5691_v53  ;;  %v6154_v49 = vld [vmem:[%s11732_s1 + $0xaa8] sm:$0xf]  ;;  %v7527_v53 = vld [vmem:[%s11732_s1 + $0xbb4] sm:$0xf0] }
 0x150   :  { %v6155_v5 = vor.u32 %v7495_v50, %v6154_v49  ;;  %v7427_v9 = vld [vmem:[%s11732_s1 + $0x894] sm:$0xf0]  ;;  %v6283_v13 = vor.u32 %v7527_v53, %v6282_v51  ;;  %v6138_v17 = vld [vmem:[%s11732_s1 + $0xa88] sm:$0xf] }
 0x151   :  { %3678 = vmatmul.bf16.vlgmr.msrb.gmra.mxu0 %v8308_v40  ;;  %3692 = vmatmul.bf16.vlgmr.msrb.gmra.mxu1 %v8321_v45  ;;  %v7459_v16 = vld [vmem:[%s11732_s1 + $0x994] sm:$0xf0]  ;;  %v5866_v49 = vld [vmem:[%s11732_s1 + $0x868] sm:$0xf] }
 0x152   :  { %3726 = vmatpush.bf16.msra.mxu0 %v5931_v10  ;;  %3740 = vmatpush.bf16.msra.mxu1 %v6059_v58  ;;  %v5899_v10 = vor.u32 %v7431_v34, %v5898_v31  ;;  %v10056_v58 = vpop.f32.mrf.mxu2  ;;  %v7491_v3 = vld [vmem:[%s11732_s1 + $0xa94] sm:$0xf0]  ;;  %v5883_v34 = vor.u32 %v7427_v9, %v5882_v6  ;;  %v5994_v51 = vld [vmem:[%s11732_s1 + $0x968] sm:$0xf] }
 0x153   :  { %3754 = vmatpush.bf16.msra.mxu2 %v6187_v60  ;;  %3768 = vmatpush.bf16.msra.mxu3 %v6315_v12  ;;  %v6027_v60 = vor.u32 %v7463_v43, %v6026_v35  ;;  %v6010_v12 = vld [vmem:[%s11732_s1 + $0x988] sm:$0xf]  ;;  %v3469_v43 = vpop.f32.mrf.mxu1  ;;  %v7423_v50 = vld [vmem:[%s11732_s1 + $0x874] sm:$0xf0] }
 0x154   :  { %3706 = vmatmul.bf16.vlgmr.msrb.gmra.mxu2 %v8319_v44  ;;  %3720 = vmatmul.bf16.vlgmr.msrb.gmra.mxu3 %v8329_v48  ;;  %v6011_v35 = vor.u32 %v7459_v16, %v6010_v12  ;;  %v6250_v6 = vld [vmem:[%s11732_s1 + $0xb68] sm:$0xf]  ;;  %v7519_v9 = vld [vmem:[%s11732_s1 + $0xb74] sm:$0xf0]  ;;  %v5867_v12 = vor.u32 %v7423_v50, %v5866_v49 }
 0x155   :  { %v7515_v49 = vld [vmem:[%s11732_s1 + $0xb54] sm:$0xf0] }
 0x156   :  { %3727 = vmatpush.bf16.msra.mxu0 %v5915_v24  ;;  %3741 = vmatpush.bf16.msra.mxu1 %v6043_v25  ;;  %v3455_v24 = vpop.f32.mrf.mxu0  ;;  %v6266_v25 = vld [vmem:[%s11732_s1 + $0xb88] sm:$0xf] }
 0x157   :  { %3755 = vmatpush.bf16.msra.mxu2 %v6171_v29  ;;  %3769 = vmatpush.bf16.msra.mxu3 %v6299_v38  ;;  %v7523_v29 = vld [vmem:[%s11732_s1 + $0xb94] sm:$0xf0]  ;;  %v3456_v31 = vadd.f32 %v3455_v24, %v9935_v46  ;;  %v6139_v38 = vor.u32 %v7491_v3, %v6138_v17  ;;  %v5850_v17 = vld [vmem:[%s11732_s1 + $0x848] sm:$0xf]  ;;  %v3497_v50 = vpop.f32.mrf.mxu3 }
 0x158   :  { %v6267_v46 = vor.u32 %v7523_v29, %v6266_v25  ;;  %v7419_v3 = vld [vmem:[%s11732_s1 + $0x854] sm:$0xf0]  ;;  %v5978_v24 = vld [vmem:[%s11732_s1 + $0x948] sm:$0xf]  ;;  %v6251_v25 = vor.u32 %v7519_v9, %v6250_v6 }
 0x159   :  { %v3470_v53 = vadd.f32 %v3469_v43, %v3456_v31  ;;  %v7451_v31 = vld [vmem:[%s11732_s1 + $0x954] sm:$0xf0]  ;;  %v6234_v43 = vld [vmem:[%s11732_s1 + $0xb48] sm:$0xf] }
 0x15a   :  { %3728 = vmatpush.bf16.msra.mxu0 %v5899_v10  ;;  %3742 = vmatpush.bf16.msra.mxu1 %v6027_v60  ;;  %v7455_v10 = vld [vmem:[%s11732_s1 + $0x974] sm:$0xf0]  ;;  %v6122_v60 = vld [vmem:[%s11732_s1 + $0xa68] sm:$0xf]  ;;  %v3483_v29 = vpop.f32.mrf.mxu2  ;;  %v6235_v9 = vor.u32 %v7515_v49, %v6234_v43 }
 0x15b   :  { %3756 = vmatpush.bf16.msra.mxu2 %v6155_v5  ;;  %3770 = vmatpush.bf16.msra.mxu3 %v6283_v13  ;;  %v7487_v5 = vld [vmem:[%s11732_s1 + $0xa74] sm:$0xf0]  ;;  %v5995_v13 = vor.u32 %v7455_v10, %v5994_v51  ;;  %v5851_v51 = vor.u32 %v7419_v3, %v5850_v17  ;;  %v5979_v10 = vor.u32 %v7451_v31, %v5978_v24  ;;  %v5962_v6 = vld [vmem:[%s11732_s1 + $0x928] sm:$0xf] }
 0x15c   :  { %v6123_v16 = vor.u32 %v7487_v5, %v6122_v60  ;;  %v7415_v5 = vld [vmem:[%s11732_s1 + $0x834] sm:$0xf0]  ;;  %v6218_v17 = vld [vmem:[%s11732_s1 + $0xb28] sm:$0xf] }
 0x15d   :  { %v7511_v3 = vld [vmem:[%s11732_s1 + $0xb34] sm:$0xf0]  ;;  %v6074_v43 = vld [vmem:[%s11732_s1 + $0xa08] sm:$0xf] }
 0x15e   :  { %3729 = vmatpush.bf16.msra.mxu0 %v5883_v34  ;;  %3743 = vmatpush.bf16.msra.mxu1 %v6011_v35  ;;  %v6106_v34 = vld [vmem:[%s11732_s1 + $0xa48] sm:$0xf]  ;;  %v7483_v35 = vld [vmem:[%s11732_s1 + $0xa54] sm:$0xf0]  ;;  %v6219_v49 = vor.u32 %v7511_v3, %v6218_v17 }
 0x15f   :  { %3757 = vmatpush.bf16.msra.mxu2 %v6139_v38  ;;  %3771 = vmatpush.bf16.msra.mxu3 %v6267_v46  ;;  %v3484_v38 = vadd.f32 %v3483_v29, %v3470_v53  ;;  %v6107_v60 = vor.u32 %v7483_v35, %v6106_v34  ;;  %v5834_v53 = vld [vmem:[%s11732_s1 + $0x828] sm:$0xf]  ;;  %v7411_v29 = vld [vmem:[%s11732_s1 + $0x814] sm:$0xf0] }
 0x160   :  { %v5835_v24 = vor.u32 %v7415_v5, %v5834_v53  ;;  %v5946_v35 = vld [vmem:[%s11732_s1 + $0x908] sm:$0xf]  ;;  %v7567_v53 = vld [vmem:[%s11732_s1 + $0xcf4] sm:$0xf0] }
 0x161   :  { %v10133_v46 = vadd.f32 %v3497_v50, %v3484_v38  ;;  %v7443_v38 = vld [vmem:[%s11732_s1 + $0x914] sm:$0xf0]  ;;  %v6570_v5 = vld [vmem:[%s11732_s1 + $0xde8] sm:$0xf] }
 0x162   :  { %3730 = vmatpush.bf16.msra.mxu0 %v5867_v12  ;;  %3744 = vmatpush.bf16.msra.mxu1 %v5995_v13  ;;  %v7447_v12 = vld [vmem:[%s11732_s1 + $0x934] sm:$0xf0]  ;;  %v6090_v13 = vld [vmem:[%s11732_s1 + $0xa28] sm:$0xf] }
 0x163   :  { %3758 = vmatpush.bf16.msra.mxu2 %v6123_v16  ;;  %3772 = vmatpush.bf16.msra.mxu3 %v6251_v25  ;;  %v7479_v16 = vld [vmem:[%s11732_s1 + $0xa34] sm:$0xf0]  ;;  %v5818_v25 = vld [vmem:[%s11732_s1 + $0x808] sm:$0xf]  ;;  %v5963_v31 = vor.u32 %v7447_v12, %v5962_v6 }
 0x164   :  { %v6091_v34 = vor.u32 %v7479_v16, %v6090_v13  ;;  %v7475_v50 = vld [vmem:[%s11732_s1 + $0xa14] sm:$0xf0]  ;;  %v5819_v6 = vor.u32 %v7411_v29, %v5818_v25  ;;  %v6698_v12 = vld [vmem:[%s11732_s1 + $0xee8] sm:$0xf]  ;;  %v5947_v16 = vor.u32 %v7443_v38, %v5946_v35 }
 0x165   :  { %v7631_v13 = vld [vmem:[%s11732_s1 + $0xef4] sm:$0xf0]  ;;  %v6075_v17 = vor.u32 %v7475_v50, %v6074_v43  ;;  %v6826_v3 = vld [vmem:[%s11732_s1 + $0xfe8] sm:$0xf] }
 0x166   :  { %3731 = vmatpush.bf16.msra.mxu0 %v5851_v51  ;;  %3745 = vmatpush.bf16.msra.mxu1 %v5979_v10  ;;  %v6202_v51 = vld [vmem:[%s11732_s1 + $0xb08] sm:$0xf]  ;;  %v7507_v10 = vld [vmem:[%s11732_s1 + $0xb14] sm:$0xf0]  ;;  %v6699_v57 = vor.u32 %v7631_v13, %v6698_v12 }
 0x167   :  { %3759 = vmatpush.bf16.msra.mxu2 %v6107_v60  ;;  %3773 = vmatpush.bf16.msra.mxu3 %v6235_v9  ;;  %v6442_v60 = vld [vmem:[%s11732_s1 + $0xce8] sm:$0xf]  ;;  %v7599_v9 = vld [vmem:[%s11732_s1 + $0xdf4] sm:$0xf0]  ;;  %v6203_v25 = vor.u32 %v7507_v10, %v6202_v51  ;;  %v10225_v51 = vpop.f32.mrf.mxu0 }
 0x168   :  { %v6443_v29 = vor.u32 %v7567_v53, %v6442_v60  ;;  %v6571_v0 = vor.u32 %v7599_v9, %v6570_v5  ;;  %v6554_v35 = vld [vmem:[%s11732_s1 + $0xdc8] sm:$0xf]  ;;  %v7595_v43 = vld [vmem:[%s11732_s1 + $0xdd4] sm:$0xf0]  ;;  %v10233_v53 = vpop.f32.mrf.mxu1 }
 0x169   :  { %v7627_v50 = vld [vmem:[%s11732_s1 + $0xed4] sm:$0xf0]  ;;  %v6810_v10 = vld [vmem:[%s11732_s1 + $0xfc8] sm:$0xf] }
 0x16a   :  { %3732 = vmatpush.bf16.msra.mxu0 %v5835_v24  ;;  %3746 = vmatpush.bf16.msra.mxu1 %v5963_v31  ;;  %v7663_v24 = vld [vmem:[%s11732_s1 + $0xff4] sm:$0xf0]  ;;  %v6426_v31 = vld [vmem:[%s11732_s1 + $0xcc8] sm:$0xf] }
 0x16b   :  { %3760 = vmatpush.bf16.msra.mxu2 %v6091_v34  ;;  %3774 = vmatpush.bf16.msra.mxu3 %v6219_v49  ;;  %v7563_v34 = vld [vmem:[%s11732_s1 + $0xcd4] sm:$0xf0]  ;;  %v6827_v38 = vor.u32 %v7663_v24, %v6826_v3  ;;  %v6682_v49 = vld [vmem:[%s11732_s1 + $0xec8] sm:$0xf] }
 0x16c   :  { %v7659_v60 = vld [vmem:[%s11732_s1 + $0xfd4] sm:$0xf0]  ;;  %v6427_v5 = vor.u32 %v7563_v34, %v6426_v31  ;;  %v6683_v9 = vor.u32 %v7627_v50, %v6682_v49  ;;  %v6410_v12 = vld [vmem:[%s11732_s1 + $0xca8] sm:$0xf]  ;;  %v11743_v49 = vperm.slane %v9845_v56, 1 }
 0x16d   :  { %v7559_v13 = vld [vmem:[%s11732_s1 + $0xcb4] sm:$0xf0]  ;;  %v6794_v24 = vld [vmem:[%s11732_s1 + $0xfa8] sm:$0xf] }
 0x16e   :  { %3733 = vmatpush.bf16.msra.mxu0 %v5819_v6  ;;  %3747 = vmatpush.bf16.msra.mxu1 %v5947_v16  ;;  %v6555_v6 = vor.u32 %v7595_v43, %v6554_v35  ;;  %v6538_v16 = vld [vmem:[%s11732_s1 + $0xda8] sm:$0xf]  ;;  %v7623_v3 = vld [vmem:[%s11732_s1 + $0xeb4] sm:$0xf0]  ;;  %v3402_v50 = vadd.f32 %v10000_v4, %v11743_v49 }
 0x16f   :  { %3761 = vmatpush.bf16.msra.mxu2 %v6075_v17  ;;  %3775 = vmatpush.bf16.msra.mxu3 %v6203_v25  ;;  %v6811_v17 = vor.u32 %v7659_v60, %v6810_v10  ;;  %v7655_v25 = vld [vmem:[%s11732_s1 + $0xfb4] sm:$0xf0]  ;;  %v6394_v35 = vld [vmem:[%s11732_s1 + $0xc88] sm:$0xf]  ;;  %v10275_v10 = vpop.f32.mrf.mxu2  ;;  %v3511_v56 = vpop.f32.mrf.mxu0 }
 0x170   :  { %v6522_v43 = vld [vmem:[%s11732_s1 + $0xd88] sm:$0xf]  ;;  %v6795_v60 = vor.u32 %v7655_v25, %v6794_v24  ;;  %v7551_v25 = vld [vmem:[%s11732_s1 + $0xc74] sm:$0xf0] }
 0x171   :  { %3734 = vmatmul.bf16.vlgmr.msra.gmra.mxu0 %v8536_v32  ;;  %3748 = vmatmul.bf16.vlgmr.msra.gmra.mxu1 %v8549_v37  ;;  %v6778_v4 = vld [vmem:[%s11732_s1 + $0xf88] sm:$0xf] }
 0x172   :  { %3782 = vmatpush.bf16.msrb.mxu0 %v6443_v29  ;;  %3796 = vmatpush.bf16.msrb.mxu1 %v6571_v0  ;;  %v7591_v0 = vld [vmem:[%s11732_s1 + $0xdb4] sm:$0xf0]  ;;  %v6411_v29 = vor.u32 %v7559_v13, %v6410_v12  ;;  %v10286_v12 = vpop.f32.mrf.mxu3  ;;  %v6378_v24 = vld [vmem:[%s11732_s1 + $0xc68] sm:$0xf] }
 0x173   :  { %3810 = vmatpush.bf16.msrb.mxu2 %v6699_v57  ;;  %3824 = vmatpush.bf16.msrb.mxu3 %v6827_v38  ;;  %v6666_v57 = vld [vmem:[%s11732_s1 + $0xea8] sm:$0xf]  ;;  %v6539_v31 = vor.u32 %v7591_v0, %v6538_v16  ;;  %v7555_v38 = vld [vmem:[%s11732_s1 + $0xc94] sm:$0xf0]  ;;  %v3512_v16 = vadd.f32 %v3511_v56, %v10133_v46  ;;  %v3525_v0 = vpop.f32.mrf.mxu1  ;;  %v3416_v46 = vadd.f32 %v10026_v21, %v3402_v50 }
 0x174   :  { %3762 = vmatmul.bf16.vlgmr.msra.gmra.mxu2 %v8547_v36  ;;  %3776 = vmatmul.bf16.vlgmr.msra.gmra.mxu3 %v8557_v41  ;;  %v6667_v34 = vor.u32 %v7623_v3, %v6666_v57  ;;  %v7651_v13 = vld [vmem:[%s11732_s1 + $0xf94] sm:$0xf0]  ;;  %v6762_v49 = vld [vmem:[%s11732_s1 + $0xf68] sm:$0xf]  ;;  %v6379_v50 = vor.u32 %v7551_v25, %v6378_v24 }
 0x175   :  { %v7647_v21 = vld [vmem:[%s11732_s1 + $0xf74] sm:$0xf0]  ;;  %v6490_v56 = vld [vmem:[%s11732_s1 + $0xd48] sm:$0xf] }
 0x176   :  { %3783 = vmatpush.bf16.msrb.mxu0 %v6427_v5  ;;  %3797 = vmatpush.bf16.msrb.mxu1 %v6555_v6  ;;  %v7587_v5 = vld [vmem:[%s11732_s1 + $0xd94] sm:$0xf0]  ;;  %v6650_v6 = vld [vmem:[%s11732_s1 + $0xe88] sm:$0xf] }
 0x177   :  { %3811 = vmatpush.bf16.msrb.mxu2 %v6683_v9  ;;  %3825 = vmatpush.bf16.msrb.mxu3 %v6811_v17  ;;  %v7619_v9 = vld [vmem:[%s11732_s1 + $0xe94] sm:$0xf0]  ;;  %v6395_v17 = vor.u32 %v7555_v38, %v6394_v35  ;;  %v6523_v57 = vor.u32 %v7587_v5, %v6522_v43  ;;  %v6779_v35 = vor.u32 %v7651_v13, %v6778_v4  ;;  %v6634_v38 = vld [vmem:[%s11732_s1 + $0xe68] sm:$0xf] }
 0x178   :  { %v6651_v3 = vor.u32 %v7619_v9, %v6650_v6  ;;  %v7615_v43 = vld [vmem:[%s11732_s1 + $0xe74] sm:$0xf0]  ;;  %v6362_v6 = vld [vmem:[%s11732_s1 + $0xc48] sm:$0xf]  ;;  %v3430_v4 = vadd.f32 %v10056_v58, %v3416_v46  ;;  %v6763_v13 = vor.u32 %v7647_v21, %v6762_v49 }
 0x179   :  { %v6635_v5 = vor.u32 %v7615_v43, %v6634_v38  ;;  %v7547_v9 = vld [vmem:[%s11732_s1 + $0xc54] sm:$0xf0]  ;;  %v6746_v58 = vld [vmem:[%s11732_s1 + $0xf48] sm:$0xf] }
 0x17a   :  { %3784 = vmatpush.bf16.msrb.mxu0 %v6411_v29  ;;  %3798 = vmatpush.bf16.msrb.mxu1 %v6539_v31  ;;  %v6506_v29 = vld [vmem:[%s11732_s1 + $0xd68] sm:$0xf]  ;;  %v3526_v31 = vadd.f32 %v3525_v0, %v3512_v16  ;;  %v3539_v16 = vpop.f32.mrf.mxu2  ;;  %v3553_v24 = vpop.f32.mrf.mxu3  ;;  %v7643_v25 = vld [vmem:[%s11732_s1 + $0xf54] sm:$0xf0]  ;;  %v3444_v49 = vadd.f32 %v10067_v14, %v3430_v4 }
 0x17b   :  { %3812 = vmatpush.bf16.msrb.mxu2 %v6667_v34  ;;  %3826 = vmatpush.bf16.msrb.mxu3 %v6795_v60  ;;  %v7583_v34 = vld [vmem:[%s11732_s1 + $0xd74] sm:$0xf0]  ;;  %v6618_v0 = vld [vmem:[%s11732_s1 + $0xe48] sm:$0xf]  ;;  %v6747_v21 = vor.u32 %v7643_v25, %v6746_v58 }
 0x17c   :  { %v6507_v60 = vor.u32 %v7583_v34, %v6506_v29  ;;  %v6363_v29 = vor.u32 %v7547_v9, %v6362_v6  ;;  %v7543_v38 = vld [vmem:[%s11732_s1 + $0xc34] sm:$0xf0]  ;;  %v6474_v43 = vld [vmem:[%s11732_s1 + $0xd28] sm:$0xf] }
 0x17d   :  { %v6730_v6 = vld [vmem:[%s11732_s1 + $0xf28] sm:$0xf]  ;;  %v7639_v14 = vld [vmem:[%s11732_s1 + $0xf34] sm:$0xf0] }
 0x17e   :  { %3785 = vmatpush.bf16.msrb.mxu0 %v6395_v17  ;;  %3799 = vmatpush.bf16.msrb.mxu1 %v6523_v57  ;;  %v7579_v17 = vld [vmem:[%s11732_s1 + $0xd54] sm:$0xf0]  ;;  %v6714_v25 = vld [vmem:[%s11732_s1 + $0xf08] sm:$0xf] }
 0x17f   :  { %3813 = vmatpush.bf16.msrb.mxu2 %v6651_v3  ;;  %3827 = vmatpush.bf16.msrb.mxu3 %v6779_v35  ;;  %v7611_v57 = vld [vmem:[%s11732_s1 + $0xe54] sm:$0xf0]  ;;  %v3540_v3 = vadd.f32 %v3539_v16, %v3526_v31  ;;  %v6491_v35 = vor.u32 %v7579_v17, %v6490_v56  ;;  %v6346_v31 = vld [vmem:[%s11732_s1 + $0xc28] sm:$0xf] }
 0x180   :  { %v6619_v34 = vor.u32 %v7611_v57, %v6618_v0  ;;  %v6347_v9 = vor.u32 %v7543_v38, %v6346_v31  ;;  %v6330_v56 = vld [vmem:[%s11732_s1 + $0xc08] sm:$0xf]  ;;  %v7539_v4 = vld [vmem:[%s11732_s1 + $0xc14] sm:$0xf0]  ;;  %v5036_v38 = vld [vmem:[%s11732_s1 + $0x1f8] sm:$0xf0] }
 0x181   :  { %v10345_v46 = vadd.f32 %v3553_v24, %v3540_v3  ;;  %v6458_v17 = vld [vmem:[%s11732_s1 + $0xd08] sm:$0xf]  ;;  %v7571_v0 = vld [vmem:[%s11732_s1 + $0xd14] sm:$0xf0]  ;;  %v3458_v3 = vadd.f32 %v10225_v51, %v3444_v49  ;;  %v6731_v24 = vor.u32 %v7639_v14, %v6730_v6  ;;  %v4908_v51 = vld [vmem:[%s11732_s1 + $0xf8] sm:$0xf0]  ;;  %v6331_v31 = vor.u32 %v7539_v4, %v6330_v56 }
 0x182   :  { %3786 = vmatpush.bf16.msrb.mxu0 %v6379_v50  ;;  %3800 = vmatpush.bf16.msrb.mxu1 %v6507_v60  ;;  %v7575_v50 = vld [vmem:[%s11732_s1 + $0xd34] sm:$0xf0]  ;;  %v6602_v60 = vld [vmem:[%s11732_s1 + $0xe28] sm:$0xf]  ;;  %v5164_v49 = vld [vmem:[%s11732_s1 + $0x2f8] sm:$0xf0] }
 0x183   :  { %3814 = vmatpush.bf16.msrb.mxu2 %v6635_v5  ;;  %3828 = vmatpush.bf16.msrb.mxu3 %v6763_v13  ;;  %v7607_v5 = vld [vmem:[%s11732_s1 + $0xe34] sm:$0xf0]  ;;  %v6475_v13 = vor.u32 %v7575_v50, %v6474_v43  ;;  %v6586_v57 = vld [vmem:[%s11732_s1 + $0xe08] sm:$0xf]  ;;  %v7245_v43 = vld [vmem:[%s11732_s1 + $0x2ec] sm:$0xf]  ;;  %v3472_v6 = vadd.f32 %v10233_v53, %v3458_v3 }
 0x184   :  { %v6603_v16 = vor.u32 %v7607_v5, %v6602_v60  ;;  %v7603_v58 = vld [vmem:[%s11732_s1 + $0xe14] sm:$0xf0]  ;;  %v7277_v60 = vld [vmem:[%s11732_s1 + $0x3ec] sm:$0xf]  ;;  %v5292_v5 = vld [vmem:[%s11732_s1 + $0x3f8] sm:$0xf0]  ;;  %v5167_v4 = vor.u32 %v7245_v43, %v5164_v49 }
 0x185   :  { %v6587_v50 = vor.u32 %v7603_v58, %v6586_v57  ;;  %v5295_v53 = vor.u32 %v7277_v60, %v5292_v5  ;;  %v5020_v57 = vld [vmem:[%s11732_s1 + $0x1d8] sm:$0xf0]  ;;  %v7241_v3 = vld [vmem:[%s11732_s1 + $0x2cc] sm:$0xf]  ;;  %v3513_v58 = vpop.f32.mrf.mxu0 }
 0x186   :  { %3787 = vmatpush.bf16.msrb.mxu0 %v6363_v29  ;;  %3801 = vmatpush.bf16.msrb.mxu1 %v6491_v35  ;;  %v7635_v29 = vld [vmem:[%s11732_s1 + $0xf14] sm:$0xf0]  ;;  %v7181_v35 = vld [vmem:[%s11732_s1 + $0xec] sm:$0xf]  ;;  %v5132_v5 = vld [vmem:[%s11732_s1 + $0x2b8] sm:$0xf0] }
 0x187   :  { %3815 = vmatpush.bf16.msrb.mxu2 %v6619_v34  ;;  %3829 = vmatpush.bf16.msrb.mxu3 %v6747_v21  ;;  %v7213_v34 = vld [vmem:[%s11732_s1 + $0x1ec] sm:$0xf]  ;;  %v6459_v21 = vor.u32 %v7571_v0, %v6458_v17  ;;  %v6715_v14 = vor.u32 %v7635_v29, %v6714_v25  ;;  %v3486_v0 = vadd.f32 %v10275_v10, %v3472_v6  ;;  %v5276_v25 = vld [vmem:[%s11732_s1 + $0x3d8] sm:$0xf0]  ;;  %v3527_v29 = vpop.f32.mrf.mxu1 }
 0x188   :  { %v5039_v56 = vor.u32 %v7213_v34, %v5036_v38  ;;  %v7209_v17 = vld [vmem:[%s11732_s1 + $0x1cc] sm:$0xf]  ;;  %v4876_v38 = vld [vmem:[%s11732_s1 + $0xb8] sm:$0xf0] }
 0x189   :  { %v7273_v10 = vld [vmem:[%s11732_s1 + $0x3cc] sm:$0xf]  ;;  %v3500_v49 = vadd.f32 %v10286_v12, %v3486_v0  ;;  %v5260_v6 = vld [vmem:[%s11732_s1 + $0x3b8] sm:$0xf0]  ;;  %v3541_v0 = vpop.f32.mrf.mxu2 }
 0x18a   :  { %3788 = vmatpush.bf16.msrb.mxu0 %v6347_v9  ;;  %3802 = vmatpush.bf16.msrb.mxu1 %v6475_v13  ;;  %v4911_v9 = vor.u32 %v7181_v35, %v4908_v51  ;;  %v7177_v13 = vld [vmem:[%s11732_s1 + $0xcc] sm:$0xf]  ;;  %v5023_v51 = vor.u32 %v7209_v17, %v5020_v57  ;;  %v4988_v57 = vld [vmem:[%s11732_s1 + $0x198] sm:$0xf0] }
 0x18b   :  { %3816 = vmatpush.bf16.msrb.mxu2 %v6603_v16  ;;  %3830 = vmatpush.bf16.msrb.mxu3 %v6731_v24  ;;  %v4892_v16 = vld [vmem:[%s11732_s1 + $0xd8] sm:$0xf0]  ;;  %v7205_v43 = vld [vmem:[%s11732_s1 + $0x1ac] sm:$0xf] }
 0x18c   :  { %v5148_v24 = vld [vmem:[%s11732_s1 + $0x2d8] sm:$0xf0]  ;;  %v4895_v35 = vor.u32 %v7177_v13, %v4892_v16  ;;  %v7237_v60 = vld [vmem:[%s11732_s1 + $0x2ac] sm:$0xf] }
 0x18d   :  { %v5151_v34 = vor.u32 %v7241_v3, %v5148_v24  ;;  %v7269_v12 = vld [vmem:[%s11732_s1 + $0x3ac] sm:$0xf]  ;;  %v4860_v16 = vld [vmem:[%s11732_s1 + $0x98] sm:$0xf0] }
 0x18e   :  { %3789 = vmatpush.bf16.msrb.mxu0 %v6331_v31  ;;  %3803 = vmatpush.bf16.msrb.mxu1 %v6459_v21  ;;  %v7173_v31 = vld [vmem:[%s11732_s1 + $0xac] sm:$0xf]  ;;  %v5279_v21 = vor.u32 %v7273_v10, %v5276_v25  ;;  %v5116_v24 = vld [vmem:[%s11732_s1 + $0x298] sm:$0xf0]  ;;  %v3567_v10 = vpop.f32.mrf.mxu0 }
 0x18f   :  { %3817 = vmatpush.bf16.msrb.mxu2 %v6587_v50  ;;  %3831 = vmatpush.bf16.msrb.mxu3 %v6715_v14  ;;  %v5004_v50 = vld [vmem:[%s11732_s1 + $0x1b8] sm:$0xf0]  ;;  %v3514_v14 = vadd.f32 %v3513_v58, %v3500_v49  ;;  %v7169_v13 = vld [vmem:[%s11732_s1 + $0x8c] sm:$0xf]  ;;  %v3555_v58 = vpop.f32.mrf.mxu3 }
 0x190   :  { %v7201_v17 = vld [vmem:[%s11732_s1 + $0x18c] sm:$0xf] }
 0x191   :  { %3790 = vmatmul.bf16.vlgmr.msrb.gmra.mxu0 %v8764_v33  ;;  %3804 = vmatmul.bf16.vlgmr.msrb.gmra.mxu1 %v8777_v42  ;;  %v7233_v3 = vld [vmem:[%s11732_s1 + $0x28c] sm:$0xf] }
 0x192   :  { %3838 = vmatpush.bf16.msra.mxu0 %v4911_v9  ;;  %3852 = vmatpush.bf16.msra.mxu1 %v5039_v56  ;;  %v4879_v9 = vor.u32 %v7173_v31, %v4876_v38  ;;  %v5007_v56 = vor.u32 %v7205_v43, %v5004_v50  ;;  %v7265_v25 = vld [vmem:[%s11732_s1 + $0x38c] sm:$0xf]  ;;  %v4863_v31 = vor.u32 %v7169_v13, %v4860_v16  ;;  %v3581_v38 = vpop.f32.mrf.mxu1  ;;  %v4844_v50 = vld [vmem:[%s11732_s1 + $0x78] sm:$0xf0] }
 0x193   :  { %3866 = vmatpush.bf16.msra.mxu2 %v5167_v4  ;;  %3880 = vmatpush.bf16.msra.mxu3 %v5295_v53  ;;  %v5135_v4 = vor.u32 %v7237_v60, %v5132_v5  ;;  %v5263_v53 = vor.u32 %v7269_v12, %v5260_v6  ;;  %v4991_v43 = vor.u32 %v7201_v17, %v4988_v57  ;;  %v4972_v12 = vld [vmem:[%s11732_s1 + $0x178] sm:$0xf0]  ;;  %v7229_v6 = vld [vmem:[%s11732_s1 + $0x26c] sm:$0xf] }
 0x194   :  { %3818 = vmatmul.bf16.vlgmr.msrb.gmra.mxu2 %v8775_v39  ;;  %3832 = vmatmul.bf16.vlgmr.msrb.gmra.mxu3 %v8785_v47  ;;  %v5119_v49 = vor.u32 %v7233_v3, %v5116_v24  ;;  %v7161_v17 = vld [vmem:[%s11732_s1 + $0x4c] sm:$0xf] }
 0x196   :  { %3839 = vmatpush.bf16.msra.mxu0 %v4895_v35  ;;  %3853 = vmatpush.bf16.msra.mxu1 %v5023_v51  ;;  %v5244_v35 = vld [vmem:[%s11732_s1 + $0x398] sm:$0xf0]  ;;  %v3528_v51 = vadd.f32 %v3527_v29, %v3514_v14  ;;  %v7197_v29 = vld [vmem:[%s11732_s1 + $0x16c] sm:$0xf] }
 0x197   :  { %3867 = vmatpush.bf16.msra.mxu2 %v5151_v34  ;;  %3881 = vmatpush.bf16.msra.mxu3 %v5279_v21  ;;  %v3568_v34 = vadd.f32 %v3567_v10, %v10345_v46  ;;  %v7165_v21 = vld [vmem:[%s11732_s1 + $0x6c] sm:$0xf]  ;;  %v5247_v46 = vor.u32 %v7265_v25, %v5244_v35  ;;  %v5100_v14 = vld [vmem:[%s11732_s1 + $0x278] sm:$0xf0]  ;;  %v4975_v13 = vor.u32 %v7197_v29, %v4972_v12  ;;  %v3595_v24 = vpop.f32.mrf.mxu2 }
 0x198   :  { %v3542_v60 = vadd.f32 %v3541_v0, %v3528_v51  ;;  %v5103_v16 = vor.u32 %v7229_v6, %v5100_v14  ;;  %v4828_v0 = vld [vmem:[%s11732_s1 + $0x58] sm:$0xf0]  ;;  %v7225_v25 = vld [vmem:[%s11732_s1 + $0x24c] sm:$0xf] }
 0x199   :  { %v3582_v5 = vadd.f32 %v3581_v38, %v3568_v34  ;;  %v4956_v10 = vld [vmem:[%s11732_s1 + $0x158] sm:$0xf0]  ;;  %v3569_v34 = vpop.f32.mrf.mxu0  ;;  %v7189_v12 = vld [vmem:[%s11732_s1 + $0x12c] sm:$0xf] }
 0x19a   :  { %3840 = vmatpush.bf16.msra.mxu0 %v4879_v9  ;;  %3854 = vmatpush.bf16.msra.mxu1 %v5007_v56  ;;  %v7261_v9 = vld [vmem:[%s11732_s1 + $0x36c] sm:$0xf]  ;;  %v5228_v56 = vld [vmem:[%s11732_s1 + $0x378] sm:$0xf0]  ;;  %v3556_v57 = vadd.f32 %v3555_v58, %v3542_v60 }
 0x19b   :  { %3868 = vmatpush.bf16.msra.mxu2 %v5135_v4  ;;  %3882 = vmatpush.bf16.msra.mxu3 %v5263_v53  ;;  %v4847_v4 = vor.u32 %v7165_v21, %v4844_v50  ;;  %v7193_v53 = vld [vmem:[%s11732_s1 + $0x14c] sm:$0xf]  ;;  %v5231_v3 = vor.u32 %v7261_v9, %v5228_v56  ;;  %v5084_v35 = vld [vmem:[%s11732_s1 + $0x258] sm:$0xf0]  ;;  %v3596_v51 = vadd.f32 %v3595_v24, %v3582_v5  ;;  %v3583_v21 = vpop.f32.mrf.mxu1 }
 0x19c   :  { %v7257_v58 = vld [vmem:[%s11732_s1 + $0x34c] sm:$0xf]  ;;  %v5212_v38 = vld [vmem:[%s11732_s1 + $0x358] sm:$0xf0]  ;;  %v4959_v29 = vor.u32 %v7193_v53, %v4956_v10  ;;  %v5087_v60 = vor.u32 %v7225_v25, %v5084_v35 }
 0x19d   :  { %v4812_v5 = vld [vmem:[%s11732_s1 + $0x38] sm:$0xf0]  ;;  %v5215_v6 = vor.u32 %v7257_v58, %v5212_v38  ;;  %v7221_v56 = vld [vmem:[%s11732_s1 + $0x22c] sm:$0xf] }
 0x19e   :  { %3841 = vmatpush.bf16.msra.mxu0 %v4863_v31  ;;  %3855 = vmatpush.bf16.msra.mxu1 %v4991_v43  ;;  %v3609_v31 = vpop.f32.mrf.mxu3  ;;  %v3570_v43 = vadd.f32 %v3569_v34, %v3556_v57  ;;  %v4940_v9 = vld [vmem:[%s11732_s1 + $0x138] sm:$0xf0]  ;;  %v7185_v24 = vld [vmem:[%s11732_s1 + $0x10c] sm:$0xf] }
 0x19f   :  { %3869 = vmatpush.bf16.msra.mxu2 %v5119_v49  ;;  %3883 = vmatpush.bf16.msra.mxu3 %v5247_v46  ;;  %v4831_v49 = vor.u32 %v7161_v17, %v4828_v0  ;;  %v10549_v50 = vadd.f32 %v3609_v31, %v3596_v51  ;;  %v7157_v46 = vld [vmem:[%s11732_s1 + $0x2c] sm:$0xf]  ;;  %v4796_v53 = vld [vmem:[%s11732_s1 + $0x18] sm:$0xf0]  ;;  %v4943_v57 = vor.u32 %v7189_v12, %v4940_v9  ;;  %v3597_v51 = vpop.f32.mrf.mxu2 }
 0x1a0   :  { %v3584_v14 = vadd.f32 %v3583_v21, %v3570_v43  ;;  %v4815_v17 = vor.u32 %v7157_v46, %v4812_v5  ;;  %v7153_v0 = vld [vmem:[%s11732_s1 + $0xc] sm:$0xf]  ;;  %v4924_v10 = vld [vmem:[%s11732_s1 + $0x118] sm:$0xf0] }
 0x1a1   :  { %v7217_v25 = vld [vmem:[%s11732_s1 + $0x20c] sm:$0xf]  ;;  %v5052_v34 = vld [vmem:[%s11732_s1 + $0x218] sm:$0xf0] }
 0x1a2   :  { %3842 = vmatpush.bf16.msra.mxu0 %v4847_v4  ;;  %3856 = vmatpush.bf16.msra.mxu1 %v4975_v13  ;;  %v5068_v4 = vld [vmem:[%s11732_s1 + $0x238] sm:$0xf0]  ;;  %v7253_v13 = vld [vmem:[%s11732_s1 + $0x32c] sm:$0xf]  ;;  %v3598_v38 = vadd.f32 %v3597_v51, %v3584_v14  ;;  %v4927_v14 = vor.u32 %v7185_v24, %v4924_v10  ;;  %v5055_v9 = vor.u32 %v7217_v25, %v5052_v34 }
 0x1a3   :  { %3870 = vmatpush.bf16.msra.mxu2 %v5103_v16  ;;  %3884 = vmatpush.bf16.msra.mxu3 %v5231_v3  ;;  %v5196_v16 = vld [vmem:[%s11732_s1 + $0x338] sm:$0xf0]  ;;  %v5071_v3 = vor.u32 %v7221_v56, %v5068_v4  ;;  %v7249_v31 = vld [vmem:[%s11732_s1 + $0x30c] sm:$0xf] }
 0x1a4   :  { %v5199_v35 = vor.u32 %v7253_v13, %v5196_v16  ;;  %v5180_v58 = vld [vmem:[%s11732_s1 + $0x318] sm:$0xf0]  ;;  %v7373_v5 = vld [vmem:[%s11732_s1 + $0x6ec] sm:$0xf] }
 0x1a5   :  { %v5420_v21 = vld [vmem:[%s11732_s1 + $0x4f8] sm:$0xf0]  ;;  %v7405_v56 = vld [vmem:[%s11732_s1 + $0x7ec] sm:$0xf]  ;;  %v5183_v13 = vor.u32 %v7249_v31, %v5180_v58 }
 0x1a6   :  { %3843 = vmatpush.bf16.msra.mxu0 %v4831_v49  ;;  %3857 = vmatpush.bf16.msra.mxu1 %v4959_v29  ;;  %v3611_v43 = vpop.f32.mrf.mxu3  ;;  %v7309_v49 = vld [vmem:[%s11732_s1 + $0x4ec] sm:$0xf]  ;;  %v5548_v46 = vld [vmem:[%s11732_s1 + $0x5f8] sm:$0xf0] }
 0x1a7   :  { %3871 = vmatpush.bf16.msra.mxu2 %v5087_v60  ;;  %3885 = vmatpush.bf16.msra.mxu3 %v5215_v6  ;;  %v7341_v29 = vld [vmem:[%s11732_s1 + $0x5ec] sm:$0xf]  ;;  %v4799_v60 = vor.u32 %v7153_v0, %v4796_v53  ;;  %v5676_v12 = vld [vmem:[%s11732_s1 + $0x6f8] sm:$0xf0]  ;;  %v3612_v6 = vadd.f32 %v3611_v43, %v3598_v38  ;;  %v5423_v16 = vor.u32 %v7309_v49, %v5420_v21  ;;  %v4063_v0 = vmax.f32 %v10549_v50, 0.0 }
 0x1a8   :  { %v5804_v4 = vld [vmem:[%s11732_s1 + $0x7f8] sm:$0xf0]  ;;  %v7337_v10 = vld [vmem:[%s11732_s1 + $0x5cc] sm:$0xf] }
 0x1a9   :  { %v4067_v53 = vmax.f32 %v3612_v6, 0.0  ;;  %v5404_v24 = vld [vmem:[%s11732_s1 + $0x4d8] sm:$0xf0]  ;;  %v5807_v25 = vor.u32 %v7405_v56, %v5804_v4  ;;  %v7369_v50 = vld [vmem:[%s11732_s1 + $0x6cc] sm:$0xf] }
 0x1aa   :  { %3844 = vmatpush.bf16.msra.mxu0 %v4815_v17  ;;  %3858 = vmatpush.bf16.msra.mxu1 %v4943_v57  ;;  %v7305_v17 = vld [vmem:[%s11732_s1 + $0x4cc] sm:$0xf]  ;;  %v5551_v57 = vor.u32 %v7341_v29, %v5548_v46  ;;  %v5660_v51 = vld [vmem:[%s11732_s1 + $0x6d8] sm:$0xf0] }
 0x1ab   :  { %3872 = vmatpush.bf16.msra.mxu2 %v5071_v3  ;;  %3886 = vmatpush.bf16.msra.mxu3 %v5199_v35  ;;  %v5679_v3 = vor.u32 %v7373_v5, %v5676_v12  ;;  %v5532_v35 = vld [vmem:[%s11732_s1 + $0x5d8] sm:$0xf0]  ;;  %v10642_v34 = vpack.c.bf16 %v4067_v53, %v4063_v0  ;;  %v7401_v31 = vld [vmem:[%s11732_s1 + $0x7cc] sm:$0xf]  ;;  %v5407_v38 = vor.u32 %v7305_v17, %v5404_v24 }
 0x1ac   :  { %v5788_v58 = vld [vmem:[%s11732_s1 + $0x7d8] sm:$0xf0]  ;;  %v5535_v43 = vor.u32 %v7337_v10, %v5532_v35  ;;  %v5663_v49 = vor.u32 %v7369_v50, %v5660_v51  ;;  %v7301_v21 = vld [vmem:[%s11732_s1 + $0x4ac] sm:$0xf] }
 0x1ad   :  { %v5388_v29 = vld [vmem:[%s11732_s1 + $0x4b8] sm:$0xf0]  ;;  %v5791_v46 = vor.u32 %v7401_v31, %v5788_v58  ;;  %v7365_v12 = vld [vmem:[%s11732_s1 + $0x6ac] sm:$0xf] }
 0x1ae   :  { %3845 = vmatpush.bf16.msra.mxu0 %v4799_v60  ;;  %3859 = vmatpush.bf16.msra.mxu1 %v4927_v14  ;;  %v7333_v60 = vld [vmem:[%s11732_s1 + $0x5ac] sm:$0xf]  ;;  %v5516_v5 = vld [vmem:[%s11732_s1 + $0x5b8] sm:$0xf0]  ;;  %v5391_v56 = vor.u32 %v7301_v21, %v5388_v29 }
 0x1af   :  { %3873 = vmatpush.bf16.msra.mxu2 %v5055_v9  ;;  %3887 = vmatpush.bf16.msra.mxu3 %v5183_v13  ;;  %v5644_v6 = vld [vmem:[%s11732_s1 + $0x6b8] sm:$0xf0]  ;;  %v7397_v14 = vld [vmem:[%s11732_s1 + $0x7ac] sm:$0xf]  ;;  %v5519_v4 = vor.u32 %v7333_v60, %v5516_v5 }
 0x1b0   :  { %v5772_v9 = vld [vmem:[%s11732_s1 + $0x7b8] sm:$0xf0]  ;;  %v7297_v13 = vld [vmem:[%s11732_s1 + $0x48c] sm:$0xf] }
 0x1b1   :  { %3846 = vmatmul.bf16.vlgmr.msra.gmra.mxu0 %v8086_v59  ;;  %3860 = vmatmul.bf16.vlgmr.msra.gmra.mxu1 %v8122_v11  ;;  %v5647_v59 = vor.u32 %v7365_v12, %v5644_v6  ;;  %v5775_v11 = vor.u32 %v7397_v14, %v5772_v9  ;;  %v7361_v17 = vld [vmem:[%s11732_s1 + $0x68c] sm:$0xf]  ;;  %v5628_v0 = vld [vmem:[%s11732_s1 + $0x698] sm:$0xf0] }
 0x1b2   :  { %3894 = vmatpush.bf16.msrb.mxu0 %v5423_v16  ;;  %3908 = vmatpush.bf16.msrb.mxu1 %v5551_v57  ;;  %v5372_v16 = vld [vmem:[%s11732_s1 + $0x498] sm:$0xf0]  ;;  %v7393_v53 = vld [vmem:[%s11732_s1 + $0x78c] sm:$0xf]  ;;  %v5631_v10 = vor.u32 %v7361_v17, %v5628_v0 }
 0x1b3   :  { %3922 = vmatpush.bf16.msrb.mxu2 %v5679_v3  ;;  %3936 = vmatpush.bf16.msrb.mxu3 %v5807_v25  ;;  %v5756_v57 = vld [vmem:[%s11732_s1 + $0x798] sm:$0xf0]  ;;  %v5375_v3 = vor.u32 %v7297_v13, %v5372_v16  ;;  %v7293_v25 = vld [vmem:[%s11732_s1 + $0x46c] sm:$0xf] }
 0x1b4   :  { %3874 = vmatmul.bf16.vlgmr.msra.gmra.mxu2 %v8100_v2  ;;  %3888 = vmatmul.bf16.vlgmr.msra.gmra.mxu3 %v8136_v18  ;;  %v7329_v2 = vld [vmem:[%s11732_s1 + $0x58c] sm:$0xf]  ;;  %v5500_v18 = vld [vmem:[%s11732_s1 + $0x598] sm:$0xf0]  ;;  %v5759_v51 = vor.u32 %v7393_v53, %v5756_v57 }
 0x1b5   :  { %v5503_v24 = vor.u32 %v7329_v2, %v5500_v18  ;;  %v5356_v35 = vld [vmem:[%s11732_s1 + $0x478] sm:$0xf0]  ;;  %v7325_v50 = vld [vmem:[%s11732_s1 + $0x56c] sm:$0xf] }
 0x1b6   :  { %3895 = vmatpush.bf16.msrb.mxu0 %v5407_v38  ;;  %3909 = vmatpush.bf16.msrb.mxu1 %v5535_v43  ;;  %v5484_v31 = vld [vmem:[%s11732_s1 + $0x578] sm:$0xf0]  ;;  %v7357_v58 = vld [vmem:[%s11732_s1 + $0x66c] sm:$0xf]  ;;  %v5359_v21 = vor.u32 %v7293_v25, %v5356_v35 }
 0x1b7   :  { %3923 = vmatpush.bf16.msrb.mxu2 %v5663_v49  ;;  %3937 = vmatpush.bf16.msrb.mxu3 %v5791_v46  ;;  %v5612_v38 = vld [vmem:[%s11732_s1 + $0x678] sm:$0xf0]  ;;  %v7389_v43 = vld [vmem:[%s11732_s1 + $0x76c] sm:$0xf]  ;;  %v5487_v29 = vor.u32 %v7325_v50, %v5484_v31 }
 0x1b8   :  { %v5740_v49 = vld [vmem:[%s11732_s1 + $0x778] sm:$0xf0]  ;;  %v5615_v60 = vor.u32 %v7357_v58, %v5612_v38  ;;  %v7289_v46 = vld [vmem:[%s11732_s1 + $0x44c] sm:$0xf] }
 0x1b9   :  { %v5340_v5 = vld [vmem:[%s11732_s1 + $0x458] sm:$0xf0]  ;;  %v7321_v12 = vld [vmem:[%s11732_s1 + $0x54c] sm:$0xf]  ;;  %v5743_v6 = vor.u32 %v7389_v43, %v5740_v49 }
 0x1ba   :  { %3896 = vmatpush.bf16.msrb.mxu0 %v5391_v56  ;;  %3910 = vmatpush.bf16.msrb.mxu1 %v5519_v4  ;;  %v5468_v14 = vld [vmem:[%s11732_s1 + $0x558] sm:$0xf0]  ;;  %v7353_v9 = vld [vmem:[%s11732_s1 + $0x64c] sm:$0xf]  ;;  %v5343_v13 = vor.u32 %v7289_v46, %v5340_v5 }
 0x1bb   :  { %3924 = vmatpush.bf16.msrb.mxu2 %v5647_v59  ;;  %3938 = vmatpush.bf16.msrb.mxu3 %v5775_v11  ;;  %v5596_v56 = vld [vmem:[%s11732_s1 + $0x658] sm:$0xf0]  ;;  %v7385_v4 = vld [vmem:[%s11732_s1 + $0x74c] sm:$0xf]  ;;  %v5471_v16 = vor.u32 %v7321_v12, %v5468_v14 }
 0x1bc   :  { %v5724_v59 = vld [vmem:[%s11732_s1 + $0x758] sm:$0xf0]  ;;  %v5599_v2 = vor.u32 %v7353_v9, %v5596_v56  ;;  %v7285_v11 = vld [vmem:[%s11732_s1 + $0x42c] sm:$0xf] }
 0x1bd   :  { %v5324_v18 = vld [vmem:[%s11732_s1 + $0x438] sm:$0xf0]  ;;  %v7317_v17 = vld [vmem:[%s11732_s1 + $0x52c] sm:$0xf]  ;;  %v5727_v0 = vor.u32 %v7385_v4, %v5724_v59 }
 0x1be   :  { %3897 = vmatpush.bf16.msrb.mxu0 %v5375_v3  ;;  %3911 = vmatpush.bf16.msrb.mxu1 %v5503_v24  ;;  %v5452_v53 = vld [vmem:[%s11732_s1 + $0x538] sm:$0xf0]  ;;  %v7349_v57 = vld [vmem:[%s11732_s1 + $0x62c] sm:$0xf]  ;;  %v5327_v25 = vor.u32 %v7285_v11, %v5324_v18 }
 0x1bf   :  { %3925 = vmatpush.bf16.msrb.mxu2 %v5631_v10  ;;  %3939 = vmatpush.bf16.msrb.mxu3 %v5759_v51  ;;  %v5580_v3 = vld [vmem:[%s11732_s1 + $0x638] sm:$0xf0]  ;;  %v7381_v24 = vld [vmem:[%s11732_s1 + $0x72c] sm:$0xf]  ;;  %v5455_v51 = vor.u32 %v7317_v17, %v5452_v53 }
 0x1c0   :  { %v5708_v10 = vld [vmem:[%s11732_s1 + $0x738] sm:$0xf0]  ;;  %v7281_v35 = vld [vmem:[%s11732_s1 + $0x40c] sm:$0xf]  ;;  %v5583_v31 = vor.u32 %v7349_v57, %v5580_v3 }
 0x1c1   :  { %v5308_v50 = vld [vmem:[%s11732_s1 + $0x418] sm:$0xf0]  ;;  %v7313_v58 = vld [vmem:[%s11732_s1 + $0x50c] sm:$0xf]  ;;  %v5711_v49 = vor.u32 %v7381_v24, %v5708_v10 }
 0x1c2   :  { %3898 = vmatpush.bf16.msrb.mxu0 %v5359_v21  ;;  %3912 = vmatpush.bf16.msrb.mxu1 %v5487_v29  ;;  %v5436_v38 = vld [vmem:[%s11732_s1 + $0x518] sm:$0xf0]  ;;  %v7345_v43 = vld [vmem:[%s11732_s1 + $0x60c] sm:$0xf] }
 0x1c3   :  { %3926 = vmatpush.bf16.msrb.mxu2 %v5615_v60  ;;  %3940 = vmatpush.bf16.msrb.mxu3 %v5743_v6  ;;  %v5564_v21 = vld [vmem:[%s11732_s1 + $0x618] sm:$0xf0]  ;;  %v7377_v29 = vld [vmem:[%s11732_s1 + $0x70c] sm:$0xf]  ;;  %v5311_v6 = vor.u32 %v7281_v35, %v5308_v50  ;;  %v5439_v4 = vor.u32 %v7313_v58, %v5436_v38 }
 0x1c4   :  { %v5692_v60 = vld [vmem:[%s11732_s1 + $0x718] sm:$0xf0]  ;;  %v7437_v46 = vld [vmem:[%s11732_s1 + $0x8ec] sm:$0xf]  ;;  %v5567_v59 = vor.u32 %v7345_v43, %v5564_v21 }
 0x1c5   :  { %v5932_v5 = vld [vmem:[%s11732_s1 + $0x8f8] sm:$0xf0]  ;;  %v7469_v12 = vld [vmem:[%s11732_s1 + $0x9ec] sm:$0xf] }
 0x1c6   :  { %3899 = vmatpush.bf16.msrb.mxu0 %v5343_v13  ;;  %3913 = vmatpush.bf16.msrb.mxu1 %v5471_v16  ;;  %v6060_v14 = vld [vmem:[%s11732_s1 + $0x9f8] sm:$0xf0]  ;;  %v7501_v9 = vld [vmem:[%s11732_s1 + $0xaec] sm:$0xf]  ;;  %v5935_v11 = vor.u32 %v7437_v46, %v5932_v5 }
 0x1c7   :  { %3927 = vmatpush.bf16.msrb.mxu2 %v5599_v2  ;;  %3941 = vmatpush.bf16.msrb.mxu3 %v5727_v0  ;;  %v6188_v56 = vld [vmem:[%s11732_s1 + $0xaf8] sm:$0xf0]  ;;  %v7533_v13 = vld [vmem:[%s11732_s1 + $0xbec] sm:$0xf]  ;;  %v5695_v2 = vor.u32 %v7377_v29, %v5692_v60  ;;  %v6063_v18 = vor.u32 %v7469_v12, %v6060_v14 }
 0x1c8   :  { %v6316_v16 = vld [vmem:[%s11732_s1 + $0xbf8] sm:$0xf0]  ;;  %v6191_v17 = vor.u32 %v7501_v9, %v6188_v56  ;;  %v7433_v0 = vld [vmem:[%s11732_s1 + $0x8cc] sm:$0xf] }
 0x1c9   :  { %v5916_v53 = vld [vmem:[%s11732_s1 + $0x8d8] sm:$0xf0]  ;;  %v7465_v57 = vld [vmem:[%s11732_s1 + $0x9cc] sm:$0xf]  ;;  %v6319_v3 = vor.u32 %v7533_v13, %v6316_v16 }
 0x1ca   :  { %3900 = vmatpush.bf16.msrb.mxu0 %v5327_v25  ;;  %3914 = vmatpush.bf16.msrb.mxu1 %v5455_v51  ;;  %v6044_v24 = vld [vmem:[%s11732_s1 + $0x9d8] sm:$0xf0]  ;;  %v7497_v10 = vld [vmem:[%s11732_s1 + $0xacc] sm:$0xf]  ;;  %v5919_v51 = vor.u32 %v7433_v0, %v5916_v53 }
 0x1cb   :  { %3928 = vmatpush.bf16.msrb.mxu2 %v5583_v31  ;;  %3942 = vmatpush.bf16.msrb.mxu3 %v5711_v49  ;;  %v6172_v25 = vld [vmem:[%s11732_s1 + $0xad8] sm:$0xf0]  ;;  %v7529_v35 = vld [vmem:[%s11732_s1 + $0xbcc] sm:$0xf]  ;;  %v6047_v31 = vor.u32 %v7465_v57, %v6044_v24 }
 0x1cc   :  { %v6300_v50 = vld [vmem:[%s11732_s1 + $0xbd8] sm:$0xf0]  ;;  %v6175_v58 = vor.u32 %v7497_v10, %v6172_v25  ;;  %v7429_v38 = vld [vmem:[%s11732_s1 + $0x8ac] sm:$0xf]  ;;  %v10916_v25 = vpop.f32.mrf.mxu0 }
 0x1cd   :  { %v5900_v43 = vld [vmem:[%s11732_s1 + $0x8b8] sm:$0xf0]  ;;  %v7461_v49 = vld [vmem:[%s11732_s1 + $0x9ac] sm:$0xf]  ;;  %v6303_v21 = vor.u32 %v7529_v35, %v6300_v50 }
 0x1ce   :  { %3901 = vmatpush.bf16.msrb.mxu0 %v5311_v6  ;;  %3915 = vmatpush.bf16.msrb.mxu1 %v5439_v4  ;;  %v6028_v29 = vld [vmem:[%s11732_s1 + $0x9b8] sm:$0xf0]  ;;  %v7493_v60 = vld [vmem:[%s11732_s1 + $0xaac] sm:$0xf]  ;;  %v5903_v12 = vor.u32 %v7429_v38, %v5900_v43 }
 0x1cf   :  { %3929 = vmatpush.bf16.msrb.mxu2 %v5567_v59  ;;  %3943 = vmatpush.bf16.msrb.mxu3 %v5695_v2  ;;  %v6156_v46 = vld [vmem:[%s11732_s1 + $0xab8] sm:$0xf0]  ;;  %v6031_v6 = vor.u32 %v7461_v49, %v6028_v29  ;;  %v7457_v9 = vld [vmem:[%s11732_s1 + $0x98c] sm:$0xf] }
 0x1d0   :  { %v6284_v5 = vld [vmem:[%s11732_s1 + $0xbb8] sm:$0xf0]  ;;  %v6159_v14 = vor.u32 %v7493_v60, %v6156_v46  ;;  %v7489_v4 = vld [vmem:[%s11732_s1 + $0xa8c] sm:$0xf] }
 0x1d1   :  { %3902 = vmatmul.bf16.vlgmr.msrb.gmra.mxu0 %v8308_v40  ;;  %3916 = vmatmul.bf16.vlgmr.msrb.gmra.mxu1 %v8321_v45  ;;  %v7525_v40 = vld [vmem:[%s11732_s1 + $0xbac] sm:$0xf]  ;;  %v5884_v45 = vld [vmem:[%s11732_s1 + $0x898] sm:$0xf0] }
 0x1d2   :  { %3950 = vmatpush.bf16.msra.mxu0 %v5935_v11  ;;  %3964 = vmatpush.bf16.msra.mxu1 %v6063_v18  ;;  %v6012_v56 = vld [vmem:[%s11732_s1 + $0x998] sm:$0xf0]  ;;  %v7521_v13 = vld [vmem:[%s11732_s1 + $0xb8c] sm:$0xf] }
 0x1d3   :  { %3978 = vmatpush.bf16.msra.mxu2 %v6191_v17  ;;  %3992 = vmatpush.bf16.msra.mxu3 %v6319_v3  ;;  %v6140_v59 = vld [vmem:[%s11732_s1 + $0xa98] sm:$0xf0]  ;;  %v6015_v11 = vor.u32 %v7457_v9, %v6012_v56  ;;  %v7421_v17 = vld [vmem:[%s11732_s1 + $0x86c] sm:$0xf]  ;;  %v10959_v56 = vpop.f32.mrf.mxu2 }
 0x1d4   :  { %3930 = vmatmul.bf16.vlgmr.msrb.gmra.mxu2 %v8319_v44  ;;  %3944 = vmatmul.bf16.vlgmr.msrb.gmra.mxu3 %v8329_v48  ;;  %v7425_v44 = vld [vmem:[%s11732_s1 + $0x88c] sm:$0xf]  ;;  %v6287_v48 = vor.u32 %v7525_v40, %v6284_v5  ;;  %v6268_v16 = vld [vmem:[%s11732_s1 + $0xb98] sm:$0xf0]  ;;  %v6143_v18 = vor.u32 %v7489_v4, %v6140_v59 }
 0x1d5   :  { %v5887_v2 = vor.u32 %v7425_v44, %v5884_v45  ;;  %v5868_v0 = vld [vmem:[%s11732_s1 + $0x878] sm:$0xf0]  ;;  %v7453_v53 = vld [vmem:[%s11732_s1 + $0x96c] sm:$0xf]  ;;  %v6271_v57 = vor.u32 %v7521_v13, %v6268_v16 }
 0x1d6   :  { %3951 = vmatpush.bf16.msra.mxu0 %v5919_v51  ;;  %3965 = vmatpush.bf16.msra.mxu1 %v6047_v31  ;;  %v5996_v3 = vld [vmem:[%s11732_s1 + $0x978] sm:$0xf0]  ;;  %v7485_v24 = vld [vmem:[%s11732_s1 + $0xa6c] sm:$0xf]  ;;  %v10924_v51 = vpop.f32.mrf.mxu1  ;;  %v5871_v31 = vor.u32 %v7421_v17, %v5868_v0 }
 0x1d7   :  { %3979 = vmatpush.bf16.msra.mxu2 %v6175_v58  ;;  %3993 = vmatpush.bf16.msra.mxu3 %v6303_v21  ;;  %v6124_v10 = vld [vmem:[%s11732_s1 + $0xa78] sm:$0xf0]  ;;  %v7517_v35 = vld [vmem:[%s11732_s1 + $0xb6c] sm:$0xf]  ;;  %v5999_v58 = vor.u32 %v7453_v53, %v5996_v3 }
 0x1d8   :  { %v6252_v50 = vld [vmem:[%s11732_s1 + $0xb78] sm:$0xf0]  ;;  %v6127_v38 = vor.u32 %v7485_v24, %v6124_v10  ;;  %v7417_v43 = vld [vmem:[%s11732_s1 + $0x84c] sm:$0xf] }
 0x1d9   :  { %v5852_v49 = vld [vmem:[%s11732_s1 + $0x858] sm:$0xf0]  ;;  %v7449_v21 = vld [vmem:[%s11732_s1 + $0x94c] sm:$0xf]  ;;  %v6255_v29 = vor.u32 %v7517_v35, %v6252_v50 }
 0x1da   :  { %3952 = vmatpush.bf16.msra.mxu0 %v5903_v12  ;;  %3966 = vmatpush.bf16.msra.mxu1 %v6031_v6  ;;  %v5980_v60 = vld [vmem:[%s11732_s1 + $0x958] sm:$0xf0]  ;;  %v7481_v46 = vld [vmem:[%s11732_s1 + $0xa4c] sm:$0xf]  ;;  %v5855_v6 = vor.u32 %v7417_v43, %v5852_v49 }
 0x1db   :  { %3980 = vmatpush.bf16.msra.mxu2 %v6159_v14  ;;  %3994 = vmatpush.bf16.msra.mxu3 %v6287_v48  ;;  %v6108_v40 = vld [vmem:[%s11732_s1 + $0xa58] sm:$0xf0]  ;;  %v7513_v5 = vld [vmem:[%s11732_s1 + $0xb4c] sm:$0xf]  ;;  %v5983_v14 = vor.u32 %v7449_v21, %v5980_v60 }
 0x1dc   :  { %v6236_v12 = vld [vmem:[%s11732_s1 + $0xb58] sm:$0xf0]  ;;  %v6111_v44 = vor.u32 %v7481_v46, %v6108_v40  ;;  %v7413_v45 = vld [vmem:[%s11732_s1 + $0x82c] sm:$0xf] }
 0x1dd   :  { %v5836_v9 = vld [vmem:[%s11732_s1 + $0x838] sm:$0xf0]  ;;  %v7445_v48 = vld [vmem:[%s11732_s1 + $0x92c] sm:$0xf]  ;;  %v6239_v4 = vor.u32 %v7513_v5, %v6236_v12 }
 0x1de   :  { %3953 = vmatpush.bf16.msra.mxu0 %v5887_v2  ;;  %3967 = vmatpush.bf16.msra.mxu1 %v6015_v11  ;;  %v5964_v59 = vld [vmem:[%s11732_s1 + $0x938] sm:$0xf0]  ;;  %v7477_v13 = vld [vmem:[%s11732_s1 + $0xa2c] sm:$0xf]  ;;  %v10970_v2 = vpop.f32.mrf.mxu3  ;;  %v5839_v17 = vor.u32 %v7413_v45, %v5836_v9  ;;  %v11033_v9 = vld [vmem:[%s11733_s2] sm:$0xf] }
 0x1df   :  { %3981 = vmatpush.bf16.msra.mxu2 %v6143_v18  ;;  %3995 = vmatpush.bf16.msra.mxu3 %v6271_v57  ;;  %v6092_v16 = vld [vmem:[%s11732_s1 + $0xa38] sm:$0xf0]  ;;  %v7509_v11 = vld [vmem:[%s11732_s1 + $0xb2c] sm:$0xf]  ;;  %v10984_v57 = vpop.f32.mrf.mxu0  ;;  %v5967_v3 = vor.u32 %v7445_v48, %v5964_v59  ;;  %v600_v48 = vperm.slane %v11033_v9, 2  ;;  %s7777_s2 = smov [#allocation3]  }
 0x1e0   :  { %v6220_v18 = vld [vmem:[%s11732_s1 + $0xb38] sm:$0xf0]  ;;  %v7409_v0 = vld [vmem:[%s11732_s1 + $0x80c] sm:$0xf]  ;;  %v6095_v24 = vor.u32 %v7477_v13, %v6092_v16  ;;  %s4773_s24 = sshll.u32 %s7777_s2, 4  ;;  %s4774_s24 = int_to_ptr.vmem [resolvable:$true] %s4773_s24 }
 0x1e1   :  { %v5820_v53 = vld [vmem:[%s11732_s1 + $0x818] sm:$0xf0]  ;;  %v7441_v10 = vld [vmem:[%s11732_s1 + $0x90c] sm:$0xf] }
 0x1e2   :  { %3954 = vmatpush.bf16.msra.mxu0 %v5871_v31  ;;  %3968 = vmatpush.bf16.msra.mxu1 %v5999_v58  ;;  %v5948_v35 = vld [vmem:[%s11732_s1 + $0x918] sm:$0xf0]  ;;  %v7473_v50 = vld [vmem:[%s11732_s1 + $0xa0c] sm:$0xf]  ;;  %v10995_v31 = vpop.f32.mrf.mxu1  ;;  %v6223_v58 = vor.u32 %v7509_v11, %v6220_v18  ;;  %v5823_v46 = vor.u32 %v7409_v0, %v5820_v53  ;;  %v11045_v0 = vpop.f32.mrf.mxu2 }
 0x1e3   :  { %3982 = vmatpush.bf16.msra.mxu2 %v6127_v38  ;;  %3996 = vmatpush.bf16.msra.mxu3 %v6255_v29  ;;  %v6076_v38 = vld [vmem:[%s11732_s1 + $0xa18] sm:$0xf0]  ;;  %v7505_v43 = vld [vmem:[%s11732_s1 + $0xb0c] sm:$0xf] }
 0x1e4   :  { %v6204_v49 = vld [vmem:[%s11732_s1 + $0xb18] sm:$0xf0]  ;;  %v7565_v21 = vld [vmem:[%s11732_s1 + $0xcec] sm:$0xf] }
 0x1e5   :  { %v6444_v29 = vld [vmem:[%s11732_s1 + $0xcf8] sm:$0xf0]  ;;  %v7597_v60 = vld [vmem:[%s11732_s1 + $0xdec] sm:$0xf] }
 0x1e6   :  { %3955 = vmatpush.bf16.msra.mxu0 %v5855_v6  ;;  %3969 = vmatpush.bf16.msra.mxu1 %v5983_v14  ;;  %v6572_v40 = vld [vmem:[%s11732_s1 + $0xdf8] sm:$0xf0]  ;;  %v7629_v5 = vld [vmem:[%s11732_s1 + $0xeec] sm:$0xf]  ;;  %v5951_v6 = vor.u32 %v7441_v10, %v5948_v35  ;;  %v6079_v14 = vor.u32 %v7473_v50, %v6076_v38  ;;  %v6447_v59 = vor.u32 %v7565_v21, %v6444_v29  ;;  %v11056_v35 = vpop.f32.mrf.mxu3  ;;  %v11744_v38 = vperm.slane %v8995_v55, 0 }
 0x1e7   :  { %3983 = vmatpush.bf16.msra.mxu2 %v6111_v44  ;;  %3997 = vmatpush.bf16.msra.mxu3 %v6239_v4  ;;  %v6700_v12 = vld [vmem:[%s11732_s1 + $0xef8] sm:$0xf0]  ;;  %v7661_v44 = vld [vmem:[%s11732_s1 + $0xfec] sm:$0xf]  ;;  %v6207_v4 = vor.u32 %v7505_v43, %v6204_v49  ;;  %v6575_v13 = vor.u32 %v7597_v60, %v6572_v40  ;;  %v3624_v21 = vadd.f32 %v10916_v25, %v600_v48  ;;  %v11068_v29 = vpop.f32.mrf.mxu0 }
 0x1e8   :  { %v6828_v45 = vld [vmem:[%s11732_s1 + $0xff8] sm:$0xf0]  ;;  %v6703_v16 = vor.u32 %v7629_v5, %v6700_v12  ;;  %v7561_v11 = vld [vmem:[%s11732_s1 + $0xccc] sm:$0xf]  ;;  %v3178_v43 = vadd.f32 %v9165_v52, %v11744_v38 }
 0x1e9   :  { %v6428_v18 = vld [vmem:[%s11732_s1 + $0xcd8] sm:$0xf0]  ;;  %v6831_v53 = vor.u32 %v7661_v44, %v6828_v45  ;;  %v7657_v50 = vld [vmem:[%s11732_s1 + $0xfcc] sm:$0xf] }
 0x1ea   :  { %3956 = vmatpush.bf16.msra.mxu0 %v5839_v17  ;;  %3970 = vmatpush.bf16.msra.mxu1 %v5967_v3  ;;  %v7593_v17 = vld [vmem:[%s11732_s1 + $0xdcc] sm:$0xf]  ;;  %v6556_v3 = vld [vmem:[%s11732_s1 + $0xdd8] sm:$0xf0]  ;;  %v6431_v49 = vor.u32 %v7561_v11, %v6428_v18  ;;  %v11079_v5 = vpop.f32.mrf.mxu1  ;;  %v3192_v45 = vadd.f32 %v9191_v1, %v3178_v43 }
 0x1eb   :  { %3984 = vmatpush.bf16.msra.mxu2 %v6095_v24  ;;  %3998 = vmatpush.bf16.msra.mxu3 %v6223_v58  ;;  %v7625_v24 = vld [vmem:[%s11732_s1 + $0xecc] sm:$0xf]  ;;  %v6684_v10 = vld [vmem:[%s11732_s1 + $0xed8] sm:$0xf0]  ;;  %v6559_v60 = vor.u32 %v7593_v17, %v6556_v3  ;;  %v3626_v17 = vadd.f32 %v10984_v57, %v600_v48 }
 0x1ec   :  { %v6812_v58 = vld [vmem:[%s11732_s1 + $0xfd8] sm:$0xf0]  ;;  %v7557_v40 = vld [vmem:[%s11732_s1 + $0xcac] sm:$0xf] }
 0x1ed   :  { %v6412_v55 = vld [vmem:[%s11732_s1 + $0xcb8] sm:$0xf0]  ;;  %v7589_v52 = vld [vmem:[%s11732_s1 + $0xdac] sm:$0xf]  ;;  %v6815_v25 = vor.u32 %v7657_v50, %v6812_v58 }
 0x1ee   :  { %3957 = vmatpush.bf16.msra.mxu0 %v5823_v46  ;;  %3971 = vmatpush.bf16.msra.mxu1 %v5951_v6  ;;  %v6687_v46 = vor.u32 %v7625_v24, %v6684_v10  ;;  %v6540_v12 = vld [vmem:[%s11732_s1 + $0xdb8] sm:$0xf0]  ;;  %v7621_v6 = vld [vmem:[%s11732_s1 + $0xeac] sm:$0xf]  ;;  %v3206_v24 = vadd.f32 %v9221_v19, %v3192_v45  ;;  %v11128_v10 = vpop.f32.mrf.mxu2  ;;  %v11131_v38 = vpop.f32.mrf.mxu3 }
 0x1ef   :  { %3985 = vmatpush.bf16.msra.mxu2 %v6079_v14  ;;  %3999 = vmatpush.bf16.msra.mxu3 %v6207_v4  ;;  %v6668_v14 = vld [vmem:[%s11732_s1 + $0xeb8] sm:$0xf0]  ;;  %v6415_v4 = vor.u32 %v7557_v40, %v6412_v55  ;;  %v7617_v11 = vld [vmem:[%s11732_s1 + $0xe8c] sm:$0xf]  ;;  %v3640_v40 = vadd.f32 %v10995_v31, %v3626_v17  ;;  %v11152_v55 = vpop.f32.mrf.mxu0 }
 0x1f0   :  { %v6796_v44 = vld [vmem:[%s11732_s1 + $0xfb8] sm:$0xf0]  ;;  %v7549_v43 = vld [vmem:[%s11732_s1 + $0xc6c] sm:$0xf] }
 0x1f1   :  { %3958 = vmatmul.bf16.vlgmr.msra.gmra.mxu0 %v8536_v32  ;;  %3972 = vmatmul.bf16.vlgmr.msra.gmra.mxu1 %v8549_v37  ;;  %v7653_v32 = vld [vmem:[%s11732_s1 + $0xfac] sm:$0xf]  ;;  %v6671_v37 = vor.u32 %v7621_v6, %v6668_v14  ;;  %v6652_v18 = vld [vmem:[%s11732_s1 + $0xe98] sm:$0xf0] }
 0x1f2   :  { %4006 = vmatpush.bf16.msrb.mxu0 %v6447_v59  ;;  %4020 = vmatpush.bf16.msrb.mxu1 %v6575_v13  ;;  %v3638_v59 = vadd.f32 %v10924_v51, %v3624_v21  ;;  %v7553_v13 = vld [vmem:[%s11732_s1 + $0xc8c] sm:$0xf]  ;;  %v6799_v1 = vor.u32 %v7653_v32, %v6796_v44  ;;  %v6524_v51 = vld [vmem:[%s11732_s1 + $0xd98] sm:$0xf0]  ;;  %v6655_v48 = vor.u32 %v7617_v11, %v6652_v18  ;;  %v11161_v6 = vpop.f32.mrf.mxu1 }
 0x1f3   :  { %4034 = vmatpush.bf16.msrb.mxu2 %v6703_v16  ;;  %4048 = vmatpush.bf16.msrb.mxu3 %v6831_v53  ;;  %v6396_v16 = vld [vmem:[%s11732_s1 + $0xc98] sm:$0xf0]  ;;  %v7649_v53 = vld [vmem:[%s11732_s1 + $0xf8c] sm:$0xf] }
 0x1f4   :  { %3986 = vmatmul.bf16.vlgmr.msra.gmra.mxu2 %v8547_v36  ;;  %4000 = vmatmul.bf16.vlgmr.msra.gmra.mxu3 %v8557_v41  ;;  %v6543_v36 = vor.u32 %v7589_v52, %v6540_v12  ;;  %v7585_v41 = vld [vmem:[%s11732_s1 + $0xd8c] sm:$0xf]  ;;  %v6780_v3 = vld [vmem:[%s11732_s1 + $0xf98] sm:$0xf0]  ;;  %v6399_v50 = vor.u32 %v7553_v13, %v6396_v16  ;;  %v3652_v58 = vadd.f32 %v10959_v56, %v3638_v59 }
 0x1f5   :  { %v6527_v57 = vor.u32 %v7585_v41, %v6524_v51  ;;  %v6380_v19 = vld [vmem:[%s11732_s1 + $0xc78] sm:$0xf0]  ;;  %v6783_v56 = vor.u32 %v7649_v53, %v6780_v3  ;;  %v7645_v52 = vld [vmem:[%s11732_s1 + $0xf6c] sm:$0xf]  ;;  %v3220_v12 = vadd.f32 %v9232_v26, %v3206_v24  ;;  %v3654_v13 = vadd.f32 %v11045_v0, %v3640_v40 }
 0x1f6   :  { %4007 = vmatpush.bf16.msrb.mxu0 %v6431_v49  ;;  %4021 = vmatpush.bf16.msrb.mxu1 %v6559_v60  ;;  %v7581_v49 = vld [vmem:[%s11732_s1 + $0xd6c] sm:$0xf]  ;;  %v6508_v21 = vld [vmem:[%s11732_s1 + $0xd78] sm:$0xf0]  ;;  %v6383_v14 = vor.u32 %v7549_v43, %v6380_v19  ;;  %v3666_v32 = vadd.f32 %v10970_v2, %v3652_v58  ;;  %v11200_v3 = vpop.f32.mrf.mxu2 }
 0x1f7   :  { %4035 = vmatpush.bf16.msrb.mxu2 %v6687_v46  ;;  %4049 = vmatpush.bf16.msrb.mxu3 %v6815_v25  ;;  %v7613_v60 = vld [vmem:[%s11732_s1 + $0xe6c] sm:$0xf]  ;;  %v6636_v46 = vld [vmem:[%s11732_s1 + $0xe78] sm:$0xf0]  ;;  %v6511_v31 = vor.u32 %v7581_v49, %v6508_v21  ;;  %v11214_v43 = vpop.f32.mrf.mxu0 }
 0x1f8   :  { %v6764_v25 = vld [vmem:[%s11732_s1 + $0xf78] sm:$0xf0]  ;;  %v6639_v44 = vor.u32 %v7613_v60, %v6636_v46  ;;  %v7545_v45 = vld [vmem:[%s11732_s1 + $0xc4c] sm:$0xf]  ;;  %v3680_v11 = vadd.f32 %v11068_v29, %v3666_v32 }
 0x1f9   :  { %v7577_v26 = vld [vmem:[%s11732_s1 + $0xd4c] sm:$0xf]  ;;  %v6767_v59 = vor.u32 %v7645_v52, %v6764_v25  ;;  %v6492_v2 = vld [vmem:[%s11732_s1 + $0xd58] sm:$0xf0] }
 0x1fa   :  { %4008 = vmatpush.bf16.msrb.mxu0 %v6415_v4  ;;  %4022 = vmatpush.bf16.msrb.mxu1 %v6543_v36  ;;  %v6364_v4 = vld [vmem:[%s11732_s1 + $0xc58] sm:$0xf0]  ;;  %v7609_v36 = vld [vmem:[%s11732_s1 + $0xe4c] sm:$0xf]  ;;  %v6495_v18 = vor.u32 %v7577_v26, %v6492_v2  ;;  %v11223_v21 = vpop.f32.mrf.mxu1  ;;  %v3694_v40 = vadd.f32 %v11079_v5, %v3680_v11  ;;  %v7679_v26 = vld [vmem:[%s11734_s3 + $0x74] sm:$0xf0] }
 0x1fb   :  { %4036 = vmatpush.bf16.msrb.mxu2 %v6671_v37  ;;  %4050 = vmatpush.bf16.msrb.mxu3 %v6799_v1  ;;  %v6620_v37 = vld [vmem:[%s11732_s1 + $0xe58] sm:$0xf0]  ;;  %v7641_v16 = vld [vmem:[%s11732_s1 + $0xf4c] sm:$0xf]  ;;  %v3234_v1 = vadd.f32 %v9390_v27, %v3220_v12  ;;  %v6367_v51 = vor.u32 %v7545_v45, %v6364_v4 }
 0x1fc   :  { %v6748_v41 = vld [vmem:[%s11732_s1 + $0xf58] sm:$0xf0]  ;;  %v6623_v17 = vor.u32 %v7609_v36, %v6620_v37  ;;  %v7541_v0 = vld [vmem:[%s11732_s1 + $0xc2c] sm:$0xf]  ;;  %v7695_v36 = vld [vmem:[%s11734_s3 + $0xf4] sm:$0xf0] }
 0x1fd   :  { %v6348_v53 = vld [vmem:[%s11732_s1 + $0xc38] sm:$0xf0]  ;;  %v7573_v27 = vld [vmem:[%s11732_s1 + $0xd2c] sm:$0xf]  ;;  %v6751_v29 = vor.u32 %v7641_v16, %v6748_v41  ;;  %v7711_v37 = vld [vmem:[%s11734_s3 + $0x174] sm:$0xf0] }
 0x1fe   :  { %4009 = vmatpush.bf16.msrb.mxu0 %v6399_v50  ;;  %4023 = vmatpush.bf16.msrb.mxu1 %v6527_v57  ;;  %v6476_v24 = vld [vmem:[%s11732_s1 + $0xd38] sm:$0xf0]  ;;  %v7605_v50 = vld [vmem:[%s11732_s1 + $0xe2c] sm:$0xf]  ;;  %v3668_v57 = vadd.f32 %v11056_v35, %v3654_v13  ;;  %v6351_v60 = vor.u32 %v7541_v0, %v6348_v53  ;;  %v3708_v13 = vadd.f32 %v11128_v10, %v3694_v40  ;;  %v6882_v10 = vld [vmem:[%s11734_s3 + $0x60] sm:$0xf] }
 0x1ff   :  { %4037 = vmatpush.bf16.msrb.mxu2 %v6655_v48  ;;  %4051 = vmatpush.bf16.msrb.mxu3 %v6783_v56  ;;  %v6604_v58 = vld [vmem:[%s11732_s1 + $0xe38] sm:$0xf0]  ;;  %v11212_v48 = vpop.f32.mrf.mxu3  ;;  %v7637_v19 = vld [vmem:[%s11732_s1 + $0xf2c] sm:$0xf]  ;;  %v3248_v56 = vadd.f32 %v9398_v30, %v3234_v1  ;;  %v6479_v52 = vor.u32 %v7573_v27, %v6476_v24 }
 0x200   :  { %v6732_v49 = vld [vmem:[%s11732_s1 + $0xf38] sm:$0xf0]  ;;  %v7537_v35 = vld [vmem:[%s11732_s1 + $0xc0c] sm:$0xf]  ;;  %v6607_v25 = vor.u32 %v7605_v50, %v6604_v58  ;;  %v3682_v4 = vadd.f32 %v11152_v55, %v3668_v57  ;;  %v7018_v55 = vld [vmem:[%s11734_s3 + $0x170] sm:$0xf]  ;;  %v3722_v57 = vadd.f32 %v11131_v38, %v3708_v13 }
 0x201   :  { %v6332_v46 = vld [vmem:[%s11732_s1 + $0xc18] sm:$0xf0]  ;;  %v7569_v30 = vld [vmem:[%s11732_s1 + $0xd0c] sm:$0xf]  ;;  %v3262_v32 = vadd.f32 %v9437_v63, %v3248_v56  ;;  %v6735_v5 = vor.u32 %v7637_v19, %v6732_v49  ;;  %v6890_v63 = vld [vmem:[%s11734_s3 + $0x70] sm:$0xf]  ;;  %v7019_v27 = vor.u32 %v7711_v37, %v7018_v55  ;;  %v3737_v49 = vpop.f32.mrf.mxu0 }
 0x202   :  { %4010 = vmatpush.bf16.msrb.mxu0 %v6383_v14  ;;  %4024 = vmatpush.bf16.msrb.mxu1 %v6511_v31  ;;  %v6460_v12 = vld [vmem:[%s11732_s1 + $0xd18] sm:$0xf0]  ;;  %v7601_v14 = vld [vmem:[%s11732_s1 + $0xe0c] sm:$0xf]  ;;  %v6335_v2 = vor.u32 %v7537_v35, %v6332_v46  ;;  %v7010_v50 = vld [vmem:[%s11734_s3 + $0x160] sm:$0xf]  ;;  %v3736_v35 = vadd.f32 %v11214_v43, %v3722_v57 }
 0x203   :  { %4038 = vmatpush.bf16.msrb.mxu2 %v6639_v44  ;;  %4052 = vmatpush.bf16.msrb.mxu3 %v6767_v59  ;;  %v6588_v31 = vld [vmem:[%s11732_s1 + $0xe18] sm:$0xf0]  ;;  %v7633_v44 = vld [vmem:[%s11732_s1 + $0xf0c] sm:$0xf]  ;;  %v6954_v59 = vld [vmem:[%s11734_s3 + $0xf0] sm:$0xf]  ;;  %v6463_v16 = vor.u32 %v7569_v30, %v6460_v12  ;;  %v3276_v1 = vadd.f32 %v9448_v7, %v3262_v32 }
 0x204   :  { %v6716_v45 = vld [vmem:[%s11732_s1 + $0xf18] sm:$0xf0]  ;;  %v6591_v41 = vor.u32 %v7601_v14, %v6588_v31  ;;  %v6955_v53 = vor.u32 %v7695_v36, %v6954_v59  ;;  %v6946_v7 = vld [vmem:[%s11734_s3 + $0xe0] sm:$0xf]  ;;  %v7709_v58 = vld [vmem:[%s11734_s3 + $0x164] sm:$0xf0] }
 0x205   :  { %v6719_v11 = vor.u32 %v7633_v44, %v6716_v45  ;;  %v3290_v24 = vadd.f32 %v9597_v15, %v3276_v1  ;;  %v3751_v15 = vpop.f32.mrf.mxu1  ;;  %v7011_v40 = vor.u32 %v7709_v58, %v7010_v50  ;;  %v7675_v38 = vld [vmem:[%s11734_s3 + $0x54] sm:$0xf0]  ;;  %v7002_v43 = vld [vmem:[%s11734_s3 + $0x150] sm:$0xf]  ;;  %v6866_v31 = vld [vmem:[%s11734_s3 + $0x40] sm:$0xf] }
 0x206   :  { %4011 = vmatpush.bf16.msrb.mxu0 %v6367_v51  ;;  %4025 = vmatpush.bf16.msrb.mxu1 %v6495_v18  ;;  %v3763_v51 = vpop.f32.mrf.mxu2  ;;  %v6891_v18 = vor.u32 %v7679_v26, %v6890_v63  ;;  %v7707_v30 = vld [vmem:[%s11734_s3 + $0x154] sm:$0xf0]  ;;  %v7705_v44 = vld [vmem:[%s11734_s3 + $0x144] sm:$0xf0]  ;;  %v6858_v13 = vld [vmem:[%s11734_s3 + $0x30] sm:$0xf] }
 0x207   :  { %4039 = vmatpush.bf16.msrb.mxu2 %v6623_v17  ;;  %4053 = vmatpush.bf16.msrb.mxu3 %v6751_v29  ;;  %v3696_v17 = vadd.f32 %v11161_v6, %v3682_v4  ;;  %v11273_v0 = vpop.f32.mrf.mxu3  ;;  %v7677_v29 = vld [vmem:[%s11734_s3 + $0x64] sm:$0xf0]  ;;  %v7687_v1 = vld [vmem:[%s11734_s3 + $0xb4] sm:$0xf0]  ;;  %v6978_v58 = vld [vmem:[%s11734_s3 + $0x120] sm:$0xf] }
 0x208   :  { %v7693_v6 = vld [vmem:[%s11734_s3 + $0xe4] sm:$0xf0]  ;;  %v6883_v56 = vor.u32 %v7677_v29, %v6882_v10 }
 0x209   :  { %v3710_v19 = vadd.f32 %v11200_v3, %v3696_v17  ;;  %v6947_v46 = vor.u32 %v7693_v6, %v6946_v7  ;;  %v6938_v3 = vld [vmem:[%s11734_s3 + $0xd0] sm:$0xf]  ;;  %v7669_v7 = vld [vmem:[%s11734_s3 + $0x24] sm:$0xf0] }
 0x20a   :  { %4012 = vmatpush.bf16.msrb.mxu0 %v6351_v60  ;;  %4026 = vmatpush.bf16.msrb.mxu1 %v6479_v52  ;;  %v6874_v60 = vld [vmem:[%s11734_s3 + $0x50] sm:$0xf]  ;;  %v7691_v52 = vld [vmem:[%s11734_s3 + $0xd4] sm:$0xf0]  ;;  %v7701_v57 = vld [vmem:[%s11734_s3 + $0x124] sm:$0xf0] }
 0x20b   :  { %4040 = vmatpush.bf16.msrb.mxu2 %v6607_v25  ;;  %4054 = vmatpush.bf16.msrb.mxu3 %v6735_v5  ;;  %v3304_v25 = vadd.f32 %v9605_v20, %v3290_v24  ;;  %v3724_v12 = vadd.f32 %v11212_v48, %v3710_v19  ;;  %v6939_v14 = vor.u32 %v7691_v52, %v6938_v3  ;;  %v7689_v48 = vld [vmem:[%s11734_s3 + $0xc4] sm:$0xf0]  ;;  %v7667_v3 = vld [vmem:[%s11734_s3 + $0x14] sm:$0xf0] }
 0x20c   :  { %v7003_v5 = vor.u32 %v7707_v30, %v7002_v43  ;;  %v7685_v24 = vld [vmem:[%s11734_s3 + $0xa4] sm:$0xf0]  ;;  %v6970_v43 = vld [vmem:[%s11734_s3 + $0x110] sm:$0xf]  ;;  %v7699_v30 = vld [vmem:[%s11734_s3 + $0x114] sm:$0xf0] }
 0x20d   :  { %v3318_v20 = vadd.f32 %v9644_v54, %v3304_v25  ;;  %v3738_v32 = vadd.f32 %v3737_v49, %v3724_v12  ;;  %v7683_v25 = vld [vmem:[%s11734_s3 + $0x94] sm:$0xf0] }
 0x20e   :  { %4013 = vmatpush.bf16.msrb.mxu0 %v6335_v2  ;;  %4027 = vmatpush.bf16.msrb.mxu1 %v6463_v16  ;;  %v3765_v54 = vpop.f32.mrf.mxu2  ;;  %v3791_v63 = vpop.f32.mrf.mxu0  ;;  %v7671_v16 = vld [vmem:[%s11734_s3 + $0x34] sm:$0xf0] }
 0x20f   :  { %4041 = vmatpush.bf16.msrb.mxu2 %v6591_v41  ;;  %4055 = vmatpush.bf16.msrb.mxu3 %v6719_v11  ;;  %v3779_v4 = vpop.f32.mrf.mxu3  ;;  %v3332_v26 = vadd.f32 %v9655_v61, %v3318_v20  ;;  %v3805_v2 = vpop.f32.mrf.mxu1  ;;  %v3752_v36 = vadd.f32 %v3751_v15, %v3738_v32  ;;  %v6922_v61 = vld [vmem:[%s11734_s3 + $0xb0] sm:$0xf]  ;;  %v7703_v11 = vld [vmem:[%s11734_s3 + $0x134] sm:$0xf0] }
 0x210   :  { %v6923_v10 = vor.u32 %v7687_v1, %v6922_v61 }
 0x211   :  { %4014 = vmatmul.bf16.vlgmr.msrb.gmra.mxu0 %v8764_v33  ;;  %4028 = vmatmul.bf16.vlgmr.msrb.gmra.mxu1 %v8777_v42  ;;  %v6875_v33 = vor.u32 %v7675_v38, %v6874_v60  ;;  %v3750_v42 = vadd.f32 %v11223_v21, %v3736_v35  ;;  %v6994_v21 = vld [vmem:[%s11734_s3 + $0x140] sm:$0xf]  ;;  %v3346_v41 = vadd.f32 %v9804_v23, %v3332_v26  ;;  %v6842_v38 = vld [vmem:[%s11734_s3 + $0x10] sm:$0xf]  ;;  %v7694_v26 = vld [vmem:[%s11734_s3 + $0xf4] sm:$0xf] }
 0x212   :  { %4464 = vmatpush.bf16.msra.mxu0 %v6891_v18  ;;  %4478 = vmatpush.bf16.msra.mxu1 %v6955_v53  ;;  %v6995_v37 = vor.u32 %v7705_v44, %v6994_v21  ;;  %v3766_v17 = vadd.f32 %v3765_v54, %v3752_v36  ;;  %v6859_v53 = vor.u32 %v7671_v16, %v6858_v13  ;;  %v6850_v23 = vld [vmem:[%s11734_s3 + $0x20] sm:$0xf]  ;;  %v7678_v21 = vld [vmem:[%s11734_s3 + $0x74] sm:$0xf] }
 0x213   :  { %4492 = vmatpush.bf16.msra.mxu2 %v7019_v27  ;;  %4056 = vmatmul.bf16.vlgmr.msrb.gmra.mxu3 %v8785_v47  ;;  %v6930_v47 = vld [vmem:[%s11734_s3 + $0xc0] sm:$0xf]  ;;  %v3764_v45 = vadd.f32 %v3763_v51, %v3750_v42  ;;  %v6986_v51 = vld [vmem:[%s11734_s3 + $0x130] sm:$0xf]  ;;  %v3360_v6 = vadd.f32 %v9812_v28, %v3346_v41  ;;  %v6851_v60 = vor.u32 %v7669_v7, %v6850_v23  ;;  %v7710_v36 = vld [vmem:[%s11734_s3 + $0x174] sm:$0xf] }
 0x214   :  { %4042 = vmatmul.bf16.vlgmr.msrb.gmra.mxu2 %v8775_v39  ;;  %v7673_v39 = vld [vmem:[%s11734_s3 + $0x44] sm:$0xf0]  ;;  %v6931_v55 = vor.u32 %v7689_v48, %v6930_v47  ;;  %v6987_v29 = vor.u32 %v7703_v11, %v6986_v51  ;;  %v3780_v19 = vadd.f32 %v3779_v4, %v3766_v17  ;;  %v6962_v54 = vld [vmem:[%s11734_s3 + $0x100] sm:$0xf]  ;;  %v4062_v41 = vmax.f32 %v9712_v62, 0.0 }
 0x215   :  { %v6867_v59 = vor.u32 %v7673_v39, %v6866_v31  ;;  %v3778_v18 = vadd.f32 %v11273_v0, %v3764_v45  ;;  %v6914_v0 = vld [vmem:[%s11734_s3 + $0xa0] sm:$0xf]  ;;  %v7665_v31 = vld [vmem:[%s11734_s3 + $0x4] sm:$0xf0]  ;;  %v7676_v11 = vld [vmem:[%s11734_s3 + $0x64] sm:$0xf] }
 0x216   :  { %4465 = vmatpush.bf16.msra.mxu0 %v6883_v56  ;;  %4479 = vmatpush.bf16.msra.mxu1 %v6947_v46  ;;  %v3793_v49 = vpop.f32.mrf.mxu0  ;;  %v3374_v56 = vadd.f32 %v9857_v8, %v3360_v6  ;;  %v6915_v35 = vor.u32 %v7685_v24, %v6914_v0  ;;  %v6906_v8 = vld [vmem:[%s11734_s3 + $0x90] sm:$0xf]  ;;  %v6898_v39 = vld [vmem:[%s11734_s3 + $0x80] sm:$0xf]  ;;  %v7697_v48 = vld [vmem:[%s11734_s3 + $0x104] sm:$0xf0] }
 0x217   :  { %4493 = vmatpush.bf16.msra.mxu2 %v7011_v40  ;;  %v3792_v27 = vadd.f32 %v3791_v63, %v3778_v18  ;;  %v3819_v50 = vpop.f32.mrf.mxu2  ;;  %v3833_v15 = vpop.f32.mrf.mxu3  ;;  %v3794_v28 = vadd.f32 %v3793_v49, %v3780_v19  ;;  %v6979_v40 = vor.u32 %v7701_v57, %v6978_v58  ;;  %v6907_v32 = vor.u32 %v7683_v25, %v6906_v8  ;;  %v6892_v63 = vld [vmem:[%s11734_s3 + $0x78] sm:$0xf0]  ;;  %v6884_v18 = vld [vmem:[%s11734_s3 + $0x68] sm:$0xf0]  ;;  %v7690_v19 = vld [vmem:[%s11734_s3 + $0xd4] sm:$0xf] }
 0x218   :  { %v3807_v52 = vpop.f32.mrf.mxu1  ;;  %v3388_v20 = vadd.f32 %v9874_v22, %v3374_v56  ;;  %v7681_v22 = vld [vmem:[%s11734_s3 + $0x84] sm:$0xf0]  ;;  %v6963_v61 = vor.u32 %v7697_v48, %v6962_v54  ;;  %v6895_v1 = vor.u32 %v7678_v21, %v6892_v63  ;;  %v6948_v62 = vld [vmem:[%s11734_s3 + $0xe8] sm:$0xf0]  ;;  %v6887_v24 = vor.u32 %v7676_v11, %v6884_v18  ;;  %v6876_v57 = vld [vmem:[%s11734_s3 + $0x58] sm:$0xf0] }
 0x219   :  { %v3806_v46 = vadd.f32 %v3805_v2, %v3792_v27  ;;  %v3808_v42 = vadd.f32 %v3807_v52, %v3794_v28  ;;  %v6899_v16 = vor.u32 %v7681_v22, %v6898_v39  ;;  %v7692_v27 = vld [vmem:[%s11734_s3 + $0xe4] sm:$0xf]  ;;  %v6940_v49 = vld [vmem:[%s11734_s3 + $0xd8] sm:$0xf0]  ;;  %v6996_v52 = vld [vmem:[%s11734_s3 + $0x148] sm:$0xf0] }
 0x21a   :  { %4466 = vmatpush.bf16.msra.mxu0 %v6875_v33  ;;  %4480 = vmatpush.bf16.msra.mxu1 %v6939_v14  ;;  %v6843_v33 = vor.u32 %v7667_v3, %v6842_v38  ;;  %v6834_v14 = vld [vmem:[%s11734_s3] sm:$0xf]  ;;  %v6951_v6 = vor.u32 %v7692_v27, %v6948_v62  ;;  %v7004_v56 = vld [vmem:[%s11734_s3 + $0x158] sm:$0xf0]  ;;  %v7688_v38 = vld [vmem:[%s11734_s3 + $0xc4] sm:$0xf] }
 0x21b   :  { %4494 = vmatpush.bf16.msra.mxu2 %v7003_v5  ;;  %v3820_v12 = vadd.f32 %v3819_v50, %v3806_v46  ;;  %v6971_v5 = vor.u32 %v7699_v30, %v6970_v43  ;;  %v6835_v2 = vor.u32 %v7665_v31, %v6834_v14  ;;  %v7674_v50 = vld [vmem:[%s11734_s3 + $0x54] sm:$0xf]  ;;  %v7672_v46 = vld [vmem:[%s11734_s3 + $0x44] sm:$0xf]  ;;  %v6932_v3 = vld [vmem:[%s11734_s3 + $0xc8] sm:$0xf0] }
 0x21c   :  { %v7704_v8 = vld [vmem:[%s11734_s3 + $0x144] sm:$0xf]  ;;  %v6935_v43 = vor.u32 %v7688_v38, %v6932_v3  ;;  %v7670_v30 = vld [vmem:[%s11734_s3 + $0x34] sm:$0xf]  ;;  %v6924_v14 = vld [vmem:[%s11734_s3 + $0xb8] sm:$0xf0] }
 0x21d   :  { %v3834_v44 = vadd.f32 %v3833_v15, %v3820_v12  ;;  %v7706_v15 = vld [vmem:[%s11734_s3 + $0x154] sm:$0xf]  ;;  %v6999_v12 = vor.u32 %v7704_v8, %v6996_v52  ;;  %v7668_v39 = vld [vmem:[%s11734_s3 + $0x24] sm:$0xf]  ;;  %v6916_v48 = vld [vmem:[%s11734_s3 + $0xa8] sm:$0xf0] }
 0x21e   :  { %4467 = vmatpush.bf16.msra.mxu0 %v6867_v59  ;;  %4481 = vmatpush.bf16.msra.mxu1 %v6931_v55  ;;  %v6956_v59 = vld [vmem:[%s11734_s3 + $0xf8] sm:$0xf0]  ;;  %v7007_v28 = vor.u32 %v7706_v15, %v7004_v56  ;;  %v7684_v54 = vld [vmem:[%s11734_s3 + $0xa4] sm:$0xf]  ;;  %v7666_v63 = vld [vmem:[%s11734_s3 + $0x14] sm:$0xf] }
 0x21f   :  { %4495 = vmatpush.bf16.msra.mxu2 %v6995_v37  ;;  %v3821_v47 = vpop.f32.mrf.mxu2  ;;  %v3835_v4 = vpop.f32.mrf.mxu3  ;;  %v7020_v55 = vld [vmem:[%s11734_s3 + $0x178] sm:$0xf0]  ;;  %v4066_v37 = vmax.f32 %v3388_v20, 0.0  ;;  %v6959_v51 = vor.u32 %v7694_v26, %v6956_v59  ;;  %v4064_v17 = vmax.f32 %v3834_v44, 0.0  ;;  %v7700_v21 = vld [vmem:[%s11734_s3 + $0x124] sm:$0xf] }
 0x220   :  { %v3822_v45 = vadd.f32 %v3821_v47, %v3808_v42  ;;  %v7023_v23 = vor.u32 %v7710_v36, %v7020_v55  ;;  %v6860_v20 = vld [vmem:[%s11734_s3 + $0x38] sm:$0xf0]  ;;  %v7702_v42 = vld [vmem:[%s11734_s3 + $0x134] sm:$0xf]  ;;  %v6852_v47 = vld [vmem:[%s11734_s3 + $0x28] sm:$0xf0] }
 0x221   :  { %v11456_v7 = vpack.c.bf16 %v4066_v37, %v4062_v41  ;;  %v6980_v44 = vld [vmem:[%s11734_s3 + $0x128] sm:$0xf0]  ;;  %v6844_v59 = vld [vmem:[%s11734_s3 + $0x18] sm:$0xf0]  ;;  %v7698_v55 = vld [vmem:[%s11734_s3 + $0x114] sm:$0xf] }
 0x222   :  { %4468 = vmatpush.bf16.msra.mxu0 %v6859_v53  ;;  %4482 = vmatpush.bf16.msra.mxu1 %v6923_v10  ;;  %v3836_v13 = vadd.f32 %v3835_v4, %v3822_v45  ;;  %v7708_v10 = vld [vmem:[%s11734_s3 + $0x164] sm:$0xf]  ;;  %v6855_v45 = vor.u32 %v7668_v39, %v6852_v47  ;;  %v6919_v4 = vor.u32 %v7684_v54, %v6916_v48  ;;  %v6908_v36 = vld [vmem:[%s11734_s3 + $0x98] sm:$0xf0]  ;;  %v6900_v11 = vld [vmem:[%s11734_s3 + $0x88] sm:$0xf0] }
 0x223   :  { %4496 = vmatpush.bf16.msra.mxu2 %v6987_v29  ;;  %v7012_v29 = vld [vmem:[%s11734_s3 + $0x168] sm:$0xf0]  ;;  %v6983_v26 = vor.u32 %v7700_v21, %v6980_v44  ;;  %v6972_v37 = vld [vmem:[%s11734_s3 + $0x118] sm:$0xf0]  ;;  %v7696_v18 = vld [vmem:[%s11734_s3 + $0x104] sm:$0xf] }
 0x224   :  { %v4068_v53 = vmax.f32 %v3836_v13, 0.0  ;;  %v7015_v58 = vor.u32 %v7708_v10, %v7012_v29  ;;  %v6847_v13 = vor.u32 %v7666_v63, %v6844_v59  ;;  %v6975_v41 = vor.u32 %v7698_v55, %v6972_v37  ;;  %v7082_v10 = vld [vmem:[%s11734_s3 + $0x1f0] sm:$0xf]  ;;  %v7727_v29 = vld [vmem:[%s11734_s3 + $0x1f4] sm:$0xf0] }
 0x225   :  { %v7058_v56 = vld [vmem:[%s11734_s3 + $0x1c0] sm:$0xf]  ;;  %v601_v38 = vperm.slane %v11033_v9, 3  ;;  %v7713_v21 = vld [vmem:[%s11734_s3 + $0x184] sm:$0xf0] }
 0x226   :  { %4469 = vmatpush.bf16.msra.mxu0 %v6851_v60  ;;  %4483 = vmatpush.bf16.msra.mxu1 %v6915_v35  ;;  %v11458_v0 = vpack.c.bf16 %v4068_v53, %v4064_v17  ;;  %v6879_v60 = vor.u32 %v7674_v50, %v6876_v57  ;;  %v6943_v35 = vor.u32 %v7690_v19, %v6940_v49  ;;  %v6964_v17 = vld [vmem:[%s11734_s3 + $0x108] sm:$0xf0]  ;;  %v7066_v19 = vld [vmem:[%s11734_s3 + $0x1d0] sm:$0xf]  ;;  %v7723_v49 = vld [vmem:[%s11734_s3 + $0x1d4] sm:$0xf0] }
 0x227   :  { %4497 = vmatpush.bf16.msra.mxu2 %v6979_v40  ;;  %v6868_v40 = vld [vmem:[%s11734_s3 + $0x48] sm:$0xf0]  ;;  %v6967_v27 = vor.u32 %v7696_v18, %v6964_v17  ;;  %v7067_v15 = vor.u32 %v7723_v49, %v7066_v19  ;;  %v7026_v48 = vld [vmem:[%s11734_s3 + $0x180] sm:$0xf]  ;;  %v7716_v49 = vld [vmem:[%s11734_s3 + $0x1a4] sm:$0xf] }
 0x228   :  { %v6871_v25 = vor.u32 %v7672_v46, %v6868_v40  ;;  %v7719_v40 = vld [vmem:[%s11734_s3 + $0x1b4] sm:$0xf0]  ;;  %v7027_v44 = vor.u32 %v7713_v21, %v7026_v48  ;;  %v7076_v55 = vld [vmem:[%s11734_s3 + $0x1e8] sm:$0xf0] }
 0x22a   :  { %4470 = vmatpush.bf16.msra.mxu0 %v6843_v33  ;;  %4484 = vmatpush.bf16.msra.mxu1 %v6907_v32  ;;  %v7686_v33 = vld [vmem:[%s11734_s3 + $0xb4] sm:$0xf]  ;;  %v6988_v32 = vld [vmem:[%s11734_s3 + $0x138] sm:$0xf0] }
 0x22b   :  { %4498 = vmatpush.bf16.msra.mxu2 %v6971_v5  ;;  %v6863_v5 = vor.u32 %v7670_v30, %v6860_v20  ;;  %v6927_v31 = vor.u32 %v7686_v33, %v6924_v14  ;;  %v6991_v22 = vor.u32 %v7702_v42, %v6988_v32  ;;  %v7034_v42 = vld [vmem:[%s11734_s3 + $0x190] sm:$0xf]  ;;  %v7715_v32 = vld [vmem:[%s11734_s3 + $0x194] sm:$0xf0] }
 0x22c   :  { %v7035_v39 = vor.u32 %v7715_v32, %v7034_v42 }
 0x22e   :  { %4471 = vmatpush.bf16.msra.mxu0 %v6835_v2  ;;  %4485 = vmatpush.bf16.msra.mxu1 %v6899_v16  ;;  %v7682_v2 = vld [vmem:[%s11734_s3 + $0x94] sm:$0xf]  ;;  %v3847_v62 = vpop.f32.mrf.mxu0 }
 0x22f   :  { %4499 = vmatpush.bf16.msra.mxu2 %v6963_v61  ;;  %v6911_v16 = vor.u32 %v7682_v2, %v6908_v36  ;;  %v7664_v61 = vld [vmem:[%s11734_s3 + $0x4] sm:$0xf]  ;;  %v3848_v30 = vadd.f32 %v3847_v62, %v601_v38  ;;  %v7060_v62 = vld [vmem:[%s11734_s3 + $0x1c8] sm:$0xf0] }
 0x230   :  { %v7724_v36 = vld [vmem:[%s11734_s3 + $0x1e4] sm:$0xf] }
 0x231   :  { %4472 = vmatmul.bf16.vlgmr.msra.gmra.mxu0 %v11456_v7  ;;  %4486 = vmatmul.bf16.vlgmr.msra.gmra.mxu1 %v10642_v34 }
 0x232   :  { %4520 = vmatpush.bf16.msrb.mxu0 %v6895_v1  ;;  %4534 = vmatpush.bf16.msrb.mxu1 %v6959_v51  ;;  %v6836_v1 = vld [vmem:[%s11734_s3 + $0x8] sm:$0xf0]  ;;  %v7680_v51 = vld [vmem:[%s11734_s3 + $0x84] sm:$0xf] }
 0x233   :  { %4548 = vmatpush.bf16.msrb.mxu2 %v7023_v23  ;;  %v6839_v53 = vor.u32 %v7664_v61, %v6836_v1  ;;  %v6903_v23 = vor.u32 %v7680_v51, %v6900_v11  ;;  %v7722_v51 = vld [vmem:[%s11734_s3 + $0x1d4] sm:$0xf]  ;;  %v7068_v11 = vld [vmem:[%s11734_s3 + $0x1d8] sm:$0xf0] }
 0x234   :  { %4500 = vmatmul.bf16.vlgmr.msra.gmra.mxu2 %v11458_v0  ;;  %v7071_v17 = vor.u32 %v7722_v51, %v7068_v11  ;;  %v7743_v51 = vld [vmem:[%s11736_s5 + $0x78] sm:$0xff]  ;;  %v7730_v11 = vld [vmem:[%s11736_s5 + $0x10] sm:$0xff] }
 0x236   :  { %4521 = vmatpush.bf16.msrb.mxu0 %v6887_v24  ;;  %4535 = vmatpush.bf16.msrb.mxu1 %v6951_v6  ;;  %v3861_v24 = vpop.f32.mrf.mxu1  ;;  %v7083_v6 = vor.u32 %v7727_v29, %v7082_v10  ;;  %v3849_v57 = vpop.f32.mrf.mxu0 }
 0x237   :  { %4549 = vmatpush.bf16.msrb.mxu2 %v7015_v58  ;;  %v3875_v50 = vpop.f32.mrf.mxu2  ;;  %v3889_v58 = vpop.f32.mrf.mxu3  ;;  %v3862_v14 = vadd.f32 %v3861_v24, %v3848_v30  ;;  %v3850_v9 = vadd.f32 %v3849_v57, %v601_v38 }
 0x238   :  { %4506 = vmatpush.bf16.msra.mxu3 %v7083_v6 }
 0x23a   :  { %4522 = vmatpush.bf16.msrb.mxu0 %v6879_v60  ;;  %4536 = vmatpush.bf16.msrb.mxu1 %v6943_v35  ;;  %v7721_v60 = vld [vmem:[%s11734_s3 + $0x1c4] sm:$0xf0] }
 0x23b   :  { %4550 = vmatpush.bf16.msrb.mxu2 %v7007_v28  ;;  %v7059_v46 = vor.u32 %v7721_v60, %v7058_v56  ;;  %v7050_v28 = vld [vmem:[%s11734_s3 + $0x1b0] sm:$0xf] }
 0x23c   :  { %v7051_v52 = vor.u32 %v7719_v40, %v7050_v28 }
 0x23e   :  { %4523 = vmatpush.bf16.msrb.mxu0 %v6871_v25  ;;  %4537 = vmatpush.bf16.msrb.mxu1 %v6935_v43  ;;  %v3863_v35 = vpop.f32.mrf.mxu1  ;;  %v7042_v25 = vld [vmem:[%s11734_s3 + $0x1a0] sm:$0xf]  ;;  %v7717_v43 = vld [vmem:[%s11734_s3 + $0x1a4] sm:$0xf0] }
 0x23f   :  { %4551 = vmatpush.bf16.msrb.mxu2 %v6999_v12  ;;  %v3877_v3 = vpop.f32.mrf.mxu2  ;;  %v3891_v8 = vpop.f32.mrf.mxu3  ;;  %v7043_v20 = vor.u32 %v7717_v43, %v7042_v25  ;;  %v3864_v47 = vadd.f32 %v3863_v35, %v3850_v9 }
 0x241   :  { %v3878_v2 = vadd.f32 %v3877_v3, %v3864_v47 }
 0x242   :  { %4524 = vmatpush.bf16.msrb.mxu0 %v6863_v5  ;;  %4538 = vmatpush.bf16.msrb.mxu1 %v6927_v31 }
 0x243   :  { %4552 = vmatpush.bf16.msrb.mxu2 %v6991_v22  ;;  %v3876_v22 = vadd.f32 %v3875_v50, %v3862_v14 }
 0x245   :  { %v3890_v63 = vadd.f32 %v3889_v58, %v3876_v22 }
 0x246   :  { %4525 = vmatpush.bf16.msrb.mxu0 %v6855_v45  ;;  %4539 = vmatpush.bf16.msrb.mxu1 %v6919_v4  ;;  %v7726_v45 = vld [vmem:[%s11734_s3 + $0x1f4] sm:$0xf]  ;;  %v7084_v4 = vld [vmem:[%s11734_s3 + $0x1f8] sm:$0xf0] }
 0x247   :  { %4553 = vmatpush.bf16.msrb.mxu2 %v6983_v26  ;;  %v7087_v26 = vor.u32 %v7726_v45, %v7084_v4 }
 0x24a   :  { %4526 = vmatpush.bf16.msrb.mxu0 %v6847_v13  ;;  %4540 = vmatpush.bf16.msrb.mxu1 %v6911_v16  ;;  %v7079_v13 = vor.u32 %v7724_v36, %v7076_v55 }
 0x24b   :  { %4554 = vmatpush.bf16.msrb.mxu2 %v6975_v41  ;;  %v3892_v41 = vadd.f32 %v3891_v8, %v3878_v2  ;;  %v7714_v8 = vld [vmem:[%s11734_s3 + $0x194] sm:$0xf] }
 0x24e   :  { %4527 = vmatpush.bf16.msrb.mxu0 %v6839_v53  ;;  %4541 = vmatpush.bf16.msrb.mxu1 %v6903_v23  ;;  %v3903_v12 = vpop.f32.mrf.mxu0  ;;  %v3917_v33 = vpop.f32.mrf.mxu1 }
 0x24f   :  { %4555 = vmatpush.bf16.msrb.mxu2 %v6967_v27  ;;  %v3904_v37 = vadd.f32 %v3903_v12, %v3890_v63  ;;  %v7720_v27 = vld [vmem:[%s11734_s3 + $0x1c4] sm:$0xf] }
 0x250   :  { %v7063_v29 = vor.u32 %v7720_v27, %v7060_v62  ;;  %v7712_v12 = vld [vmem:[%s11734_s3 + $0x184] sm:$0xf]  ;;  %v7739_v62 = vld [vmem:[%s11736_s5 + $0x58] sm:$0xff] }
 0x251   :  { %4528 = vmatmul.bf16.vlgmr.msrb.gmra.mxu0 %v11456_v7  ;;  %4542 = vmatmul.bf16.vlgmr.msrb.gmra.mxu1 %v10642_v34  ;;  %v7074_v7 = vld [vmem:[%s11734_s3 + $0x1e0] sm:$0xf]  ;;  %v7725_v34 = vld [vmem:[%s11734_s3 + $0x1e4] sm:$0xf0]  ;;  %v3918_v18 = vadd.f32 %v3917_v33, %v3904_v37 }
 0x252   :  { %4556 = vmatmul.bf16.vlgmr.msrb.gmra.mxu2 %v11458_v0  ;;  %v7075_v0 = vor.u32 %v7725_v34, %v7074_v7  ;;  %v7718_v34 = vld [vmem:[%s11734_s3 + $0x1b4] sm:$0xf]  ;;  %4728 = vmatpush.bf16.msra.mxu1 %v7743_v51  ;;  %v7740_v27 = vld [vmem:[%s11736_s5 + $0x60] sm:$0xff] }
 0x254   :  { %4507 = vmatpush.bf16.msra.mxu3 %v7075_v0  ;;  %v7052_v0 = vld [vmem:[%s11734_s3 + $0x1b8] sm:$0xf0] }
 0x255   :  { %v7055_v19 = vor.u32 %v7718_v34, %v7052_v0 }
 0x256   :  { %v3905_v54 = vpop.f32.mrf.mxu0  ;;  %v3919_v59 = vpop.f32.mrf.mxu1 }
 0x257   :  { %v3931_v5 = vpop.f32.mrf.mxu2  ;;  %v3945_v31 = vpop.f32.mrf.mxu3  ;;  %v3906_v23 = vadd.f32 %v3905_v54, %v3892_v41  ;;  %v7732_v41 = vld [vmem:[%s11736_s5 + $0x20] sm:$0xff] }
 0x258   :  { %4508 = vmatpush.bf16.msra.mxu3 %v7067_v15  ;;  %v3932_v10 = vadd.f32 %v3931_v5, %v3918_v18  ;;  %v7044_v15 = vld [vmem:[%s11734_s3 + $0x1a8] sm:$0xf0]  ;;  %v7742_v18 = vld [vmem:[%s11736_s5 + $0x70] sm:$0xff] }
 0x259   :  { %v3920_v7 = vadd.f32 %v3919_v59, %v3906_v23  ;;  %v7047_v60 = vor.u32 %v7716_v49, %v7044_v15  ;;  %4729 = vmatpush.bf16.msra.mxu1 %v7742_v18  ;;  %v7728_v23 = vld [vmem:[%s11736_s5] sm:$0xff] }
 0x25a   :  { %v3946_v50 = vadd.f32 %v3945_v31, %v3932_v10  ;;  %v4744_v18 = vld [vmem:[%s11738_s7] sm:$0x1] }
 0x25c   :  { %4509 = vmatpush.bf16.msra.mxu3 %v7059_v46 }
 0x25f   :  { %v3933_v16 = vpop.f32.mrf.mxu2  ;;  %v3947_v61 = vpop.f32.mrf.mxu3 }
 0x260   :  { %4510 = vmatpush.bf16.msra.mxu3 %v7051_v52  ;;  %v3934_v58 = vadd.f32 %v3933_v16, %v3920_v7  ;;  %v7036_v52 = vld [vmem:[%s11734_s3 + $0x198] sm:$0xf0]  ;;  %v7734_v16 = vld [vmem:[%s11736_s5 + $0x30] sm:$0xff] }
 0x261   :  { %v7039_v30 = vor.u32 %v7714_v8, %v7036_v52 }
 0x262   :  { %v3948_v46 = vadd.f32 %v3947_v61, %v3934_v58  ;;  %v7733_v61 = vld [vmem:[%s11736_s5 + $0x28] sm:$0xff] }
 0x264   :  { %4511 = vmatpush.bf16.msra.mxu3 %v7043_v20  ;;  %v7028_v20 = vld [vmem:[%s11734_s3 + $0x188] sm:$0xf0] }
 0x265   :  { %v7031_v14 = vor.u32 %v7712_v12, %v7028_v20 }
 0x268   :  { %4512 = vmatpush.bf16.msra.mxu3 %v7035_v39 }
 0x26c   :  { %4513 = vmatpush.bf16.msra.mxu3 %v7027_v44 }
 0x26e   :  { %v3959_v1 = vpop.f32.mrf.mxu0  ;;  %v3973_v53 = vpop.f32.mrf.mxu1 }
 0x26f   :  { %v3960_v56 = vadd.f32 %v3959_v1, %v3946_v50  ;;  %v7731_v1 = vld [vmem:[%s11736_s5 + $0x18] sm:$0xff]  ;;  %v7736_v50 = vld [vmem:[%s11736_s5 + $0x40] sm:$0xff] }
 0x270   :  { %4562 = vmatpush.bf16.msrb.mxu3 %v7087_v26 }
 0x271   :  { %v3974_v28 = vadd.f32 %v3973_v53, %v3960_v56  ;;  %v7741_v53 = vld [vmem:[%s11736_s5 + $0x68] sm:$0xff] }
 0x272   :  { %4730 = vmatpush.bf16.msra.mxu1 %v7741_v53 }
 0x274   :  { %4563 = vmatpush.bf16.msrb.mxu3 %v7079_v13  ;;  %v7735_v13 = vld [vmem:[%s11736_s5 + $0x38] sm:$0xff] }
 0x275   :  { %4714 = vmatpush.bf16.msra.mxu0 %v7735_v13 }
 0x276   :  { %v3961_v57 = vpop.f32.mrf.mxu0  ;;  %v3975_v35 = vpop.f32.mrf.mxu1  ;;  %4731 = vmatpush.bf16.msra.mxu1 %v7740_v27 }
 0x277   :  { %v3987_v24 = vpop.f32.mrf.mxu2  ;;  %v4001_v6 = vpop.f32.mrf.mxu3  ;;  %v3962_v40 = vadd.f32 %v3961_v57, %v3948_v46 }
 0x278   :  { %4564 = vmatpush.bf16.msrb.mxu3 %v7071_v17  ;;  %v3988_v25 = vadd.f32 %v3987_v24, %v3974_v28  ;;  %v7729_v17 = vld [vmem:[%s11736_s5 + $0x8] sm:$0xff] }
 0x279   :  { %v3976_v33 = vadd.f32 %v3975_v35, %v3962_v40  ;;  %4715 = vmatpush.bf16.msra.mxu0 %v7734_v16  ;;  %v7737_v24 = vld [vmem:[%s11736_s5 + $0x48] sm:$0xff] }
 0x27a   :  { %v4002_v42 = vadd.f32 %v4001_v6, %v3988_v25  ;;  %4732 = vmatpush.bf16.msra.mxu1 %v7739_v62  ;;  %v4138_v6 = vld [vmem:[%s11735_s4] sm:$0x3] }
 0x27b   :  { %v4140_v0 = vperm.slane %v4138_v6, 0 }
 0x27c   :  { %4565 = vmatpush.bf16.msrb.mxu3 %v7063_v29  ;;  %v7738_v29 = vld [vmem:[%s11736_s5 + $0x50] sm:$0xff] }
 0x27d   :  { %4716 = vmatpush.bf16.msra.mxu0 %v7733_v61 }
 0x27e   :  { %4733 = vmatpush.bf16.msra.mxu1 %v7738_v29 }
 0x27f   :  { %v3989_v38 = vpop.f32.mrf.mxu2  ;;  %v4003_v3 = vpop.f32.mrf.mxu3 }
 0x280   :  { %4566 = vmatpush.bf16.msrb.mxu3 %v7055_v19  ;;  %v3990_v32 = vadd.f32 %v3989_v38, %v3976_v33 }
 0x281   :  { %4717 = vmatpush.bf16.msra.mxu0 %v7732_v41 }
 0x282   :  { %v4004_v22 = vadd.f32 %v4003_v3, %v3990_v32  ;;  %4734 = vmatpush.bf16.msra.mxu1 %v7737_v24 }
 0x284   :  { %4567 = vmatpush.bf16.msrb.mxu3 %v7047_v60 }
 0x285   :  { %4718 = vmatpush.bf16.msra.mxu0 %v7731_v1 }
 0x286   :  { %4735 = vmatpush.bf16.msra.mxu1 %v7736_v50 }
 0x288   :  { %4568 = vmatpush.bf16.msrb.mxu3 %v7039_v30 }
 0x289   :  { %4719 = vmatpush.bf16.msra.mxu0 %v7730_v11 }
 0x28c   :  { %4569 = vmatpush.bf16.msrb.mxu3 %v7031_v14 }
 0x28d   :  { %4720 = vmatpush.bf16.msra.mxu0 %v7729_v17 }
 0x28e   :  { %v4015_v43 = vpop.f32.mrf.mxu0  ;;  %v4029_v9 = vpop.f32.mrf.mxu1 }
 0x28f   :  { %v4016_v5 = vadd.f32 %v4015_v43, %v4002_v42  ;;  %v4141_v43 = vperm.slane %v4138_v6, 1 }
 0x291   :  { %v4030_v54 = vadd.f32 %v4029_v9, %v4016_v5  ;;  %4721 = vmatpush.bf16.msra.mxu0 %v7728_v23 }
 0x296   :  { %v4057_v39 = vpop.f32.mrf.mxu3  ;;  %v4017_v47 = vpop.f32.mrf.mxu0 }
 0x297   :  { %v4043_v31 = vpop.f32.mrf.mxu2  ;;  %v4018_v48 = vadd.f32 %v4017_v47, %v4004_v22  ;;  %v4031_v44 = vpop.f32.mrf.mxu1 }
 0x298   :  { %v4044_v21 = vadd.f32 %v4043_v31, %v4030_v54 }
 0x299   :  { %v4032_v45 = vadd.f32 %v4031_v44, %v4018_v48 }
 0x29a   :  { %v4058_v63 = vadd.f32 %v4057_v39, %v4044_v21 }
 0x29c   :  { %v4065_v36 = vmax.f32 %v4058_v63, 0.0  ;;  %v4746_v63 = vld [vmem:[#allocation2] sm:$0x1] }
 0x29e   :  { %v4059_v59 = vpop.f32.mrf.mxu3 }
 0x29f   :  { %v4045_v4 = vpop.f32.mrf.mxu2 }
 0x2a0   :  { %v4046_v26 = vadd.f32 %v4045_v4, %v4032_v45 }
 0x2a2   :  { %v4060_v2 = vadd.f32 %v4059_v59, %v4046_v26  ;;  %v7776_v26 = vmov 0  }
 0x2a3   :  { %7746 = vset.pattern.permute.xlu0 %v7776_v26 }
 0x2a4   :  { %v4069_v55 = vmax.f32 %v4060_v2, 0.0  ;;  %4749 = vperm.xlu0 %7746, %v4746_v63  }
 0x2a6   :  { %v4073_v37 = vpack.c.bf16 %v4069_v55, %v4065_v36  ;;  %v7747_v36 = vld [vmem:[%s11737_s6] ss:$0 sm:$0xff] }
 0x2a8   :  { %4514 = vmatmul.bf16.vlgmr.msra.gmra.mxu3 %v4073_v37 }
 0x2ae   :  { %v4473_v10 = vpop.f32.mrf.mxu0  ;;  %v4487_v7 = vpop.f32.mrf.mxu1 }
 0x2af   :  { %v4474_v57 = vadd.f32 %v4473_v10, %v4140_v0 }
 0x2b1   :  { %v4488_v60 = vadd.f32 %v4487_v7, %v4474_v57 }
 0x2b6   :  { %v4475_v58 = vpop.f32.mrf.mxu0  ;;  %v4489_v15 = vpop.f32.mrf.mxu1 }
 0x2b7   :  { %v4501_v34 = vpop.f32.mrf.mxu2  ;;  %v4476_v49 = vadd.f32 %v4475_v58, %v4140_v0 }
 0x2b8   :  { %4570 = vmatmul.bf16.vlgmr.msrb.gmra.mxu3 %v4073_v37  ;;  %v4502_v28 = vadd.f32 %v4501_v34, %v4488_v60 }
 0x2b9   :  { %v4490_v46 = vadd.f32 %v4489_v15, %v4476_v49 }
 0x2bf   :  { %v4503_v56 = vpop.f32.mrf.mxu2 }
 0x2c0   :  { %v4504_v40 = vadd.f32 %v4503_v56, %v4490_v46 }
 0x2ce   :  { %v4529_v35 = vpop.f32.mrf.mxu0  ;;  %v4543_v52 = vpop.f32.mrf.mxu1 }
 0x2cf   :  { %v4530_v14 = vadd.f32 %v4529_v35, %v4141_v43 }
 0x2d1   :  { %v4544_v32 = vadd.f32 %v4543_v52, %v4530_v14 }
 0x2d5   :  { %v4557_v25 = vpop.f32.mrf.mxu2 }
 0x2d6   :  { %v4531_v33 = vpop.f32.mrf.mxu0  ;;  %v4545_v5 = vpop.f32.mrf.mxu1  ;;  %v4558_v39 = vadd.f32 %v4557_v25, %v4544_v32 }
 0x2d7   :  { %v4532_v42 = vadd.f32 %v4531_v33, %v4141_v43 }
 0x2d9   :  { %v4546_v22 = vadd.f32 %v4545_v5, %v4532_v42 }
 0x2dd   :  { %v4559_v31 = vpop.f32.mrf.mxu2 }
 0x2de   :  { %v4560_v47 = vadd.f32 %v4559_v31, %v4546_v22 }
 0x316   :  { %v4750_v17 = vpop.permute.xlu0 %4749 }
 0x317   :  { %v4752_v53 = vperm.slane %v4750_v17, 0 }
 0x32b   :  { %v4515_v19 = vpop.f32.mrf.mxu3 }
 0x32c   :  { %v4516_v38 = vadd.f32 %v4515_v19, %v4502_v28 }
 0x32e   :  { %v4576_v30 = vmax.f32 %v4516_v38, 0.0 }
 0x333   :  { %v4517_v3 = vpop.f32.mrf.mxu3 }
 0x334   :  { %v4518_v8 = vadd.f32 %v4517_v3, %v4504_v40 }
 0x336   :  { %v4578_v12 = vmax.f32 %v4518_v8, 0.0 }
 0x338   :  { %v4580_v20 = vpack.c.bf16 %v4578_v12, %v4576_v30 }
 0x33a   :  { %4722 = vmatmul.bf16.vlgmr.msra.gmra.mxu0 %v4580_v20 }
 0x33b   :  { %v4571_v9 = vpop.f32.mrf.mxu3 }
 0x33c   :  { %v4572_v54 = vadd.f32 %v4571_v9, %v4558_v39 }
 0x33e   :  { %v4577_v44 = vmax.f32 %v4572_v54, 0.0 }
 0x343   :  { %v4573_v48 = vpop.f32.mrf.mxu3 }
 0x344   :  { %v4574_v21 = vadd.f32 %v4573_v48, %v4560_v47 }
 0x346   :  { %v4579_v45 = vmax.f32 %v4574_v21, 0.0 }
 0x348   :  { %v4581_v4 = vpack.c.bf16 %v4579_v45, %v4577_v44 }
 0x34a   :  { %4736 = vmatmul.bf16.vlgmr.msra.gmra.mxu1 %v4581_v4 }
 0x3b7   :  { %v4723_v59 = vpop.f32.mrf.mxu0 }
 0x3b8   :  { %v4724_v37 = vadd.f32 %v7747_v36, %v4723_v59 }
 0x3bf   :  { %v4725_v55 = vpop.f32.mrf.mxu0 }
 0x3c0   :  { %v4726_v13 = vadd.f32 %v7747_v36, %v4725_v55 }
 0x3c7   :  { %v4737_v2 = vpop.f32.mrf.mxu1 }
 0x3c8   :  { %v4738_v16 = vadd.f32 %v4737_v2, %v4724_v37 }
 0x3ca   :  { %v4742_v1 = vmax.f32 %v4738_v16, 0.0 }
 0x3cf   :  { %v4739_v61 = vpop.f32.mrf.mxu1 }
 0x3d0   :  { %v4740_v41 = vadd.f32 %v4739_v61, %v4726_v13 }
 0x3d2   :  { %v4743_v51 = vmax.f32 %v4740_v41, 0.0 }
 0x3d4   :  { %v4745_v11 = vpack.c.bf16 %v4743_v51, %v4742_v1 }
 0x3d6   :  { %4760 = vmatpush.bf16.xpose.msra.mxu2 %v4745_v11 }
 0x3dd   :  { %4761 = vmatmul.bf16.vlgmr.msra.gmra.mxu2 %v4744_v18 }
 0x460   :  { %v4762_v23 = vpop.f32.mrf.mxu2 }
 0x461   :  { %v4763_v27 = vadd.f32 %v4762_v23, %v4752_v53 }
 0x463   :  { %4767 = vst.msk [vmem:[#allocation3] sm:$0x1] %vm4766_vm0, %v4763_v27 }
 0x464   :  { %4778 = dma.vmem_to_hbm [thread:$0]  %s4774_s24, 16, %s4776_s26, [#allocation4]  }
 0x468   :  { %v4764_v62 = vpop.f32.mrf.mxu2 }
 0x469   :  { %7774 = dma.done.wait [#allocation4], 16  }
 0x46a   :  { %7775 = vsyncadd [#allocation4], 4294967280 }
 0x46b   :  { %4783 = vsyncpa [#allocation4], 1 }

// kernel: _mlp_lipo_forward.1
= control target key start
LH: loop header
LB: loop body
LE: loop exit
PB: predicated region body
PF: predicated region fallthrough
CT: control target
= control target key end

     0   :  { %s11731_s0 = inlined_call_operand.vmem [shape: f32[16,2048], index: 0, kind: input, shape index: {}]   ;;  %s11732_s1 = inlined_call_operand.vmem [shape: bf16[2048,512], index: 1, kind: input, shape index: {}]   ;;  %s11733_s2 = inlined_call_operand.vmem [shape: f32[1,512], index: 2, kind: input, shape index: {}]   ;;  %s11734_s3 = inlined_call_operand.vmem [shape: bf16[512,256], index: 3, kind: input, shape index: {}]   ;;  %s11735_s4 = inlined_call_operand.vmem [shape: f32[1,256], index: 4, kind: input, shape index: {}]   ;;  %s11736_s5 = inlined_call_operand.vmem [shape: bf16[256,128], index: 5, kind: input, shape index: {}]   ;;  %s11737_s6 = inlined_call_operand.vmem [shape: f32[1,128], index: 6, kind: input, shape index: {}]   ;;  %s11738_s7 = inlined_call_operand.vmem [shape: bf16[1,128], index: 7, kind: input, shape index: {}]   ;;  %s11739_s8 = inlined_call_operand.<no memory space> [shape: f32[1,1], index: 8, kind: input, shape index: {}]   ;;  %s11740_s9 = inlined_call_operand.hbm [shape: f32[1,1,16], index: 9, kind: output, shape index: {}]  }
   0x1   :  { %v14_v0 = vstv %s11739_s8 }
   0x2   :  { %15 = vst [vmem:[#allocation2] sm:$0x1] %v14_v0 }
   0x3   :  { %v4898_v1 = vld [vmem:[%s11732_s1 + $0xe0] sm:$0xf]  ;;  %v7182_v2 = vld [vmem:[%s11732_s1 + $0xec] sm:$0xf0] }
   0x4   :  { %v5026_v3 = vld [vmem:[%s11732_s1 + $0x1e0] sm:$0xf]  ;;  %v4899_v4 = vor.u32 %v7182_v2, %v4898_v1  ;;  %v7214_v5 = vld [vmem:[%s11732_s1 + $0x1ec] sm:$0xf0] }
   0x5   :  { %v5154_v6 = vld [vmem:[%s11732_s1 + $0x2e0] sm:$0xf]  ;;  %v7246_v7 = vld [vmem:[%s11732_s1 + $0x2ec] sm:$0xf0]  ;;  %v5027_v8 = vor.u32 %v7214_v5, %v5026_v3 }
   0x6   :  { %v5155_v9 = vor.u32 %v7246_v7, %v5154_v6  ;;  %v5282_v10 = vld [vmem:[%s11732_s1 + $0x3e0] sm:$0xf]  ;;  %v7278_v11 = vld [vmem:[%s11732_s1 + $0x3ec] sm:$0xf0]  ;;  %3166 = vmatpush.bf16.msra.mxu0 %v4899_v4 }
   0x7   :  { %v4882_v12 = vld [vmem:[%s11732_s1 + $0xc0] sm:$0xf]  ;;  %v5283_v13 = vor.u32 %v7278_v11, %v5282_v10  ;;  %v7178_v14 = vld [vmem:[%s11732_s1 + $0xcc] sm:$0xf0]  ;;  %3180 = vmatpush.bf16.msra.mxu1 %v5027_v8 }
   0x8   :  { %v5010_v15 = vld [vmem:[%s11732_s1 + $0x1c0] sm:$0xf]  ;;  %v7210_v16 = vld [vmem:[%s11732_s1 + $0x1cc] sm:$0xf0]  ;;  %3194 = vmatpush.bf16.msra.mxu2 %v5155_v9  ;;  %v4883_v17 = vor.u32 %v7178_v14, %v4882_v12 }
   0x9   :  { %v5011_v18 = vor.u32 %v7210_v16, %v5010_v15  ;;  %v5138_v19 = vld [vmem:[%s11732_s1 + $0x2c0] sm:$0xf]  ;;  %v7242_v20 = vld [vmem:[%s11732_s1 + $0x2cc] sm:$0xf0]  ;;  %3208 = vmatpush.bf16.msra.mxu3 %v5283_v13 }
   0xa   :  { %v5266_v21 = vld [vmem:[%s11732_s1 + $0x3c0] sm:$0xf]  ;;  %v5139_v22 = vor.u32 %v7242_v20, %v5138_v19  ;;  %v7274_v23 = vld [vmem:[%s11732_s1 + $0x3cc] sm:$0xf0]  ;;  %3167 = vmatpush.bf16.msra.mxu0 %v4883_v17 }
   0xb   :  { %v4866_v24 = vld [vmem:[%s11732_s1 + $0xa0] sm:$0xf]  ;;  %v7174_v25 = vld [vmem:[%s11732_s1 + $0xac] sm:$0xf0]  ;;  %v5267_v26 = vor.u32 %v7274_v23, %v5266_v21  ;;  %3181 = vmatpush.bf16.msra.mxu1 %v5011_v18 }
   0xc   :  { %v4994_v27 = vld [vmem:[%s11732_s1 + $0x1a0] sm:$0xf]  ;;  %v7206_v28 = vld [vmem:[%s11732_s1 + $0x1ac] sm:$0xf0]  ;;  %v4867_v30 = vor.u32 %v7174_v25, %v4866_v24  ;;  %3195 = vmatpush.bf16.msra.mxu2 %v5139_v22 }
   0xd   :  { %v5122_v29 = vld [vmem:[%s11732_s1 + $0x2a0] sm:$0xf]  ;;  %v7238_v31 = vld [vmem:[%s11732_s1 + $0x2ac] sm:$0xf0]  ;;  %v4995_v34 = vor.u32 %v7206_v28, %v4994_v27  ;;  %3209 = vmatpush.bf16.msra.mxu3 %v5267_v26 }
   0xe   :  { %v5250_v32 = vld [vmem:[%s11732_s1 + $0x3a0] sm:$0xf]  ;;  %v7270_v33 = vld [vmem:[%s11732_s1 + $0x3ac] sm:$0xf0]  ;;  %v5123_v35 = vor.u32 %v7238_v31, %v5122_v29  ;;  %3168 = vmatpush.bf16.msra.mxu0 %v4867_v30 }
   0xf   :  { %v4850_v36 = vld [vmem:[%s11732_s1 + $0x80] sm:$0xf]  ;;  %v7170_v37 = vld [vmem:[%s11732_s1 + $0x8c] sm:$0xf0]  ;;  %v5251_v39 = vor.u32 %v7270_v33, %v5250_v32  ;;  %3182 = vmatpush.bf16.msra.mxu1 %v4995_v34 }
  0x10   :  { %v4978_v38 = vld [vmem:[%s11732_s1 + $0x180] sm:$0xf]  ;;  %v7202_v40 = vld [vmem:[%s11732_s1 + $0x18c] sm:$0xf0]  ;;  %v4851_v45 = vor.u32 %v7170_v37, %v4850_v36  ;;  %3196 = vmatpush.bf16.msra.mxu2 %v5123_v35 }
  0x11   :  { %v5106_v41 = vld [vmem:[%s11732_s1 + $0x280] sm:$0xf]  ;;  %v7234_v42 = vld [vmem:[%s11732_s1 + $0x28c] sm:$0xf0]  ;;  %v4979_v46 = vor.u32 %v7202_v40, %v4978_v38  ;;  %3210 = vmatpush.bf16.msra.mxu3 %v5251_v39 }
  0x12   :  { %v5234_v43 = vld [vmem:[%s11732_s1 + $0x380] sm:$0xf]  ;;  %v7266_v44 = vld [vmem:[%s11732_s1 + $0x38c] sm:$0xf0]  ;;  %v5107_v47 = vor.u32 %v7234_v42, %v5106_v41  ;;  %3169 = vmatpush.bf16.msra.mxu0 %v4851_v45 }
  0x13   :  { %v4834_v48 = vld [vmem:[%s11732_s1 + $0x60] sm:$0xf]  ;;  %v7166_v49 = vld [vmem:[%s11732_s1 + $0x6c] sm:$0xf0]  ;;  %v5235_v51 = vor.u32 %v7266_v44, %v5234_v43  ;;  %3183 = vmatpush.bf16.msra.mxu1 %v4979_v46 }
  0x14   :  { %v4962_v50 = vld [vmem:[%s11732_s1 + $0x160] sm:$0xf]  ;;  %v7198_v52 = vld [vmem:[%s11732_s1 + $0x16c] sm:$0xf0]  ;;  %v4835_v57 = vor.u32 %v7166_v49, %v4834_v48  ;;  %3197 = vmatpush.bf16.msra.mxu2 %v5107_v47 }
  0x15   :  { %v5090_v53 = vld [vmem:[%s11732_s1 + $0x260] sm:$0xf]  ;;  %v7230_v54 = vld [vmem:[%s11732_s1 + $0x26c] sm:$0xf0]  ;;  %v4963_v58 = vor.u32 %v7198_v52, %v4962_v50  ;;  %3211 = vmatpush.bf16.msra.mxu3 %v5235_v51 }
  0x16   :  { %v5218_v55 = vld [vmem:[%s11732_s1 + $0x360] sm:$0xf]  ;;  %v7262_v56 = vld [vmem:[%s11732_s1 + $0x36c] sm:$0xf0]  ;;  %v5091_v59 = vor.u32 %v7230_v54, %v5090_v53  ;;  %3170 = vmatpush.bf16.msra.mxu0 %v4835_v57 }
  0x17   :  { %v4818_v60 = vld [vmem:[%s11732_s1 + $0x40] sm:$0xf]  ;;  %v7162_v61 = vld [vmem:[%s11732_s1 + $0x4c] sm:$0xf0]  ;;  %v5219_v63 = vor.u32 %v7262_v56, %v5218_v55  ;;  %3184 = vmatpush.bf16.msra.mxu1 %v4963_v58 }
  0x18   :  { %v4946_v62 = vld [vmem:[%s11732_s1 + $0x140] sm:$0xf]  ;;  %v7194_v0 = vld [vmem:[%s11732_s1 + $0x14c] sm:$0xf0]  ;;  %v4819_v5 = vor.u32 %v7162_v61, %v4818_v60  ;;  %3198 = vmatpush.bf16.msra.mxu2 %v5091_v59 }
  0x19   :  { %v5074_v1 = vld [vmem:[%s11732_s1 + $0x240] sm:$0xf]  ;;  %v7226_v2 = vld [vmem:[%s11732_s1 + $0x24c] sm:$0xf0]  ;;  %v4947_v6 = vor.u32 %v7194_v0, %v4946_v62  ;;  %3212 = vmatpush.bf16.msra.mxu3 %v5219_v63 }
  0x1a   :  { %v5202_v3 = vld [vmem:[%s11732_s1 + $0x340] sm:$0xf]  ;;  %v7258_v4 = vld [vmem:[%s11732_s1 + $0x34c] sm:$0xf0]  ;;  %v5075_v7 = vor.u32 %v7226_v2, %v5074_v1  ;;  %3171 = vmatpush.bf16.msra.mxu0 %v4819_v5 }
  0x1b   :  { %v4802_v8 = vld [vmem:[%s11732_s1 + $0x20] sm:$0xf]  ;;  %v7158_v9 = vld [vmem:[%s11732_s1 + $0x2c] sm:$0xf0]  ;;  %v5203_v11 = vor.u32 %v7258_v4, %v5202_v3  ;;  %3185 = vmatpush.bf16.msra.mxu1 %v4947_v6 }
  0x1c   :  { %v4930_v10 = vld [vmem:[%s11732_s1 + $0x120] sm:$0xf]  ;;  %v7190_v12 = vld [vmem:[%s11732_s1 + $0x12c] sm:$0xf0]  ;;  %v4803_v17 = vor.u32 %v7158_v9, %v4802_v8  ;;  %3199 = vmatpush.bf16.msra.mxu2 %v5075_v7  ;;  %v37_v7 = vld [vmem:[%s11731_s0 + $0x8] sm:$0xff] }
  0x1d   :  { %v5058_v13 = vld [vmem:[%s11732_s1 + $0x220] sm:$0xf]  ;;  %v7222_v14 = vld [vmem:[%s11732_s1 + $0x22c] sm:$0xf0]  ;;  %v4931_v20 = vor.u32 %v7190_v12, %v4930_v10  ;;  %3213 = vmatpush.bf16.msra.mxu3 %v5203_v11  ;;  %v53_v8 = vld [vmem:[%s11731_s0 + $0x88] sm:$0xff] }
  0x1e   :  { %v5186_v15 = vld [vmem:[%s11732_s1 + $0x320] sm:$0xf]  ;;  %v7254_v16 = vld [vmem:[%s11732_s1 + $0x32c] sm:$0xf0]  ;;  %v5059_v21 = vor.u32 %v7222_v14, %v5058_v13  ;;  %3172 = vmatpush.bf16.msra.mxu0 %v4803_v17  ;;  %v39_v9 = vld [vmem:[%s11731_s0 + $0x18] sm:$0xff]  ;;  %v8122_v11 = vpack.c.bf16 %v53_v8, %v37_v7 }
  0x1f   :  { %v4786_v18 = vld [vmem:[%s11732_s1] sm:$0xf]  ;;  %v7154_v19 = vld [vmem:[%s11732_s1 + $0xc] sm:$0xf0]  ;;  %v5187_v25 = vor.u32 %v7254_v16, %v5186_v15  ;;  %3186 = vmatpush.bf16.msra.mxu1 %v4931_v20  ;;  %v55_v12 = vld [vmem:[%s11731_s0 + $0x98] sm:$0xff] }
  0x20   :  { %v4914_v22 = vld [vmem:[%s11732_s1 + $0x100] sm:$0xf]  ;;  %v7186_v23 = vld [vmem:[%s11732_s1 + $0x10c] sm:$0xf0]  ;;  %v4787_v32 = vor.u32 %v7154_v19, %v4786_v18  ;;  %3200 = vmatpush.bf16.msra.mxu2 %v5059_v21  ;;  %v8136_v18 = vpack.c.bf16 %v55_v12, %v39_v9 }
  0x21   :  { %v5042_v24 = vld [vmem:[%s11732_s1 + $0x200] sm:$0xf]  ;;  %v7218_v26 = vld [vmem:[%s11732_s1 + $0x20c] sm:$0xf0]  ;;  %v4915_v36 = vor.u32 %v7186_v23, %v4914_v22  ;;  %3214 = vmatpush.bf16.msra.mxu3 %v5187_v25 }
  0x22   :  { %v5170_v27 = vld [vmem:[%s11732_s1 + $0x300] sm:$0xf]  ;;  %v7250_v28 = vld [vmem:[%s11732_s1 + $0x30c] sm:$0xf0]  ;;  %v5043_v37 = vor.u32 %v7218_v26, %v5042_v24  ;;  %3173 = vmatpush.bf16.msra.mxu0 %v4787_v32 }
  0x23   :  { %v5410_v29 = vld [vmem:[%s11732_s1 + $0x4e0] sm:$0xf]  ;;  %v7310_v30 = vld [vmem:[%s11732_s1 + $0x4ec] sm:$0xf0]  ;;  %v5171_v40 = vor.u32 %v7250_v28, %v5170_v27  ;;  %3187 = vmatpush.bf16.msra.mxu1 %v4915_v36 }
  0x24   :  { %v5538_v31 = vld [vmem:[%s11732_s1 + $0x5e0] sm:$0xf]  ;;  %v7342_v33 = vld [vmem:[%s11732_s1 + $0x5ec] sm:$0xf0]  ;;  %v5411_v41 = vor.u32 %v7310_v30, %v5410_v29  ;;  %3201 = vmatpush.bf16.msra.mxu2 %v5043_v37 }
  0x25   :  { %v5666_v34 = vld [vmem:[%s11732_s1 + $0x6e0] sm:$0xf]  ;;  %v7374_v35 = vld [vmem:[%s11732_s1 + $0x6ec] sm:$0xf0]  ;;  %v5539_v44 = vor.u32 %v7342_v33, %v5538_v31  ;;  %3215 = vmatpush.bf16.msra.mxu3 %v5171_v40 }
  0x26   :  { %v5794_v38 = vld [vmem:[%s11732_s1 + $0x7e0] sm:$0xf]  ;;  %v7406_v39 = vld [vmem:[%s11732_s1 + $0x7ec] sm:$0xf0]  ;;  %v5667_v45 = vor.u32 %v7374_v35, %v5666_v34  ;;  %3222 = vmatpush.bf16.msrb.mxu0 %v5411_v41  ;;  %3188 = vmatmul.bf16.vlgmr.msra.gmra.mxu1 %v8122_v11 }
  0x27   :  { %v5394_v42 = vld [vmem:[%s11732_s1 + $0x4c0] sm:$0xf]  ;;  %v7306_v43 = vld [vmem:[%s11732_s1 + $0x4cc] sm:$0xf0]  ;;  %v5795_v49 = vor.u32 %v7406_v39, %v5794_v38  ;;  %3236 = vmatpush.bf16.msrb.mxu1 %v5539_v44 }
  0x28   :  { %v5522_v46 = vld [vmem:[%s11732_s1 + $0x5c0] sm:$0xf]  ;;  %v7338_v47 = vld [vmem:[%s11732_s1 + $0x5cc] sm:$0xf0]  ;;  %v5395_v56 = vor.u32 %v7306_v43, %v5394_v42  ;;  %3250 = vmatpush.bf16.msrb.mxu2 %v5667_v45  ;;  %3216 = vmatmul.bf16.vlgmr.msra.gmra.mxu3 %v8136_v18 }
  0x29   :  { %v5650_v48 = vld [vmem:[%s11732_s1 + $0x6c0] sm:$0xf]  ;;  %v7370_v50 = vld [vmem:[%s11732_s1 + $0x6cc] sm:$0xf0]  ;;  %v5523_v61 = vor.u32 %v7338_v47, %v5522_v46  ;;  %3264 = vmatpush.bf16.msrb.mxu3 %v5795_v49 }
  0x2a   :  { %v5778_v51 = vld [vmem:[%s11732_s1 + $0x7c0] sm:$0xf]  ;;  %v7402_v52 = vld [vmem:[%s11732_s1 + $0x7cc] sm:$0xf0]  ;;  %v5651_v62 = vor.u32 %v7370_v50, %v5650_v48  ;;  %3223 = vmatpush.bf16.msrb.mxu0 %v5395_v56 }
  0x2b   :  { %v36_v53 = vld [vmem:[%s11731_s0] sm:$0xff]  ;;  %v38_v55 = vld [vmem:[%s11731_s0 + $0x10] sm:$0xff]  ;;  %v5779_v3 = vor.u32 %v7402_v52, %v5778_v51  ;;  %3237 = vmatpush.bf16.msrb.mxu1 %v5523_v61 }
  0x2c   :  { %v52_v54 = vld [vmem:[%s11731_s0 + $0x80] sm:$0xff]  ;;  %v7302_v58 = vld [vmem:[%s11732_s1 + $0x4ac] sm:$0xf0]  ;;  %3251 = vmatpush.bf16.msrb.mxu2 %v5651_v62 }
  0x2d   :  { %v5378_v57 = vld [vmem:[%s11732_s1 + $0x4a0] sm:$0xf]  ;;  %v8086_v59 = vpack.c.bf16 %v52_v54, %v36_v53  ;;  %v54_v60 = vld [vmem:[%s11731_s0 + $0x90] sm:$0xff]  ;;  %3265 = vmatpush.bf16.msrb.mxu3 %v5779_v3 }
  0x2e   :  { %v5506_v63 = vld [vmem:[%s11732_s1 + $0x5a0] sm:$0xf]  ;;  %v7334_v0 = vld [vmem:[%s11732_s1 + $0x5ac] sm:$0xf0]  ;;  %v8100_v2 = vpack.c.bf16 %v54_v60, %v38_v55  ;;  %v5379_v10 = vor.u32 %v7302_v58, %v5378_v57 }
  0x2f   :  { %v5634_v1 = vld [vmem:[%s11732_s1 + $0x6a0] sm:$0xf]  ;;  %v7366_v4 = vld [vmem:[%s11732_s1 + $0x6ac] sm:$0xf0]  ;;  %3174 = vmatmul.bf16.vlgmr.msra.gmra.mxu0 %v8086_v59  ;;  %v5507_v13 = vor.u32 %v7334_v0, %v5506_v63 }
  0x30   :  { %v5762_v5 = vld [vmem:[%s11732_s1 + $0x7a0] sm:$0xf]  ;;  %v7398_v6 = vld [vmem:[%s11732_s1 + $0x7ac] sm:$0xf0]  ;;  %3202 = vmatmul.bf16.vlgmr.msra.gmra.mxu2 %v8100_v2  ;;  %v5635_v14 = vor.u32 %v7366_v4, %v5634_v1  ;;  %3224 = vmatpush.bf16.msrb.mxu0 %v5379_v10 }
  0x31   :  { %v5362_v15 = vld [vmem:[%s11732_s1 + $0x480] sm:$0xf]  ;;  %v7298_v16 = vld [vmem:[%s11732_s1 + $0x48c] sm:$0xf0]  ;;  %v5763_v19 = vor.u32 %v7398_v6, %v5762_v5  ;;  %3238 = vmatpush.bf16.msrb.mxu1 %v5507_v13 }
  0x32   :  { %v5490_v17 = vld [vmem:[%s11732_s1 + $0x580] sm:$0xf]  ;;  %v7330_v20 = vld [vmem:[%s11732_s1 + $0x58c] sm:$0xf0]  ;;  %v5363_v25 = vor.u32 %v7298_v16, %v5362_v15  ;;  %3252 = vmatpush.bf16.msrb.mxu2 %v5635_v14 }
  0x33   :  { %v5618_v21 = vld [vmem:[%s11732_s1 + $0x680] sm:$0xf]  ;;  %v7362_v22 = vld [vmem:[%s11732_s1 + $0x68c] sm:$0xf0]  ;;  %v5491_v26 = vor.u32 %v7330_v20, %v5490_v17  ;;  %3266 = vmatpush.bf16.msrb.mxu3 %v5763_v19 }
  0x34   :  { %v5746_v23 = vld [vmem:[%s11732_s1 + $0x780] sm:$0xf]  ;;  %v7394_v24 = vld [vmem:[%s11732_s1 + $0x78c] sm:$0xf0]  ;;  %v5619_v27 = vor.u32 %v7362_v22, %v5618_v21  ;;  %3225 = vmatpush.bf16.msrb.mxu0 %v5363_v25 }
  0x35   :  { %v5346_v28 = vld [vmem:[%s11732_s1 + $0x460] sm:$0xf]  ;;  %v7294_v29 = vld [vmem:[%s11732_s1 + $0x46c] sm:$0xf0]  ;;  %v5747_v31 = vor.u32 %v7394_v24, %v5746_v23  ;;  %3239 = vmatpush.bf16.msrb.mxu1 %v5491_v26 }
  0x36   :  { %v5474_v30 = vld [vmem:[%s11732_s1 + $0x560] sm:$0xf]  ;;  %v7326_v32 = vld [vmem:[%s11732_s1 + $0x56c] sm:$0xf0]  ;;  %v5347_v37 = vor.u32 %v7294_v29, %v5346_v28  ;;  %3253 = vmatpush.bf16.msrb.mxu2 %v5619_v27  ;;  %v41_v28 = vld [vmem:[%s11731_s0 + $0x28] sm:$0xff] }
  0x37   :  { %v5602_v33 = vld [vmem:[%s11732_s1 + $0x660] sm:$0xf]  ;;  %v7358_v34 = vld [vmem:[%s11732_s1 + $0x66c] sm:$0xf0]  ;;  %v5475_v38 = vor.u32 %v7326_v32, %v5474_v30  ;;  %3267 = vmatpush.bf16.msrb.mxu3 %v5747_v31  ;;  %v57_v31 = vld [vmem:[%s11731_s0 + $0xa8] sm:$0xff] }
  0x38   :  { %v5730_v35 = vld [vmem:[%s11732_s1 + $0x760] sm:$0xf]  ;;  %v7390_v36 = vld [vmem:[%s11732_s1 + $0x76c] sm:$0xf0]  ;;  %v5603_v39 = vor.u32 %v7358_v34, %v5602_v33  ;;  %3226 = vmatpush.bf16.msrb.mxu0 %v5347_v37  ;;  %v43_v32 = vld [vmem:[%s11731_s0 + $0x38] sm:$0xff] }
  0x39   :  { %v5330_v40 = vld [vmem:[%s11732_s1 + $0x440] sm:$0xf]  ;;  %v7290_v41 = vld [vmem:[%s11732_s1 + $0x44c] sm:$0xf0]  ;;  %v5731_v43 = vor.u32 %v7390_v36, %v5730_v35  ;;  %3240 = vmatpush.bf16.msrb.mxu1 %v5475_v38  ;;  %v59_v33 = vld [vmem:[%s11731_s0 + $0xb8] sm:$0xff] }
  0x3a   :  { %v5458_v42 = vld [vmem:[%s11732_s1 + $0x540] sm:$0xf]  ;;  %v7322_v44 = vld [vmem:[%s11732_s1 + $0x54c] sm:$0xf0]  ;;  %v5331_v49 = vor.u32 %v7290_v41, %v5330_v40  ;;  %3254 = vmatpush.bf16.msrb.mxu2 %v5603_v39 }
  0x3b   :  { %v5586_v45 = vld [vmem:[%s11732_s1 + $0x640] sm:$0xf]  ;;  %v7354_v46 = vld [vmem:[%s11732_s1 + $0x64c] sm:$0xf0]  ;;  %v5459_v51 = vor.u32 %v7322_v44, %v5458_v42  ;;  %3268 = vmatpush.bf16.msrb.mxu3 %v5731_v43 }
  0x3c   :  { %v5714_v47 = vld [vmem:[%s11732_s1 + $0x740] sm:$0xf]  ;;  %v7386_v48 = vld [vmem:[%s11732_s1 + $0x74c] sm:$0xf0]  ;;  %v5587_v52 = vor.u32 %v7354_v46, %v5586_v45  ;;  %3227 = vmatpush.bf16.msrb.mxu0 %v5331_v49  ;;  %v8321_v45 = vpack.c.bf16 %v57_v31, %v41_v28 }
  0x3d   :  { %v5314_v50 = vld [vmem:[%s11732_s1 + $0x420] sm:$0xf]  ;;  %v7286_v53 = vld [vmem:[%s11732_s1 + $0x42c] sm:$0xf0]  ;;  %v5715_v56 = vor.u32 %v7386_v48, %v5714_v47  ;;  %3241 = vmatpush.bf16.msrb.mxu1 %v5459_v51  ;;  %v8329_v48 = vpack.c.bf16 %v59_v33, %v43_v32 }
  0x3e   :  { %v5442_v54 = vld [vmem:[%s11732_s1 + $0x520] sm:$0xf]  ;;  %v7318_v55 = vld [vmem:[%s11732_s1 + $0x52c] sm:$0xf0]  ;;  %v5315_v0 = vor.u32 %v7286_v53, %v5314_v50  ;;  %3255 = vmatpush.bf16.msrb.mxu2 %v5587_v52 }
  0x3f   :  { %v5570_v57 = vld [vmem:[%s11732_s1 + $0x620] sm:$0xf]  ;;  %v7350_v58 = vld [vmem:[%s11732_s1 + $0x62c] sm:$0xf0]  ;;  %v5443_v6 = vor.u32 %v7318_v55, %v5442_v54  ;;  %3269 = vmatpush.bf16.msrb.mxu3 %v5715_v56 }
  0x40   :  { %v5698_v60 = vld [vmem:[%s11732_s1 + $0x720] sm:$0xf]  ;;  %v7382_v61 = vld [vmem:[%s11732_s1 + $0x72c] sm:$0xf0]  ;;  %v5571_v7 = vor.u32 %v7350_v58, %v5570_v57  ;;  %3228 = vmatpush.bf16.msrb.mxu0 %v5315_v0 }
  0x41   :  { %v5298_v62 = vld [vmem:[%s11732_s1 + $0x400] sm:$0xf]  ;;  %v7282_v63 = vld [vmem:[%s11732_s1 + $0x40c] sm:$0xf0]  ;;  %v5699_v12 = vor.u32 %v7382_v61, %v5698_v60  ;;  %3242 = vmatpush.bf16.msrb.mxu1 %v5443_v6 }
  0x42   :  { %v5426_v1 = vld [vmem:[%s11732_s1 + $0x500] sm:$0xf]  ;;  %v7314_v3 = vld [vmem:[%s11732_s1 + $0x50c] sm:$0xf0]  ;;  %v5299_v20 = vor.u32 %v7282_v63, %v5298_v62  ;;  %3256 = vmatpush.bf16.msrb.mxu2 %v5571_v7 }
  0x43   :  { %v5554_v4 = vld [vmem:[%s11732_s1 + $0x600] sm:$0xf]  ;;  %v7346_v5 = vld [vmem:[%s11732_s1 + $0x60c] sm:$0xf0]  ;;  %v5427_v24 = vor.u32 %v7314_v3, %v5426_v1  ;;  %3270 = vmatpush.bf16.msrb.mxu3 %v5699_v12 }
  0x44   :  { %v5682_v8 = vld [vmem:[%s11732_s1 + $0x700] sm:$0xf]  ;;  %v7378_v9 = vld [vmem:[%s11732_s1 + $0x70c] sm:$0xf0]  ;;  %v5555_v25 = vor.u32 %v7346_v5, %v5554_v4  ;;  %3229 = vmatpush.bf16.msrb.mxu0 %v5299_v20 }
  0x45   :  { %v5922_v10 = vld [vmem:[%s11732_s1 + $0x8e0] sm:$0xf]  ;;  %v7438_v13 = vld [vmem:[%s11732_s1 + $0x8ec] sm:$0xf0]  ;;  %v5683_v29 = vor.u32 %v7378_v9, %v5682_v8  ;;  %3243 = vmatpush.bf16.msrb.mxu1 %v5427_v24 }
  0x46   :  { %v6050_v14 = vld [vmem:[%s11732_s1 + $0x9e0] sm:$0xf]  ;;  %v7470_v15 = vld [vmem:[%s11732_s1 + $0x9ec] sm:$0xf0]  ;;  %v5923_v30 = vor.u32 %v7438_v13, %v5922_v10  ;;  %3257 = vmatpush.bf16.msrb.mxu2 %v5555_v25 }
  0x47   :  { %v6178_v16 = vld [vmem:[%s11732_s1 + $0xae0] sm:$0xf]  ;;  %v7502_v17 = vld [vmem:[%s11732_s1 + $0xaec] sm:$0xf0]  ;;  %v6051_v34 = vor.u32 %v7470_v15, %v6050_v14  ;;  %3271 = vmatpush.bf16.msrb.mxu3 %v5683_v29 }
  0x48   :  { %v6306_v19 = vld [vmem:[%s11732_s1 + $0xbe0] sm:$0xf]  ;;  %v7534_v21 = vld [vmem:[%s11732_s1 + $0xbec] sm:$0xf0]  ;;  %v6179_v35 = vor.u32 %v7502_v17, %v6178_v16  ;;  %3278 = vmatpush.bf16.msra.mxu0 %v5923_v30  ;;  %3244 = vmatmul.bf16.vlgmr.msrb.gmra.mxu1 %v8321_v45 }
  0x49   :  { %v40_v22 = vld [vmem:[%s11731_s0 + $0x20] sm:$0xff]  ;;  %v42_v26 = vld [vmem:[%s11731_s0 + $0x30] sm:$0xff]  ;;  %v6307_v39 = vor.u32 %v7534_v21, %v6306_v19  ;;  %3292 = vmatpush.bf16.msra.mxu1 %v6051_v34 }
  0x4a   :  { %v56_v23 = vld [vmem:[%s11731_s0 + $0xa0] sm:$0xff]  ;;  %v58_v27 = vld [vmem:[%s11731_s0 + $0xb0] sm:$0xff]  ;;  %3306 = vmatpush.bf16.msra.mxu2 %v6179_v35  ;;  %3272 = vmatmul.bf16.vlgmr.msrb.gmra.mxu3 %v8329_v48 }
  0x4b   :  { %v5906_v36 = vld [vmem:[%s11732_s1 + $0x8c0] sm:$0xf]  ;;  %v7434_v37 = vld [vmem:[%s11732_s1 + $0x8cc] sm:$0xf0]  ;;  %v8308_v40 = vpack.c.bf16 %v56_v23, %v40_v22  ;;  %v8319_v44 = vpack.c.bf16 %v58_v27, %v42_v26  ;;  %3320 = vmatpush.bf16.msra.mxu3 %v6307_v39 }
  0x4c   :  { %v6034_v38 = vld [vmem:[%s11732_s1 + $0x9c0] sm:$0xf]  ;;  %v7466_v41 = vld [vmem:[%s11732_s1 + $0x9cc] sm:$0xf0]  ;;  %v5907_v49 = vor.u32 %v7434_v37, %v5906_v36 }
  0x4d   :  { %v6162_v42 = vld [vmem:[%s11732_s1 + $0xac0] sm:$0xf]  ;;  %v7498_v43 = vld [vmem:[%s11732_s1 + $0xacc] sm:$0xf0]  ;;  %v6035_v50 = vor.u32 %v7466_v41, %v6034_v38  ;;  %3230 = vmatmul.bf16.vlgmr.msrb.gmra.mxu0 %v8308_v40  ;;  %3258 = vmatmul.bf16.vlgmr.msrb.gmra.mxu2 %v8319_v44 }
  0x4e   :  { %v6290_v46 = vld [vmem:[%s11732_s1 + $0xbc0] sm:$0xf]  ;;  %v7530_v47 = vld [vmem:[%s11732_s1 + $0xbcc] sm:$0xf0]  ;;  %v6163_v51 = vor.u32 %v7498_v43, %v6162_v42  ;;  %3279 = vmatpush.bf16.msra.mxu0 %v5907_v49 }
  0x4f   :  { %v5890_v52 = vld [vmem:[%s11732_s1 + $0x8a0] sm:$0xf]  ;;  %v7430_v53 = vld [vmem:[%s11732_s1 + $0x8ac] sm:$0xf0]  ;;  %v6291_v55 = vor.u32 %v7530_v47, %v6290_v46  ;;  %3293 = vmatpush.bf16.msra.mxu1 %v6035_v50 }
  0x50   :  { %v6018_v54 = vld [vmem:[%s11732_s1 + $0x9a0] sm:$0xf]  ;;  %v7462_v56 = vld [vmem:[%s11732_s1 + $0x9ac] sm:$0xf0]  ;;  %v5891_v62 = vor.u32 %v7430_v53, %v5890_v52  ;;  %3307 = vmatpush.bf16.msra.mxu2 %v6163_v51 }
  0x51   :  { %v6146_v57 = vld [vmem:[%s11732_s1 + $0xaa0] sm:$0xf]  ;;  %v7494_v58 = vld [vmem:[%s11732_s1 + $0xaac] sm:$0xf0]  ;;  %v6019_v63 = vor.u32 %v7462_v56, %v6018_v54  ;;  %3321 = vmatpush.bf16.msra.mxu3 %v6291_v55 }
  0x52   :  { %v6274_v60 = vld [vmem:[%s11732_s1 + $0xba0] sm:$0xf]  ;;  %v7526_v61 = vld [vmem:[%s11732_s1 + $0xbac] sm:$0xf0]  ;;  %v6147_v0 = vor.u32 %v7494_v58, %v6146_v57  ;;  %3280 = vmatpush.bf16.msra.mxu0 %v5891_v62 }
  0x53   :  { %v5874_v1 = vld [vmem:[%s11732_s1 + $0x880] sm:$0xf]  ;;  %v7426_v3 = vld [vmem:[%s11732_s1 + $0x88c] sm:$0xf0]  ;;  %v6275_v5 = vor.u32 %v7526_v61, %v6274_v60  ;;  %3294 = vmatpush.bf16.msra.mxu1 %v6019_v63 }
  0x54   :  { %v6002_v4 = vld [vmem:[%s11732_s1 + $0x980] sm:$0xf]  ;;  %v7458_v6 = vld [vmem:[%s11732_s1 + $0x98c] sm:$0xf0]  ;;  %v5875_v12 = vor.u32 %v7426_v3, %v5874_v1  ;;  %3308 = vmatpush.bf16.msra.mxu2 %v6147_v0 }
  0x55   :  { %v6130_v7 = vld [vmem:[%s11732_s1 + $0xa80] sm:$0xf]  ;;  %v7490_v8 = vld [vmem:[%s11732_s1 + $0xa8c] sm:$0xf0]  ;;  %v6003_v13 = vor.u32 %v7458_v6, %v6002_v4  ;;  %3322 = vmatpush.bf16.msra.mxu3 %v6275_v5 }
  0x56   :  { %v6258_v9 = vld [vmem:[%s11732_s1 + $0xb80] sm:$0xf]  ;;  %v7522_v10 = vld [vmem:[%s11732_s1 + $0xb8c] sm:$0xf0]  ;;  %v6131_v14 = vor.u32 %v7490_v8, %v6130_v7  ;;  %3281 = vmatpush.bf16.msra.mxu0 %v5875_v12 }
  0x57   :  { %v5858_v15 = vld [vmem:[%s11732_s1 + $0x860] sm:$0xf]  ;;  %v7422_v16 = vld [vmem:[%s11732_s1 + $0x86c] sm:$0xf0]  ;;  %v6259_v19 = vor.u32 %v7522_v10, %v6258_v9  ;;  %3295 = vmatpush.bf16.msra.mxu1 %v6003_v13 }
  0x58   :  { %v5986_v17 = vld [vmem:[%s11732_s1 + $0x960] sm:$0xf]  ;;  %v7454_v20 = vld [vmem:[%s11732_s1 + $0x96c] sm:$0xf0]  ;;  %v5859_v25 = vor.u32 %v7422_v16, %v5858_v15  ;;  %3309 = vmatpush.bf16.msra.mxu2 %v6131_v14 }
  0x59   :  { %v6114_v21 = vld [vmem:[%s11732_s1 + $0xa60] sm:$0xf]  ;;  %v7486_v22 = vld [vmem:[%s11732_s1 + $0xa6c] sm:$0xf0]  ;;  %v5987_v26 = vor.u32 %v7454_v20, %v5986_v17  ;;  %3323 = vmatpush.bf16.msra.mxu3 %v6259_v19  ;;  %v45_v20 = vld [vmem:[%s11731_s0 + $0x48] sm:$0xff] }
  0x5a   :  { %v6242_v23 = vld [vmem:[%s11732_s1 + $0xb60] sm:$0xf]  ;;  %v7518_v24 = vld [vmem:[%s11732_s1 + $0xb6c] sm:$0xf0]  ;;  %v6115_v27 = vor.u32 %v7486_v22, %v6114_v21  ;;  %3282 = vmatpush.bf16.msra.mxu0 %v5859_v25  ;;  %v63_v25 = vld [vmem:[%s11731_s0 + $0xd8] sm:$0xff] }
  0x5b   :  { %v5842_v28 = vld [vmem:[%s11732_s1 + $0x840] sm:$0xf]  ;;  %v7418_v29 = vld [vmem:[%s11732_s1 + $0x84c] sm:$0xf0]  ;;  %v6243_v31 = vor.u32 %v7518_v24, %v6242_v23  ;;  %3296 = vmatpush.bf16.msra.mxu1 %v5987_v26  ;;  %v61_v23 = vld [vmem:[%s11731_s0 + $0xc8] sm:$0xff] }
  0x5c   :  { %v5970_v30 = vld [vmem:[%s11732_s1 + $0x940] sm:$0xf]  ;;  %v7450_v32 = vld [vmem:[%s11732_s1 + $0x94c] sm:$0xf0]  ;;  %v5843_v37 = vor.u32 %v7418_v29, %v5842_v28  ;;  %3310 = vmatpush.bf16.msra.mxu2 %v6115_v27  ;;  %v47_v24 = vld [vmem:[%s11731_s0 + $0x58] sm:$0xff] }
  0x5d   :  { %v6098_v33 = vld [vmem:[%s11732_s1 + $0xa40] sm:$0xf]  ;;  %v7482_v34 = vld [vmem:[%s11732_s1 + $0xa4c] sm:$0xf0]  ;;  %v5971_v39 = vor.u32 %v7450_v32, %v5970_v30  ;;  %3324 = vmatpush.bf16.msra.mxu3 %v6243_v31 }
  0x5e   :  { %v6226_v35 = vld [vmem:[%s11732_s1 + $0xb40] sm:$0xf]  ;;  %v7514_v36 = vld [vmem:[%s11732_s1 + $0xb4c] sm:$0xf0]  ;;  %v6099_v41 = vor.u32 %v7482_v34, %v6098_v33  ;;  %3283 = vmatpush.bf16.msra.mxu0 %v5843_v37  ;;  %v8549_v37 = vpack.c.bf16 %v61_v23, %v45_v20 }
  0x5f   :  { %v5826_v38 = vld [vmem:[%s11732_s1 + $0x820] sm:$0xf]  ;;  %v7414_v42 = vld [vmem:[%s11732_s1 + $0x82c] sm:$0xf0]  ;;  %v6227_v47 = vor.u32 %v7514_v36, %v6226_v35  ;;  %3297 = vmatpush.bf16.msra.mxu1 %v5971_v39 }
  0x60   :  { %v5954_v43 = vld [vmem:[%s11732_s1 + $0x920] sm:$0xf]  ;;  %v7446_v46 = vld [vmem:[%s11732_s1 + $0x92c] sm:$0xf0]  ;;  %v5827_v55 = vor.u32 %v7414_v42, %v5826_v38  ;;  %3311 = vmatpush.bf16.msra.mxu2 %v6099_v41  ;;  %v8557_v41 = vpack.c.bf16 %v63_v25, %v47_v24 }
  0x61   :  { %v6082_v49 = vld [vmem:[%s11732_s1 + $0xa20] sm:$0xf]  ;;  %v7478_v50 = vld [vmem:[%s11732_s1 + $0xa2c] sm:$0xf0]  ;;  %v5955_v61 = vor.u32 %v7446_v46, %v5954_v43  ;;  %3325 = vmatpush.bf16.msra.mxu3 %v6227_v47 }
  0x62   :  { %v6210_v51 = vld [vmem:[%s11732_s1 + $0xb20] sm:$0xf]  ;;  %v7510_v52 = vld [vmem:[%s11732_s1 + $0xb2c] sm:$0xf0]  ;;  %v6083_v62 = vor.u32 %v7478_v50, %v6082_v49  ;;  %3284 = vmatpush.bf16.msra.mxu0 %v5827_v55 }
  0x63   :  { %v5810_v53 = vld [vmem:[%s11732_s1 + $0x800] sm:$0xf]  ;;  %v7410_v54 = vld [vmem:[%s11732_s1 + $0x80c] sm:$0xf0]  ;;  %v6211_v3 = vor.u32 %v7510_v52, %v6210_v51  ;;  %3298 = vmatpush.bf16.msra.mxu1 %v5955_v61 }
  0x64   :  { %v5938_v56 = vld [vmem:[%s11732_s1 + $0x900] sm:$0xf]  ;;  %v7442_v57 = vld [vmem:[%s11732_s1 + $0x90c] sm:$0xf0]  ;;  %v5811_v10 = vor.u32 %v7410_v54, %v5810_v53  ;;  %3312 = vmatpush.bf16.msra.mxu2 %v6083_v62 }
  0x65   :  { %v6066_v58 = vld [vmem:[%s11732_s1 + $0xa00] sm:$0xf]  ;;  %v7474_v60 = vld [vmem:[%s11732_s1 + $0xa0c] sm:$0xf0]  ;;  %v5939_v15 = vor.u32 %v7442_v57, %v5938_v56  ;;  %3326 = vmatpush.bf16.msra.mxu3 %v6211_v3 }
  0x66   :  { %v6194_v63 = vld [vmem:[%s11732_s1 + $0xb00] sm:$0xf]  ;;  %v7506_v0 = vld [vmem:[%s11732_s1 + $0xb0c] sm:$0xf0]  ;;  %v6067_v16 = vor.u32 %v7474_v60, %v6066_v58  ;;  %3285 = vmatpush.bf16.msra.mxu0 %v5811_v10 }
  0x67   :  { %v6434_v1 = vld [vmem:[%s11732_s1 + $0xce0] sm:$0xf]  ;;  %v7566_v4 = vld [vmem:[%s11732_s1 + $0xcec] sm:$0xf0]  ;;  %v6195_v21 = vor.u32 %v7506_v0, %v6194_v63  ;;  %3299 = vmatpush.bf16.msra.mxu1 %v5939_v15 }
  0x68   :  { %v6562_v5 = vld [vmem:[%s11732_s1 + $0xde0] sm:$0xf]  ;;  %v7598_v6 = vld [vmem:[%s11732_s1 + $0xdec] sm:$0xf0]  ;;  %v6435_v22 = vor.u32 %v7566_v4, %v6434_v1  ;;  %3313 = vmatpush.bf16.msra.mxu2 %v6067_v16 }
  0x69   :  { %v6690_v7 = vld [vmem:[%s11732_s1 + $0xee0] sm:$0xf]  ;;  %v7630_v8 = vld [vmem:[%s11732_s1 + $0xeec] sm:$0xf0]  ;;  %v6563_v26 = vor.u32 %v7598_v6, %v6562_v5  ;;  %3327 = vmatpush.bf16.msra.mxu3 %v6195_v21 }
  0x6a   :  { %v6818_v9 = vld [vmem:[%s11732_s1 + $0xfe0] sm:$0xf]  ;;  %v7662_v12 = vld [vmem:[%s11732_s1 + $0xfec] sm:$0xf0]  ;;  %v6691_v27 = vor.u32 %v7630_v8, %v6690_v7  ;;  %3334 = vmatpush.bf16.msrb.mxu0 %v6435_v22  ;;  %3300 = vmatmul.bf16.vlgmr.msra.gmra.mxu1 %v8549_v37 }
  0x6b   :  { %v44_v13 = vld [vmem:[%s11731_s0 + $0x40] sm:$0xff]  ;;  %v46_v17 = vld [vmem:[%s11731_s0 + $0x50] sm:$0xff]  ;;  %v6819_v31 = vor.u32 %v7662_v12, %v6818_v9  ;;  %3348 = vmatpush.bf16.msrb.mxu1 %v6563_v26 }
  0x6c   :  { %v60_v14 = vld [vmem:[%s11731_s0 + $0xc0] sm:$0xff]  ;;  %v62_v19 = vld [vmem:[%s11731_s0 + $0xd0] sm:$0xff]  ;;  %3362 = vmatpush.bf16.msrb.mxu2 %v6691_v27  ;;  %3328 = vmatmul.bf16.vlgmr.msra.gmra.mxu3 %v8557_v41 }
  0x6d   :  { %v6418_v28 = vld [vmem:[%s11732_s1 + $0xcc0] sm:$0xf]  ;;  %v7562_v29 = vld [vmem:[%s11732_s1 + $0xccc] sm:$0xf0]  ;;  %v8536_v32 = vpack.c.bf16 %v60_v14, %v44_v13  ;;  %v8547_v36 = vpack.c.bf16 %v62_v19, %v46_v17  ;;  %3376 = vmatpush.bf16.msrb.mxu3 %v6819_v31 }
  0x6e   :  { %v6546_v30 = vld [vmem:[%s11732_s1 + $0xdc0] sm:$0xf]  ;;  %v7594_v33 = vld [vmem:[%s11732_s1 + $0xdcc] sm:$0xf0]  ;;  %v6419_v42 = vor.u32 %v7562_v29, %v6418_v28 }
  0x6f   :  { %v6674_v34 = vld [vmem:[%s11732_s1 + $0xec0] sm:$0xf]  ;;  %v7626_v35 = vld [vmem:[%s11732_s1 + $0xecc] sm:$0xf0]  ;;  %v6547_v43 = vor.u32 %v7594_v33, %v6546_v30  ;;  %3286 = vmatmul.bf16.vlgmr.msra.gmra.mxu0 %v8536_v32  ;;  %3314 = vmatmul.bf16.vlgmr.msra.gmra.mxu2 %v8547_v36 }
  0x70   :  { %v6802_v38 = vld [vmem:[%s11732_s1 + $0xfc0] sm:$0xf]  ;;  %v7658_v39 = vld [vmem:[%s11732_s1 + $0xfcc] sm:$0xf0]  ;;  %v6675_v46 = vor.u32 %v7626_v35, %v6674_v34  ;;  %3335 = vmatpush.bf16.msrb.mxu0 %v6419_v42 }
  0x71   :  { %v6402_v47 = vld [vmem:[%s11732_s1 + $0xca0] sm:$0xf]  ;;  %v7558_v49 = vld [vmem:[%s11732_s1 + $0xcac] sm:$0xf0]  ;;  %v6803_v51 = vor.u32 %v7658_v39, %v6802_v38  ;;  %3349 = vmatpush.bf16.msrb.mxu1 %v6547_v43 }
  0x72   :  { %v6530_v50 = vld [vmem:[%s11732_s1 + $0xda0] sm:$0xf]  ;;  %v7590_v52 = vld [vmem:[%s11732_s1 + $0xdac] sm:$0xf0]  ;;  %v6403_v57 = vor.u32 %v7558_v49, %v6402_v47  ;;  %3363 = vmatpush.bf16.msrb.mxu2 %v6675_v46 }
  0x73   :  { %v6658_v53 = vld [vmem:[%s11732_s1 + $0xea0] sm:$0xf]  ;;  %v7622_v54 = vld [vmem:[%s11732_s1 + $0xeac] sm:$0xf0]  ;;  %v6531_v58 = vor.u32 %v7590_v52, %v6530_v50  ;;  %3377 = vmatpush.bf16.msrb.mxu3 %v6803_v51 }
  0x74   :  { %v6786_v55 = vld [vmem:[%s11732_s1 + $0xfa0] sm:$0xf]  ;;  %v7654_v56 = vld [vmem:[%s11732_s1 + $0xfac] sm:$0xf0]  ;;  %v6659_v60 = vor.u32 %v7622_v54, %v6658_v53  ;;  %3336 = vmatpush.bf16.msrb.mxu0 %v6403_v57 }
  0x75   :  { %v6386_v61 = vld [vmem:[%s11732_s1 + $0xc80] sm:$0xf]  ;;  %v7554_v62 = vld [vmem:[%s11732_s1 + $0xc8c] sm:$0xf0]  ;;  %v6787_v0 = vor.u32 %v7654_v56, %v6786_v55  ;;  %3350 = vmatpush.bf16.msrb.mxu1 %v6531_v58 }
  0x76   :  { %v6514_v63 = vld [vmem:[%s11732_s1 + $0xd80] sm:$0xf]  ;;  %v7586_v1 = vld [vmem:[%s11732_s1 + $0xd8c] sm:$0xf0]  ;;  %v6387_v7 = vor.u32 %v7554_v62, %v6386_v61  ;;  %3364 = vmatpush.bf16.msrb.mxu2 %v6659_v60 }
  0x77   :  { %v6642_v3 = vld [vmem:[%s11732_s1 + $0xe80] sm:$0xf]  ;;  %v7618_v4 = vld [vmem:[%s11732_s1 + $0xe8c] sm:$0xf0]  ;;  %v6515_v8 = vor.u32 %v7586_v1, %v6514_v63  ;;  %3378 = vmatpush.bf16.msrb.mxu3 %v6787_v0 }
  0x78   :  { %v6770_v5 = vld [vmem:[%s11732_s1 + $0xf80] sm:$0xf]  ;;  %v7650_v6 = vld [vmem:[%s11732_s1 + $0xf8c] sm:$0xf0]  ;;  %v6643_v9 = vor.u32 %v7618_v4, %v6642_v3  ;;  %3337 = vmatpush.bf16.msrb.mxu0 %v6387_v7 }
  0x79   :  { %v6370_v10 = vld [vmem:[%s11732_s1 + $0xc60] sm:$0xf]  ;;  %v7550_v12 = vld [vmem:[%s11732_s1 + $0xc6c] sm:$0xf0]  ;;  %v6771_v14 = vor.u32 %v7650_v6, %v6770_v5  ;;  %3351 = vmatpush.bf16.msrb.mxu1 %v6515_v8 }
  0x7a   :  { %v6498_v13 = vld [vmem:[%s11732_s1 + $0xd60] sm:$0xf]  ;;  %v7582_v15 = vld [vmem:[%s11732_s1 + $0xd6c] sm:$0xf0]  ;;  %v6371_v21 = vor.u32 %v7550_v12, %v6370_v10  ;;  %3365 = vmatpush.bf16.msrb.mxu2 %v6643_v9 }
  0x7b   :  { %v6626_v16 = vld [vmem:[%s11732_s1 + $0xe60] sm:$0xf]  ;;  %v7614_v17 = vld [vmem:[%s11732_s1 + $0xe6c] sm:$0xf0]  ;;  %v6499_v22 = vor.u32 %v7582_v15, %v6498_v13  ;;  %3379 = vmatpush.bf16.msrb.mxu3 %v6771_v14 }
  0x7c   :  { %v6754_v19 = vld [vmem:[%s11732_s1 + $0xf60] sm:$0xf]  ;;  %v7646_v20 = vld [vmem:[%s11732_s1 + $0xf6c] sm:$0xf0]  ;;  %v6627_v23 = vor.u32 %v7614_v17, %v6626_v16  ;;  %3338 = vmatpush.bf16.msrb.mxu0 %v6371_v21 }
  0x7d   :  { %v6354_v24 = vld [vmem:[%s11732_s1 + $0xc40] sm:$0xf]  ;;  %v7546_v25 = vld [vmem:[%s11732_s1 + $0xc4c] sm:$0xf0]  ;;  %v6755_v27 = vor.u32 %v7646_v20, %v6754_v19  ;;  %3352 = vmatpush.bf16.msrb.mxu1 %v6499_v22 }
  0x7e   :  { %v6482_v26 = vld [vmem:[%s11732_s1 + $0xd40] sm:$0xf]  ;;  %v7578_v28 = vld [vmem:[%s11732_s1 + $0xd4c] sm:$0xf0]  ;;  %v6355_v34 = vor.u32 %v7546_v25, %v6354_v24  ;;  %3366 = vmatpush.bf16.msrb.mxu2 %v6627_v23 }
  0x7f   :  { %v6610_v29 = vld [vmem:[%s11732_s1 + $0xe40] sm:$0xf]  ;;  %v7610_v30 = vld [vmem:[%s11732_s1 + $0xe4c] sm:$0xf0]  ;;  %v6483_v39 = vor.u32 %v7578_v28, %v6482_v26  ;;  %3380 = vmatpush.bf16.msrb.mxu3 %v6755_v27 }
  0x80   :  { %v6738_v31 = vld [vmem:[%s11732_s1 + $0xf40] sm:$0xf]  ;;  %v7642_v33 = vld [vmem:[%s11732_s1 + $0xf4c] sm:$0xf0]  ;;  %v6611_v42 = vor.u32 %v7610_v30, %v6610_v29 }
  0x81   :  { %v6338_v35 = vld [vmem:[%s11732_s1 + $0xc20] sm:$0xf]  ;;  %v7542_v38 = vld [vmem:[%s11732_s1 + $0xc2c] sm:$0xf0]  ;;  %v6739_v49 = vor.u32 %v7642_v33, %v6738_v31 }
  0x82   :  { %v6466_v43 = vld [vmem:[%s11732_s1 + $0xd20] sm:$0xf]  ;;  %v7574_v46 = vld [vmem:[%s11732_s1 + $0xd2c] sm:$0xf0] }
  0x83   :  { %v6594_v47 = vld [vmem:[%s11732_s1 + $0xe20] sm:$0xf]  ;;  %v7606_v50 = vld [vmem:[%s11732_s1 + $0xe2c] sm:$0xf0] }
  0x84   :  { %v6722_v51 = vld [vmem:[%s11732_s1 + $0xf20] sm:$0xf]  ;;  %v7638_v52 = vld [vmem:[%s11732_s1 + $0xf2c] sm:$0xf0] }
  0x85   :  { %v6322_v53 = vld [vmem:[%s11732_s1 + $0xc00] sm:$0xf]  ;;  %v7538_v54 = vld [vmem:[%s11732_s1 + $0xc0c] sm:$0xf0] }
  0x86   :  { %16 = vsyncpa [#allocation4], 0  ;;  %3339 = vmatpush.bf16.msrb.mxu0 %v6355_v34  ;;  %v6339_v55 = vor.u32 %v7542_v38, %v6338_v35  ;;  %v6450_v56 = vld [vmem:[%s11732_s1 + $0xd00] sm:$0xf]  ;;  %v7570_v57 = vld [vmem:[%s11732_s1 + $0xd0c] sm:$0xf0]  ;;  %3353 = vmatpush.bf16.msrb.mxu1 %v6483_v39  ;;  %v6467_v61 = vor.u32 %v7574_v46, %v6466_v43  ;;  %v6595_v62 = vor.u32 %v7606_v50, %v6594_v47 }
  0x87   :  { %v6578_v58 = vld [vmem:[%s11732_s1 + $0xe00] sm:$0xf]  ;;  %v7602_v60 = vld [vmem:[%s11732_s1 + $0xe0c] sm:$0xf0]  ;;  %3367 = vmatpush.bf16.msrb.mxu2 %v6611_v42  ;;  %v7180_v1 = vld [vmem:[%s11732_s1 + $0xe4] sm:$0xf]  ;;  %3381 = vmatpush.bf16.msrb.mxu3 %v6739_v49  ;;  %v6723_v3 = vor.u32 %v7638_v52, %v6722_v51  ;;  %v6323_v10 = vor.u32 %v7538_v54, %v6322_v53  ;;  %v6451_v15 = vor.u32 %v7570_v57, %v6450_v56 }
  0x88   :  { %v6706_v63 = vld [vmem:[%s11732_s1 + $0xf00] sm:$0xf]  ;;  %v7634_v0 = vld [vmem:[%s11732_s1 + $0xf0c] sm:$0xf0]  ;;  %v4900_v4 = vld [vmem:[%s11732_s1 + $0xf0] sm:$0xf0]  ;;  %v6579_v16 = vor.u32 %v7602_v60, %v6578_v58 }
  0x89   :  { %v7212_v5 = vld [vmem:[%s11732_s1 + $0x1e4] sm:$0xf]  ;;  %v5028_v6 = vld [vmem:[%s11732_s1 + $0x1f0] sm:$0xf0]  ;;  %v49_v20 = vld [vmem:[%s11731_s0 + $0x68] sm:$0xff]  ;;  %v6707_v21 = vor.u32 %v7634_v0, %v6706_v63  ;;  %v4903_v22 = vor.u32 %v7180_v1, %v4900_v4  ;;  %s4775_s26 = sshll.u32 %s11740_s9, 4  ;;  %s4776_s26 = int_to_ptr.hbm [resolvable:$true] %s4775_s26 }
  0x8a   :  { %v7244_v7 = vld [vmem:[%s11732_s1 + $0x2e4] sm:$0xf]  ;;  %v5156_v8 = vld [vmem:[%s11732_s1 + $0x2f0] sm:$0xf0]  ;;  %3340 = vmatpush.bf16.msrb.mxu0 %v6339_v55  ;;  %3354 = vmatpush.bf16.msrb.mxu1 %v6467_v61  ;;  %v65_v23 = vld [vmem:[%s11731_s0 + $0xe8] sm:$0xff]  ;;  %v5031_v26 = vor.u32 %v7212_v5, %v5028_v6  ;;  %vm4766_vm0 = vcmask 122880  }
  0x8b   :  { %v7276_v9 = vld [vmem:[%s11732_s1 + $0x3e4] sm:$0xf]  ;;  %v5284_v12 = vld [vmem:[%s11732_s1 + $0x3f0] sm:$0xf0]  ;;  %3368 = vmatpush.bf16.msrb.mxu2 %v6595_v62  ;;  %3382 = vmatpush.bf16.msrb.mxu3 %v6723_v3  ;;  %v51_v24 = vld [vmem:[%s11731_s0 + $0x78] sm:$0xff]  ;;  %v5159_v27 = vor.u32 %v7244_v7, %v5156_v8  ;;  %v8777_v42 = vpack.c.bf16 %v65_v23, %v49_v20 }
  0x8c   :  { %v48_v13 = vld [vmem:[%s11731_s0 + $0x60] sm:$0xff]  ;;  %v50_v17 = vld [vmem:[%s11731_s0 + $0x70] sm:$0xff]  ;;  %v67_v25 = vld [vmem:[%s11731_s0 + $0xf8] sm:$0xff]  ;;  %v5287_v31 = vor.u32 %v7276_v9, %v5284_v12 }
  0x8d   :  { %v64_v14 = vld [vmem:[%s11731_s0 + $0xe0] sm:$0xff]  ;;  %v66_v19 = vld [vmem:[%s11731_s0 + $0xf0] sm:$0xff]  ;;  %v8785_v47 = vpack.c.bf16 %v67_v25, %v51_v24 }
  0x8e   :  { %v7176_v28 = vld [vmem:[%s11732_s1 + $0xc4] sm:$0xf]  ;;  %v4884_v29 = vld [vmem:[%s11732_s1 + $0xd0] sm:$0xf0]  ;;  %3341 = vmatpush.bf16.msrb.mxu0 %v6323_v10  ;;  %v8764_v33 = vpack.c.bf16 %v64_v14, %v48_v13  ;;  %3355 = vmatpush.bf16.msrb.mxu1 %v6451_v15  ;;  %v8775_v39 = vpack.c.bf16 %v66_v19, %v50_v17 }
  0x8f   :  { %v7208_v30 = vld [vmem:[%s11732_s1 + $0x1c4] sm:$0xf]  ;;  %v5012_v34 = vld [vmem:[%s11732_s1 + $0x1d0] sm:$0xf0]  ;;  %3369 = vmatpush.bf16.msrb.mxu2 %v6579_v16  ;;  %3383 = vmatpush.bf16.msrb.mxu3 %v6707_v21  ;;  %v4887_v49 = vor.u32 %v7176_v28, %v4884_v29 }
  0x90   :  { %v7240_v35 = vld [vmem:[%s11732_s1 + $0x2c4] sm:$0xf]  ;;  %v5140_v38 = vld [vmem:[%s11732_s1 + $0x2d0] sm:$0xf0]  ;;  %v5015_v50 = vor.u32 %v7208_v30, %v5012_v34 }
  0x91   :  { %v7272_v43 = vld [vmem:[%s11732_s1 + $0x3c4] sm:$0xf]  ;;  %v5268_v46 = vld [vmem:[%s11732_s1 + $0x3d0] sm:$0xf0]  ;;  %v5143_v51 = vor.u32 %v7240_v35, %v5140_v38  ;;  %3342 = vmatmul.bf16.vlgmr.msrb.gmra.mxu0 %v8764_v33  ;;  %3356 = vmatmul.bf16.vlgmr.msrb.gmra.mxu1 %v8777_v42 }
  0x92   :  { %3390 = vmatpush.bf16.msra.mxu0 %v4903_v22  ;;  %3404 = vmatpush.bf16.msra.mxu1 %v5031_v26  ;;  %v7172_v52 = vld [vmem:[%s11732_s1 + $0xa4] sm:$0xf]  ;;  %v4868_v53 = vld [vmem:[%s11732_s1 + $0xb0] sm:$0xf0]  ;;  %v5271_v55 = vor.u32 %v7272_v43, %v5268_v46 }
  0x93   :  { %3418 = vmatpush.bf16.msra.mxu2 %v5159_v27  ;;  %v7204_v54 = vld [vmem:[%s11732_s1 + $0x1a4] sm:$0xf]  ;;  %3432 = vmatpush.bf16.msra.mxu3 %v5287_v31  ;;  %v4996_v56 = vld [vmem:[%s11732_s1 + $0x1b0] sm:$0xf0]  ;;  %v4871_v62 = vor.u32 %v7172_v52, %v4868_v53 }
  0x94   :  { %v7236_v57 = vld [vmem:[%s11732_s1 + $0x2a4] sm:$0xf]  ;;  %v5124_v58 = vld [vmem:[%s11732_s1 + $0x2b0] sm:$0xf0]  ;;  %3370 = vmatmul.bf16.vlgmr.msrb.gmra.mxu2 %v8775_v39  ;;  %3384 = vmatmul.bf16.vlgmr.msrb.gmra.mxu3 %v8785_v47  ;;  %v4999_v63 = vor.u32 %v7204_v54, %v4996_v56 }
  0x95   :  { %v7268_v60 = vld [vmem:[%s11732_s1 + $0x3a4] sm:$0xf]  ;;  %v5252_v61 = vld [vmem:[%s11732_s1 + $0x3b0] sm:$0xf0]  ;;  %v5127_v0 = vor.u32 %v7236_v57, %v5124_v58 }
  0x96   :  { %3391 = vmatpush.bf16.msra.mxu0 %v4887_v49  ;;  %3405 = vmatpush.bf16.msra.mxu1 %v5015_v50  ;;  %v7168_v1 = vld [vmem:[%s11732_s1 + $0x84] sm:$0xf]  ;;  %v4852_v3 = vld [vmem:[%s11732_s1 + $0x90] sm:$0xf0]  ;;  %v5255_v5 = vor.u32 %v7268_v60, %v5252_v61 }
  0x97   :  { %3419 = vmatpush.bf16.msra.mxu2 %v5143_v51  ;;  %v7200_v4 = vld [vmem:[%s11732_s1 + $0x184] sm:$0xf]  ;;  %3433 = vmatpush.bf16.msra.mxu3 %v5271_v55  ;;  %v4980_v6 = vld [vmem:[%s11732_s1 + $0x190] sm:$0xf0]  ;;  %v4855_v12 = vor.u32 %v7168_v1, %v4852_v3 }
  0x98   :  { %v7232_v7 = vld [vmem:[%s11732_s1 + $0x284] sm:$0xf]  ;;  %v5108_v8 = vld [vmem:[%s11732_s1 + $0x290] sm:$0xf0]  ;;  %v4983_v13 = vor.u32 %v7200_v4, %v4980_v6 }
  0x99   :  { %v7264_v9 = vld [vmem:[%s11732_s1 + $0x384] sm:$0xf]  ;;  %v5236_v10 = vld [vmem:[%s11732_s1 + $0x390] sm:$0xf0]  ;;  %v5111_v14 = vor.u32 %v7232_v7, %v5108_v8 }
  0x9a   :  { %3392 = vmatpush.bf16.msra.mxu0 %v4871_v62  ;;  %3406 = vmatpush.bf16.msra.mxu1 %v4999_v63  ;;  %v7164_v15 = vld [vmem:[%s11732_s1 + $0x64] sm:$0xf]  ;;  %v4836_v16 = vld [vmem:[%s11732_s1 + $0x70] sm:$0xf0]  ;;  %v5239_v19 = vor.u32 %v7264_v9, %v5236_v10 }
  0x9b   :  { %3420 = vmatpush.bf16.msra.mxu2 %v5127_v0  ;;  %v7196_v17 = vld [vmem:[%s11732_s1 + $0x164] sm:$0xf]  ;;  %3434 = vmatpush.bf16.msra.mxu3 %v5255_v5  ;;  %v4964_v20 = vld [vmem:[%s11732_s1 + $0x170] sm:$0xf0]  ;;  %v4839_v25 = vor.u32 %v7164_v15, %v4836_v16 }
  0x9c   :  { %v7228_v21 = vld [vmem:[%s11732_s1 + $0x264] sm:$0xf]  ;;  %v5092_v22 = vld [vmem:[%s11732_s1 + $0x270] sm:$0xf0]  ;;  %v4967_v26 = vor.u32 %v7196_v17, %v4964_v20 }
  0x9d   :  { %v7260_v23 = vld [vmem:[%s11732_s1 + $0x364] sm:$0xf]  ;;  %v5220_v24 = vld [vmem:[%s11732_s1 + $0x370] sm:$0xf0]  ;;  %v5095_v27 = vor.u32 %v7228_v21, %v5092_v22 }
  0x9e   :  { %3393 = vmatpush.bf16.msra.mxu0 %v4855_v12  ;;  %3407 = vmatpush.bf16.msra.mxu1 %v4983_v13  ;;  %v7160_v28 = vld [vmem:[%s11732_s1 + $0x44] sm:$0xf]  ;;  %v4820_v29 = vld [vmem:[%s11732_s1 + $0x50] sm:$0xf0]  ;;  %v5223_v31 = vor.u32 %v7260_v23, %v5220_v24 }
  0x9f   :  { %3421 = vmatpush.bf16.msra.mxu2 %v5111_v14  ;;  %v7192_v30 = vld [vmem:[%s11732_s1 + $0x144] sm:$0xf]  ;;  %3435 = vmatpush.bf16.msra.mxu3 %v5239_v19  ;;  %v4948_v34 = vld [vmem:[%s11732_s1 + $0x150] sm:$0xf0]  ;;  %v4823_v49 = vor.u32 %v7160_v28, %v4820_v29 }
  0xa0   :  { %v7224_v35 = vld [vmem:[%s11732_s1 + $0x244] sm:$0xf]  ;;  %v5076_v38 = vld [vmem:[%s11732_s1 + $0x250] sm:$0xf0]  ;;  %v4951_v50 = vor.u32 %v7192_v30, %v4948_v34 }
  0xa1   :  { %v7256_v43 = vld [vmem:[%s11732_s1 + $0x344] sm:$0xf]  ;;  %v5204_v46 = vld [vmem:[%s11732_s1 + $0x350] sm:$0xf0]  ;;  %v5079_v51 = vor.u32 %v7224_v35, %v5076_v38 }
  0xa2   :  { %3394 = vmatpush.bf16.msra.mxu0 %v4839_v25  ;;  %3408 = vmatpush.bf16.msra.mxu1 %v4967_v26  ;;  %v7156_v52 = vld [vmem:[%s11732_s1 + $0x24] sm:$0xf]  ;;  %v4804_v53 = vld [vmem:[%s11732_s1 + $0x30] sm:$0xf0]  ;;  %v5207_v55 = vor.u32 %v7256_v43, %v5204_v46 }
  0xa3   :  { %3422 = vmatpush.bf16.msra.mxu2 %v5095_v27  ;;  %v7188_v54 = vld [vmem:[%s11732_s1 + $0x124] sm:$0xf]  ;;  %3436 = vmatpush.bf16.msra.mxu3 %v5223_v31  ;;  %v4932_v56 = vld [vmem:[%s11732_s1 + $0x130] sm:$0xf0]  ;;  %v4807_v62 = vor.u32 %v7156_v52, %v4804_v53 }
  0xa4   :  { %v7220_v57 = vld [vmem:[%s11732_s1 + $0x224] sm:$0xf]  ;;  %v5060_v58 = vld [vmem:[%s11732_s1 + $0x230] sm:$0xf0]  ;;  %v4935_v1 = vor.u32 %v7188_v54, %v4932_v56 }
  0xa5   :  { %v7252_v60 = vld [vmem:[%s11732_s1 + $0x324] sm:$0xf]  ;;  %v5188_v61 = vld [vmem:[%s11732_s1 + $0x330] sm:$0xf0]  ;;  %v5063_v3 = vor.u32 %v7220_v57, %v5060_v58 }
  0xa6   :  { %3395 = vmatpush.bf16.msra.mxu0 %v4823_v49  ;;  %v7152_v63 = vld [vmem:[%s11732_s1 + $0x4] sm:$0xf]  ;;  %v4788_v0 = vld [vmem:[%s11732_s1 + $0x10] sm:$0xf0]  ;;  %3409 = vmatpush.bf16.msra.mxu1 %v4951_v50  ;;  %v5191_v7 = vor.u32 %v7252_v60, %v5188_v61 }
  0xa7   :  { %3423 = vmatpush.bf16.msra.mxu2 %v5079_v51  ;;  %v7184_v4 = vld [vmem:[%s11732_s1 + $0x104] sm:$0xf]  ;;  %v4916_v5 = vld [vmem:[%s11732_s1 + $0x110] sm:$0xf0]  ;;  %3437 = vmatpush.bf16.msra.mxu3 %v5207_v55  ;;  %v4791_v15 = vor.u32 %v7152_v63, %v4788_v0  ;;  %v8995_v55 = vld [vmem:[%s11733_s2] sm:$0xf] }
  0xa8   :  { %v7216_v6 = vld [vmem:[%s11732_s1 + $0x204] sm:$0xf]  ;;  %v5044_v8 = vld [vmem:[%s11732_s1 + $0x210] sm:$0xf0]  ;;  %v4919_v20 = vor.u32 %v7184_v4, %v4916_v5  ;;  %v11741_v0 = vperm.slane %v8995_v55, 0 }
  0xa9   :  { %v7248_v9 = vld [vmem:[%s11732_s1 + $0x304] sm:$0xf]  ;;  %v5172_v10 = vld [vmem:[%s11732_s1 + $0x310] sm:$0xf0]  ;;  %v5047_v21 = vor.u32 %v7216_v6, %v5044_v8 }
  0xaa   :  { %v7308_v12 = vld [vmem:[%s11732_s1 + $0x4e4] sm:$0xf]  ;;  %v5412_v13 = vld [vmem:[%s11732_s1 + $0x4f0] sm:$0xf0]  ;;  %3396 = vmatpush.bf16.msra.mxu0 %v4807_v62  ;;  %3410 = vmatpush.bf16.msra.mxu1 %v4935_v1  ;;  %v5175_v24 = vor.u32 %v7248_v9, %v5172_v10 }
  0xab   :  { %v7340_v14 = vld [vmem:[%s11732_s1 + $0x5e4] sm:$0xf]  ;;  %v5540_v16 = vld [vmem:[%s11732_s1 + $0x5f0] sm:$0xf0]  ;;  %3424 = vmatpush.bf16.msra.mxu2 %v5063_v3  ;;  %3438 = vmatpush.bf16.msra.mxu3 %v5191_v7  ;;  %v5415_v25 = vor.u32 %v7308_v12, %v5412_v13 }
  0xac   :  { %v7372_v17 = vld [vmem:[%s11732_s1 + $0x6e4] sm:$0xf]  ;;  %v5668_v19 = vld [vmem:[%s11732_s1 + $0x6f0] sm:$0xf0]  ;;  %v5543_v26 = vor.u32 %v7340_v14, %v5540_v16  ;;  %v3175_v14 = vpop.f32.mrf.mxu0 }
  0xad   :  { %v7404_v22 = vld [vmem:[%s11732_s1 + $0x7e4] sm:$0xf]  ;;  %v5796_v23 = vld [vmem:[%s11732_s1 + $0x7f0] sm:$0xf0]  ;;  %v5671_v27 = vor.u32 %v7372_v17, %v5668_v19  ;;  %v3176_v16 = vadd.f32 %v3175_v14, %v11741_v0 }
  0xae   :  { %v7304_v28 = vld [vmem:[%s11732_s1 + $0x4c4] sm:$0xf]  ;;  %v5396_v29 = vld [vmem:[%s11732_s1 + $0x4d0] sm:$0xf0]  ;;  %3397 = vmatpush.bf16.msra.mxu0 %v4791_v15  ;;  %v5799_v31 = vor.u32 %v7404_v22, %v5796_v23  ;;  %3411 = vmatpush.bf16.msra.mxu1 %v4919_v20 }
  0xaf   :  { %v7336_v30 = vld [vmem:[%s11732_s1 + $0x5c4] sm:$0xf]  ;;  %v5524_v34 = vld [vmem:[%s11732_s1 + $0x5d0] sm:$0xf0]  ;;  %3425 = vmatpush.bf16.msra.mxu2 %v5047_v21  ;;  %3439 = vmatpush.bf16.msra.mxu3 %v5175_v24  ;;  %v5399_v49 = vor.u32 %v7304_v28, %v5396_v29  ;;  %v3189_v29 = vpop.f32.mrf.mxu1 }
  0xb0   :  { %v7368_v35 = vld [vmem:[%s11732_s1 + $0x6c4] sm:$0xf]  ;;  %v5652_v38 = vld [vmem:[%s11732_s1 + $0x6d0] sm:$0xf0]  ;;  %v5527_v51 = vor.u32 %v7336_v30, %v5524_v34 }
  0xb1   :  { %v7400_v43 = vld [vmem:[%s11732_s1 + $0x7c4] sm:$0xf]  ;;  %v5780_v46 = vld [vmem:[%s11732_s1 + $0x7d0] sm:$0xf0]  ;;  %v5655_v52 = vor.u32 %v7368_v35, %v5652_v38  ;;  %3398 = vmatmul.bf16.vlgmr.msra.gmra.mxu0 %v8086_v59  ;;  %3412 = vmatmul.bf16.vlgmr.msra.gmra.mxu1 %v8122_v11 }
  0xb2   :  { %3446 = vmatpush.bf16.msrb.mxu0 %v5415_v25  ;;  %v7300_v50 = vld [vmem:[%s11732_s1 + $0x4a4] sm:$0xf]  ;;  %3460 = vmatpush.bf16.msrb.mxu1 %v5543_v26  ;;  %v5380_v53 = vld [vmem:[%s11732_s1 + $0x4b0] sm:$0xf0]  ;;  %v5783_v56 = vor.u32 %v7400_v43, %v5780_v46 }
  0xb3   :  { %3474 = vmatpush.bf16.msrb.mxu2 %v5671_v27  ;;  %v7332_v54 = vld [vmem:[%s11732_s1 + $0x5a4] sm:$0xf]  ;;  %3488 = vmatpush.bf16.msrb.mxu3 %v5799_v31  ;;  %v5508_v57 = vld [vmem:[%s11732_s1 + $0x5b0] sm:$0xf0]  ;;  %v5383_v63 = vor.u32 %v7300_v50, %v5380_v53  ;;  %v3190_v31 = vadd.f32 %v3189_v29, %v3176_v16  ;;  %v3203_v53 = vpop.f32.mrf.mxu2 }
  0xb4   :  { %v7364_v58 = vld [vmem:[%s11732_s1 + $0x6a4] sm:$0xf]  ;;  %v5636_v60 = vld [vmem:[%s11732_s1 + $0x6b0] sm:$0xf0]  ;;  %3426 = vmatmul.bf16.vlgmr.msra.gmra.mxu2 %v8100_v2  ;;  %3440 = vmatmul.bf16.vlgmr.msra.gmra.mxu3 %v8136_v18  ;;  %v5511_v1 = vor.u32 %v7332_v54, %v5508_v57 }
  0xb5   :  { %v7396_v61 = vld [vmem:[%s11732_s1 + $0x7a4] sm:$0xf]  ;;  %v5764_v62 = vld [vmem:[%s11732_s1 + $0x7b0] sm:$0xf0]  ;;  %v5639_v3 = vor.u32 %v7364_v58, %v5636_v60  ;;  %v3204_v57 = vadd.f32 %v3203_v53, %v3190_v31 }
  0xb6   :  { %3447 = vmatpush.bf16.msrb.mxu0 %v5399_v49  ;;  %3461 = vmatpush.bf16.msrb.mxu1 %v5527_v51  ;;  %v7296_v4 = vld [vmem:[%s11732_s1 + $0x484] sm:$0xf]  ;;  %v5364_v5 = vld [vmem:[%s11732_s1 + $0x490] sm:$0xf0]  ;;  %v5767_v7 = vor.u32 %v7396_v61, %v5764_v62 }
  0xb7   :  { %3475 = vmatpush.bf16.msrb.mxu2 %v5655_v52  ;;  %v7328_v6 = vld [vmem:[%s11732_s1 + $0x584] sm:$0xf]  ;;  %3489 = vmatpush.bf16.msrb.mxu3 %v5783_v56  ;;  %v5492_v8 = vld [vmem:[%s11732_s1 + $0x590] sm:$0xf0]  ;;  %v5367_v15 = vor.u32 %v7296_v4, %v5364_v5 }
  0xb8   :  { %v7360_v9 = vld [vmem:[%s11732_s1 + $0x684] sm:$0xf]  ;;  %v5620_v10 = vld [vmem:[%s11732_s1 + $0x690] sm:$0xf0]  ;;  %v5495_v17 = vor.u32 %v7328_v6, %v5492_v8 }
  0xb9   :  { %v7392_v12 = vld [vmem:[%s11732_s1 + $0x784] sm:$0xf]  ;;  %v5748_v13 = vld [vmem:[%s11732_s1 + $0x790] sm:$0xf0]  ;;  %v5623_v19 = vor.u32 %v7360_v9, %v5620_v10 }
  0xba   :  { %3448 = vmatpush.bf16.msrb.mxu0 %v5383_v63  ;;  %3462 = vmatpush.bf16.msrb.mxu1 %v5511_v1  ;;  %v7292_v20 = vld [vmem:[%s11732_s1 + $0x464] sm:$0xf]  ;;  %v5348_v21 = vld [vmem:[%s11732_s1 + $0x470] sm:$0xf0]  ;;  %v5751_v23 = vor.u32 %v7392_v12, %v5748_v13 }
  0xbb   :  { %3476 = vmatpush.bf16.msrb.mxu2 %v5639_v3  ;;  %v7324_v22 = vld [vmem:[%s11732_s1 + $0x564] sm:$0xf]  ;;  %3490 = vmatpush.bf16.msrb.mxu3 %v5767_v7  ;;  %v5476_v24 = vld [vmem:[%s11732_s1 + $0x570] sm:$0xf0]  ;;  %v5351_v30 = vor.u32 %v7292_v20, %v5348_v21  ;;  %v3217_v7 = vpop.f32.mrf.mxu3 }
  0xbc   :  { %v7356_v25 = vld [vmem:[%s11732_s1 + $0x664] sm:$0xf]  ;;  %v5604_v26 = vld [vmem:[%s11732_s1 + $0x670] sm:$0xf0]  ;;  %v5479_v34 = vor.u32 %v7324_v22, %v5476_v24  ;;  %v9115_v10 = vadd.f32 %v3217_v7, %v3204_v57 }
  0xbd   :  { %v7388_v27 = vld [vmem:[%s11732_s1 + $0x764] sm:$0xf]  ;;  %v5732_v28 = vld [vmem:[%s11732_s1 + $0x770] sm:$0xf0]  ;;  %v5607_v35 = vor.u32 %v7356_v25, %v5604_v26 }
  0xbe   :  { %3449 = vmatpush.bf16.msrb.mxu0 %v5367_v15  ;;  %3463 = vmatpush.bf16.msrb.mxu1 %v5495_v17  ;;  %v7288_v38 = vld [vmem:[%s11732_s1 + $0x444] sm:$0xf]  ;;  %v5332_v43 = vld [vmem:[%s11732_s1 + $0x450] sm:$0xf0]  ;;  %v5735_v49 = vor.u32 %v7388_v27, %v5732_v28 }
  0xbf   :  { %3477 = vmatpush.bf16.msrb.mxu2 %v5623_v19  ;;  %v7320_v46 = vld [vmem:[%s11732_s1 + $0x544] sm:$0xf]  ;;  %3491 = vmatpush.bf16.msrb.mxu3 %v5751_v23  ;;  %v5460_v50 = vld [vmem:[%s11732_s1 + $0x550] sm:$0xf0]  ;;  %v5335_v58 = vor.u32 %v7288_v38, %v5332_v43 }
  0xc0   :  { %v7352_v51 = vld [vmem:[%s11732_s1 + $0x644] sm:$0xf]  ;;  %v5588_v52 = vld [vmem:[%s11732_s1 + $0x650] sm:$0xf0]  ;;  %v5463_v60 = vor.u32 %v7320_v46, %v5460_v50 }
  0xc1   :  { %v7384_v54 = vld [vmem:[%s11732_s1 + $0x744] sm:$0xf]  ;;  %v5716_v56 = vld [vmem:[%s11732_s1 + $0x750] sm:$0xf0]  ;;  %v5591_v61 = vor.u32 %v7352_v51, %v5588_v52  ;;  %v9165_v52 = vpop.f32.mrf.mxu0 }
  0xc2   :  { %3450 = vmatpush.bf16.msrb.mxu0 %v5351_v30  ;;  %3464 = vmatpush.bf16.msrb.mxu1 %v5479_v34  ;;  %v7284_v62 = vld [vmem:[%s11732_s1 + $0x424] sm:$0xf]  ;;  %v5316_v63 = vld [vmem:[%s11732_s1 + $0x430] sm:$0xf0]  ;;  %v5719_v3 = vor.u32 %v7384_v54, %v5716_v56 }
  0xc3   :  { %3478 = vmatpush.bf16.msrb.mxu2 %v5607_v35  ;;  %v7316_v1 = vld [vmem:[%s11732_s1 + $0x524] sm:$0xf]  ;;  %3492 = vmatpush.bf16.msrb.mxu3 %v5735_v49  ;;  %v5444_v4 = vld [vmem:[%s11732_s1 + $0x530] sm:$0xf0]  ;;  %v5319_v12 = vor.u32 %v7284_v62, %v5316_v63 }
  0xc4   :  { %v7348_v5 = vld [vmem:[%s11732_s1 + $0x624] sm:$0xf]  ;;  %v5572_v6 = vld [vmem:[%s11732_s1 + $0x630] sm:$0xf0]  ;;  %v5447_v15 = vor.u32 %v7316_v1, %v5444_v4  ;;  %v9191_v1 = vpop.f32.mrf.mxu1 }
  0xc5   :  { %v7380_v8 = vld [vmem:[%s11732_s1 + $0x724] sm:$0xf]  ;;  %v5700_v9 = vld [vmem:[%s11732_s1 + $0x730] sm:$0xf0]  ;;  %v5575_v16 = vor.u32 %v7348_v5, %v5572_v6 }
  0xc6   :  { %3451 = vmatpush.bf16.msrb.mxu0 %v5335_v58  ;;  %v7280_v13 = vld [vmem:[%s11732_s1 + $0x404] sm:$0xf]  ;;  %v5300_v14 = vld [vmem:[%s11732_s1 + $0x410] sm:$0xf0]  ;;  %3465 = vmatpush.bf16.msrb.mxu1 %v5463_v60  ;;  %v5703_v21 = vor.u32 %v7380_v8, %v5700_v9 }
  0xc7   :  { %3479 = vmatpush.bf16.msrb.mxu2 %v5591_v61  ;;  %v7312_v17 = vld [vmem:[%s11732_s1 + $0x504] sm:$0xf]  ;;  %v5428_v19 = vld [vmem:[%s11732_s1 + $0x510] sm:$0xf0]  ;;  %3493 = vmatpush.bf16.msrb.mxu3 %v5719_v3  ;;  %v5303_v28 = vor.u32 %v7280_v13, %v5300_v14 }
  0xc8   :  { %v7344_v20 = vld [vmem:[%s11732_s1 + $0x604] sm:$0xf]  ;;  %v5556_v22 = vld [vmem:[%s11732_s1 + $0x610] sm:$0xf0]  ;;  %v5431_v34 = vor.u32 %v7312_v17, %v5428_v19  ;;  %v9221_v19 = vpop.f32.mrf.mxu2 }
  0xc9   :  { %v7376_v23 = vld [vmem:[%s11732_s1 + $0x704] sm:$0xf]  ;;  %v5684_v24 = vld [vmem:[%s11732_s1 + $0x710] sm:$0xf0]  ;;  %v5559_v35 = vor.u32 %v7344_v20, %v5556_v22 }
  0xca   :  { %v7436_v25 = vld [vmem:[%s11732_s1 + $0x8e4] sm:$0xf]  ;;  %v5924_v26 = vld [vmem:[%s11732_s1 + $0x8f0] sm:$0xf0]  ;;  %3452 = vmatpush.bf16.msrb.mxu0 %v5319_v12  ;;  %3466 = vmatpush.bf16.msrb.mxu1 %v5447_v15  ;;  %v5687_v46 = vor.u32 %v7376_v23, %v5684_v24 }
  0xcb   :  { %v7468_v27 = vld [vmem:[%s11732_s1 + $0x9e4] sm:$0xf]  ;;  %v6052_v29 = vld [vmem:[%s11732_s1 + $0x9f0] sm:$0xf0]  ;;  %3480 = vmatpush.bf16.msrb.mxu2 %v5575_v16  ;;  %3494 = vmatpush.bf16.msrb.mxu3 %v5703_v21  ;;  %v5927_v49 = vor.u32 %v7436_v25, %v5924_v26  ;;  %v9232_v26 = vpop.f32.mrf.mxu3 }
  0xcc   :  { %v7500_v30 = vld [vmem:[%s11732_s1 + $0xae4] sm:$0xf]  ;;  %v6180_v31 = vld [vmem:[%s11732_s1 + $0xaf0] sm:$0xf0]  ;;  %v6055_v50 = vor.u32 %v7468_v27, %v6052_v29 }
  0xcd   :  { %v7532_v38 = vld [vmem:[%s11732_s1 + $0xbe4] sm:$0xf]  ;;  %v6308_v43 = vld [vmem:[%s11732_s1 + $0xbf0] sm:$0xf0]  ;;  %v6183_v51 = vor.u32 %v7500_v30, %v6180_v31  ;;  %v3231_v30 = vpop.f32.mrf.mxu0 }
  0xce   :  { %v7432_v53 = vld [vmem:[%s11732_s1 + $0x8c4] sm:$0xf]  ;;  %v5908_v54 = vld [vmem:[%s11732_s1 + $0x8d0] sm:$0xf0]  ;;  %3453 = vmatpush.bf16.msrb.mxu0 %v5303_v28  ;;  %v6311_v57 = vor.u32 %v7532_v38, %v6308_v43  ;;  %3467 = vmatpush.bf16.msrb.mxu1 %v5431_v34 }
  0xcf   :  { %v7464_v56 = vld [vmem:[%s11732_s1 + $0x9c4] sm:$0xf]  ;;  %v6036_v58 = vld [vmem:[%s11732_s1 + $0x9d0] sm:$0xf0]  ;;  %3481 = vmatpush.bf16.msrb.mxu2 %v5559_v35  ;;  %3495 = vmatpush.bf16.msrb.mxu3 %v5687_v46  ;;  %v5911_v3 = vor.u32 %v7432_v53, %v5908_v54  ;;  %v3232_v35 = vadd.f32 %v3231_v30, %v9115_v10 }
  0xd0   :  { %v7496_v60 = vld [vmem:[%s11732_s1 + $0xac4] sm:$0xf]  ;;  %v6164_v61 = vld [vmem:[%s11732_s1 + $0xad0] sm:$0xf0]  ;;  %v6039_v4 = vor.u32 %v7464_v56, %v6036_v58 }
  0xd1   :  { %v7528_v62 = vld [vmem:[%s11732_s1 + $0xbc4] sm:$0xf]  ;;  %v6292_v63 = vld [vmem:[%s11732_s1 + $0xbd0] sm:$0xf0]  ;;  %v6167_v5 = vor.u32 %v7496_v60, %v6164_v61  ;;  %3454 = vmatmul.bf16.vlgmr.msrb.gmra.mxu0 %v8308_v40  ;;  %3468 = vmatmul.bf16.vlgmr.msrb.gmra.mxu1 %v8321_v45 }
  0xd2   :  { %3502 = vmatpush.bf16.msra.mxu0 %v5927_v49  ;;  %3516 = vmatpush.bf16.msra.mxu1 %v6055_v50  ;;  %v7428_v6 = vld [vmem:[%s11732_s1 + $0x8a4] sm:$0xf]  ;;  %v5892_v7 = vld [vmem:[%s11732_s1 + $0x8b0] sm:$0xf0]  ;;  %v6295_v9 = vor.u32 %v7528_v62, %v6292_v63  ;;  %v3245_v49 = vpop.f32.mrf.mxu1 }
  0xd3   :  { %3530 = vmatpush.bf16.msra.mxu2 %v6183_v51  ;;  %v7460_v8 = vld [vmem:[%s11732_s1 + $0x9a4] sm:$0xf]  ;;  %3544 = vmatpush.bf16.msra.mxu3 %v6311_v57  ;;  %v6020_v12 = vld [vmem:[%s11732_s1 + $0x9b0] sm:$0xf0]  ;;  %v5895_v17 = vor.u32 %v7428_v6, %v5892_v7  ;;  %v3246_v54 = vadd.f32 %v3245_v49, %v3232_v35 }
  0xd4   :  { %v7492_v13 = vld [vmem:[%s11732_s1 + $0xaa4] sm:$0xf]  ;;  %v6148_v14 = vld [vmem:[%s11732_s1 + $0xab0] sm:$0xf0]  ;;  %3482 = vmatmul.bf16.vlgmr.msrb.gmra.mxu2 %v8319_v44  ;;  %3496 = vmatmul.bf16.vlgmr.msrb.gmra.mxu3 %v8329_v48  ;;  %v6023_v20 = vor.u32 %v7460_v8, %v6020_v12  ;;  %v3259_v8 = vpop.f32.mrf.mxu2 }
  0xd5   :  { %v7524_v15 = vld [vmem:[%s11732_s1 + $0xba4] sm:$0xf]  ;;  %v6276_v16 = vld [vmem:[%s11732_s1 + $0xbb0] sm:$0xf0]  ;;  %v6151_v21 = vor.u32 %v7492_v13, %v6148_v14  ;;  %v3260_v14 = vadd.f32 %v3259_v8, %v3246_v54 }
  0xd6   :  { %3503 = vmatpush.bf16.msra.mxu0 %v5911_v3  ;;  %3517 = vmatpush.bf16.msra.mxu1 %v6039_v4  ;;  %v7424_v22 = vld [vmem:[%s11732_s1 + $0x884] sm:$0xf]  ;;  %v5876_v23 = vld [vmem:[%s11732_s1 + $0x890] sm:$0xf0]  ;;  %v6279_v25 = vor.u32 %v7524_v15, %v6276_v16 }
  0xd7   :  { %3531 = vmatpush.bf16.msra.mxu2 %v6167_v5  ;;  %v7456_v24 = vld [vmem:[%s11732_s1 + $0x984] sm:$0xf]  ;;  %3545 = vmatpush.bf16.msra.mxu3 %v6295_v9  ;;  %v6004_v27 = vld [vmem:[%s11732_s1 + $0x990] sm:$0xf0]  ;;  %v5879_v38 = vor.u32 %v7424_v22, %v5876_v23 }
  0xd8   :  { %v7488_v28 = vld [vmem:[%s11732_s1 + $0xa84] sm:$0xf]  ;;  %v6132_v29 = vld [vmem:[%s11732_s1 + $0xa90] sm:$0xf0]  ;;  %v6007_v43 = vor.u32 %v7456_v24, %v6004_v27 }
  0xd9   :  { %v7520_v31 = vld [vmem:[%s11732_s1 + $0xb84] sm:$0xf]  ;;  %v6260_v34 = vld [vmem:[%s11732_s1 + $0xb90] sm:$0xf0]  ;;  %v6135_v46 = vor.u32 %v7488_v28, %v6132_v29 }
  0xda   :  { %3504 = vmatpush.bf16.msra.mxu0 %v5895_v17  ;;  %3518 = vmatpush.bf16.msra.mxu1 %v6023_v20  ;;  %v7420_v50 = vld [vmem:[%s11732_s1 + $0x864] sm:$0xf]  ;;  %v5860_v51 = vld [vmem:[%s11732_s1 + $0x870] sm:$0xf0]  ;;  %v6263_v10 = vor.u32 %v7520_v31, %v6260_v34  ;;  %v3273_v17 = vpop.f32.mrf.mxu3 }
  0xdb   :  { %3532 = vmatpush.bf16.msra.mxu2 %v6151_v21  ;;  %v7452_v53 = vld [vmem:[%s11732_s1 + $0x964] sm:$0xf]  ;;  %3546 = vmatpush.bf16.msra.mxu3 %v6279_v25  ;;  %v5988_v56 = vld [vmem:[%s11732_s1 + $0x970] sm:$0xf0]  ;;  %v5863_v62 = vor.u32 %v7420_v50, %v5860_v51  ;;  %v9298_v21 = vadd.f32 %v3273_v17, %v3260_v14 }
  0xdc   :  { %v7484_v57 = vld [vmem:[%s11732_s1 + $0xa64] sm:$0xf]  ;;  %v6116_v58 = vld [vmem:[%s11732_s1 + $0xa70] sm:$0xf0]  ;;  %v5991_v63 = vor.u32 %v7452_v53, %v5988_v56 }
  0xdd   :  { %v7516_v60 = vld [vmem:[%s11732_s1 + $0xb64] sm:$0xf]  ;;  %v6244_v61 = vld [vmem:[%s11732_s1 + $0xb70] sm:$0xf0]  ;;  %v6119_v3 = vor.u32 %v7484_v57, %v6116_v58 }
  0xde   :  { %3505 = vmatpush.bf16.msra.mxu0 %v5879_v38  ;;  %3519 = vmatpush.bf16.msra.mxu1 %v6007_v43  ;;  %v7416_v4 = vld [vmem:[%s11732_s1 + $0x844] sm:$0xf]  ;;  %v5844_v5 = vld [vmem:[%s11732_s1 + $0x850] sm:$0xf0]  ;;  %v6247_v7 = vor.u32 %v7516_v60, %v6244_v61 }
  0xdf   :  { %3533 = vmatpush.bf16.msra.mxu2 %v6135_v46  ;;  %v7448_v6 = vld [vmem:[%s11732_s1 + $0x944] sm:$0xf]  ;;  %3547 = vmatpush.bf16.msra.mxu3 %v6263_v10  ;;  %v5972_v9 = vld [vmem:[%s11732_s1 + $0x950] sm:$0xf0]  ;;  %v5847_v20 = vor.u32 %v7416_v4, %v5844_v5 }
  0xe0   :  { %v7480_v12 = vld [vmem:[%s11732_s1 + $0xa44] sm:$0xf]  ;;  %v6100_v13 = vld [vmem:[%s11732_s1 + $0xa50] sm:$0xf0]  ;;  %v5975_v22 = vor.u32 %v7448_v6, %v5972_v9 }
  0xe1   :  { %v7512_v15 = vld [vmem:[%s11732_s1 + $0xb44] sm:$0xf]  ;;  %v6228_v16 = vld [vmem:[%s11732_s1 + $0xb50] sm:$0xf0]  ;;  %v6103_v23 = vor.u32 %v7480_v12, %v6100_v13 }
  0xe2   :  { %3506 = vmatpush.bf16.msra.mxu0 %v5863_v62  ;;  %3520 = vmatpush.bf16.msra.mxu1 %v5991_v63  ;;  %v7412_v24 = vld [vmem:[%s11732_s1 + $0x824] sm:$0xf]  ;;  %v5828_v25 = vld [vmem:[%s11732_s1 + $0x830] sm:$0xf0]  ;;  %v6231_v28 = vor.u32 %v7512_v15, %v6228_v16 }
  0xe3   :  { %3534 = vmatpush.bf16.msra.mxu2 %v6119_v3  ;;  %v7444_v27 = vld [vmem:[%s11732_s1 + $0x924] sm:$0xf]  ;;  %3548 = vmatpush.bf16.msra.mxu3 %v6247_v7  ;;  %v5956_v29 = vld [vmem:[%s11732_s1 + $0x930] sm:$0xf0]  ;;  %v5831_v38 = vor.u32 %v7412_v24, %v5828_v25 }
  0xe4   :  { %v7476_v30 = vld [vmem:[%s11732_s1 + $0xa24] sm:$0xf]  ;;  %v6084_v31 = vld [vmem:[%s11732_s1 + $0xa30] sm:$0xf0]  ;;  %v5959_v49 = vor.u32 %v7444_v27, %v5956_v29  ;;  %v9390_v27 = vpop.f32.mrf.mxu0 }
  0xe5   :  { %v7508_v34 = vld [vmem:[%s11732_s1 + $0xb24] sm:$0xf]  ;;  %v6212_v35 = vld [vmem:[%s11732_s1 + $0xb30] sm:$0xf0]  ;;  %v6087_v50 = vor.u32 %v7476_v30, %v6084_v31  ;;  %v9398_v30 = vpop.f32.mrf.mxu1 }
  0xe6   :  { %3507 = vmatpush.bf16.msra.mxu0 %v5847_v20  ;;  %v7408_v43 = vld [vmem:[%s11732_s1 + $0x804] sm:$0xf]  ;;  %v5812_v46 = vld [vmem:[%s11732_s1 + $0x810] sm:$0xf0]  ;;  %3521 = vmatpush.bf16.msra.mxu1 %v5975_v22  ;;  %v6215_v54 = vor.u32 %v7508_v34, %v6212_v35 }
  0xe7   :  { %3535 = vmatpush.bf16.msra.mxu2 %v6103_v23  ;;  %v7440_v51 = vld [vmem:[%s11732_s1 + $0x904] sm:$0xf]  ;;  %v5940_v53 = vld [vmem:[%s11732_s1 + $0x910] sm:$0xf0]  ;;  %3549 = vmatpush.bf16.msra.mxu3 %v6231_v28  ;;  %v5815_v63 = vor.u32 %v7408_v43, %v5812_v46 }
  0xe8   :  { %v7472_v10 = vld [vmem:[%s11732_s1 + $0xa04] sm:$0xf]  ;;  %v6068_v56 = vld [vmem:[%s11732_s1 + $0xa10] sm:$0xf0]  ;;  %v5943_v6 = vor.u32 %v7440_v51, %v5940_v53 }
  0xe9   :  { %v7504_v57 = vld [vmem:[%s11732_s1 + $0xb04] sm:$0xf]  ;;  %v6196_v58 = vld [vmem:[%s11732_s1 + $0xb10] sm:$0xf0]  ;;  %v6071_v7 = vor.u32 %v7472_v10, %v6068_v56 }
  0xea   :  { %v7564_v60 = vld [vmem:[%s11732_s1 + $0xce4] sm:$0xf]  ;;  %v6436_v61 = vld [vmem:[%s11732_s1 + $0xcf0] sm:$0xf0]  ;;  %3508 = vmatpush.bf16.msra.mxu0 %v5831_v38  ;;  %3522 = vmatpush.bf16.msra.mxu1 %v5959_v49  ;;  %v6199_v12 = vor.u32 %v7504_v57, %v6196_v58 }
  0xeb   :  { %v7596_v62 = vld [vmem:[%s11732_s1 + $0xde4] sm:$0xf]  ;;  %v6564_v3 = vld [vmem:[%s11732_s1 + $0xdf0] sm:$0xf0]  ;;  %3536 = vmatpush.bf16.msra.mxu2 %v6087_v50  ;;  %3550 = vmatpush.bf16.msra.mxu3 %v6215_v54  ;;  %v6439_v13 = vor.u32 %v7564_v60, %v6436_v61 }
  0xec   :  { %v7628_v4 = vld [vmem:[%s11732_s1 + $0xee4] sm:$0xf]  ;;  %v6692_v5 = vld [vmem:[%s11732_s1 + $0xef0] sm:$0xf0]  ;;  %v6567_v14 = vor.u32 %v7596_v62, %v6564_v3 }
  0xed   :  { %v7660_v8 = vld [vmem:[%s11732_s1 + $0xfe4] sm:$0xf]  ;;  %v6820_v9 = vld [vmem:[%s11732_s1 + $0xff0] sm:$0xf0]  ;;  %v6695_v15 = vor.u32 %v7628_v4, %v6692_v5 }
  0xee   :  { %v7560_v16 = vld [vmem:[%s11732_s1 + $0xcc4] sm:$0xf]  ;;  %v6420_v17 = vld [vmem:[%s11732_s1 + $0xcd0] sm:$0xf0]  ;;  %3509 = vmatpush.bf16.msra.mxu0 %v5815_v63  ;;  %v6823_v22 = vor.u32 %v7660_v8, %v6820_v9  ;;  %3523 = vmatpush.bf16.msra.mxu1 %v5943_v6  ;;  %v9437_v63 = vpop.f32.mrf.mxu2  ;;  %v3287_v8 = vpop.f32.mrf.mxu0 }
  0xef   :  { %v7592_v20 = vld [vmem:[%s11732_s1 + $0xdc4] sm:$0xf]  ;;  %v6548_v23 = vld [vmem:[%s11732_s1 + $0xdd0] sm:$0xf0]  ;;  %3537 = vmatpush.bf16.msra.mxu2 %v6071_v7  ;;  %3551 = vmatpush.bf16.msra.mxu3 %v6199_v12  ;;  %v6423_v31 = vor.u32 %v7560_v16, %v6420_v17  ;;  %v9448_v7 = vpop.f32.mrf.mxu3 }
  0xf0   :  { %v7624_v24 = vld [vmem:[%s11732_s1 + $0xec4] sm:$0xf]  ;;  %v6676_v25 = vld [vmem:[%s11732_s1 + $0xed0] sm:$0xf0]  ;;  %v6551_v34 = vor.u32 %v7592_v20, %v6548_v23 }
  0xf1   :  { %v7656_v28 = vld [vmem:[%s11732_s1 + $0xfc4] sm:$0xf]  ;;  %v6804_v29 = vld [vmem:[%s11732_s1 + $0xfd0] sm:$0xf0]  ;;  %v6679_v35 = vor.u32 %v7624_v24, %v6676_v25  ;;  %3510 = vmatmul.bf16.vlgmr.msra.gmra.mxu0 %v8536_v32  ;;  %3524 = vmatmul.bf16.vlgmr.msra.gmra.mxu1 %v8549_v37 }
  0xf2   :  { %3558 = vmatpush.bf16.msrb.mxu0 %v6439_v13  ;;  %3572 = vmatpush.bf16.msrb.mxu1 %v6567_v14  ;;  %v7556_v38 = vld [vmem:[%s11732_s1 + $0xca4] sm:$0xf]  ;;  %v6404_v43 = vld [vmem:[%s11732_s1 + $0xcb0] sm:$0xf0]  ;;  %v6807_v49 = vor.u32 %v7656_v28, %v6804_v29  ;;  %v3288_v13 = vadd.f32 %v3287_v8, %v9298_v21 }
  0xf3   :  { %3586 = vmatpush.bf16.msrb.mxu2 %v6695_v15  ;;  %v7588_v46 = vld [vmem:[%s11732_s1 + $0xda4] sm:$0xf]  ;;  %3600 = vmatpush.bf16.msrb.mxu3 %v6823_v22  ;;  %v6532_v50 = vld [vmem:[%s11732_s1 + $0xdb0] sm:$0xf0]  ;;  %v6407_v56 = vor.u32 %v7556_v38, %v6404_v43  ;;  %v3301_v15 = vpop.f32.mrf.mxu1 }
  0xf4   :  { %v7620_v51 = vld [vmem:[%s11732_s1 + $0xea4] sm:$0xf]  ;;  %v6660_v53 = vld [vmem:[%s11732_s1 + $0xeb0] sm:$0xf0]  ;;  %3538 = vmatmul.bf16.vlgmr.msra.gmra.mxu2 %v8547_v36  ;;  %3552 = vmatmul.bf16.vlgmr.msra.gmra.mxu3 %v8557_v41  ;;  %v6535_v57 = vor.u32 %v7588_v46, %v6532_v50  ;;  %v3302_v24 = vadd.f32 %v3301_v15, %v3288_v13 }
  0xf5   :  { %v7652_v10 = vld [vmem:[%s11732_s1 + $0xfa4] sm:$0xf]  ;;  %v6788_v54 = vld [vmem:[%s11732_s1 + $0xfb0] sm:$0xf0]  ;;  %v6663_v58 = vor.u32 %v7620_v51, %v6660_v53 }
  0xf6   :  { %3559 = vmatpush.bf16.msrb.mxu0 %v6423_v31  ;;  %3573 = vmatpush.bf16.msrb.mxu1 %v6551_v34  ;;  %v7552_v60 = vld [vmem:[%s11732_s1 + $0xc84] sm:$0xf]  ;;  %v6388_v61 = vld [vmem:[%s11732_s1 + $0xc90] sm:$0xf0]  ;;  %v6791_v3 = vor.u32 %v7652_v10, %v6788_v54  ;;  %v3315_v53 = vpop.f32.mrf.mxu2 }
  0xf7   :  { %3587 = vmatpush.bf16.msrb.mxu2 %v6679_v35  ;;  %v7584_v62 = vld [vmem:[%s11732_s1 + $0xd84] sm:$0xf]  ;;  %3601 = vmatpush.bf16.msrb.mxu3 %v6807_v49  ;;  %v6516_v4 = vld [vmem:[%s11732_s1 + $0xd90] sm:$0xf0]  ;;  %v6391_v14 = vor.u32 %v7552_v60, %v6388_v61 }
  0xf8   :  { %v7616_v5 = vld [vmem:[%s11732_s1 + $0xe84] sm:$0xf]  ;;  %v6644_v6 = vld [vmem:[%s11732_s1 + $0xe90] sm:$0xf0]  ;;  %v6519_v16 = vor.u32 %v7584_v62, %v6516_v4 }
  0xf9   :  { %v7648_v9 = vld [vmem:[%s11732_s1 + $0xf84] sm:$0xf]  ;;  %v6772_v12 = vld [vmem:[%s11732_s1 + $0xf90] sm:$0xf0]  ;;  %v6647_v17 = vor.u32 %v7616_v5, %v6644_v6 }
  0xfa   :  { %3560 = vmatpush.bf16.msrb.mxu0 %v6407_v56  ;;  %3574 = vmatpush.bf16.msrb.mxu1 %v6535_v57  ;;  %v7548_v20 = vld [vmem:[%s11732_s1 + $0xc64] sm:$0xf]  ;;  %v6372_v22 = vld [vmem:[%s11732_s1 + $0xc70] sm:$0xf0]  ;;  %v6775_v21 = vor.u32 %v7648_v9, %v6772_v12  ;;  %v3316_v57 = vadd.f32 %v3315_v53, %v3302_v24  ;;  %v5162_v53 = vld [vmem:[%s11732_s1 + $0x2e8] sm:$0xf] }
  0xfb   :  { %3588 = vmatpush.bf16.msrb.mxu2 %v6663_v58  ;;  %v7580_v23 = vld [vmem:[%s11732_s1 + $0xd64] sm:$0xf]  ;;  %3602 = vmatpush.bf16.msrb.mxu3 %v6791_v3  ;;  %v6500_v25 = vld [vmem:[%s11732_s1 + $0xd70] sm:$0xf0]  ;;  %v6375_v35 = vor.u32 %v7548_v20, %v6372_v22  ;;  %v3329_v58 = vpop.f32.mrf.mxu3 }
  0xfc   :  { %v7612_v28 = vld [vmem:[%s11732_s1 + $0xe64] sm:$0xf]  ;;  %v6628_v29 = vld [vmem:[%s11732_s1 + $0xe70] sm:$0xf0]  ;;  %v6503_v38 = vor.u32 %v7580_v23, %v6500_v25  ;;  %v9505_v3 = vadd.f32 %v3329_v58, %v3316_v57  ;;  %v5290_v57 = vld [vmem:[%s11732_s1 + $0x3e8] sm:$0xf] }
  0xfd   :  { %v7644_v31 = vld [vmem:[%s11732_s1 + $0xf64] sm:$0xf]  ;;  %v6756_v34 = vld [vmem:[%s11732_s1 + $0xf70] sm:$0xf0]  ;;  %v6631_v43 = vor.u32 %v7612_v28, %v6628_v29  ;;  %v7279_v58 = vld [vmem:[%s11732_s1 + $0x3f4] sm:$0xf0] }
  0xfe   :  { %3561 = vmatpush.bf16.msrb.mxu0 %v6391_v14  ;;  %3575 = vmatpush.bf16.msrb.mxu1 %v6519_v16  ;;  %v7544_v46 = vld [vmem:[%s11732_s1 + $0xc44] sm:$0xf]  ;;  %v6356_v49 = vld [vmem:[%s11732_s1 + $0xc50] sm:$0xf0]  ;;  %v6759_v51 = vor.u32 %v7644_v31, %v6756_v34 }
  0xff   :  { %3589 = vmatpush.bf16.msrb.mxu2 %v6647_v17  ;;  %v7576_v50 = vld [vmem:[%s11732_s1 + $0xd44] sm:$0xf]  ;;  %3603 = vmatpush.bf16.msrb.mxu3 %v6775_v21  ;;  %v6484_v10 = vld [vmem:[%s11732_s1 + $0xd50] sm:$0xf0]  ;;  %v6359_v62 = vor.u32 %v7544_v46, %v6356_v49  ;;  %v7183_v46 = vld [vmem:[%s11732_s1 + $0xf4] sm:$0xf0] }
 0x100   :  { %v7608_v54 = vld [vmem:[%s11732_s1 + $0xe44] sm:$0xf]  ;;  %v6612_v56 = vld [vmem:[%s11732_s1 + $0xe50] sm:$0xf0]  ;;  %v6487_v4 = vor.u32 %v7576_v50, %v6484_v10  ;;  %v5034_v49 = vld [vmem:[%s11732_s1 + $0x1e8] sm:$0xf] }
 0x101   :  { %v7640_v60 = vld [vmem:[%s11732_s1 + $0xf44] sm:$0xf]  ;;  %v6740_v61 = vld [vmem:[%s11732_s1 + $0xf50] sm:$0xf0]  ;;  %v6615_v5 = vor.u32 %v7608_v54, %v6612_v56  ;;  %v7247_v10 = vld [vmem:[%s11732_s1 + $0x2f4] sm:$0xf0] }
 0x102   :  { %3562 = vmatpush.bf16.msrb.mxu0 %v6375_v35  ;;  %3576 = vmatpush.bf16.msrb.mxu1 %v6503_v38  ;;  %v7540_v6 = vld [vmem:[%s11732_s1 + $0xc24] sm:$0xf]  ;;  %v6340_v8 = vld [vmem:[%s11732_s1 + $0xc30] sm:$0xf0]  ;;  %v6743_v12 = vor.u32 %v7640_v60, %v6740_v61 }
 0x103   :  { %3590 = vmatpush.bf16.msrb.mxu2 %v6631_v43  ;;  %v7572_v9 = vld [vmem:[%s11732_s1 + $0xd24] sm:$0xf]  ;;  %3604 = vmatpush.bf16.msrb.mxu3 %v6759_v51  ;;  %v6468_v13 = vld [vmem:[%s11732_s1 + $0xd30] sm:$0xf0]  ;;  %v6343_v20 = vor.u32 %v7540_v6, %v6340_v8  ;;  %v4906_v43 = vld [vmem:[%s11732_s1 + $0xe8] sm:$0xf] }
 0x104   :  { %v7604_v14 = vld [vmem:[%s11732_s1 + $0xe24] sm:$0xf]  ;;  %v6596_v15 = vld [vmem:[%s11732_s1 + $0xe30] sm:$0xf0]  ;;  %v6471_v21 = vor.u32 %v7572_v9, %v6468_v13  ;;  %v7215_v51 = vld [vmem:[%s11732_s1 + $0x1f4] sm:$0xf0]  ;;  %v4907_v61 = vor.u32 %v7183_v46, %v4906_v43  ;;  %v5291_v9 = vor.u32 %v7279_v58, %v5290_v57 }
 0x105   :  { %v7636_v16 = vld [vmem:[%s11732_s1 + $0xf24] sm:$0xf]  ;;  %v6724_v17 = vld [vmem:[%s11732_s1 + $0xf30] sm:$0xf0]  ;;  %v6599_v24 = vor.u32 %v7604_v14, %v6596_v15  ;;  %v7179_v6 = vld [vmem:[%s11732_s1 + $0xd4] sm:$0xf0]  ;;  %v9597_v15 = vpop.f32.mrf.mxu0 }
 0x106   :  { %3563 = vmatpush.bf16.msrb.mxu0 %v6359_v62  ;;  %v7536_v22 = vld [vmem:[%s11732_s1 + $0xc04] sm:$0xf]  ;;  %v6324_v23 = vld [vmem:[%s11732_s1 + $0xc10] sm:$0xf0]  ;;  %3577 = vmatpush.bf16.msrb.mxu1 %v6487_v4  ;;  %v6727_v31 = vor.u32 %v7636_v16, %v6724_v17  ;;  %v5035_v62 = vor.u32 %v7215_v51, %v5034_v49  ;;  %v5163_v4 = vor.u32 %v7247_v10, %v5162_v53  ;;  %v5018_v8 = vld [vmem:[%s11732_s1 + $0x1c8] sm:$0xf] }
 0x107   :  { %3591 = vmatpush.bf16.msrb.mxu2 %v6615_v5  ;;  %v7568_v25 = vld [vmem:[%s11732_s1 + $0xd04] sm:$0xf]  ;;  %v6452_v28 = vld [vmem:[%s11732_s1 + $0xd10] sm:$0xf0]  ;;  %3605 = vmatpush.bf16.msrb.mxu3 %v6743_v12  ;;  %v6327_v50 = vor.u32 %v7536_v22, %v6324_v23  ;;  %v4890_v5 = vld [vmem:[%s11732_s1 + $0xc8] sm:$0xf] }
 0x108   :  { %v7600_v29 = vld [vmem:[%s11732_s1 + $0xe04] sm:$0xf]  ;;  %v6580_v34 = vld [vmem:[%s11732_s1 + $0xe10] sm:$0xf0]  ;;  %v6455_v54 = vor.u32 %v7568_v25, %v6452_v28  ;;  %v7211_v12 = vld [vmem:[%s11732_s1 + $0x1d4] sm:$0xf0]  ;;  %v4891_v22 = vor.u32 %v7179_v6, %v4890_v5 }
 0x109   :  { %v7632_v35 = vld [vmem:[%s11732_s1 + $0xf04] sm:$0xf]  ;;  %v6708_v38 = vld [vmem:[%s11732_s1 + $0xf10] sm:$0xf0]  ;;  %v6583_v56 = vor.u32 %v7600_v29, %v6580_v34  ;;  %v5146_v13 = vld [vmem:[%s11732_s1 + $0x2c8] sm:$0xf]  ;;  %v5019_v23 = vor.u32 %v7211_v12, %v5018_v8 }
 0x10a   :  { %3564 = vmatpush.bf16.msrb.mxu0 %v6343_v20  ;;  %3578 = vmatpush.bf16.msrb.mxu1 %v6471_v21  ;;  %v6711_v60 = vor.u32 %v7632_v35, %v6708_v38  ;;  %v7243_v14 = vld [vmem:[%s11732_s1 + $0x2d4] sm:$0xf0]  ;;  %v5274_v16 = vld [vmem:[%s11732_s1 + $0x3c8] sm:$0xf]  ;;  %v9605_v20 = vpop.f32.mrf.mxu1 }
 0x10b   :  { %3592 = vmatpush.bf16.msrb.mxu2 %v6599_v24  ;;  %3606 = vmatpush.bf16.msrb.mxu3 %v6727_v31  ;;  %v7275_v17 = vld [vmem:[%s11732_s1 + $0x3d4] sm:$0xf0]  ;;  %v5147_v21 = vor.u32 %v7243_v14, %v5146_v13  ;;  %v4874_v24 = vld [vmem:[%s11732_s1 + $0xa8] sm:$0xf] }
 0x10c   :  { %v7175_v25 = vld [vmem:[%s11732_s1 + $0xb4] sm:$0xf0]  ;;  %v5002_v28 = vld [vmem:[%s11732_s1 + $0x1a8] sm:$0xf]  ;;  %v5275_v29 = vor.u32 %v7275_v17, %v5274_v16 }
 0x10d   :  { %v7207_v31 = vld [vmem:[%s11732_s1 + $0x1b4] sm:$0xf0]  ;;  %v5130_v34 = vld [vmem:[%s11732_s1 + $0x2a8] sm:$0xf]  ;;  %v4875_v46 = vor.u32 %v7175_v25, %v4874_v24 }
 0x10e   :  { %3565 = vmatpush.bf16.msrb.mxu0 %v6327_v50  ;;  %3579 = vmatpush.bf16.msrb.mxu1 %v6455_v54  ;;  %v7239_v35 = vld [vmem:[%s11732_s1 + $0x2b4] sm:$0xf0]  ;;  %v5258_v38 = vld [vmem:[%s11732_s1 + $0x3a8] sm:$0xf]  ;;  %v5003_v49 = vor.u32 %v7207_v31, %v5002_v28  ;;  %v9644_v54 = vpop.f32.mrf.mxu2 }
 0x10f   :  { %3593 = vmatpush.bf16.msrb.mxu2 %v6583_v56  ;;  %3607 = vmatpush.bf16.msrb.mxu3 %v6711_v60  ;;  %v7271_v43 = vld [vmem:[%s11732_s1 + $0x3b4] sm:$0xf0]  ;;  %v5131_v50 = vor.u32 %v7239_v35, %v5130_v34  ;;  %v4858_v51 = vld [vmem:[%s11732_s1 + $0x88] sm:$0xf] }
 0x110   :  { %v7171_v53 = vld [vmem:[%s11732_s1 + $0x94] sm:$0xf0]  ;;  %v4986_v10 = vld [vmem:[%s11732_s1 + $0x188] sm:$0xf]  ;;  %v5259_v56 = vor.u32 %v7271_v43, %v5258_v38 }
 0x111   :  { %3566 = vmatmul.bf16.vlgmr.msrb.gmra.mxu0 %v8764_v33  ;;  %3580 = vmatmul.bf16.vlgmr.msrb.gmra.mxu1 %v8777_v42  ;;  %v7203_v57 = vld [vmem:[%s11732_s1 + $0x194] sm:$0xf0]  ;;  %v5114_v58 = vld [vmem:[%s11732_s1 + $0x288] sm:$0xf]  ;;  %v4859_v8 = vor.u32 %v7171_v53, %v4858_v51 }
 0x112   :  { %3614 = vmatpush.bf16.msra.mxu0 %v4907_v61  ;;  %3628 = vmatpush.bf16.msra.mxu1 %v5035_v62  ;;  %v7235_v60 = vld [vmem:[%s11732_s1 + $0x294] sm:$0xf0]  ;;  %v9655_v61 = vpop.f32.mrf.mxu3  ;;  %v3343_v62 = vpop.f32.mrf.mxu0  ;;  %v4987_v12 = vor.u32 %v7203_v57, %v4986_v10  ;;  %v4842_v14 = vld [vmem:[%s11732_s1 + $0x68] sm:$0xf] }
 0x113   :  { %3642 = vmatpush.bf16.msra.mxu2 %v5163_v4  ;;  %3656 = vmatpush.bf16.msra.mxu3 %v5291_v9  ;;  %v5242_v4 = vld [vmem:[%s11732_s1 + $0x388] sm:$0xf]  ;;  %v7267_v5 = vld [vmem:[%s11732_s1 + $0x394] sm:$0xf0]  ;;  %v3344_v6 = vadd.f32 %v3343_v62, %v9505_v3  ;;  %v3357_v9 = vpop.f32.mrf.mxu1  ;;  %v5115_v13 = vor.u32 %v7235_v60, %v5114_v58 }
 0x114   :  { %3594 = vmatmul.bf16.vlgmr.msrb.gmra.mxu2 %v8775_v39  ;;  %3608 = vmatmul.bf16.vlgmr.msrb.gmra.mxu3 %v8785_v47  ;;  %v7167_v16 = vld [vmem:[%s11732_s1 + $0x74] sm:$0xf0]  ;;  %v4970_v17 = vld [vmem:[%s11732_s1 + $0x168] sm:$0xf]  ;;  %v5243_v3 = vor.u32 %v7267_v5, %v5242_v4 }
 0x115   :  { %v7231_v24 = vld [vmem:[%s11732_s1 + $0x274] sm:$0xf0]  ;;  %v5226_v25 = vld [vmem:[%s11732_s1 + $0x368] sm:$0xf] }
 0x116   :  { %3615 = vmatpush.bf16.msra.mxu0 %v4891_v22  ;;  %3629 = vmatpush.bf16.msra.mxu1 %v5019_v23  ;;  %v3358_v22 = vadd.f32 %v3357_v9, %v3344_v6  ;;  %v7199_v23 = vld [vmem:[%s11732_s1 + $0x174] sm:$0xf0]  ;;  %v4826_v35 = vld [vmem:[%s11732_s1 + $0x48] sm:$0xf] }
 0x117   :  { %3643 = vmatpush.bf16.msra.mxu2 %v5147_v21  ;;  %3657 = vmatpush.bf16.msra.mxu3 %v5275_v29  ;;  %v5098_v21 = vld [vmem:[%s11732_s1 + $0x268] sm:$0xf]  ;;  %v7263_v28 = vld [vmem:[%s11732_s1 + $0x374] sm:$0xf0]  ;;  %v4843_v29 = vor.u32 %v7167_v16, %v4842_v14  ;;  %v4971_v31 = vor.u32 %v7199_v23, %v4970_v17 }
 0x118   :  { %v5099_v34 = vor.u32 %v7231_v24, %v5098_v21  ;;  %v7163_v38 = vld [vmem:[%s11732_s1 + $0x54] sm:$0xf0]  ;;  %v4954_v43 = vld [vmem:[%s11732_s1 + $0x148] sm:$0xf] }
 0x119   :  { %v5082_v51 = vld [vmem:[%s11732_s1 + $0x248] sm:$0xf]  ;;  %v7227_v53 = vld [vmem:[%s11732_s1 + $0x254] sm:$0xf0]  ;;  %v4827_v60 = vor.u32 %v7163_v38, %v4826_v35 }
 0x11a   :  { %3616 = vmatpush.bf16.msra.mxu0 %v4875_v46  ;;  %3630 = vmatpush.bf16.msra.mxu1 %v5003_v49  ;;  %v5227_v46 = vor.u32 %v7263_v28, %v5226_v25  ;;  %v3371_v49 = vpop.f32.mrf.mxu2  ;;  %v5210_v57 = vld [vmem:[%s11732_s1 + $0x348] sm:$0xf]  ;;  %v7259_v58 = vld [vmem:[%s11732_s1 + $0x354] sm:$0xf0]  ;;  %v5083_v5 = vor.u32 %v7227_v53, %v5082_v51 }
 0x11b   :  { %3644 = vmatpush.bf16.msra.mxu2 %v5131_v50  ;;  %3658 = vmatpush.bf16.msra.mxu3 %v5259_v56  ;;  %v7195_v50 = vld [vmem:[%s11732_s1 + $0x154] sm:$0xf0]  ;;  %v3372_v10 = vadd.f32 %v3371_v49, %v3358_v22  ;;  %v3385_v56 = vpop.f32.mrf.mxu3  ;;  %v4810_v6 = vld [vmem:[%s11732_s1 + $0x28] sm:$0xf] }
 0x11c   :  { %v4955_v4 = vor.u32 %v7195_v50, %v4954_v43  ;;  %v4938_v9 = vld [vmem:[%s11732_s1 + $0x128] sm:$0xf]  ;;  %v7223_v16 = vld [vmem:[%s11732_s1 + $0x234] sm:$0xf0] }
 0x11d   :  { %v9712_v62 = vadd.f32 %v3385_v56, %v3372_v10  ;;  %v5066_v14 = vld [vmem:[%s11732_s1 + $0x228] sm:$0xf]  ;;  %v7155_v21 = vld [vmem:[%s11732_s1 + $0x14] sm:$0xf0] }
 0x11e   :  { %3617 = vmatpush.bf16.msra.mxu0 %v4859_v8  ;;  %3631 = vmatpush.bf16.msra.mxu1 %v4987_v12  ;;  %v7159_v8 = vld [vmem:[%s11732_s1 + $0x34] sm:$0xf0]  ;;  %v5211_v12 = vor.u32 %v7259_v58, %v5210_v57  ;;  %v5194_v17 = vld [vmem:[%s11732_s1 + $0x328] sm:$0xf]  ;;  %v5067_v25 = vor.u32 %v7223_v16, %v5066_v14 }
 0x11f   :  { %3645 = vmatpush.bf16.msra.mxu2 %v5115_v13  ;;  %3659 = vmatpush.bf16.msra.mxu3 %v5243_v3  ;;  %v7191_v13 = vld [vmem:[%s11732_s1 + $0x134] sm:$0xf0]  ;;  %v4811_v22 = vor.u32 %v7159_v8, %v4810_v6  ;;  %v4794_v23 = vld [vmem:[%s11732_s1 + $0x8] sm:$0xf] }
 0x120   :  { %v7255_v3 = vld [vmem:[%s11732_s1 + $0x334] sm:$0xf0]  ;;  %v4939_v24 = vor.u32 %v7191_v13, %v4938_v9  ;;  %v4922_v28 = vld [vmem:[%s11732_s1 + $0x108] sm:$0xf]  ;;  %v4795_v51 = vor.u32 %v7155_v21, %v4794_v23  ;;  %v9804_v23 = vpop.f32.mrf.mxu0 }
 0x121   :  { %v7219_v35 = vld [vmem:[%s11732_s1 + $0x214] sm:$0xf0]  ;;  %v5178_v38 = vld [vmem:[%s11732_s1 + $0x308] sm:$0xf] }
 0x122   :  { %3618 = vmatpush.bf16.msra.mxu0 %v4843_v29  ;;  %3632 = vmatpush.bf16.msra.mxu1 %v4971_v31  ;;  %v7187_v29 = vld [vmem:[%s11732_s1 + $0x114] sm:$0xf0]  ;;  %v5050_v31 = vld [vmem:[%s11732_s1 + $0x208] sm:$0xf] }
 0x123   :  { %3646 = vmatpush.bf16.msra.mxu2 %v5099_v34  ;;  %3660 = vmatpush.bf16.msra.mxu3 %v5227_v46  ;;  %v5195_v34 = vor.u32 %v7255_v3, %v5194_v17  ;;  %v7251_v43 = vld [vmem:[%s11732_s1 + $0x314] sm:$0xf0]  ;;  %v5418_v46 = vld [vmem:[%s11732_s1 + $0x4e8] sm:$0xf]  ;;  %v4923_v57 = vor.u32 %v7187_v29, %v4922_v28  ;;  %v5051_v58 = vor.u32 %v7219_v35, %v5050_v31  ;;  %v9812_v28 = vpop.f32.mrf.mxu1 }
 0x124   :  { %v7311_v49 = vld [vmem:[%s11732_s1 + $0x4f4] sm:$0xf0]  ;;  %v5546_v50 = vld [vmem:[%s11732_s1 + $0x5e8] sm:$0xf] }
 0x125   :  { %v7343_v53 = vld [vmem:[%s11732_s1 + $0x5f4] sm:$0xf0]  ;;  %v5674_v10 = vld [vmem:[%s11732_s1 + $0x6e8] sm:$0xf]  ;;  %v5419_v6 = vor.u32 %v7311_v49, %v5418_v46 }
 0x126   :  { %3619 = vmatpush.bf16.msra.mxu0 %v4827_v60  ;;  %3633 = vmatpush.bf16.msra.mxu1 %v4955_v4  ;;  %v7375_v56 = vld [vmem:[%s11732_s1 + $0x6f4] sm:$0xf0]  ;;  %v5802_v60 = vld [vmem:[%s11732_s1 + $0x7e8] sm:$0xf]  ;;  %v5547_v8 = vor.u32 %v7343_v53, %v5546_v50 }
 0x127   :  { %3647 = vmatpush.bf16.msra.mxu2 %v5083_v5  ;;  %3661 = vmatpush.bf16.msra.mxu3 %v5211_v12  ;;  %v7407_v4 = vld [vmem:[%s11732_s1 + $0x7f4] sm:$0xf0]  ;;  %v5179_v5 = vor.u32 %v7251_v43, %v5178_v38  ;;  %v5675_v9 = vor.u32 %v7375_v56, %v5674_v10  ;;  %v5402_v12 = vld [vmem:[%s11732_s1 + $0x4c8] sm:$0xf]  ;;  %v9845_v56 = vld [vmem:[%s11733_s2] sm:$0xf] }
 0x128   :  { %v7307_v13 = vld [vmem:[%s11732_s1 + $0x4d4] sm:$0xf0]  ;;  %v5530_v14 = vld [vmem:[%s11732_s1 + $0x5c8] sm:$0xf]  ;;  %v5803_v16 = vor.u32 %v7407_v4, %v5802_v60 }
 0x129   :  { %v7339_v17 = vld [vmem:[%s11732_s1 + $0x5d4] sm:$0xf0]  ;;  %v5658_v3 = vld [vmem:[%s11732_s1 + $0x6c8] sm:$0xf] }
 0x12a   :  { %3620 = vmatpush.bf16.msra.mxu0 %v4811_v22  ;;  %3634 = vmatpush.bf16.msra.mxu1 %v4939_v24  ;;  %v7371_v22 = vld [vmem:[%s11732_s1 + $0x6d4] sm:$0xf0]  ;;  %v5786_v21 = vld [vmem:[%s11732_s1 + $0x7c8] sm:$0xf]  ;;  %v5531_v29 = vor.u32 %v7339_v17, %v5530_v14 }
 0x12b   :  { %3648 = vmatpush.bf16.msra.mxu2 %v5067_v25  ;;  %3662 = vmatpush.bf16.msra.mxu3 %v5195_v34  ;;  %v7403_v24 = vld [vmem:[%s11732_s1 + $0x7d4] sm:$0xf0]  ;;  %v5403_v25 = vor.u32 %v7307_v13, %v5402_v12  ;;  %v5659_v31 = vor.u32 %v7371_v22, %v5658_v3  ;;  %v5386_v34 = vld [vmem:[%s11732_s1 + $0x4a8] sm:$0xf]  ;;  %v9874_v22 = vpop.f32.mrf.mxu3 }
 0x12c   :  { %v7303_v35 = vld [vmem:[%s11732_s1 + $0x4b4] sm:$0xf0]  ;;  %v5514_v38 = vld [vmem:[%s11732_s1 + $0x5a8] sm:$0xf]  ;;  %v5787_v43 = vor.u32 %v7403_v24, %v5786_v21 }
 0x12d   :  { %v7335_v46 = vld [vmem:[%s11732_s1 + $0x5b4] sm:$0xf0]  ;;  %v5642_v49 = vld [vmem:[%s11732_s1 + $0x6a8] sm:$0xf]  ;;  %v5387_v10 = vor.u32 %v7303_v35, %v5386_v34 }
 0x12e   :  { %3621 = vmatpush.bf16.msra.mxu0 %v4795_v51  ;;  %3635 = vmatpush.bf16.msra.mxu1 %v4923_v57  ;;  %v7367_v50 = vld [vmem:[%s11732_s1 + $0x6b4] sm:$0xf0]  ;;  %v5770_v51 = vld [vmem:[%s11732_s1 + $0x7a8] sm:$0xf]  ;;  %v11742_v57 = vperm.slane %v9845_v56, 1  ;;  %v3399_v3 = vpop.f32.mrf.mxu0 }
 0x12f   :  { %3649 = vmatpush.bf16.msra.mxu2 %v5051_v58  ;;  %3663 = vmatpush.bf16.msra.mxu3 %v5179_v5  ;;  %v7399_v53 = vld [vmem:[%s11732_s1 + $0x7b4] sm:$0xf0]  ;;  %v5515_v58 = vor.u32 %v7335_v46, %v5514_v38  ;;  %v5643_v60 = vor.u32 %v7367_v50, %v5642_v49  ;;  %v5370_v4 = vld [vmem:[%s11732_s1 + $0x488] sm:$0xf]  ;;  %v3413_v38 = vpop.f32.mrf.mxu1 }
 0x130   :  { %v7299_v5 = vld [vmem:[%s11732_s1 + $0x494] sm:$0xf0]  ;;  %v5626_v13 = vld [vmem:[%s11732_s1 + $0x688] sm:$0xf]  ;;  %v3400_v24 = vadd.f32 %v3399_v3, %v11742_v57 }
 0x131   :  { %3622 = vmatmul.bf16.vlgmr.msra.gmra.mxu0 %v8086_v59  ;;  %3636 = vmatmul.bf16.vlgmr.msra.gmra.mxu1 %v8122_v11  ;;  %v7331_v12 = vld [vmem:[%s11732_s1 + $0x594] sm:$0xf0]  ;;  %v5371_v21 = vor.u32 %v7299_v5, %v5370_v4  ;;  %v5482_v35 = vld [vmem:[%s11732_s1 + $0x568] sm:$0xf] }
 0x132   :  { %3670 = vmatpush.bf16.msrb.mxu0 %v5419_v6  ;;  %3684 = vmatpush.bf16.msrb.mxu1 %v5547_v8  ;;  %v5498_v6 = vld [vmem:[%s11732_s1 + $0x588] sm:$0xf]  ;;  %v9857_v8 = vpop.f32.mrf.mxu2  ;;  %v7363_v14 = vld [vmem:[%s11732_s1 + $0x694] sm:$0xf0] }
 0x133   :  { %3698 = vmatpush.bf16.msrb.mxu2 %v5675_v9  ;;  %3712 = vmatpush.bf16.msrb.mxu3 %v5803_v16  ;;  %v5771_v9 = vor.u32 %v7399_v53, %v5770_v51  ;;  %v5754_v16 = vld [vmem:[%s11732_s1 + $0x788] sm:$0xf]  ;;  %v7395_v17 = vld [vmem:[%s11732_s1 + $0x794] sm:$0xf0]  ;;  %v3414_v51 = vadd.f32 %v3413_v38, %v3400_v24 }
 0x134   :  { %3650 = vmatmul.bf16.vlgmr.msra.gmra.mxu2 %v8100_v2  ;;  %3664 = vmatmul.bf16.vlgmr.msra.gmra.mxu3 %v8136_v18  ;;  %v7295_v34 = vld [vmem:[%s11732_s1 + $0x474] sm:$0xf0]  ;;  %v5610_v49 = vld [vmem:[%s11732_s1 + $0x668] sm:$0xf] }
 0x135   :  { %v7327_v46 = vld [vmem:[%s11732_s1 + $0x574] sm:$0xf0]  ;;  %v5738_v53 = vld [vmem:[%s11732_s1 + $0x768] sm:$0xf] }
 0x136   :  { %3671 = vmatpush.bf16.msrb.mxu0 %v5403_v25  ;;  %3685 = vmatpush.bf16.msrb.mxu1 %v5531_v29  ;;  %v5499_v25 = vor.u32 %v7331_v12, %v5498_v6  ;;  %v5627_v29 = vor.u32 %v7363_v14, %v5626_v13  ;;  %v7359_v50 = vld [vmem:[%s11732_s1 + $0x674] sm:$0xf0]  ;;  %v5338_v5 = vld [vmem:[%s11732_s1 + $0x448] sm:$0xf] }
 0x137   :  { %3699 = vmatpush.bf16.msrb.mxu2 %v5659_v31  ;;  %3713 = vmatpush.bf16.msrb.mxu3 %v5787_v43  ;;  %v5354_v31 = vld [vmem:[%s11732_s1 + $0x468] sm:$0xf]  ;;  %v5755_v43 = vor.u32 %v7395_v17, %v5754_v16  ;;  %v5611_v4 = vor.u32 %v7359_v50, %v5610_v49  ;;  %v7291_v6 = vld [vmem:[%s11732_s1 + $0x454] sm:$0xf0] }
 0x138   :  { %v7323_v13 = vld [vmem:[%s11732_s1 + $0x554] sm:$0xf0]  ;;  %v5594_v14 = vld [vmem:[%s11732_s1 + $0x648] sm:$0xf] }
 0x139   :  { %v7355_v16 = vld [vmem:[%s11732_s1 + $0x654] sm:$0xf0]  ;;  %v5722_v3 = vld [vmem:[%s11732_s1 + $0x748] sm:$0xf] }
 0x13a   :  { %3672 = vmatpush.bf16.msrb.mxu0 %v5387_v10  ;;  %3686 = vmatpush.bf16.msrb.mxu1 %v5515_v58  ;;  %v7391_v10 = vld [vmem:[%s11732_s1 + $0x774] sm:$0xf0]  ;;  %v5355_v58 = vor.u32 %v7295_v34, %v5354_v31  ;;  %v3427_v17 = vpop.f32.mrf.mxu2  ;;  %v5595_v34 = vor.u32 %v7355_v16, %v5594_v14  ;;  %v5562_v14 = vld [vmem:[%s11732_s1 + $0x608] sm:$0xf] }
 0x13b   :  { %3700 = vmatpush.bf16.msrb.mxu2 %v5643_v60  ;;  %3714 = vmatpush.bf16.msrb.mxu3 %v5771_v9  ;;  %v5483_v60 = vor.u32 %v7327_v46, %v5482_v35  ;;  %v5466_v9 = vld [vmem:[%s11732_s1 + $0x548] sm:$0xf]  ;;  %v5739_v12 = vor.u32 %v7391_v10, %v5738_v53  ;;  %v3428_v24 = vadd.f32 %v3427_v17, %v3414_v51  ;;  %v7287_v38 = vld [vmem:[%s11732_s1 + $0x434] sm:$0xf0] }
 0x13c   :  { %v5467_v31 = vor.u32 %v7323_v13, %v5466_v9  ;;  %v5322_v35 = vld [vmem:[%s11732_s1 + $0x428] sm:$0xf]  ;;  %v7319_v50 = vld [vmem:[%s11732_s1 + $0x534] sm:$0xf0] }
 0x13d   :  { %v5578_v51 = vld [vmem:[%s11732_s1 + $0x628] sm:$0xf]  ;;  %v7351_v53 = vld [vmem:[%s11732_s1 + $0x634] sm:$0xf0] }
 0x13e   :  { %3673 = vmatpush.bf16.msrb.mxu0 %v5371_v21  ;;  %3687 = vmatpush.bf16.msrb.mxu1 %v5499_v25  ;;  %v7387_v21 = vld [vmem:[%s11732_s1 + $0x754] sm:$0xf0]  ;;  %v5339_v25 = vor.u32 %v7291_v6, %v5338_v5  ;;  %v5706_v10 = vld [vmem:[%s11732_s1 + $0x728] sm:$0xf]  ;;  %v5579_v9 = vor.u32 %v7351_v53, %v5578_v51 }
 0x13f   :  { %3701 = vmatpush.bf16.msrb.mxu2 %v5627_v29  ;;  %3715 = vmatpush.bf16.msrb.mxu3 %v5755_v43  ;;  %v3441_v29 = vpop.f32.mrf.mxu3  ;;  %v5450_v43 = vld [vmem:[%s11732_s1 + $0x528] sm:$0xf]  ;;  %v5723_v49 = vor.u32 %v7387_v21, %v5722_v3  ;;  %v7283_v5 = vld [vmem:[%s11732_s1 + $0x414] sm:$0xf0] }
 0x140   :  { %v9935_v46 = vadd.f32 %v3441_v29, %v3428_v24  ;;  %v5451_v6 = vor.u32 %v7319_v50, %v5450_v43  ;;  %v7315_v13 = vld [vmem:[%s11732_s1 + $0x514] sm:$0xf0]  ;;  %v5690_v3 = vld [vmem:[%s11732_s1 + $0x708] sm:$0xf] }
 0x141   :  { %v7347_v17 = vld [vmem:[%s11732_s1 + $0x614] sm:$0xf0]  ;;  %v5930_v24 = vld [vmem:[%s11732_s1 + $0x8e8] sm:$0xf] }
 0x142   :  { %3674 = vmatpush.bf16.msrb.mxu0 %v5355_v58  ;;  %3688 = vmatpush.bf16.msrb.mxu1 %v5483_v60  ;;  %v7383_v58 = vld [vmem:[%s11732_s1 + $0x734] sm:$0xf0]  ;;  %v5323_v60 = vor.u32 %v7287_v38, %v5322_v35  ;;  %v6058_v29 = vld [vmem:[%s11732_s1 + $0x9e8] sm:$0xf] }
 0x143   :  { %3702 = vmatpush.bf16.msrb.mxu2 %v5611_v4  ;;  %3716 = vmatpush.bf16.msrb.mxu3 %v5739_v12  ;;  %v5306_v4 = vld [vmem:[%s11732_s1 + $0x408] sm:$0xf]  ;;  %v5707_v16 = vor.u32 %v7383_v58, %v5706_v10  ;;  %v7379_v21 = vld [vmem:[%s11732_s1 + $0x714] sm:$0xf0] }
 0x144   :  { %v5434_v12 = vld [vmem:[%s11732_s1 + $0x508] sm:$0xf]  ;;  %v7503_v38 = vld [vmem:[%s11732_s1 + $0xaf4] sm:$0xf0]  ;;  %v5691_v53 = vor.u32 %v7379_v21, %v5690_v3  ;;  %v10026_v21 = vpop.f32.mrf.mxu1 }
 0x145   :  { %v6186_v35 = vld [vmem:[%s11732_s1 + $0xae8] sm:$0xf]  ;;  %v5435_v43 = vor.u32 %v7315_v13, %v5434_v12  ;;  %v7535_v51 = vld [vmem:[%s11732_s1 + $0xbf4] sm:$0xf0] }
 0x146   :  { %3675 = vmatpush.bf16.msrb.mxu0 %v5339_v25  ;;  %3689 = vmatpush.bf16.msrb.mxu1 %v5467_v31  ;;  %v7439_v25 = vld [vmem:[%s11732_s1 + $0x8f4] sm:$0xf0]  ;;  %v5307_v31 = vor.u32 %v7283_v5, %v5306_v4  ;;  %v6314_v50 = vld [vmem:[%s11732_s1 + $0xbe8] sm:$0xf]  ;;  %v10000_v4 = vpop.f32.mrf.mxu0 }
 0x147   :  { %3703 = vmatpush.bf16.msrb.mxu2 %v5595_v34  ;;  %3717 = vmatpush.bf16.msrb.mxu3 %v5723_v49  ;;  %v7471_v34 = vld [vmem:[%s11732_s1 + $0x9f4] sm:$0xf0]  ;;  %v5563_v49 = vor.u32 %v7347_v17, %v5562_v14  ;;  %v5931_v10 = vor.u32 %v7439_v25, %v5930_v24  ;;  %v5914_v5 = vld [vmem:[%s11732_s1 + $0x8c8] sm:$0xf]  ;;  %v6315_v12 = vor.u32 %v7535_v51, %v6314_v50 }
 0x148   :  { %v6059_v58 = vor.u32 %v7471_v34, %v6058_v29  ;;  %v7467_v13 = vld [vmem:[%s11732_s1 + $0x9d4] sm:$0xf0]  ;;  %v6170_v14 = vld [vmem:[%s11732_s1 + $0xac8] sm:$0xf] }
 0x149   :  { %v6298_v17 = vld [vmem:[%s11732_s1 + $0xbc8] sm:$0xf]  ;;  %v7531_v3 = vld [vmem:[%s11732_s1 + $0xbd4] sm:$0xf0] }
 0x14a   :  { %3676 = vmatpush.bf16.msrb.mxu0 %v5323_v60  ;;  %3690 = vmatpush.bf16.msrb.mxu1 %v5451_v6  ;;  %v6187_v60 = vor.u32 %v7503_v38, %v6186_v35  ;;  %v7435_v6 = vld [vmem:[%s11732_s1 + $0x8d4] sm:$0xf0]  ;;  %v6026_v35 = vld [vmem:[%s11732_s1 + $0x9a8] sm:$0xf]  ;;  %v6299_v38 = vor.u32 %v7531_v3, %v6298_v17 }
 0x14b   :  { %3704 = vmatpush.bf16.msrb.mxu2 %v5579_v9  ;;  %3718 = vmatpush.bf16.msrb.mxu3 %v5707_v16  ;;  %v6042_v9 = vld [vmem:[%s11732_s1 + $0x9c8] sm:$0xf]  ;;  %v7499_v16 = vld [vmem:[%s11732_s1 + $0xad4] sm:$0xf0]  ;;  %v5915_v24 = vor.u32 %v7435_v6, %v5914_v5 }
 0x14c   :  { %v6043_v25 = vor.u32 %v7467_v13, %v6042_v9  ;;  %v6171_v29 = vor.u32 %v7499_v16, %v6170_v14  ;;  %v7431_v34 = vld [vmem:[%s11732_s1 + $0x8b4] sm:$0xf0]  ;;  %v6282_v51 = vld [vmem:[%s11732_s1 + $0xba8] sm:$0xf]  ;;  %v10067_v14 = vpop.f32.mrf.mxu3 }
 0x14d   :  { %v7495_v50 = vld [vmem:[%s11732_s1 + $0xab4] sm:$0xf0]  ;;  %v5882_v6 = vld [vmem:[%s11732_s1 + $0x888] sm:$0xf] }
 0x14e   :  { %3677 = vmatpush.bf16.msrb.mxu0 %v5307_v31  ;;  %3691 = vmatpush.bf16.msrb.mxu1 %v5435_v43  ;;  %v5898_v31 = vld [vmem:[%s11732_s1 + $0x8a8] sm:$0xf]  ;;  %v7463_v43 = vld [vmem:[%s11732_s1 + $0x9b4] sm:$0xf0] }
 0x14f   :  { %3705 = vmatpush.bf16.msrb.mxu2 %v5563_v49  ;;  %3719 = vmatpush.bf16.msrb.mxu3 %v5691_v53  ;;  %v6154_v49 = vld [vmem:[%s11732_s1 + $0xaa8] sm:$0xf]  ;;  %v7527_v53 = vld [vmem:[%s11732_s1 + $0xbb4] sm:$0xf0] }
 0x150   :  { %v6155_v5 = vor.u32 %v7495_v50, %v6154_v49  ;;  %v7427_v9 = vld [vmem:[%s11732_s1 + $0x894] sm:$0xf0]  ;;  %v6283_v13 = vor.u32 %v7527_v53, %v6282_v51  ;;  %v6138_v17 = vld [vmem:[%s11732_s1 + $0xa88] sm:$0xf] }
 0x151   :  { %3678 = vmatmul.bf16.vlgmr.msrb.gmra.mxu0 %v8308_v40  ;;  %3692 = vmatmul.bf16.vlgmr.msrb.gmra.mxu1 %v8321_v45  ;;  %v7459_v16 = vld [vmem:[%s11732_s1 + $0x994] sm:$0xf0]  ;;  %v5866_v49 = vld [vmem:[%s11732_s1 + $0x868] sm:$0xf] }
 0x152   :  { %3726 = vmatpush.bf16.msra.mxu0 %v5931_v10  ;;  %3740 = vmatpush.bf16.msra.mxu1 %v6059_v58  ;;  %v5899_v10 = vor.u32 %v7431_v34, %v5898_v31  ;;  %v10056_v58 = vpop.f32.mrf.mxu2  ;;  %v7491_v3 = vld [vmem:[%s11732_s1 + $0xa94] sm:$0xf0]  ;;  %v5883_v34 = vor.u32 %v7427_v9, %v5882_v6  ;;  %v5994_v51 = vld [vmem:[%s11732_s1 + $0x968] sm:$0xf] }
 0x153   :  { %3754 = vmatpush.bf16.msra.mxu2 %v6187_v60  ;;  %3768 = vmatpush.bf16.msra.mxu3 %v6315_v12  ;;  %v6027_v60 = vor.u32 %v7463_v43, %v6026_v35  ;;  %v6010_v12 = vld [vmem:[%s11732_s1 + $0x988] sm:$0xf]  ;;  %v3469_v43 = vpop.f32.mrf.mxu1  ;;  %v7423_v50 = vld [vmem:[%s11732_s1 + $0x874] sm:$0xf0] }
 0x154   :  { %3706 = vmatmul.bf16.vlgmr.msrb.gmra.mxu2 %v8319_v44  ;;  %3720 = vmatmul.bf16.vlgmr.msrb.gmra.mxu3 %v8329_v48  ;;  %v6011_v35 = vor.u32 %v7459_v16, %v6010_v12  ;;  %v6250_v6 = vld [vmem:[%s11732_s1 + $0xb68] sm:$0xf]  ;;  %v7519_v9 = vld [vmem:[%s11732_s1 + $0xb74] sm:$0xf0]  ;;  %v5867_v12 = vor.u32 %v7423_v50, %v5866_v49 }
 0x155   :  { %v7515_v49 = vld [vmem:[%s11732_s1 + $0xb54] sm:$0xf0] }
 0x156   :  { %3727 = vmatpush.bf16.msra.mxu0 %v5915_v24  ;;  %3741 = vmatpush.bf16.msra.mxu1 %v6043_v25  ;;  %v3455_v24 = vpop.f32.mrf.mxu0  ;;  %v6266_v25 = vld [vmem:[%s11732_s1 + $0xb88] sm:$0xf] }
 0x157   :  { %3755 = vmatpush.bf16.msra.mxu2 %v6171_v29  ;;  %3769 = vmatpush.bf16.msra.mxu3 %v6299_v38  ;;  %v7523_v29 = vld [vmem:[%s11732_s1 + $0xb94] sm:$0xf0]  ;;  %v3456_v31 = vadd.f32 %v3455_v24, %v9935_v46  ;;  %v6139_v38 = vor.u32 %v7491_v3, %v6138_v17  ;;  %v5850_v17 = vld [vmem:[%s11732_s1 + $0x848] sm:$0xf]  ;;  %v3497_v50 = vpop.f32.mrf.mxu3 }
 0x158   :  { %v6267_v46 = vor.u32 %v7523_v29, %v6266_v25  ;;  %v7419_v3 = vld [vmem:[%s11732_s1 + $0x854] sm:$0xf0]  ;;  %v5978_v24 = vld [vmem:[%s11732_s1 + $0x948] sm:$0xf]  ;;  %v6251_v25 = vor.u32 %v7519_v9, %v6250_v6 }
 0x159   :  { %v3470_v53 = vadd.f32 %v3469_v43, %v3456_v31  ;;  %v7451_v31 = vld [vmem:[%s11732_s1 + $0x954] sm:$0xf0]  ;;  %v6234_v43 = vld [vmem:[%s11732_s1 + $0xb48] sm:$0xf] }
 0x15a   :  { %3728 = vmatpush.bf16.msra.mxu0 %v5899_v10  ;;  %3742 = vmatpush.bf16.msra.mxu1 %v6027_v60  ;;  %v7455_v10 = vld [vmem:[%s11732_s1 + $0x974] sm:$0xf0]  ;;  %v6122_v60 = vld [vmem:[%s11732_s1 + $0xa68] sm:$0xf]  ;;  %v3483_v29 = vpop.f32.mrf.mxu2  ;;  %v6235_v9 = vor.u32 %v7515_v49, %v6234_v43 }
 0x15b   :  { %3756 = vmatpush.bf16.msra.mxu2 %v6155_v5  ;;  %3770 = vmatpush.bf16.msra.mxu3 %v6283_v13  ;;  %v7487_v5 = vld [vmem:[%s11732_s1 + $0xa74] sm:$0xf0]  ;;  %v5995_v13 = vor.u32 %v7455_v10, %v5994_v51  ;;  %v5851_v51 = vor.u32 %v7419_v3, %v5850_v17  ;;  %v5979_v10 = vor.u32 %v7451_v31, %v5978_v24  ;;  %v5962_v6 = vld [vmem:[%s11732_s1 + $0x928] sm:$0xf] }
 0x15c   :  { %v6123_v16 = vor.u32 %v7487_v5, %v6122_v60  ;;  %v7415_v5 = vld [vmem:[%s11732_s1 + $0x834] sm:$0xf0]  ;;  %v6218_v17 = vld [vmem:[%s11732_s1 + $0xb28] sm:$0xf] }
 0x15d   :  { %v7511_v3 = vld [vmem:[%s11732_s1 + $0xb34] sm:$0xf0]  ;;  %v6074_v43 = vld [vmem:[%s11732_s1 + $0xa08] sm:$0xf] }
 0x15e   :  { %3729 = vmatpush.bf16.msra.mxu0 %v5883_v34  ;;  %3743 = vmatpush.bf16.msra.mxu1 %v6011_v35  ;;  %v6106_v34 = vld [vmem:[%s11732_s1 + $0xa48] sm:$0xf]  ;;  %v7483_v35 = vld [vmem:[%s11732_s1 + $0xa54] sm:$0xf0]  ;;  %v6219_v49 = vor.u32 %v7511_v3, %v6218_v17 }
 0x15f   :  { %3757 = vmatpush.bf16.msra.mxu2 %v6139_v38  ;;  %3771 = vmatpush.bf16.msra.mxu3 %v6267_v46  ;;  %v3484_v38 = vadd.f32 %v3483_v29, %v3470_v53  ;;  %v6107_v60 = vor.u32 %v7483_v35, %v6106_v34  ;;  %v5834_v53 = vld [vmem:[%s11732_s1 + $0x828] sm:$0xf]  ;;  %v7411_v29 = vld [vmem:[%s11732_s1 + $0x814] sm:$0xf0] }
 0x160   :  { %v5835_v24 = vor.u32 %v7415_v5, %v5834_v53  ;;  %v5946_v35 = vld [vmem:[%s11732_s1 + $0x908] sm:$0xf]  ;;  %v7567_v53 = vld [vmem:[%s11732_s1 + $0xcf4] sm:$0xf0] }
 0x161   :  { %v10133_v46 = vadd.f32 %v3497_v50, %v3484_v38  ;;  %v7443_v38 = vld [vmem:[%s11732_s1 + $0x914] sm:$0xf0]  ;;  %v6570_v5 = vld [vmem:[%s11732_s1 + $0xde8] sm:$0xf] }
 0x162   :  { %3730 = vmatpush.bf16.msra.mxu0 %v5867_v12  ;;  %3744 = vmatpush.bf16.msra.mxu1 %v5995_v13  ;;  %v7447_v12 = vld [vmem:[%s11732_s1 + $0x934] sm:$0xf0]  ;;  %v6090_v13 = vld [vmem:[%s11732_s1 + $0xa28] sm:$0xf] }
 0x163   :  { %3758 = vmatpush.bf16.msra.mxu2 %v6123_v16  ;;  %3772 = vmatpush.bf16.msra.mxu3 %v6251_v25  ;;  %v7479_v16 = vld [vmem:[%s11732_s1 + $0xa34] sm:$0xf0]  ;;  %v5818_v25 = vld [vmem:[%s11732_s1 + $0x808] sm:$0xf]  ;;  %v5963_v31 = vor.u32 %v7447_v12, %v5962_v6 }
 0x164   :  { %v6091_v34 = vor.u32 %v7479_v16, %v6090_v13  ;;  %v7475_v50 = vld [vmem:[%s11732_s1 + $0xa14] sm:$0xf0]  ;;  %v5819_v6 = vor.u32 %v7411_v29, %v5818_v25  ;;  %v6698_v12 = vld [vmem:[%s11732_s1 + $0xee8] sm:$0xf]  ;;  %v5947_v16 = vor.u32 %v7443_v38, %v5946_v35 }
 0x165   :  { %v7631_v13 = vld [vmem:[%s11732_s1 + $0xef4] sm:$0xf0]  ;;  %v6075_v17 = vor.u32 %v7475_v50, %v6074_v43  ;;  %v6826_v3 = vld [vmem:[%s11732_s1 + $0xfe8] sm:$0xf] }
 0x166   :  { %3731 = vmatpush.bf16.msra.mxu0 %v5851_v51  ;;  %3745 = vmatpush.bf16.msra.mxu1 %v5979_v10  ;;  %v6202_v51 = vld [vmem:[%s11732_s1 + $0xb08] sm:$0xf]  ;;  %v7507_v10 = vld [vmem:[%s11732_s1 + $0xb14] sm:$0xf0]  ;;  %v6699_v57 = vor.u32 %v7631_v13, %v6698_v12 }
 0x167   :  { %3759 = vmatpush.bf16.msra.mxu2 %v6107_v60  ;;  %3773 = vmatpush.bf16.msra.mxu3 %v6235_v9  ;;  %v6442_v60 = vld [vmem:[%s11732_s1 + $0xce8] sm:$0xf]  ;;  %v7599_v9 = vld [vmem:[%s11732_s1 + $0xdf4] sm:$0xf0]  ;;  %v6203_v25 = vor.u32 %v7507_v10, %v6202_v51  ;;  %v10225_v51 = vpop.f32.mrf.mxu0 }
 0x168   :  { %v6443_v29 = vor.u32 %v7567_v53, %v6442_v60  ;;  %v6571_v0 = vor.u32 %v7599_v9, %v6570_v5  ;;  %v6554_v35 = vld [vmem:[%s11732_s1 + $0xdc8] sm:$0xf]  ;;  %v7595_v43 = vld [vmem:[%s11732_s1 + $0xdd4] sm:$0xf0]  ;;  %v10233_v53 = vpop.f32.mrf.mxu1 }
 0x169   :  { %v7627_v50 = vld [vmem:[%s11732_s1 + $0xed4] sm:$0xf0]  ;;  %v6810_v10 = vld [vmem:[%s11732_s1 + $0xfc8] sm:$0xf] }
 0x16a   :  { %3732 = vmatpush.bf16.msra.mxu0 %v5835_v24  ;;  %3746 = vmatpush.bf16.msra.mxu1 %v5963_v31  ;;  %v7663_v24 = vld [vmem:[%s11732_s1 + $0xff4] sm:$0xf0]  ;;  %v6426_v31 = vld [vmem:[%s11732_s1 + $0xcc8] sm:$0xf] }
 0x16b   :  { %3760 = vmatpush.bf16.msra.mxu2 %v6091_v34  ;;  %3774 = vmatpush.bf16.msra.mxu3 %v6219_v49  ;;  %v7563_v34 = vld [vmem:[%s11732_s1 + $0xcd4] sm:$0xf0]  ;;  %v6827_v38 = vor.u32 %v7663_v24, %v6826_v3  ;;  %v6682_v49 = vld [vmem:[%s11732_s1 + $0xec8] sm:$0xf] }
 0x16c   :  { %v7659_v60 = vld [vmem:[%s11732_s1 + $0xfd4] sm:$0xf0]  ;;  %v6427_v5 = vor.u32 %v7563_v34, %v6426_v31  ;;  %v6683_v9 = vor.u32 %v7627_v50, %v6682_v49  ;;  %v6410_v12 = vld [vmem:[%s11732_s1 + $0xca8] sm:$0xf]  ;;  %v11743_v49 = vperm.slane %v9845_v56, 1 }
 0x16d   :  { %v7559_v13 = vld [vmem:[%s11732_s1 + $0xcb4] sm:$0xf0]  ;;  %v6794_v24 = vld [vmem:[%s11732_s1 + $0xfa8] sm:$0xf] }
 0x16e   :  { %3733 = vmatpush.bf16.msra.mxu0 %v5819_v6  ;;  %3747 = vmatpush.bf16.msra.mxu1 %v5947_v16  ;;  %v6555_v6 = vor.u32 %v7595_v43, %v6554_v35  ;;  %v6538_v16 = vld [vmem:[%s11732_s1 + $0xda8] sm:$0xf]  ;;  %v7623_v3 = vld [vmem:[%s11732_s1 + $0xeb4] sm:$0xf0]  ;;  %v3402_v50 = vadd.f32 %v10000_v4, %v11743_v49 }
 0x16f   :  { %3761 = vmatpush.bf16.msra.mxu2 %v6075_v17  ;;  %3775 = vmatpush.bf16.msra.mxu3 %v6203_v25  ;;  %v6811_v17 = vor.u32 %v7659_v60, %v6810_v10  ;;  %v7655_v25 = vld [vmem:[%s11732_s1 + $0xfb4] sm:$0xf0]  ;;  %v6394_v35 = vld [vmem:[%s11732_s1 + $0xc88] sm:$0xf]  ;;  %v10275_v10 = vpop.f32.mrf.mxu2  ;;  %v3511_v56 = vpop.f32.mrf.mxu0 }
 0x170   :  { %v6522_v43 = vld [vmem:[%s11732_s1 + $0xd88] sm:$0xf]  ;;  %v6795_v60 = vor.u32 %v7655_v25, %v6794_v24  ;;  %v7551_v25 = vld [vmem:[%s11732_s1 + $0xc74] sm:$0xf0] }
 0x171   :  { %3734 = vmatmul.bf16.vlgmr.msra.gmra.mxu0 %v8536_v32  ;;  %3748 = vmatmul.bf16.vlgmr.msra.gmra.mxu1 %v8549_v37  ;;  %v6778_v4 = vld [vmem:[%s11732_s1 + $0xf88] sm:$0xf] }
 0x172   :  { %3782 = vmatpush.bf16.msrb.mxu0 %v6443_v29  ;;  %3796 = vmatpush.bf16.msrb.mxu1 %v6571_v0  ;;  %v7591_v0 = vld [vmem:[%s11732_s1 + $0xdb4] sm:$0xf0]  ;;  %v6411_v29 = vor.u32 %v7559_v13, %v6410_v12  ;;  %v10286_v12 = vpop.f32.mrf.mxu3  ;;  %v6378_v24 = vld [vmem:[%s11732_s1 + $0xc68] sm:$0xf] }
 0x173   :  { %3810 = vmatpush.bf16.msrb.mxu2 %v6699_v57  ;;  %3824 = vmatpush.bf16.msrb.mxu3 %v6827_v38  ;;  %v6666_v57 = vld [vmem:[%s11732_s1 + $0xea8] sm:$0xf]  ;;  %v6539_v31 = vor.u32 %v7591_v0, %v6538_v16  ;;  %v7555_v38 = vld [vmem:[%s11732_s1 + $0xc94] sm:$0xf0]  ;;  %v3512_v16 = vadd.f32 %v3511_v56, %v10133_v46  ;;  %v3525_v0 = vpop.f32.mrf.mxu1  ;;  %v3416_v46 = vadd.f32 %v10026_v21, %v3402_v50 }
 0x174   :  { %3762 = vmatmul.bf16.vlgmr.msra.gmra.mxu2 %v8547_v36  ;;  %3776 = vmatmul.bf16.vlgmr.msra.gmra.mxu3 %v8557_v41  ;;  %v6667_v34 = vor.u32 %v7623_v3, %v6666_v57  ;;  %v7651_v13 = vld [vmem:[%s11732_s1 + $0xf94] sm:$0xf0]  ;;  %v6762_v49 = vld [vmem:[%s11732_s1 + $0xf68] sm:$0xf]  ;;  %v6379_v50 = vor.u32 %v7551_v25, %v6378_v24 }
 0x175   :  { %v7647_v21 = vld [vmem:[%s11732_s1 + $0xf74] sm:$0xf0]  ;;  %v6490_v56 = vld [vmem:[%s11732_s1 + $0xd48] sm:$0xf] }
 0x176   :  { %3783 = vmatpush.bf16.msrb.mxu0 %v6427_v5  ;;  %3797 = vmatpush.bf16.msrb.mxu1 %v6555_v6  ;;  %v7587_v5 = vld [vmem:[%s11732_s1 + $0xd94] sm:$0xf0]  ;;  %v6650_v6 = vld [vmem:[%s11732_s1 + $0xe88] sm:$0xf] }
 0x177   :  { %3811 = vmatpush.bf16.msrb.mxu2 %v6683_v9  ;;  %3825 = vmatpush.bf16.msrb.mxu3 %v6811_v17  ;;  %v7619_v9 = vld [vmem:[%s11732_s1 + $0xe94] sm:$0xf0]  ;;  %v6395_v17 = vor.u32 %v7555_v38, %v6394_v35  ;;  %v6523_v57 = vor.u32 %v7587_v5, %v6522_v43  ;;  %v6779_v35 = vor.u32 %v7651_v13, %v6778_v4  ;;  %v6634_v38 = vld [vmem:[%s11732_s1 + $0xe68] sm:$0xf] }
 0x178   :  { %v6651_v3 = vor.u32 %v7619_v9, %v6650_v6  ;;  %v7615_v43 = vld [vmem:[%s11732_s1 + $0xe74] sm:$0xf0]  ;;  %v6362_v6 = vld [vmem:[%s11732_s1 + $0xc48] sm:$0xf]  ;;  %v3430_v4 = vadd.f32 %v10056_v58, %v3416_v46  ;;  %v6763_v13 = vor.u32 %v7647_v21, %v6762_v49 }
 0x179   :  { %v6635_v5 = vor.u32 %v7615_v43, %v6634_v38  ;;  %v7547_v9 = vld [vmem:[%s11732_s1 + $0xc54] sm:$0xf0]  ;;  %v6746_v58 = vld [vmem:[%s11732_s1 + $0xf48] sm:$0xf] }
 0x17a   :  { %3784 = vmatpush.bf16.msrb.mxu0 %v6411_v29  ;;  %3798 = vmatpush.bf16.msrb.mxu1 %v6539_v31  ;;  %v6506_v29 = vld [vmem:[%s11732_s1 + $0xd68] sm:$0xf]  ;;  %v3526_v31 = vadd.f32 %v3525_v0, %v3512_v16  ;;  %v3539_v16 = vpop.f32.mrf.mxu2  ;;  %v3553_v24 = vpop.f32.mrf.mxu3  ;;  %v7643_v25 = vld [vmem:[%s11732_s1 + $0xf54] sm:$0xf0]  ;;  %v3444_v49 = vadd.f32 %v10067_v14, %v3430_v4 }
 0x17b   :  { %3812 = vmatpush.bf16.msrb.mxu2 %v6667_v34  ;;  %3826 = vmatpush.bf16.msrb.mxu3 %v6795_v60  ;;  %v7583_v34 = vld [vmem:[%s11732_s1 + $0xd74] sm:$0xf0]  ;;  %v6618_v0 = vld [vmem:[%s11732_s1 + $0xe48] sm:$0xf]  ;;  %v6747_v21 = vor.u32 %v7643_v25, %v6746_v58 }
 0x17c   :  { %v6507_v60 = vor.u32 %v7583_v34, %v6506_v29  ;;  %v6363_v29 = vor.u32 %v7547_v9, %v6362_v6  ;;  %v7543_v38 = vld [vmem:[%s11732_s1 + $0xc34] sm:$0xf0]  ;;  %v6474_v43 = vld [vmem:[%s11732_s1 + $0xd28] sm:$0xf] }
 0x17d   :  { %v6730_v6 = vld [vmem:[%s11732_s1 + $0xf28] sm:$0xf]  ;;  %v7639_v14 = vld [vmem:[%s11732_s1 + $0xf34] sm:$0xf0] }
 0x17e   :  { %3785 = vmatpush.bf16.msrb.mxu0 %v6395_v17  ;;  %3799 = vmatpush.bf16.msrb.mxu1 %v6523_v57  ;;  %v7579_v17 = vld [vmem:[%s11732_s1 + $0xd54] sm:$0xf0]  ;;  %v6714_v25 = vld [vmem:[%s11732_s1 + $0xf08] sm:$0xf] }
 0x17f   :  { %3813 = vmatpush.bf16.msrb.mxu2 %v6651_v3  ;;  %3827 = vmatpush.bf16.msrb.mxu3 %v6779_v35  ;;  %v7611_v57 = vld [vmem:[%s11732_s1 + $0xe54] sm:$0xf0]  ;;  %v3540_v3 = vadd.f32 %v3539_v16, %v3526_v31  ;;  %v6491_v35 = vor.u32 %v7579_v17, %v6490_v56  ;;  %v6346_v31 = vld [vmem:[%s11732_s1 + $0xc28] sm:$0xf] }
 0x180   :  { %v6619_v34 = vor.u32 %v7611_v57, %v6618_v0  ;;  %v6347_v9 = vor.u32 %v7543_v38, %v6346_v31  ;;  %v6330_v56 = vld [vmem:[%s11732_s1 + $0xc08] sm:$0xf]  ;;  %v7539_v4 = vld [vmem:[%s11732_s1 + $0xc14] sm:$0xf0]  ;;  %v5036_v38 = vld [vmem:[%s11732_s1 + $0x1f8] sm:$0xf0] }
 0x181   :  { %v10345_v46 = vadd.f32 %v3553_v24, %v3540_v3  ;;  %v6458_v17 = vld [vmem:[%s11732_s1 + $0xd08] sm:$0xf]  ;;  %v7571_v0 = vld [vmem:[%s11732_s1 + $0xd14] sm:$0xf0]  ;;  %v3458_v3 = vadd.f32 %v10225_v51, %v3444_v49  ;;  %v6731_v24 = vor.u32 %v7639_v14, %v6730_v6  ;;  %v4908_v51 = vld [vmem:[%s11732_s1 + $0xf8] sm:$0xf0]  ;;  %v6331_v31 = vor.u32 %v7539_v4, %v6330_v56 }
 0x182   :  { %3786 = vmatpush.bf16.msrb.mxu0 %v6379_v50  ;;  %3800 = vmatpush.bf16.msrb.mxu1 %v6507_v60  ;;  %v7575_v50 = vld [vmem:[%s11732_s1 + $0xd34] sm:$0xf0]  ;;  %v6602_v60 = vld [vmem:[%s11732_s1 + $0xe28] sm:$0xf]  ;;  %v5164_v49 = vld [vmem:[%s11732_s1 + $0x2f8] sm:$0xf0] }
 0x183   :  { %3814 = vmatpush.bf16.msrb.mxu2 %v6635_v5  ;;  %3828 = vmatpush.bf16.msrb.mxu3 %v6763_v13  ;;  %v7607_v5 = vld [vmem:[%s11732_s1 + $0xe34] sm:$0xf0]  ;;  %v6475_v13 = vor.u32 %v7575_v50, %v6474_v43  ;;  %v6586_v57 = vld [vmem:[%s11732_s1 + $0xe08] sm:$0xf]  ;;  %v7245_v43 = vld [vmem:[%s11732_s1 + $0x2ec] sm:$0xf]  ;;  %v3472_v6 = vadd.f32 %v10233_v53, %v3458_v3 }
 0x184   :  { %v6603_v16 = vor.u32 %v7607_v5, %v6602_v60  ;;  %v7603_v58 = vld [vmem:[%s11732_s1 + $0xe14] sm:$0xf0]  ;;  %v7277_v60 = vld [vmem:[%s11732_s1 + $0x3ec] sm:$0xf]  ;;  %v5292_v5 = vld [vmem:[%s11732_s1 + $0x3f8] sm:$0xf0]  ;;  %v5167_v4 = vor.u32 %v7245_v43, %v5164_v49 }
 0x185   :  { %v6587_v50 = vor.u32 %v7603_v58, %v6586_v57  ;;  %v5295_v53 = vor.u32 %v7277_v60, %v5292_v5  ;;  %v5020_v57 = vld [vmem:[%s11732_s1 + $0x1d8] sm:$0xf0]  ;;  %v7241_v3 = vld [vmem:[%s11732_s1 + $0x2cc] sm:$0xf]  ;;  %v3513_v58 = vpop.f32.mrf.mxu0 }
 0x186   :  { %3787 = vmatpush.bf16.msrb.mxu0 %v6363_v29  ;;  %3801 = vmatpush.bf16.msrb.mxu1 %v6491_v35  ;;  %v7635_v29 = vld [vmem:[%s11732_s1 + $0xf14] sm:$0xf0]  ;;  %v7181_v35 = vld [vmem:[%s11732_s1 + $0xec] sm:$0xf]  ;;  %v5132_v5 = vld [vmem:[%s11732_s1 + $0x2b8] sm:$0xf0] }
 0x187   :  { %3815 = vmatpush.bf16.msrb.mxu2 %v6619_v34  ;;  %3829 = vmatpush.bf16.msrb.mxu3 %v6747_v21  ;;  %v7213_v34 = vld [vmem:[%s11732_s1 + $0x1ec] sm:$0xf]  ;;  %v6459_v21 = vor.u32 %v7571_v0, %v6458_v17  ;;  %v6715_v14 = vor.u32 %v7635_v29, %v6714_v25  ;;  %v3486_v0 = vadd.f32 %v10275_v10, %v3472_v6  ;;  %v5276_v25 = vld [vmem:[%s11732_s1 + $0x3d8] sm:$0xf0]  ;;  %v3527_v29 = vpop.f32.mrf.mxu1 }
 0x188   :  { %v5039_v56 = vor.u32 %v7213_v34, %v5036_v38  ;;  %v7209_v17 = vld [vmem:[%s11732_s1 + $0x1cc] sm:$0xf]  ;;  %v4876_v38 = vld [vmem:[%s11732_s1 + $0xb8] sm:$0xf0] }
 0x189   :  { %v7273_v10 = vld [vmem:[%s11732_s1 + $0x3cc] sm:$0xf]  ;;  %v3500_v49 = vadd.f32 %v10286_v12, %v3486_v0  ;;  %v5260_v6 = vld [vmem:[%s11732_s1 + $0x3b8] sm:$0xf0]  ;;  %v3541_v0 = vpop.f32.mrf.mxu2 }
 0x18a   :  { %3788 = vmatpush.bf16.msrb.mxu0 %v6347_v9  ;;  %3802 = vmatpush.bf16.msrb.mxu1 %v6475_v13  ;;  %v4911_v9 = vor.u32 %v7181_v35, %v4908_v51  ;;  %v7177_v13 = vld [vmem:[%s11732_s1 + $0xcc] sm:$0xf]  ;;  %v5023_v51 = vor.u32 %v7209_v17, %v5020_v57  ;;  %v4988_v57 = vld [vmem:[%s11732_s1 + $0x198] sm:$0xf0] }
 0x18b   :  { %3816 = vmatpush.bf16.msrb.mxu2 %v6603_v16  ;;  %3830 = vmatpush.bf16.msrb.mxu3 %v6731_v24  ;;  %v4892_v16 = vld [vmem:[%s11732_s1 + $0xd8] sm:$0xf0]  ;;  %v7205_v43 = vld [vmem:[%s11732_s1 + $0x1ac] sm:$0xf] }
 0x18c   :  { %v5148_v24 = vld [vmem:[%s11732_s1 + $0x2d8] sm:$0xf0]  ;;  %v4895_v35 = vor.u32 %v7177_v13, %v4892_v16  ;;  %v7237_v60 = vld [vmem:[%s11732_s1 + $0x2ac] sm:$0xf] }
 0x18d   :  { %v5151_v34 = vor.u32 %v7241_v3, %v5148_v24  ;;  %v7269_v12 = vld [vmem:[%s11732_s1 + $0x3ac] sm:$0xf]  ;;  %v4860_v16 = vld [vmem:[%s11732_s1 + $0x98] sm:$0xf0] }
 0x18e   :  { %3789 = vmatpush.bf16.msrb.mxu0 %v6331_v31  ;;  %3803 = vmatpush.bf16.msrb.mxu1 %v6459_v21  ;;  %v7173_v31 = vld [vmem:[%s11732_s1 + $0xac] sm:$0xf]  ;;  %v5279_v21 = vor.u32 %v7273_v10, %v5276_v25  ;;  %v5116_v24 = vld [vmem:[%s11732_s1 + $0x298] sm:$0xf0]  ;;  %v3567_v10 = vpop.f32.mrf.mxu0 }
 0x18f   :  { %3817 = vmatpush.bf16.msrb.mxu2 %v6587_v50  ;;  %3831 = vmatpush.bf16.msrb.mxu3 %v6715_v14  ;;  %v5004_v50 = vld [vmem:[%s11732_s1 + $0x1b8] sm:$0xf0]  ;;  %v3514_v14 = vadd.f32 %v3513_v58, %v3500_v49  ;;  %v7169_v13 = vld [vmem:[%s11732_s1 + $0x8c] sm:$0xf]  ;;  %v3555_v58 = vpop.f32.mrf.mxu3 }
 0x190   :  { %v7201_v17 = vld [vmem:[%s11732_s1 + $0x18c] sm:$0xf] }
 0x191   :  { %3790 = vmatmul.bf16.vlgmr.msrb.gmra.mxu0 %v8764_v33  ;;  %3804 = vmatmul.bf16.vlgmr.msrb.gmra.mxu1 %v8777_v42  ;;  %v7233_v3 = vld [vmem:[%s11732_s1 + $0x28c] sm:$0xf] }
 0x192   :  { %3838 = vmatpush.bf16.msra.mxu0 %v4911_v9  ;;  %3852 = vmatpush.bf16.msra.mxu1 %v5039_v56  ;;  %v4879_v9 = vor.u32 %v7173_v31, %v4876_v38  ;;  %v5007_v56 = vor.u32 %v7205_v43, %v5004_v50  ;;  %v7265_v25 = vld [vmem:[%s11732_s1 + $0x38c] sm:$0xf]  ;;  %v4863_v31 = vor.u32 %v7169_v13, %v4860_v16  ;;  %v3581_v38 = vpop.f32.mrf.mxu1  ;;  %v4844_v50 = vld [vmem:[%s11732_s1 + $0x78] sm:$0xf0] }
 0x193   :  { %3866 = vmatpush.bf16.msra.mxu2 %v5167_v4  ;;  %3880 = vmatpush.bf16.msra.mxu3 %v5295_v53  ;;  %v5135_v4 = vor.u32 %v7237_v60, %v5132_v5  ;;  %v5263_v53 = vor.u32 %v7269_v12, %v5260_v6  ;;  %v4991_v43 = vor.u32 %v7201_v17, %v4988_v57  ;;  %v4972_v12 = vld [vmem:[%s11732_s1 + $0x178] sm:$0xf0]  ;;  %v7229_v6 = vld [vmem:[%s11732_s1 + $0x26c] sm:$0xf] }
 0x194   :  { %3818 = vmatmul.bf16.vlgmr.msrb.gmra.mxu2 %v8775_v39  ;;  %3832 = vmatmul.bf16.vlgmr.msrb.gmra.mxu3 %v8785_v47  ;;  %v5119_v49 = vor.u32 %v7233_v3, %v5116_v24  ;;  %v7161_v17 = vld [vmem:[%s11732_s1 + $0x4c] sm:$0xf] }
 0x196   :  { %3839 = vmatpush.bf16.msra.mxu0 %v4895_v35  ;;  %3853 = vmatpush.bf16.msra.mxu1 %v5023_v51  ;;  %v5244_v35 = vld [vmem:[%s11732_s1 + $0x398] sm:$0xf0]  ;;  %v3528_v51 = vadd.f32 %v3527_v29, %v3514_v14  ;;  %v7197_v29 = vld [vmem:[%s11732_s1 + $0x16c] sm:$0xf] }
 0x197   :  { %3867 = vmatpush.bf16.msra.mxu2 %v5151_v34  ;;  %3881 = vmatpush.bf16.msra.mxu3 %v5279_v21  ;;  %v3568_v34 = vadd.f32 %v3567_v10, %v10345_v46  ;;  %v7165_v21 = vld [vmem:[%s11732_s1 + $0x6c] sm:$0xf]  ;;  %v5247_v46 = vor.u32 %v7265_v25, %v5244_v35  ;;  %v5100_v14 = vld [vmem:[%s11732_s1 + $0x278] sm:$0xf0]  ;;  %v4975_v13 = vor.u32 %v7197_v29, %v4972_v12  ;;  %v3595_v24 = vpop.f32.mrf.mxu2 }
 0x198   :  { %v3542_v60 = vadd.f32 %v3541_v0, %v3528_v51  ;;  %v5103_v16 = vor.u32 %v7229_v6, %v5100_v14  ;;  %v4828_v0 = vld [vmem:[%s11732_s1 + $0x58] sm:$0xf0]  ;;  %v7225_v25 = vld [vmem:[%s11732_s1 + $0x24c] sm:$0xf] }
 0x199   :  { %v3582_v5 = vadd.f32 %v3581_v38, %v3568_v34  ;;  %v4956_v10 = vld [vmem:[%s11732_s1 + $0x158] sm:$0xf0]  ;;  %v3569_v34 = vpop.f32.mrf.mxu0  ;;  %v7189_v12 = vld [vmem:[%s11732_s1 + $0x12c] sm:$0xf] }
 0x19a   :  { %3840 = vmatpush.bf16.msra.mxu0 %v4879_v9  ;;  %3854 = vmatpush.bf16.msra.mxu1 %v5007_v56  ;;  %v7261_v9 = vld [vmem:[%s11732_s1 + $0x36c] sm:$0xf]  ;;  %v5228_v56 = vld [vmem:[%s11732_s1 + $0x378] sm:$0xf0]  ;;  %v3556_v57 = vadd.f32 %v3555_v58, %v3542_v60 }
 0x19b   :  { %3868 = vmatpush.bf16.msra.mxu2 %v5135_v4  ;;  %3882 = vmatpush.bf16.msra.mxu3 %v5263_v53  ;;  %v4847_v4 = vor.u32 %v7165_v21, %v4844_v50  ;;  %v7193_v53 = vld [vmem:[%s11732_s1 + $0x14c] sm:$0xf]  ;;  %v5231_v3 = vor.u32 %v7261_v9, %v5228_v56  ;;  %v5084_v35 = vld [vmem:[%s11732_s1 + $0x258] sm:$0xf0]  ;;  %v3596_v51 = vadd.f32 %v3595_v24, %v3582_v5  ;;  %v3583_v21 = vpop.f32.mrf.mxu1 }
 0x19c   :  { %v7257_v58 = vld [vmem:[%s11732_s1 + $0x34c] sm:$0xf]  ;;  %v5212_v38 = vld [vmem:[%s11732_s1 + $0x358] sm:$0xf0]  ;;  %v4959_v29 = vor.u32 %v7193_v53, %v4956_v10  ;;  %v5087_v60 = vor.u32 %v7225_v25, %v5084_v35 }
 0x19d   :  { %v4812_v5 = vld [vmem:[%s11732_s1 + $0x38] sm:$0xf0]  ;;  %v5215_v6 = vor.u32 %v7257_v58, %v5212_v38  ;;  %v7221_v56 = vld [vmem:[%s11732_s1 + $0x22c] sm:$0xf] }
 0x19e   :  { %3841 = vmatpush.bf16.msra.mxu0 %v4863_v31  ;;  %3855 = vmatpush.bf16.msra.mxu1 %v4991_v43  ;;  %v3609_v31 = vpop.f32.mrf.mxu3  ;;  %v3570_v43 = vadd.f32 %v3569_v34, %v3556_v57  ;;  %v4940_v9 = vld [vmem:[%s11732_s1 + $0x138] sm:$0xf0]  ;;  %v7185_v24 = vld [vmem:[%s11732_s1 + $0x10c] sm:$0xf] }
 0x19f   :  { %3869 = vmatpush.bf16.msra.mxu2 %v5119_v49  ;;  %3883 = vmatpush.bf16.msra.mxu3 %v5247_v46  ;;  %v4831_v49 = vor.u32 %v7161_v17, %v4828_v0  ;;  %v10549_v50 = vadd.f32 %v3609_v31, %v3596_v51  ;;  %v7157_v46 = vld [vmem:[%s11732_s1 + $0x2c] sm:$0xf]  ;;  %v4796_v53 = vld [vmem:[%s11732_s1 + $0x18] sm:$0xf0]  ;;  %v4943_v57 = vor.u32 %v7189_v12, %v4940_v9  ;;  %v3597_v51 = vpop.f32.mrf.mxu2 }
 0x1a0   :  { %v3584_v14 = vadd.f32 %v3583_v21, %v3570_v43  ;;  %v4815_v17 = vor.u32 %v7157_v46, %v4812_v5  ;;  %v7153_v0 = vld [vmem:[%s11732_s1 + $0xc] sm:$0xf]  ;;  %v4924_v10 = vld [vmem:[%s11732_s1 + $0x118] sm:$0xf0] }
 0x1a1   :  { %v7217_v25 = vld [vmem:[%s11732_s1 + $0x20c] sm:$0xf]  ;;  %v5052_v34 = vld [vmem:[%s11732_s1 + $0x218] sm:$0xf0] }
 0x1a2   :  { %3842 = vmatpush.bf16.msra.mxu0 %v4847_v4  ;;  %3856 = vmatpush.bf16.msra.mxu1 %v4975_v13  ;;  %v5068_v4 = vld [vmem:[%s11732_s1 + $0x238] sm:$0xf0]  ;;  %v7253_v13 = vld [vmem:[%s11732_s1 + $0x32c] sm:$0xf]  ;;  %v3598_v38 = vadd.f32 %v3597_v51, %v3584_v14  ;;  %v4927_v14 = vor.u32 %v7185_v24, %v4924_v10  ;;  %v5055_v9 = vor.u32 %v7217_v25, %v5052_v34 }
 0x1a3   :  { %3870 = vmatpush.bf16.msra.mxu2 %v5103_v16  ;;  %3884 = vmatpush.bf16.msra.mxu3 %v5231_v3  ;;  %v5196_v16 = vld [vmem:[%s11732_s1 + $0x338] sm:$0xf0]  ;;  %v5071_v3 = vor.u32 %v7221_v56, %v5068_v4  ;;  %v7249_v31 = vld [vmem:[%s11732_s1 + $0x30c] sm:$0xf] }
 0x1a4   :  { %v5199_v35 = vor.u32 %v7253_v13, %v5196_v16  ;;  %v5180_v58 = vld [vmem:[%s11732_s1 + $0x318] sm:$0xf0]  ;;  %v7373_v5 = vld [vmem:[%s11732_s1 + $0x6ec] sm:$0xf] }
 0x1a5   :  { %v5420_v21 = vld [vmem:[%s11732_s1 + $0x4f8] sm:$0xf0]  ;;  %v7405_v56 = vld [vmem:[%s11732_s1 + $0x7ec] sm:$0xf]  ;;  %v5183_v13 = vor.u32 %v7249_v31, %v5180_v58 }
 0x1a6   :  { %3843 = vmatpush.bf16.msra.mxu0 %v4831_v49  ;;  %3857 = vmatpush.bf16.msra.mxu1 %v4959_v29  ;;  %v3611_v43 = vpop.f32.mrf.mxu3  ;;  %v7309_v49 = vld [vmem:[%s11732_s1 + $0x4ec] sm:$0xf]  ;;  %v5548_v46 = vld [vmem:[%s11732_s1 + $0x5f8] sm:$0xf0] }
 0x1a7   :  { %3871 = vmatpush.bf16.msra.mxu2 %v5087_v60  ;;  %3885 = vmatpush.bf16.msra.mxu3 %v5215_v6  ;;  %v7341_v29 = vld [vmem:[%s11732_s1 + $0x5ec] sm:$0xf]  ;;  %v4799_v60 = vor.u32 %v7153_v0, %v4796_v53  ;;  %v5676_v12 = vld [vmem:[%s11732_s1 + $0x6f8] sm:$0xf0]  ;;  %v3612_v6 = vadd.f32 %v3611_v43, %v3598_v38  ;;  %v5423_v16 = vor.u32 %v7309_v49, %v5420_v21  ;;  %v4063_v0 = vmax.f32 %v10549_v50, 0.0 }
 0x1a8   :  { %v5804_v4 = vld [vmem:[%s11732_s1 + $0x7f8] sm:$0xf0]  ;;  %v7337_v10 = vld [vmem:[%s11732_s1 + $0x5cc] sm:$0xf] }
 0x1a9   :  { %v4067_v53 = vmax.f32 %v3612_v6, 0.0  ;;  %v5404_v24 = vld [vmem:[%s11732_s1 + $0x4d8] sm:$0xf0]  ;;  %v5807_v25 = vor.u32 %v7405_v56, %v5804_v4  ;;  %v7369_v50 = vld [vmem:[%s11732_s1 + $0x6cc] sm:$0xf] }
 0x1aa   :  { %3844 = vmatpush.bf16.msra.mxu0 %v4815_v17  ;;  %3858 = vmatpush.bf16.msra.mxu1 %v4943_v57  ;;  %v7305_v17 = vld [vmem:[%s11732_s1 + $0x4cc] sm:$0xf]  ;;  %v5551_v57 = vor.u32 %v7341_v29, %v5548_v46  ;;  %v5660_v51 = vld [vmem:[%s11732_s1 + $0x6d8] sm:$0xf0] }
 0x1ab   :  { %3872 = vmatpush.bf16.msra.mxu2 %v5071_v3  ;;  %3886 = vmatpush.bf16.msra.mxu3 %v5199_v35  ;;  %v5679_v3 = vor.u32 %v7373_v5, %v5676_v12  ;;  %v5532_v35 = vld [vmem:[%s11732_s1 + $0x5d8] sm:$0xf0]  ;;  %v10642_v34 = vpack.c.bf16 %v4067_v53, %v4063_v0  ;;  %v7401_v31 = vld [vmem:[%s11732_s1 + $0x7cc] sm:$0xf]  ;;  %v5407_v38 = vor.u32 %v7305_v17, %v5404_v24 }
 0x1ac   :  { %v5788_v58 = vld [vmem:[%s11732_s1 + $0x7d8] sm:$0xf0]  ;;  %v5535_v43 = vor.u32 %v7337_v10, %v5532_v35  ;;  %v5663_v49 = vor.u32 %v7369_v50, %v5660_v51  ;;  %v7301_v21 = vld [vmem:[%s11732_s1 + $0x4ac] sm:$0xf] }
 0x1ad   :  { %v5388_v29 = vld [vmem:[%s11732_s1 + $0x4b8] sm:$0xf0]  ;;  %v5791_v46 = vor.u32 %v7401_v31, %v5788_v58  ;;  %v7365_v12 = vld [vmem:[%s11732_s1 + $0x6ac] sm:$0xf] }
 0x1ae   :  { %3845 = vmatpush.bf16.msra.mxu0 %v4799_v60  ;;  %3859 = vmatpush.bf16.msra.mxu1 %v4927_v14  ;;  %v7333_v60 = vld [vmem:[%s11732_s1 + $0x5ac] sm:$0xf]  ;;  %v5516_v5 = vld [vmem:[%s11732_s1 + $0x5b8] sm:$0xf0]  ;;  %v5391_v56 = vor.u32 %v7301_v21, %v5388_v29 }
 0x1af   :  { %3873 = vmatpush.bf16.msra.mxu2 %v5055_v9  ;;  %3887 = vmatpush.bf16.msra.mxu3 %v5183_v13  ;;  %v5644_v6 = vld [vmem:[%s11732_s1 + $0x6b8] sm:$0xf0]  ;;  %v7397_v14 = vld [vmem:[%s11732_s1 + $0x7ac] sm:$0xf]  ;;  %v5519_v4 = vor.u32 %v7333_v60, %v5516_v5 }
 0x1b0   :  { %v5772_v9 = vld [vmem:[%s11732_s1 + $0x7b8] sm:$0xf0]  ;;  %v7297_v13 = vld [vmem:[%s11732_s1 + $0x48c] sm:$0xf] }
 0x1b1   :  { %3846 = vmatmul.bf16.vlgmr.msra.gmra.mxu0 %v8086_v59  ;;  %3860 = vmatmul.bf16.vlgmr.msra.gmra.mxu1 %v8122_v11  ;;  %v5647_v59 = vor.u32 %v7365_v12, %v5644_v6  ;;  %v5775_v11 = vor.u32 %v7397_v14, %v5772_v9  ;;  %v7361_v17 = vld [vmem:[%s11732_s1 + $0x68c] sm:$0xf]  ;;  %v5628_v0 = vld [vmem:[%s11732_s1 + $0x698] sm:$0xf0] }
 0x1b2   :  { %3894 = vmatpush.bf16.msrb.mxu0 %v5423_v16  ;;  %3908 = vmatpush.bf16.msrb.mxu1 %v5551_v57  ;;  %v5372_v16 = vld [vmem:[%s11732_s1 + $0x498] sm:$0xf0]  ;;  %v7393_v53 = vld [vmem:[%s11732_s1 + $0x78c] sm:$0xf]  ;;  %v5631_v10 = vor.u32 %v7361_v17, %v5628_v0 }
 0x1b3   :  { %3922 = vmatpush.bf16.msrb.mxu2 %v5679_v3  ;;  %3936 = vmatpush.bf16.msrb.mxu3 %v5807_v25  ;;  %v5756_v57 = vld [vmem:[%s11732_s1 + $0x798] sm:$0xf0]  ;;  %v5375_v3 = vor.u32 %v7297_v13, %v5372_v16  ;;  %v7293_v25 = vld [vmem:[%s11732_s1 + $0x46c] sm:$0xf] }
 0x1b4   :  { %3874 = vmatmul.bf16.vlgmr.msra.gmra.mxu2 %v8100_v2  ;;  %3888 = vmatmul.bf16.vlgmr.msra.gmra.mxu3 %v8136_v18  ;;  %v7329_v2 = vld [vmem:[%s11732_s1 + $0x58c] sm:$0xf]  ;;  %v5500_v18 = vld [vmem:[%s11732_s1 + $0x598] sm:$0xf0]  ;;  %v5759_v51 = vor.u32 %v7393_v53, %v5756_v57 }
 0x1b5   :  { %v5503_v24 = vor.u32 %v7329_v2, %v5500_v18  ;;  %v5356_v35 = vld [vmem:[%s11732_s1 + $0x478] sm:$0xf0]  ;;  %v7325_v50 = vld [vmem:[%s11732_s1 + $0x56c] sm:$0xf] }
 0x1b6   :  { %3895 = vmatpush.bf16.msrb.mxu0 %v5407_v38  ;;  %3909 = vmatpush.bf16.msrb.mxu1 %v5535_v43  ;;  %v5484_v31 = vld [vmem:[%s11732_s1 + $0x578] sm:$0xf0]  ;;  %v7357_v58 = vld [vmem:[%s11732_s1 + $0x66c] sm:$0xf]  ;;  %v5359_v21 = vor.u32 %v7293_v25, %v5356_v35 }
 0x1b7   :  { %3923 = vmatpush.bf16.msrb.mxu2 %v5663_v49  ;;  %3937 = vmatpush.bf16.msrb.mxu3 %v5791_v46  ;;  %v5612_v38 = vld [vmem:[%s11732_s1 + $0x678] sm:$0xf0]  ;;  %v7389_v43 = vld [vmem:[%s11732_s1 + $0x76c] sm:$0xf]  ;;  %v5487_v29 = vor.u32 %v7325_v50, %v5484_v31 }
 0x1b8   :  { %v5740_v49 = vld [vmem:[%s11732_s1 + $0x778] sm:$0xf0]  ;;  %v5615_v60 = vor.u32 %v7357_v58, %v5612_v38  ;;  %v7289_v46 = vld [vmem:[%s11732_s1 + $0x44c] sm:$0xf] }
 0x1b9   :  { %v5340_v5 = vld [vmem:[%s11732_s1 + $0x458] sm:$0xf0]  ;;  %v7321_v12 = vld [vmem:[%s11732_s1 + $0x54c] sm:$0xf]  ;;  %v5743_v6 = vor.u32 %v7389_v43, %v5740_v49 }
 0x1ba   :  { %3896 = vmatpush.bf16.msrb.mxu0 %v5391_v56  ;;  %3910 = vmatpush.bf16.msrb.mxu1 %v5519_v4  ;;  %v5468_v14 = vld [vmem:[%s11732_s1 + $0x558] sm:$0xf0]  ;;  %v7353_v9 = vld [vmem:[%s11732_s1 + $0x64c] sm:$0xf]  ;;  %v5343_v13 = vor.u32 %v7289_v46, %v5340_v5 }
 0x1bb   :  { %3924 = vmatpush.bf16.msrb.mxu2 %v5647_v59  ;;  %3938 = vmatpush.bf16.msrb.mxu3 %v5775_v11  ;;  %v5596_v56 = vld [vmem:[%s11732_s1 + $0x658] sm:$0xf0]  ;;  %v7385_v4 = vld [vmem:[%s11732_s1 + $0x74c] sm:$0xf]  ;;  %v5471_v16 = vor.u32 %v7321_v12, %v5468_v14 }
 0x1bc   :  { %v5724_v59 = vld [vmem:[%s11732_s1 + $0x758] sm:$0xf0]  ;;  %v5599_v2 = vor.u32 %v7353_v9, %v5596_v56  ;;  %v7285_v11 = vld [vmem:[%s11732_s1 + $0x42c] sm:$0xf] }
 0x1bd   :  { %v5324_v18 = vld [vmem:[%s11732_s1 + $0x438] sm:$0xf0]  ;;  %v7317_v17 = vld [vmem:[%s11732_s1 + $0x52c] sm:$0xf]  ;;  %v5727_v0 = vor.u32 %v7385_v4, %v5724_v59 }
 0x1be   :  { %3897 = vmatpush.bf16.msrb.mxu0 %v5375_v3  ;;  %3911 = vmatpush.bf16.msrb.mxu1 %v5503_v24  ;;  %v5452_v53 = vld [vmem:[%s11732_s1 + $0x538] sm:$0xf0]  ;;  %v7349_v57 = vld [vmem:[%s11732_s1 + $0x62c] sm:$0xf]  ;;  %v5327_v25 = vor.u32 %v7285_v11, %v5324_v18 }
 0x1bf   :  { %3925 = vmatpush.bf16.msrb.mxu2 %v5631_v10  ;;  %3939 = vmatpush.bf16.msrb.mxu3 %v5759_v51  ;;  %v5580_v3 = vld [vmem:[%s11732_s1 + $0x638] sm:$0xf0]  ;;  %v7381_v24 = vld [vmem:[%s11732_s1 + $0x72c] sm:$0xf]  ;;  %v5455_v51 = vor.u32 %v7317_v17, %v5452_v53 }
 0x1c0   :  { %v5708_v10 = vld [vmem:[%s11732_s1 + $0x738] sm:$0xf0]  ;;  %v7281_v35 = vld [vmem:[%s11732_s1 + $0x40c] sm:$0xf]  ;;  %v5583_v31 = vor.u32 %v7349_v57, %v5580_v3 }
 0x1c1   :  { %v5308_v50 = vld [vmem:[%s11732_s1 + $0x418] sm:$0xf0]  ;;  %v7313_v58 = vld [vmem:[%s11732_s1 + $0x50c] sm:$0xf]  ;;  %v5711_v49 = vor.u32 %v7381_v24, %v5708_v10 }
 0x1c2   :  { %3898 = vmatpush.bf16.msrb.mxu0 %v5359_v21  ;;  %3912 = vmatpush.bf16.msrb.mxu1 %v5487_v29  ;;  %v5436_v38 = vld [vmem:[%s11732_s1 + $0x518] sm:$0xf0]  ;;  %v7345_v43 = vld [vmem:[%s11732_s1 + $0x60c] sm:$0xf] }
 0x1c3   :  { %3926 = vmatpush.bf16.msrb.mxu2 %v5615_v60  ;;  %3940 = vmatpush.bf16.msrb.mxu3 %v5743_v6  ;;  %v5564_v21 = vld [vmem:[%s11732_s1 + $0x618] sm:$0xf0]  ;;  %v7377_v29 = vld [vmem:[%s11732_s1 + $0x70c] sm:$0xf]  ;;  %v5311_v6 = vor.u32 %v7281_v35, %v5308_v50  ;;  %v5439_v4 = vor.u32 %v7313_v58, %v5436_v38 }
 0x1c4   :  { %v5692_v60 = vld [vmem:[%s11732_s1 + $0x718] sm:$0xf0]  ;;  %v7437_v46 = vld [vmem:[%s11732_s1 + $0x8ec] sm:$0xf]  ;;  %v5567_v59 = vor.u32 %v7345_v43, %v5564_v21 }
 0x1c5   :  { %v5932_v5 = vld [vmem:[%s11732_s1 + $0x8f8] sm:$0xf0]  ;;  %v7469_v12 = vld [vmem:[%s11732_s1 + $0x9ec] sm:$0xf] }
 0x1c6   :  { %3899 = vmatpush.bf16.msrb.mxu0 %v5343_v13  ;;  %3913 = vmatpush.bf16.msrb.mxu1 %v5471_v16  ;;  %v6060_v14 = vld [vmem:[%s11732_s1 + $0x9f8] sm:$0xf0]  ;;  %v7501_v9 = vld [vmem:[%s11732_s1 + $0xaec] sm:$0xf]  ;;  %v5935_v11 = vor.u32 %v7437_v46, %v5932_v5 }
 0x1c7   :  { %3927 = vmatpush.bf16.msrb.mxu2 %v5599_v2  ;;  %3941 = vmatpush.bf16.msrb.mxu3 %v5727_v0  ;;  %v6188_v56 = vld [vmem:[%s11732_s1 + $0xaf8] sm:$0xf0]  ;;  %v7533_v13 = vld [vmem:[%s11732_s1 + $0xbec] sm:$0xf]  ;;  %v5695_v2 = vor.u32 %v7377_v29, %v5692_v60  ;;  %v6063_v18 = vor.u32 %v7469_v12, %v6060_v14 }
 0x1c8   :  { %v6316_v16 = vld [vmem:[%s11732_s1 + $0xbf8] sm:$0xf0]  ;;  %v6191_v17 = vor.u32 %v7501_v9, %v6188_v56  ;;  %v7433_v0 = vld [vmem:[%s11732_s1 + $0x8cc] sm:$0xf] }
 0x1c9   :  { %v5916_v53 = vld [vmem:[%s11732_s1 + $0x8d8] sm:$0xf0]  ;;  %v7465_v57 = vld [vmem:[%s11732_s1 + $0x9cc] sm:$0xf]  ;;  %v6319_v3 = vor.u32 %v7533_v13, %v6316_v16 }
 0x1ca   :  { %3900 = vmatpush.bf16.msrb.mxu0 %v5327_v25  ;;  %3914 = vmatpush.bf16.msrb.mxu1 %v5455_v51  ;;  %v6044_v24 = vld [vmem:[%s11732_s1 + $0x9d8] sm:$0xf0]  ;;  %v7497_v10 = vld [vmem:[%s11732_s1 + $0xacc] sm:$0xf]  ;;  %v5919_v51 = vor.u32 %v7433_v0, %v5916_v53 }
 0x1cb   :  { %3928 = vmatpush.bf16.msrb.mxu2 %v5583_v31  ;;  %3942 = vmatpush.bf16.msrb.mxu3 %v5711_v49  ;;  %v6172_v25 = vld [vmem:[%s11732_s1 + $0xad8] sm:$0xf0]  ;;  %v7529_v35 = vld [vmem:[%s11732_s1 + $0xbcc] sm:$0xf]  ;;  %v6047_v31 = vor.u32 %v7465_v57, %v6044_v24 }
 0x1cc   :  { %v6300_v50 = vld [vmem:[%s11732_s1 + $0xbd8] sm:$0xf0]  ;;  %v6175_v58 = vor.u32 %v7497_v10, %v6172_v25  ;;  %v7429_v38 = vld [vmem:[%s11732_s1 + $0x8ac] sm:$0xf]  ;;  %v10916_v25 = vpop.f32.mrf.mxu0 }
 0x1cd   :  { %v5900_v43 = vld [vmem:[%s11732_s1 + $0x8b8] sm:$0xf0]  ;;  %v7461_v49 = vld [vmem:[%s11732_s1 + $0x9ac] sm:$0xf]  ;;  %v6303_v21 = vor.u32 %v7529_v35, %v6300_v50 }
 0x1ce   :  { %3901 = vmatpush.bf16.msrb.mxu0 %v5311_v6  ;;  %3915 = vmatpush.bf16.msrb.mxu1 %v5439_v4  ;;  %v6028_v29 = vld [vmem:[%s11732_s1 + $0x9b8] sm:$0xf0]  ;;  %v7493_v60 = vld [vmem:[%s11732_s1 + $0xaac] sm:$0xf]  ;;  %v5903_v12 = vor.u32 %v7429_v38, %v5900_v43 }
 0x1cf   :  { %3929 = vmatpush.bf16.msrb.mxu2 %v5567_v59  ;;  %3943 = vmatpush.bf16.msrb.mxu3 %v5695_v2  ;;  %v6156_v46 = vld [vmem:[%s11732_s1 + $0xab8] sm:$0xf0]  ;;  %v6031_v6 = vor.u32 %v7461_v49, %v6028_v29  ;;  %v7457_v9 = vld [vmem:[%s11732_s1 + $0x98c] sm:$0xf] }
 0x1d0   :  { %v6284_v5 = vld [vmem:[%s11732_s1 + $0xbb8] sm:$0xf0]  ;;  %v6159_v14 = vor.u32 %v7493_v60, %v6156_v46  ;;  %v7489_v4 = vld [vmem:[%s11732_s1 + $0xa8c] sm:$0xf] }
 0x1d1   :  { %3902 = vmatmul.bf16.vlgmr.msrb.gmra.mxu0 %v8308_v40  ;;  %3916 = vmatmul.bf16.vlgmr.msrb.gmra.mxu1 %v8321_v45  ;;  %v7525_v40 = vld [vmem:[%s11732_s1 + $0xbac] sm:$0xf]  ;;  %v5884_v45 = vld [vmem:[%s11732_s1 + $0x898] sm:$0xf0] }
 0x1d2   :  { %3950 = vmatpush.bf16.msra.mxu0 %v5935_v11  ;;  %3964 = vmatpush.bf16.msra.mxu1 %v6063_v18  ;;  %v6012_v56 = vld [vmem:[%s11732_s1 + $0x998] sm:$0xf0]  ;;  %v7521_v13 = vld [vmem:[%s11732_s1 + $0xb8c] sm:$0xf] }
 0x1d3   :  { %3978 = vmatpush.bf16.msra.mxu2 %v6191_v17  ;;  %3992 = vmatpush.bf16.msra.mxu3 %v6319_v3  ;;  %v6140_v59 = vld [vmem:[%s11732_s1 + $0xa98] sm:$0xf0]  ;;  %v6015_v11 = vor.u32 %v7457_v9, %v6012_v56  ;;  %v7421_v17 = vld [vmem:[%s11732_s1 + $0x86c] sm:$0xf]  ;;  %v10959_v56 = vpop.f32.mrf.mxu2 }
 0x1d4   :  { %3930 = vmatmul.bf16.vlgmr.msrb.gmra.mxu2 %v8319_v44  ;;  %3944 = vmatmul.bf16.vlgmr.msrb.gmra.mxu3 %v8329_v48  ;;  %v7425_v44 = vld [vmem:[%s11732_s1 + $0x88c] sm:$0xf]  ;;  %v6287_v48 = vor.u32 %v7525_v40, %v6284_v5  ;;  %v6268_v16 = vld [vmem:[%s11732_s1 + $0xb98] sm:$0xf0]  ;;  %v6143_v18 = vor.u32 %v7489_v4, %v6140_v59 }
 0x1d5   :  { %v5887_v2 = vor.u32 %v7425_v44, %v5884_v45  ;;  %v5868_v0 = vld [vmem:[%s11732_s1 + $0x878] sm:$0xf0]  ;;  %v7453_v53 = vld [vmem:[%s11732_s1 + $0x96c] sm:$0xf]  ;;  %v6271_v57 = vor.u32 %v7521_v13, %v6268_v16 }
 0x1d6   :  { %3951 = vmatpush.bf16.msra.mxu0 %v5919_v51  ;;  %3965 = vmatpush.bf16.msra.mxu1 %v6047_v31  ;;  %v5996_v3 = vld [vmem:[%s11732_s1 + $0x978] sm:$0xf0]  ;;  %v7485_v24 = vld [vmem:[%s11732_s1 + $0xa6c] sm:$0xf]  ;;  %v10924_v51 = vpop.f32.mrf.mxu1  ;;  %v5871_v31 = vor.u32 %v7421_v17, %v5868_v0 }
 0x1d7   :  { %3979 = vmatpush.bf16.msra.mxu2 %v6175_v58  ;;  %3993 = vmatpush.bf16.msra.mxu3 %v6303_v21  ;;  %v6124_v10 = vld [vmem:[%s11732_s1 + $0xa78] sm:$0xf0]  ;;  %v7517_v35 = vld [vmem:[%s11732_s1 + $0xb6c] sm:$0xf]  ;;  %v5999_v58 = vor.u32 %v7453_v53, %v5996_v3 }
 0x1d8   :  { %v6252_v50 = vld [vmem:[%s11732_s1 + $0xb78] sm:$0xf0]  ;;  %v6127_v38 = vor.u32 %v7485_v24, %v6124_v10  ;;  %v7417_v43 = vld [vmem:[%s11732_s1 + $0x84c] sm:$0xf] }
 0x1d9   :  { %v5852_v49 = vld [vmem:[%s11732_s1 + $0x858] sm:$0xf0]  ;;  %v7449_v21 = vld [vmem:[%s11732_s1 + $0x94c] sm:$0xf]  ;;  %v6255_v29 = vor.u32 %v7517_v35, %v6252_v50 }
 0x1da   :  { %3952 = vmatpush.bf16.msra.mxu0 %v5903_v12  ;;  %3966 = vmatpush.bf16.msra.mxu1 %v6031_v6  ;;  %v5980_v60 = vld [vmem:[%s11732_s1 + $0x958] sm:$0xf0]  ;;  %v7481_v46 = vld [vmem:[%s11732_s1 + $0xa4c] sm:$0xf]  ;;  %v5855_v6 = vor.u32 %v7417_v43, %v5852_v49 }
 0x1db   :  { %3980 = vmatpush.bf16.msra.mxu2 %v6159_v14  ;;  %3994 = vmatpush.bf16.msra.mxu3 %v6287_v48  ;;  %v6108_v40 = vld [vmem:[%s11732_s1 + $0xa58] sm:$0xf0]  ;;  %v7513_v5 = vld [vmem:[%s11732_s1 + $0xb4c] sm:$0xf]  ;;  %v5983_v14 = vor.u32 %v7449_v21, %v5980_v60 }
 0x1dc   :  { %v6236_v12 = vld [vmem:[%s11732_s1 + $0xb58] sm:$0xf0]  ;;  %v6111_v44 = vor.u32 %v7481_v46, %v6108_v40  ;;  %v7413_v45 = vld [vmem:[%s11732_s1 + $0x82c] sm:$0xf] }
 0x1dd   :  { %v5836_v9 = vld [vmem:[%s11732_s1 + $0x838] sm:$0xf0]  ;;  %v7445_v48 = vld [vmem:[%s11732_s1 + $0x92c] sm:$0xf]  ;;  %v6239_v4 = vor.u32 %v7513_v5, %v6236_v12 }
 0x1de   :  { %3953 = vmatpush.bf16.msra.mxu0 %v5887_v2  ;;  %3967 = vmatpush.bf16.msra.mxu1 %v6015_v11  ;;  %v5964_v59 = vld [vmem:[%s11732_s1 + $0x938] sm:$0xf0]  ;;  %v7477_v13 = vld [vmem:[%s11732_s1 + $0xa2c] sm:$0xf]  ;;  %v10970_v2 = vpop.f32.mrf.mxu3  ;;  %v5839_v17 = vor.u32 %v7413_v45, %v5836_v9  ;;  %v11033_v9 = vld [vmem:[%s11733_s2] sm:$0xf] }
 0x1df   :  { %3981 = vmatpush.bf16.msra.mxu2 %v6143_v18  ;;  %3995 = vmatpush.bf16.msra.mxu3 %v6271_v57  ;;  %v6092_v16 = vld [vmem:[%s11732_s1 + $0xa38] sm:$0xf0]  ;;  %v7509_v11 = vld [vmem:[%s11732_s1 + $0xb2c] sm:$0xf]  ;;  %v10984_v57 = vpop.f32.mrf.mxu0  ;;  %v5967_v3 = vor.u32 %v7445_v48, %v5964_v59  ;;  %v600_v48 = vperm.slane %v11033_v9, 2  ;;  %s7777_s2 = smov [#allocation3]  }
 0x1e0   :  { %v6220_v18 = vld [vmem:[%s11732_s1 + $0xb38] sm:$0xf0]  ;;  %v7409_v0 = vld [vmem:[%s11732_s1 + $0x80c] sm:$0xf]  ;;  %v6095_v24 = vor.u32 %v7477_v13, %v6092_v16  ;;  %s4773_s24 = sshll.u32 %s7777_s2, 4  ;;  %s4774_s24 = int_to_ptr.vmem [resolvable:$true] %s4773_s24 }
 0x1e1   :  { %v5820_v53 = vld [vmem:[%s11732_s1 + $0x818] sm:$0xf0]  ;;  %v7441_v10 = vld [vmem:[%s11732_s1 + $0x90c] sm:$0xf] }
 0x1e2   :  { %3954 = vmatpush.bf16.msra.mxu0 %v5871_v31  ;;  %3968 = vmatpush.bf16.msra.mxu1 %v5999_v58  ;;  %v5948_v35 = vld [vmem:[%s11732_s1 + $0x918] sm:$0xf0]  ;;  %v7473_v50 = vld [vmem:[%s11732_s1 + $0xa0c] sm:$0xf]  ;;  %v10995_v31 = vpop.f32.mrf.mxu1  ;;  %v6223_v58 = vor.u32 %v7509_v11, %v6220_v18  ;;  %v5823_v46 = vor.u32 %v7409_v0, %v5820_v53  ;;  %v11045_v0 = vpop.f32.mrf.mxu2 }
 0x1e3   :  { %3982 = vmatpush.bf16.msra.mxu2 %v6127_v38  ;;  %3996 = vmatpush.bf16.msra.mxu3 %v6255_v29  ;;  %v6076_v38 = vld [vmem:[%s11732_s1 + $0xa18] sm:$0xf0]  ;;  %v7505_v43 = vld [vmem:[%s11732_s1 + $0xb0c] sm:$0xf] }
 0x1e4   :  { %v6204_v49 = vld [vmem:[%s11732_s1 + $0xb18] sm:$0xf0]  ;;  %v7565_v21 = vld [vmem:[%s11732_s1 + $0xcec] sm:$0xf] }
 0x1e5   :  { %v6444_v29 = vld [vmem:[%s11732_s1 + $0xcf8] sm:$0xf0]  ;;  %v7597_v60 = vld [vmem:[%s11732_s1 + $0xdec] sm:$0xf] }
 0x1e6   :  { %3955 = vmatpush.bf16.msra.mxu0 %v5855_v6  ;;  %3969 = vmatpush.bf16.msra.mxu1 %v5983_v14  ;;  %v6572_v40 = vld [vmem:[%s11732_s1 + $0xdf8] sm:$0xf0]  ;;  %v7629_v5 = vld [vmem:[%s11732_s1 + $0xeec] sm:$0xf]  ;;  %v5951_v6 = vor.u32 %v7441_v10, %v5948_v35  ;;  %v6079_v14 = vor.u32 %v7473_v50, %v6076_v38  ;;  %v6447_v59 = vor.u32 %v7565_v21, %v6444_v29  ;;  %v11056_v35 = vpop.f32.mrf.mxu3  ;;  %v11744_v38 = vperm.slane %v8995_v55, 0 }
 0x1e7   :  { %3983 = vmatpush.bf16.msra.mxu2 %v6111_v44  ;;  %3997 = vmatpush.bf16.msra.mxu3 %v6239_v4  ;;  %v6700_v12 = vld [vmem:[%s11732_s1 + $0xef8] sm:$0xf0]  ;;  %v7661_v44 = vld [vmem:[%s11732_s1 + $0xfec] sm:$0xf]  ;;  %v6207_v4 = vor.u32 %v7505_v43, %v6204_v49  ;;  %v6575_v13 = vor.u32 %v7597_v60, %v6572_v40  ;;  %v3624_v21 = vadd.f32 %v10916_v25, %v600_v48  ;;  %v11068_v29 = vpop.f32.mrf.mxu0 }
 0x1e8   :  { %v6828_v45 = vld [vmem:[%s11732_s1 + $0xff8] sm:$0xf0]  ;;  %v6703_v16 = vor.u32 %v7629_v5, %v6700_v12  ;;  %v7561_v11 = vld [vmem:[%s11732_s1 + $0xccc] sm:$0xf]  ;;  %v3178_v43 = vadd.f32 %v9165_v52, %v11744_v38 }
 0x1e9   :  { %v6428_v18 = vld [vmem:[%s11732_s1 + $0xcd8] sm:$0xf0]  ;;  %v6831_v53 = vor.u32 %v7661_v44, %v6828_v45  ;;  %v7657_v50 = vld [vmem:[%s11732_s1 + $0xfcc] sm:$0xf] }
 0x1ea   :  { %3956 = vmatpush.bf16.msra.mxu0 %v5839_v17  ;;  %3970 = vmatpush.bf16.msra.mxu1 %v5967_v3  ;;  %v7593_v17 = vld [vmem:[%s11732_s1 + $0xdcc] sm:$0xf]  ;;  %v6556_v3 = vld [vmem:[%s11732_s1 + $0xdd8] sm:$0xf0]  ;;  %v6431_v49 = vor.u32 %v7561_v11, %v6428_v18  ;;  %v11079_v5 = vpop.f32.mrf.mxu1  ;;  %v3192_v45 = vadd.f32 %v9191_v1, %v3178_v43 }
 0x1eb   :  { %3984 = vmatpush.bf16.msra.mxu2 %v6095_v24  ;;  %3998 = vmatpush.bf16.msra.mxu3 %v6223_v58  ;;  %v7625_v24 = vld [vmem:[%s11732_s1 + $0xecc] sm:$0xf]  ;;  %v6684_v10 = vld [vmem:[%s11732_s1 + $0xed8] sm:$0xf0]  ;;  %v6559_v60 = vor.u32 %v7593_v17, %v6556_v3  ;;  %v3626_v17 = vadd.f32 %v10984_v57, %v600_v48 }
 0x1ec   :  { %v6812_v58 = vld [vmem:[%s11732_s1 + $0xfd8] sm:$0xf0]  ;;  %v7557_v40 = vld [vmem:[%s11732_s1 + $0xcac] sm:$0xf] }
 0x1ed   :  { %v6412_v55 = vld [vmem:[%s11732_s1 + $0xcb8] sm:$0xf0]  ;;  %v7589_v52 = vld [vmem:[%s11732_s1 + $0xdac] sm:$0xf]  ;;  %v6815_v25 = vor.u32 %v7657_v50, %v6812_v58 }
 0x1ee   :  { %3957 = vmatpush.bf16.msra.mxu0 %v5823_v46  ;;  %3971 = vmatpush.bf16.msra.mxu1 %v5951_v6  ;;  %v6687_v46 = vor.u32 %v7625_v24, %v6684_v10  ;;  %v6540_v12 = vld [vmem:[%s11732_s1 + $0xdb8] sm:$0xf0]  ;;  %v7621_v6 = vld [vmem:[%s11732_s1 + $0xeac] sm:$0xf]  ;;  %v3206_v24 = vadd.f32 %v9221_v19, %v3192_v45  ;;  %v11128_v10 = vpop.f32.mrf.mxu2  ;;  %v11131_v38 = vpop.f32.mrf.mxu3 }
 0x1ef   :  { %3985 = vmatpush.bf16.msra.mxu2 %v6079_v14  ;;  %3999 = vmatpush.bf16.msra.mxu3 %v6207_v4  ;;  %v6668_v14 = vld [vmem:[%s11732_s1 + $0xeb8] sm:$0xf0]  ;;  %v6415_v4 = vor.u32 %v7557_v40, %v6412_v55  ;;  %v7617_v11 = vld [vmem:[%s11732_s1 + $0xe8c] sm:$0xf]  ;;  %v3640_v40 = vadd.f32 %v10995_v31, %v3626_v17  ;;  %v11152_v55 = vpop.f32.mrf.mxu0 }
 0x1f0   :  { %v6796_v44 = vld [vmem:[%s11732_s1 + $0xfb8] sm:$0xf0]  ;;  %v7549_v43 = vld [vmem:[%s11732_s1 + $0xc6c] sm:$0xf] }
 0x1f1   :  { %3958 = vmatmul.bf16.vlgmr.msra.gmra.mxu0 %v8536_v32  ;;  %3972 = vmatmul.bf16.vlgmr.msra.gmra.mxu1 %v8549_v37  ;;  %v7653_v32 = vld [vmem:[%s11732_s1 + $0xfac] sm:$0xf]  ;;  %v6671_v37 = vor.u32 %v7621_v6, %v6668_v14  ;;  %v6652_v18 = vld [vmem:[%s11732_s1 + $0xe98] sm:$0xf0] }
 0x1f2   :  { %4006 = vmatpush.bf16.msrb.mxu0 %v6447_v59  ;;  %4020 = vmatpush.bf16.msrb.mxu1 %v6575_v13  ;;  %v3638_v59 = vadd.f32 %v10924_v51, %v3624_v21  ;;  %v7553_v13 = vld [vmem:[%s11732_s1 + $0xc8c] sm:$0xf]  ;;  %v6799_v1 = vor.u32 %v7653_v32, %v6796_v44  ;;  %v6524_v51 = vld [vmem:[%s11732_s1 + $0xd98] sm:$0xf0]  ;;  %v6655_v48 = vor.u32 %v7617_v11, %v6652_v18  ;;  %v11161_v6 = vpop.f32.mrf.mxu1 }
 0x1f3   :  { %4034 = vmatpush.bf16.msrb.mxu2 %v6703_v16  ;;  %4048 = vmatpush.bf16.msrb.mxu3 %v6831_v53  ;;  %v6396_v16 = vld [vmem:[%s11732_s1 + $0xc98] sm:$0xf0]  ;;  %v7649_v53 = vld [vmem:[%s11732_s1 + $0xf8c] sm:$0xf] }
 0x1f4   :  { %3986 = vmatmul.bf16.vlgmr.msra.gmra.mxu2 %v8547_v36  ;;  %4000 = vmatmul.bf16.vlgmr.msra.gmra.mxu3 %v8557_v41  ;;  %v6543_v36 = vor.u32 %v7589_v52, %v6540_v12  ;;  %v7585_v41 = vld [vmem:[%s11732_s1 + $0xd8c] sm:$0xf]  ;;  %v6780_v3 = vld [vmem:[%s11732_s1 + $0xf98] sm:$0xf0]  ;;  %v6399_v50 = vor.u32 %v7553_v13, %v6396_v16  ;;  %v3652_v58 = vadd.f32 %v10959_v56, %v3638_v59 }
 0x1f5   :  { %v6527_v57 = vor.u32 %v7585_v41, %v6524_v51  ;;  %v6380_v19 = vld [vmem:[%s11732_s1 + $0xc78] sm:$0xf0]  ;;  %v6783_v56 = vor.u32 %v7649_v53, %v6780_v3  ;;  %v7645_v52 = vld [vmem:[%s11732_s1 + $0xf6c] sm:$0xf]  ;;  %v3220_v12 = vadd.f32 %v9232_v26, %v3206_v24  ;;  %v3654_v13 = vadd.f32 %v11045_v0, %v3640_v40 }
 0x1f6   :  { %4007 = vmatpush.bf16.msrb.mxu0 %v6431_v49  ;;  %4021 = vmatpush.bf16.msrb.mxu1 %v6559_v60  ;;  %v7581_v49 = vld [vmem:[%s11732_s1 + $0xd6c] sm:$0xf]  ;;  %v6508_v21 = vld [vmem:[%s11732_s1 + $0xd78] sm:$0xf0]  ;;  %v6383_v14 = vor.u32 %v7549_v43, %v6380_v19  ;;  %v3666_v32 = vadd.f32 %v10970_v2, %v3652_v58  ;;  %v11200_v3 = vpop.f32.mrf.mxu2 }
 0x1f7   :  { %4035 = vmatpush.bf16.msrb.mxu2 %v6687_v46  ;;  %4049 = vmatpush.bf16.msrb.mxu3 %v6815_v25  ;;  %v7613_v60 = vld [vmem:[%s11732_s1 + $0xe6c] sm:$0xf]  ;;  %v6636_v46 = vld [vmem:[%s11732_s1 + $0xe78] sm:$0xf0]  ;;  %v6511_v31 = vor.u32 %v7581_v49, %v6508_v21  ;;  %v11214_v43 = vpop.f32.mrf.mxu0 }
 0x1f8   :  { %v6764_v25 = vld [vmem:[%s11732_s1 + $0xf78] sm:$0xf0]  ;;  %v6639_v44 = vor.u32 %v7613_v60, %v6636_v46  ;;  %v7545_v45 = vld [vmem:[%s11732_s1 + $0xc4c] sm:$0xf]  ;;  %v3680_v11 = vadd.f32 %v11068_v29, %v3666_v32 }
 0x1f9   :  { %v7577_v26 = vld [vmem:[%s11732_s1 + $0xd4c] sm:$0xf]  ;;  %v6767_v59 = vor.u32 %v7645_v52, %v6764_v25  ;;  %v6492_v2 = vld [vmem:[%s11732_s1 + $0xd58] sm:$0xf0] }
 0x1fa   :  { %4008 = vmatpush.bf16.msrb.mxu0 %v6415_v4  ;;  %4022 = vmatpush.bf16.msrb.mxu1 %v6543_v36  ;;  %v6364_v4 = vld [vmem:[%s11732_s1 + $0xc58] sm:$0xf0]  ;;  %v7609_v36 = vld [vmem:[%s11732_s1 + $0xe4c] sm:$0xf]  ;;  %v6495_v18 = vor.u32 %v7577_v26, %v6492_v2  ;;  %v11223_v21 = vpop.f32.mrf.mxu1  ;;  %v3694_v40 = vadd.f32 %v11079_v5, %v3680_v11  ;;  %v7679_v26 = vld [vmem:[%s11734_s3 + $0x74] sm:$0xf0] }
 0x1fb   :  { %4036 = vmatpush.bf16.msrb.mxu2 %v6671_v37  ;;  %4050 = vmatpush.bf16.msrb.mxu3 %v6799_v1  ;;  %v6620_v37 = vld [vmem:[%s11732_s1 + $0xe58] sm:$0xf0]  ;;  %v7641_v16 = vld [vmem:[%s11732_s1 + $0xf4c] sm:$0xf]  ;;  %v3234_v1 = vadd.f32 %v9390_v27, %v3220_v12  ;;  %v6367_v51 = vor.u32 %v7545_v45, %v6364_v4 }
 0x1fc   :  { %v6748_v41 = vld [vmem:[%s11732_s1 + $0xf58] sm:$0xf0]  ;;  %v6623_v17 = vor.u32 %v7609_v36, %v6620_v37  ;;  %v7541_v0 = vld [vmem:[%s11732_s1 + $0xc2c] sm:$0xf]  ;;  %v7695_v36 = vld [vmem:[%s11734_s3 + $0xf4] sm:$0xf0] }
 0x1fd   :  { %v6348_v53 = vld [vmem:[%s11732_s1 + $0xc38] sm:$0xf0]  ;;  %v7573_v27 = vld [vmem:[%s11732_s1 + $0xd2c] sm:$0xf]  ;;  %v6751_v29 = vor.u32 %v7641_v16, %v6748_v41  ;;  %v7711_v37 = vld [vmem:[%s11734_s3 + $0x174] sm:$0xf0] }
 0x1fe   :  { %4009 = vmatpush.bf16.msrb.mxu0 %v6399_v50  ;;  %4023 = vmatpush.bf16.msrb.mxu1 %v6527_v57  ;;  %v6476_v24 = vld [vmem:[%s11732_s1 + $0xd38] sm:$0xf0]  ;;  %v7605_v50 = vld [vmem:[%s11732_s1 + $0xe2c] sm:$0xf]  ;;  %v3668_v57 = vadd.f32 %v11056_v35, %v3654_v13  ;;  %v6351_v60 = vor.u32 %v7541_v0, %v6348_v53  ;;  %v3708_v13 = vadd.f32 %v11128_v10, %v3694_v40  ;;  %v6882_v10 = vld [vmem:[%s11734_s3 + $0x60] sm:$0xf] }
 0x1ff   :  { %4037 = vmatpush.bf16.msrb.mxu2 %v6655_v48  ;;  %4051 = vmatpush.bf16.msrb.mxu3 %v6783_v56  ;;  %v6604_v58 = vld [vmem:[%s11732_s1 + $0xe38] sm:$0xf0]  ;;  %v11212_v48 = vpop.f32.mrf.mxu3  ;;  %v7637_v19 = vld [vmem:[%s11732_s1 + $0xf2c] sm:$0xf]  ;;  %v3248_v56 = vadd.f32 %v9398_v30, %v3234_v1  ;;  %v6479_v52 = vor.u32 %v7573_v27, %v6476_v24 }
 0x200   :  { %v6732_v49 = vld [vmem:[%s11732_s1 + $0xf38] sm:$0xf0]  ;;  %v7537_v35 = vld [vmem:[%s11732_s1 + $0xc0c] sm:$0xf]  ;;  %v6607_v25 = vor.u32 %v7605_v50, %v6604_v58  ;;  %v3682_v4 = vadd.f32 %v11152_v55, %v3668_v57  ;;  %v7018_v55 = vld [vmem:[%s11734_s3 + $0x170] sm:$0xf]  ;;  %v3722_v57 = vadd.f32 %v11131_v38, %v3708_v13 }
 0x201   :  { %v6332_v46 = vld [vmem:[%s11732_s1 + $0xc18] sm:$0xf0]  ;;  %v7569_v30 = vld [vmem:[%s11732_s1 + $0xd0c] sm:$0xf]  ;;  %v3262_v32 = vadd.f32 %v9437_v63, %v3248_v56  ;;  %v6735_v5 = vor.u32 %v7637_v19, %v6732_v49  ;;  %v6890_v63 = vld [vmem:[%s11734_s3 + $0x70] sm:$0xf]  ;;  %v7019_v27 = vor.u32 %v7711_v37, %v7018_v55  ;;  %v3737_v49 = vpop.f32.mrf.mxu0 }
 0x202   :  { %4010 = vmatpush.bf16.msrb.mxu0 %v6383_v14  ;;  %4024 = vmatpush.bf16.msrb.mxu1 %v6511_v31  ;;  %v6460_v12 = vld [vmem:[%s11732_s1 + $0xd18] sm:$0xf0]  ;;  %v7601_v14 = vld [vmem:[%s11732_s1 + $0xe0c] sm:$0xf]  ;;  %v6335_v2 = vor.u32 %v7537_v35, %v6332_v46  ;;  %v7010_v50 = vld [vmem:[%s11734_s3 + $0x160] sm:$0xf]  ;;  %v3736_v35 = vadd.f32 %v11214_v43, %v3722_v57 }
 0x203   :  { %4038 = vmatpush.bf16.msrb.mxu2 %v6639_v44  ;;  %4052 = vmatpush.bf16.msrb.mxu3 %v6767_v59  ;;  %v6588_v31 = vld [vmem:[%s11732_s1 + $0xe18] sm:$0xf0]  ;;  %v7633_v44 = vld [vmem:[%s11732_s1 + $0xf0c] sm:$0xf]  ;;  %v6954_v59 = vld [vmem:[%s11734_s3 + $0xf0] sm:$0xf]  ;;  %v6463_v16 = vor.u32 %v7569_v30, %v6460_v12  ;;  %v3276_v1 = vadd.f32 %v9448_v7, %v3262_v32 }
 0x204   :  { %v6716_v45 = vld [vmem:[%s11732_s1 + $0xf18] sm:$0xf0]  ;;  %v6591_v41 = vor.u32 %v7601_v14, %v6588_v31  ;;  %v6955_v53 = vor.u32 %v7695_v36, %v6954_v59  ;;  %v6946_v7 = vld [vmem:[%s11734_s3 + $0xe0] sm:$0xf]  ;;  %v7709_v58 = vld [vmem:[%s11734_s3 + $0x164] sm:$0xf0] }
 0x205   :  { %v6719_v11 = vor.u32 %v7633_v44, %v6716_v45  ;;  %v3290_v24 = vadd.f32 %v9597_v15, %v3276_v1  ;;  %v3751_v15 = vpop.f32.mrf.mxu1  ;;  %v7011_v40 = vor.u32 %v7709_v58, %v7010_v50  ;;  %v7675_v38 = vld [vmem:[%s11734_s3 + $0x54] sm:$0xf0]  ;;  %v7002_v43 = vld [vmem:[%s11734_s3 + $0x150] sm:$0xf]  ;;  %v6866_v31 = vld [vmem:[%s11734_s3 + $0x40] sm:$0xf] }
 0x206   :  { %4011 = vmatpush.bf16.msrb.mxu0 %v6367_v51  ;;  %4025 = vmatpush.bf16.msrb.mxu1 %v6495_v18  ;;  %v3763_v51 = vpop.f32.mrf.mxu2  ;;  %v6891_v18 = vor.u32 %v7679_v26, %v6890_v63  ;;  %v7707_v30 = vld [vmem:[%s11734_s3 + $0x154] sm:$0xf0]  ;;  %v7705_v44 = vld [vmem:[%s11734_s3 + $0x144] sm:$0xf0]  ;;  %v6858_v13 = vld [vmem:[%s11734_s3 + $0x30] sm:$0xf] }
 0x207   :  { %4039 = vmatpush.bf16.msrb.mxu2 %v6623_v17  ;;  %4053 = vmatpush.bf16.msrb.mxu3 %v6751_v29  ;;  %v3696_v17 = vadd.f32 %v11161_v6, %v3682_v4  ;;  %v11273_v0 = vpop.f32.mrf.mxu3  ;;  %v7677_v29 = vld [vmem:[%s11734_s3 + $0x64] sm:$0xf0]  ;;  %v7687_v1 = vld [vmem:[%s11734_s3 + $0xb4] sm:$0xf0]  ;;  %v6978_v58 = vld [vmem:[%s11734_s3 + $0x120] sm:$0xf] }
 0x208   :  { %v7693_v6 = vld [vmem:[%s11734_s3 + $0xe4] sm:$0xf0]  ;;  %v6883_v56 = vor.u32 %v7677_v29, %v6882_v10 }
 0x209   :  { %v3710_v19 = vadd.f32 %v11200_v3, %v3696_v17  ;;  %v6947_v46 = vor.u32 %v7693_v6, %v6946_v7  ;;  %v6938_v3 = vld [vmem:[%s11734_s3 + $0xd0] sm:$0xf]  ;;  %v7669_v7 = vld [vmem:[%s11734_s3 + $0x24] sm:$0xf0] }
 0x20a   :  { %4012 = vmatpush.bf16.msrb.mxu0 %v6351_v60  ;;  %4026 = vmatpush.bf16.msrb.mxu1 %v6479_v52  ;;  %v6874_v60 = vld [vmem:[%s11734_s3 + $0x50] sm:$0xf]  ;;  %v7691_v52 = vld [vmem:[%s11734_s3 + $0xd4] sm:$0xf0]  ;;  %v7701_v57 = vld [vmem:[%s11734_s3 + $0x124] sm:$0xf0] }
 0x20b   :  { %4040 = vmatpush.bf16.msrb.mxu2 %v6607_v25  ;;  %4054 = vmatpush.bf16.msrb.mxu3 %v6735_v5  ;;  %v3304_v25 = vadd.f32 %v9605_v20, %v3290_v24  ;;  %v3724_v12 = vadd.f32 %v11212_v48, %v3710_v19  ;;  %v6939_v14 = vor.u32 %v7691_v52, %v6938_v3  ;;  %v7689_v48 = vld [vmem:[%s11734_s3 + $0xc4] sm:$0xf0]  ;;  %v7667_v3 = vld [vmem:[%s11734_s3 + $0x14] sm:$0xf0] }
 0x20c   :  { %v7003_v5 = vor.u32 %v7707_v30, %v7002_v43  ;;  %v7685_v24 = vld [vmem:[%s11734_s3 + $0xa4] sm:$0xf0]  ;;  %v6970_v43 = vld [vmem:[%s11734_s3 + $0x110] sm:$0xf]  ;;  %v7699_v30 = vld [vmem:[%s11734_s3 + $0x114] sm:$0xf0] }
 0x20d   :  { %v3318_v20 = vadd.f32 %v9644_v54, %v3304_v25  ;;  %v3738_v32 = vadd.f32 %v3737_v49, %v3724_v12  ;;  %v7683_v25 = vld [vmem:[%s11734_s3 + $0x94] sm:$0xf0] }
 0x20e   :  { %4013 = vmatpush.bf16.msrb.mxu0 %v6335_v2  ;;  %4027 = vmatpush.bf16.msrb.mxu1 %v6463_v16  ;;  %v3765_v54 = vpop.f32.mrf.mxu2  ;;  %v3791_v63 = vpop.f32.mrf.mxu0  ;;  %v7671_v16 = vld [vmem:[%s11734_s3 + $0x34] sm:$0xf0] }
 0x20f   :  { %4041 = vmatpush.bf16.msrb.mxu2 %v6591_v41  ;;  %4055 = vmatpush.bf16.msrb.mxu3 %v6719_v11  ;;  %v3779_v4 = vpop.f32.mrf.mxu3  ;;  %v3332_v26 = vadd.f32 %v9655_v61, %v3318_v20  ;;  %v3805_v2 = vpop.f32.mrf.mxu1  ;;  %v3752_v36 = vadd.f32 %v3751_v15, %v3738_v32  ;;  %v6922_v61 = vld [vmem:[%s11734_s3 + $0xb0] sm:$0xf]  ;;  %v7703_v11 = vld [vmem:[%s11734_s3 + $0x134] sm:$0xf0] }
 0x210   :  { %v6923_v10 = vor.u32 %v7687_v1, %v6922_v61 }
 0x211   :  { %4014 = vmatmul.bf16.vlgmr.msrb.gmra.mxu0 %v8764_v33  ;;  %4028 = vmatmul.bf16.vlgmr.msrb.gmra.mxu1 %v8777_v42  ;;  %v6875_v33 = vor.u32 %v7675_v38, %v6874_v60  ;;  %v3750_v42 = vadd.f32 %v11223_v21, %v3736_v35  ;;  %v6994_v21 = vld [vmem:[%s11734_s3 + $0x140] sm:$0xf]  ;;  %v3346_v41 = vadd.f32 %v9804_v23, %v3332_v26  ;;  %v6842_v38 = vld [vmem:[%s11734_s3 + $0x10] sm:$0xf]  ;;  %v7694_v26 = vld [vmem:[%s11734_s3 + $0xf4] sm:$0xf] }
 0x212   :  { %4464 = vmatpush.bf16.msra.mxu0 %v6891_v18  ;;  %4478 = vmatpush.bf16.msra.mxu1 %v6955_v53  ;;  %v6995_v37 = vor.u32 %v7705_v44, %v6994_v21  ;;  %v3766_v17 = vadd.f32 %v3765_v54, %v3752_v36  ;;  %v6859_v53 = vor.u32 %v7671_v16, %v6858_v13  ;;  %v6850_v23 = vld [vmem:[%s11734_s3 + $0x20] sm:$0xf]  ;;  %v7678_v21 = vld [vmem:[%s11734_s3 + $0x74] sm:$0xf] }
 0x213   :  { %4492 = vmatpush.bf16.msra.mxu2 %v7019_v27  ;;  %4056 = vmatmul.bf16.vlgmr.msrb.gmra.mxu3 %v8785_v47  ;;  %v6930_v47 = vld [vmem:[%s11734_s3 + $0xc0] sm:$0xf]  ;;  %v3764_v45 = vadd.f32 %v3763_v51, %v3750_v42  ;;  %v6986_v51 = vld [vmem:[%s11734_s3 + $0x130] sm:$0xf]  ;;  %v3360_v6 = vadd.f32 %v9812_v28, %v3346_v41  ;;  %v6851_v60 = vor.u32 %v7669_v7, %v6850_v23  ;;  %v7710_v36 = vld [vmem:[%s11734_s3 + $0x174] sm:$0xf] }
 0x214   :  { %4042 = vmatmul.bf16.vlgmr.msrb.gmra.mxu2 %v8775_v39  ;;  %v7673_v39 = vld [vmem:[%s11734_s3 + $0x44] sm:$0xf0]  ;;  %v6931_v55 = vor.u32 %v7689_v48, %v6930_v47  ;;  %v6987_v29 = vor.u32 %v7703_v11, %v6986_v51  ;;  %v3780_v19 = vadd.f32 %v3779_v4, %v3766_v17  ;;  %v6962_v54 = vld [vmem:[%s11734_s3 + $0x100] sm:$0xf]  ;;  %v4062_v41 = vmax.f32 %v9712_v62, 0.0 }
 0x215   :  { %v6867_v59 = vor.u32 %v7673_v39, %v6866_v31  ;;  %v3778_v18 = vadd.f32 %v11273_v0, %v3764_v45  ;;  %v6914_v0 = vld [vmem:[%s11734_s3 + $0xa0] sm:$0xf]  ;;  %v7665_v31 = vld [vmem:[%s11734_s3 + $0x4] sm:$0xf0]  ;;  %v7676_v11 = vld [vmem:[%s11734_s3 + $0x64] sm:$0xf] }
 0x216   :  { %4465 = vmatpush.bf16.msra.mxu0 %v6883_v56  ;;  %4479 = vmatpush.bf16.msra.mxu1 %v6947_v46  ;;  %v3793_v49 = vpop.f32.mrf.mxu0  ;;  %v3374_v56 = vadd.f32 %v9857_v8, %v3360_v6  ;;  %v6915_v35 = vor.u32 %v7685_v24, %v6914_v0  ;;  %v6906_v8 = vld [vmem:[%s11734_s3 + $0x90] sm:$0xf]  ;;  %v6898_v39 = vld [vmem:[%s11734_s3 + $0x80] sm:$0xf]  ;;  %v7697_v48 = vld [vmem:[%s11734_s3 + $0x104] sm:$0xf0] }
 0x217   :  { %4493 = vmatpush.bf16.msra.mxu2 %v7011_v40  ;;  %v3792_v27 = vadd.f32 %v3791_v63, %v3778_v18  ;;  %v3819_v50 = vpop.f32.mrf.mxu2  ;;  %v3833_v15 = vpop.f32.mrf.mxu3  ;;  %v3794_v28 = vadd.f32 %v3793_v49, %v3780_v19  ;;  %v6979_v40 = vor.u32 %v7701_v57, %v6978_v58  ;;  %v6907_v32 = vor.u32 %v7683_v25, %v6906_v8  ;;  %v6892_v63 = vld [vmem:[%s11734_s3 + $0x78] sm:$0xf0]  ;;  %v6884_v18 = vld [vmem:[%s11734_s3 + $0x68] sm:$0xf0]  ;;  %v7690_v19 = vld [vmem:[%s11734_s3 + $0xd4] sm:$0xf] }
 0x218   :  { %v3807_v52 = vpop.f32.mrf.mxu1  ;;  %v3388_v20 = vadd.f32 %v9874_v22, %v3374_v56  ;;  %v7681_v22 = vld [vmem:[%s11734_s3 + $0x84] sm:$0xf0]  ;;  %v6963_v61 = vor.u32 %v7697_v48, %v6962_v54  ;;  %v6895_v1 = vor.u32 %v7678_v21, %v6892_v63  ;;  %v6948_v62 = vld [vmem:[%s11734_s3 + $0xe8] sm:$0xf0]  ;;  %v6887_v24 = vor.u32 %v7676_v11, %v6884_v18  ;;  %v6876_v57 = vld [vmem:[%s11734_s3 + $0x58] sm:$0xf0] }
 0x219   :  { %v3806_v46 = vadd.f32 %v3805_v2, %v3792_v27  ;;  %v3808_v42 = vadd.f32 %v3807_v52, %v3794_v28  ;;  %v6899_v16 = vor.u32 %v7681_v22, %v6898_v39  ;;  %v7692_v27 = vld [vmem:[%s11734_s3 + $0xe4] sm:$0xf]  ;;  %v6940_v49 = vld [vmem:[%s11734_s3 + $0xd8] sm:$0xf0]  ;;  %v6996_v52 = vld [vmem:[%s11734_s3 + $0x148] sm:$0xf0] }
 0x21a   :  { %4466 = vmatpush.bf16.msra.mxu0 %v6875_v33  ;;  %4480 = vmatpush.bf16.msra.mxu1 %v6939_v14  ;;  %v6843_v33 = vor.u32 %v7667_v3, %v6842_v38  ;;  %v6834_v14 = vld [vmem:[%s11734_s3] sm:$0xf]  ;;  %v6951_v6 = vor.u32 %v7692_v27, %v6948_v62  ;;  %v7004_v56 = vld [vmem:[%s11734_s3 + $0x158] sm:$0xf0]  ;;  %v7688_v38 = vld [vmem:[%s11734_s3 + $0xc4] sm:$0xf] }
 0x21b   :  { %4494 = vmatpush.bf16.msra.mxu2 %v7003_v5  ;;  %v3820_v12 = vadd.f32 %v3819_v50, %v3806_v46  ;;  %v6971_v5 = vor.u32 %v7699_v30, %v6970_v43  ;;  %v6835_v2 = vor.u32 %v7665_v31, %v6834_v14  ;;  %v7674_v50 = vld [vmem:[%s11734_s3 + $0x54] sm:$0xf]  ;;  %v7672_v46 = vld [vmem:[%s11734_s3 + $0x44] sm:$0xf]  ;;  %v6932_v3 = vld [vmem:[%s11734_s3 + $0xc8] sm:$0xf0] }
 0x21c   :  { %v7704_v8 = vld [vmem:[%s11734_s3 + $0x144] sm:$0xf]  ;;  %v6935_v43 = vor.u32 %v7688_v38, %v6932_v3  ;;  %v7670_v30 = vld [vmem:[%s11734_s3 + $0x34] sm:$0xf]  ;;  %v6924_v14 = vld [vmem:[%s11734_s3 + $0xb8] sm:$0xf0] }
 0x21d   :  { %v3834_v44 = vadd.f32 %v3833_v15, %v3820_v12  ;;  %v7706_v15 = vld [vmem:[%s11734_s3 + $0x154] sm:$0xf]  ;;  %v6999_v12 = vor.u32 %v7704_v8, %v6996_v52  ;;  %v7668_v39 = vld [vmem:[%s11734_s3 + $0x24] sm:$0xf]  ;;  %v6916_v48 = vld [vmem:[%s11734_s3 + $0xa8] sm:$0xf0] }
 0x21e   :  { %4467 = vmatpush.bf16.msra.mxu0 %v6867_v59  ;;  %4481 = vmatpush.bf16.msra.mxu1 %v6931_v55  ;;  %v6956_v59 = vld [vmem:[%s11734_s3 + $0xf8] sm:$0xf0]  ;;  %v7007_v28 = vor.u32 %v7706_v15, %v7004_v56  ;;  %v7684_v54 = vld [vmem:[%s11734_s3 + $0xa4] sm:$0xf]  ;;  %v7666_v63 = vld [vmem:[%s11734_s3 + $0x14] sm:$0xf] }
 0x21f   :  { %4495 = vmatpush.bf16.msra.mxu2 %v6995_v37  ;;  %v3821_v47 = vpop.f32.mrf.mxu2  ;;  %v3835_v4 = vpop.f32.mrf.mxu3  ;;  %v7020_v55 = vld [vmem:[%s11734_s3 + $0x178] sm:$0xf0]  ;;  %v4066_v37 = vmax.f32 %v3388_v20, 0.0  ;;  %v6959_v51 = vor.u32 %v7694_v26, %v6956_v59  ;;  %v4064_v17 = vmax.f32 %v3834_v44, 0.0  ;;  %v7700_v21 = vld [vmem:[%s11734_s3 + $0x124] sm:$0xf] }
 0x220   :  { %v3822_v45 = vadd.f32 %v3821_v47, %v3808_v42  ;;  %v7023_v23 = vor.u32 %v7710_v36, %v7020_v55  ;;  %v6860_v20 = vld [vmem:[%s11734_s3 + $0x38] sm:$0xf0]  ;;  %v7702_v42 = vld [vmem:[%s11734_s3 + $0x134] sm:$0xf]  ;;  %v6852_v47 = vld [vmem:[%s11734_s3 + $0x28] sm:$0xf0] }
 0x221   :  { %v11456_v7 = vpack.c.bf16 %v4066_v37, %v4062_v41  ;;  %v6980_v44 = vld [vmem:[%s11734_s3 + $0x128] sm:$0xf0]  ;;  %v6844_v59 = vld [vmem:[%s11734_s3 + $0x18] sm:$0xf0]  ;;  %v7698_v55 = vld [vmem:[%s11734_s3 + $0x114] sm:$0xf] }
 0x222   :  { %4468 = vmatpush.bf16.msra.mxu0 %v6859_v53  ;;  %4482 = vmatpush.bf16.msra.mxu1 %v6923_v10  ;;  %v3836_v13 = vadd.f32 %v3835_v4, %v3822_v45  ;;  %v7708_v10 = vld [vmem:[%s11734_s3 + $0x164] sm:$0xf]  ;;  %v6855_v45 = vor.u32 %v7668_v39, %v6852_v47  ;;  %v6919_v4 = vor.u32 %v7684_v54, %v6916_v48  ;;  %v6908_v36 = vld [vmem:[%s11734_s3 + $0x98] sm:$0xf0]  ;;  %v6900_v11 = vld [vmem:[%s11734_s3 + $0x88] sm:$0xf0] }
 0x223   :  { %4496 = vmatpush.bf16.msra.mxu2 %v6987_v29  ;;  %v7012_v29 = vld [vmem:[%s11734_s3 + $0x168] sm:$0xf0]  ;;  %v6983_v26 = vor.u32 %v7700_v21, %v6980_v44  ;;  %v6972_v37 = vld [vmem:[%s11734_s3 + $0x118] sm:$0xf0]  ;;  %v7696_v18 = vld [vmem:[%s11734_s3 + $0x104] sm:$0xf] }
 0x224   :  { %v4068_v53 = vmax.f32 %v3836_v13, 0.0  ;;  %v7015_v58 = vor.u32 %v7708_v10, %v7012_v29  ;;  %v6847_v13 = vor.u32 %v7666_v63, %v6844_v59  ;;  %v6975_v41 = vor.u32 %v7698_v55, %v6972_v37  ;;  %v7082_v10 = vld [vmem:[%s11734_s3 + $0x1f0] sm:$0xf]  ;;  %v7727_v29 = vld [vmem:[%s11734_s3 + $0x1f4] sm:$0xf0] }
 0x225   :  { %v7058_v56 = vld [vmem:[%s11734_s3 + $0x1c0] sm:$0xf]  ;;  %v601_v38 = vperm.slane %v11033_v9, 3  ;;  %v7713_v21 = vld [vmem:[%s11734_s3 + $0x184] sm:$0xf0] }
 0x226   :  { %4469 = vmatpush.bf16.msra.mxu0 %v6851_v60  ;;  %4483 = vmatpush.bf16.msra.mxu1 %v6915_v35  ;;  %v11458_v0 = vpack.c.bf16 %v4068_v53, %v4064_v17  ;;  %v6879_v60 = vor.u32 %v7674_v50, %v6876_v57  ;;  %v6943_v35 = vor.u32 %v7690_v19, %v6940_v49  ;;  %v6964_v17 = vld [vmem:[%s11734_s3 + $0x108] sm:$0xf0]  ;;  %v7066_v19 = vld [vmem:[%s11734_s3 + $0x1d0] sm:$0xf]  ;;  %v7723_v49 = vld [vmem:[%s11734_s3 + $0x1d4] sm:$0xf0] }
 0x227   :  { %4497 = vmatpush.bf16.msra.mxu2 %v6979_v40  ;;  %v6868_v40 = vld [vmem:[%s11734_s3 + $0x48] sm:$0xf0]  ;;  %v6967_v27 = vor.u32 %v7696_v18, %v6964_v17  ;;  %v7067_v15 = vor.u32 %v7723_v49, %v7066_v19  ;;  %v7026_v48 = vld [vmem:[%s11734_s3 + $0x180] sm:$0xf]  ;;  %v7716_v49 = vld [vmem:[%s11734_s3 + $0x1a4] sm:$0xf] }
 0x228   :  { %v6871_v25 = vor.u32 %v7672_v46, %v6868_v40  ;;  %v7719_v40 = vld [vmem:[%s11734_s3 + $0x1b4] sm:$0xf0]  ;;  %v7027_v44 = vor.u32 %v7713_v21, %v7026_v48  ;;  %v7076_v55 = vld [vmem:[%s11734_s3 + $0x1e8] sm:$0xf0] }
 0x22a   :  { %4470 = vmatpush.bf16.msra.mxu0 %v6843_v33  ;;  %4484 = vmatpush.bf16.msra.mxu1 %v6907_v32  ;;  %v7686_v33 = vld [vmem:[%s11734_s3 + $0xb4] sm:$0xf]  ;;  %v6988_v32 = vld [vmem:[%s11734_s3 + $0x138] sm:$0xf0] }
 0x22b   :  { %4498 = vmatpush.bf16.msra.mxu2 %v6971_v5  ;;  %v6863_v5 = vor.u32 %v7670_v30, %v6860_v20  ;;  %v6927_v31 = vor.u32 %v7686_v33, %v6924_v14  ;;  %v6991_v22 = vor.u32 %v7702_v42, %v6988_v32  ;;  %v7034_v42 = vld [vmem:[%s11734_s3 + $0x190] sm:$0xf]  ;;  %v7715_v32 = vld [vmem:[%s11734_s3 + $0x194] sm:$0xf0] }
 0x22c   :  { %v7035_v39 = vor.u32 %v7715_v32, %v7034_v42 }
 0x22e   :  { %4471 = vmatpush.bf16.msra.mxu0 %v6835_v2  ;;  %4485 = vmatpush.bf16.msra.mxu1 %v6899_v16  ;;  %v7682_v2 = vld [vmem:[%s11734_s3 + $0x94] sm:$0xf]  ;;  %v3847_v62 = vpop.f32.mrf.mxu0 }
 0x22f   :  { %4499 = vmatpush.bf16.msra.mxu2 %v6963_v61  ;;  %v6911_v16 = vor.u32 %v7682_v2, %v6908_v36  ;;  %v7664_v61 = vld [vmem:[%s11734_s3 + $0x4] sm:$0xf]  ;;  %v3848_v30 = vadd.f32 %v3847_v62, %v601_v38  ;;  %v7060_v62 = vld [vmem:[%s11734_s3 + $0x1c8] sm:$0xf0] }
 0x230   :  { %v7724_v36 = vld [vmem:[%s11734_s3 + $0x1e4] sm:$0xf] }
 0x231   :  { %4472 = vmatmul.bf16.vlgmr.msra.gmra.mxu0 %v11456_v7  ;;  %4486 = vmatmul.bf16.vlgmr.msra.gmra.mxu1 %v10642_v34 }
 0x232   :  { %4520 = vmatpush.bf16.msrb.mxu0 %v6895_v1  ;;  %4534 = vmatpush.bf16.msrb.mxu1 %v6959_v51  ;;  %v6836_v1 = vld [vmem:[%s11734_s3 + $0x8] sm:$0xf0]  ;;  %v7680_v51 = vld [vmem:[%s11734_s3 + $0x84] sm:$0xf] }
 0x233   :  { %4548 = vmatpush.bf16.msrb.mxu2 %v7023_v23  ;;  %v6839_v53 = vor.u32 %v7664_v61, %v6836_v1  ;;  %v6903_v23 = vor.u32 %v7680_v51, %v6900_v11  ;;  %v7722_v51 = vld [vmem:[%s11734_s3 + $0x1d4] sm:$0xf]  ;;  %v7068_v11 = vld [vmem:[%s11734_s3 + $0x1d8] sm:$0xf0] }
 0x234   :  { %4500 = vmatmul.bf16.vlgmr.msra.gmra.mxu2 %v11458_v0  ;;  %v7071_v17 = vor.u32 %v7722_v51, %v7068_v11  ;;  %v7743_v51 = vld [vmem:[%s11736_s5 + $0x78] sm:$0xff]  ;;  %v7730_v11 = vld [vmem:[%s11736_s5 + $0x10] sm:$0xff] }
 0x236   :  { %4521 = vmatpush.bf16.msrb.mxu0 %v6887_v24  ;;  %4535 = vmatpush.bf16.msrb.mxu1 %v6951_v6  ;;  %v3861_v24 = vpop.f32.mrf.mxu1  ;;  %v7083_v6 = vor.u32 %v7727_v29, %v7082_v10  ;;  %v3849_v57 = vpop.f32.mrf.mxu0 }
 0x237   :  { %4549 = vmatpush.bf16.msrb.mxu2 %v7015_v58  ;;  %v3875_v50 = vpop.f32.mrf.mxu2  ;;  %v3889_v58 = vpop.f32.mrf.mxu3  ;;  %v3862_v14 = vadd.f32 %v3861_v24, %v3848_v30  ;;  %v3850_v9 = vadd.f32 %v3849_v57, %v601_v38 }
 0x238   :  { %4506 = vmatpush.bf16.msra.mxu3 %v7083_v6 }
 0x23a   :  { %4522 = vmatpush.bf16.msrb.mxu0 %v6879_v60  ;;  %4536 = vmatpush.bf16.msrb.mxu1 %v6943_v35  ;;  %v7721_v60 = vld [vmem:[%s11734_s3 + $0x1c4] sm:$0xf0] }
 0x23b   :  { %4550 = vmatpush.bf16.msrb.mxu2 %v7007_v28  ;;  %v7059_v46 = vor.u32 %v7721_v60, %v7058_v56  ;;  %v7050_v28 = vld [vmem:[%s11734_s3 + $0x1b0] sm:$0xf] }
 0x23c   :  { %v7051_v52 = vor.u32 %v7719_v40, %v7050_v28 }
 0x23e   :  { %4523 = vmatpush.bf16.msrb.mxu0 %v6871_v25  ;;  %4537 = vmatpush.bf16.msrb.mxu1 %v6935_v43  ;;  %v3863_v35 = vpop.f32.mrf.mxu1  ;;  %v7042_v25 = vld [vmem:[%s11734_s3 + $0x1a0] sm:$0xf]  ;;  %v7717_v43 = vld [vmem:[%s11734_s3 + $0x1a4] sm:$0xf0] }
 0x23f   :  { %4551 = vmatpush.bf16.msrb.mxu2 %v6999_v12  ;;  %v3877_v3 = vpop.f32.mrf.mxu2  ;;  %v3891_v8 = vpop.f32.mrf.mxu3  ;;  %v7043_v20 = vor.u32 %v7717_v43, %v7042_v25  ;;  %v3864_v47 = vadd.f32 %v3863_v35, %v3850_v9 }
 0x241   :  { %v3878_v2 = vadd.f32 %v3877_v3, %v3864_v47 }
 0x242   :  { %4524 = vmatpush.bf16.msrb.mxu0 %v6863_v5  ;;  %4538 = vmatpush.bf16.msrb.mxu1 %v6927_v31 }
 0x243   :  { %4552 = vmatpush.bf16.msrb.mxu2 %v6991_v22  ;;  %v3876_v22 = vadd.f32 %v3875_v50, %v3862_v14 }
 0x245   :  { %v3890_v63 = vadd.f32 %v3889_v58, %v3876_v22 }
 0x246   :  { %4525 = vmatpush.bf16.msrb.mxu0 %v6855_v45  ;;  %4539 = vmatpush.bf16.msrb.mxu1 %v6919_v4  ;;  %v7726_v45 = vld [vmem:[%s11734_s3 + $0x1f4] sm:$0xf]  ;;  %v7084_v4 = vld [vmem:[%s11734_s3 + $0x1f8] sm:$0xf0] }
 0x247   :  { %4553 = vmatpush.bf16.msrb.mxu2 %v6983_v26  ;;  %v7087_v26 = vor.u32 %v7726_v45, %v7084_v4 }
 0x24a   :  { %4526 = vmatpush.bf16.msrb.mxu0 %v6847_v13  ;;  %4540 = vmatpush.bf16.msrb.mxu1 %v6911_v16  ;;  %v7079_v13 = vor.u32 %v7724_v36, %v7076_v55 }
 0x24b   :  { %4554 = vmatpush.bf16.msrb.mxu2 %v6975_v41  ;;  %v3892_v41 = vadd.f32 %v3891_v8, %v3878_v2  ;;  %v7714_v8 = vld [vmem:[%s11734_s3 + $0x194] sm:$0xf] }
 0x24e   :  { %4527 = vmatpush.bf16.msrb.mxu0 %v6839_v53  ;;  %4541 = vmatpush.bf16.msrb.mxu1 %v6903_v23  ;;  %v3903_v12 = vpop.f32.mrf.mxu0  ;;  %v3917_v33 = vpop.f32.mrf.mxu1 }
 0x24f   :  { %4555 = vmatpush.bf16.msrb.mxu2 %v6967_v27  ;;  %v3904_v37 = vadd.f32 %v3903_v12, %v3890_v63  ;;  %v7720_v27 = vld [vmem:[%s11734_s3 + $0x1c4] sm:$0xf] }
 0x250   :  { %v7063_v29 = vor.u32 %v7720_v27, %v7060_v62  ;;  %v7712_v12 = vld [vmem:[%s11734_s3 + $0x184] sm:$0xf]  ;;  %v7739_v62 = vld [vmem:[%s11736_s5 + $0x58] sm:$0xff] }
 0x251   :  { %4528 = vmatmul.bf16.vlgmr.msrb.gmra.mxu0 %v11456_v7  ;;  %4542 = vmatmul.bf16.vlgmr.msrb.gmra.mxu1 %v10642_v34  ;;  %v7074_v7 = vld [vmem:[%s11734_s3 + $0x1e0] sm:$0xf]  ;;  %v7725_v34 = vld [vmem:[%s11734_s3 + $0x1e4] sm:$0xf0]  ;;  %v3918_v18 = vadd.f32 %v3917_v33, %v3904_v37 }
 0x252   :  { %4556 = vmatmul.bf16.vlgmr.msrb.gmra.mxu2 %v11458_v0  ;;  %v7075_v0 = vor.u32 %v7725_v34, %v7074_v7  ;;  %v7718_v34 = vld [vmem:[%s11734_s3 + $0x1b4] sm:$0xf]  ;;  %4728 = vmatpush.bf16.msra.mxu1 %v7743_v51  ;;  %v7740_v27 = vld [vmem:[%s11736_s5 + $0x60] sm:$0xff] }
 0x254   :  { %4507 = vmatpush.bf16.msra.mxu3 %v7075_v0  ;;  %v7052_v0 = vld [vmem:[%s11734_s3 + $0x1b8] sm:$0xf0] }
 0x255   :  { %v7055_v19 = vor.u32 %v7718_v34, %v7052_v0 }
 0x256   :  { %v3905_v54 = vpop.f32.mrf.mxu0  ;;  %v3919_v59 = vpop.f32.mrf.mxu1 }
 0x257   :  { %v3931_v5 = vpop.f32.mrf.mxu2  ;;  %v3945_v31 = vpop.f32.mrf.mxu3  ;;  %v3906_v23 = vadd.f32 %v3905_v54, %v3892_v41  ;;  %v7732_v41 = vld [vmem:[%s11736_s5 + $0x20] sm:$0xff] }
 0x258   :  { %4508 = vmatpush.bf16.msra.mxu3 %v7067_v15  ;;  %v3932_v10 = vadd.f32 %v3931_v5, %v3918_v18  ;;  %v7044_v15 = vld [vmem:[%s11734_s3 + $0x1a8] sm:$0xf0]  ;;  %v7742_v18 = vld [vmem:[%s11736_s5 + $0x70] sm:$0xff] }
 0x259   :  { %v3920_v7 = vadd.f32 %v3919_v59, %v3906_v23  ;;  %v7047_v60 = vor.u32 %v7716_v49, %v7044_v15  ;;  %4729 = vmatpush.bf16.msra.mxu1 %v7742_v18  ;;  %v7728_v23 = vld [vmem:[%s11736_s5] sm:$0xff] }
 0x25a   :  { %v3946_v50 = vadd.f32 %v3945_v31, %v3932_v10  ;;  %v4744_v18 = vld [vmem:[%s11738_s7] sm:$0x1] }
 0x25c   :  { %4509 = vmatpush.bf16.msra.mxu3 %v7059_v46 }
 0x25f   :  { %v3933_v16 = vpop.f32.mrf.mxu2  ;;  %v3947_v61 = vpop.f32.mrf.mxu3 }
 0x260   :  { %4510 = vmatpush.bf16.msra.mxu3 %v7051_v52  ;;  %v3934_v58 = vadd.f32 %v3933_v16, %v3920_v7  ;;  %v7036_v52 = vld [vmem:[%s11734_s3 + $0x198] sm:$0xf0]  ;;  %v7734_v16 = vld [vmem:[%s11736_s5 + $0x30] sm:$0xff] }
 0x261   :  { %v7039_v30 = vor.u32 %v7714_v8, %v7036_v52 }
 0x262   :  { %v3948_v46 = vadd.f32 %v3947_v61, %v3934_v58  ;;  %v7733_v61 = vld [vmem:[%s11736_s5 + $0x28] sm:$0xff] }
 0x264   :  { %4511 = vmatpush.bf16.msra.mxu3 %v7043_v20  ;;  %v7028_v20 = vld [vmem:[%s11734_s3 + $0x188] sm:$0xf0] }
 0x265   :  { %v7031_v14 = vor.u32 %v7712_v12, %v7028_v20 }
 0x268   :  { %4512 = vmatpush.bf16.msra.mxu3 %v7035_v39 }
 0x26c   :  { %4513 = vmatpush.bf16.msra.mxu3 %v7027_v44 }
 0x26e   :  { %v3959_v1 = vpop.f32.mrf.mxu0  ;;  %v3973_v53 = vpop.f32.mrf.mxu1 }
 0x26f   :  { %v3960_v56 = vadd.f32 %v3959_v1, %v3946_v50  ;;  %v7731_v1 = vld [vmem:[%s11736_s5 + $0x18] sm:$0xff]  ;;  %v7736_v50 = vld [vmem:[%s11736_s5 + $0x40] sm:$0xff] }
 0x270   :  { %4562 = vmatpush.bf16.msrb.mxu3 %v7087_v26 }
 0x271   :  { %v3974_v28 = vadd.f32 %v3973_v53, %v3960_v56  ;;  %v7741_v53 = vld [vmem:[%s11736_s5 + $0x68] sm:$0xff] }
 0x272   :  { %4730 = vmatpush.bf16.msra.mxu1 %v7741_v53 }
 0x274   :  { %4563 = vmatpush.bf16.msrb.mxu3 %v7079_v13  ;;  %v7735_v13 = vld [vmem:[%s11736_s5 + $0x38] sm:$0xff] }
 0x275   :  { %4714 = vmatpush.bf16.msra.mxu0 %v7735_v13 }
 0x276   :  { %v3961_v57 = vpop.f32.mrf.mxu0  ;;  %v3975_v35 = vpop.f32.mrf.mxu1  ;;  %4731 = vmatpush.bf16.msra.mxu1 %v7740_v27 }
 0x277   :  { %v3987_v24 = vpop.f32.mrf.mxu2  ;;  %v4001_v6 = vpop.f32.mrf.mxu3  ;;  %v3962_v40 = vadd.f32 %v3961_v57, %v3948_v46 }
 0x278   :  { %4564 = vmatpush.bf16.msrb.mxu3 %v7071_v17  ;;  %v3988_v25 = vadd.f32 %v3987_v24, %v3974_v28  ;;  %v7729_v17 = vld [vmem:[%s11736_s5 + $0x8] sm:$0xff] }
 0x279   :  { %v3976_v33 = vadd.f32 %v3975_v35, %v3962_v40  ;;  %4715 = vmatpush.bf16.msra.mxu0 %v7734_v16  ;;  %v7737_v24 = vld [vmem:[%s11736_s5 + $0x48] sm:$0xff] }
 0x27a   :  { %v4002_v42 = vadd.f32 %v4001_v6, %v3988_v25  ;;  %4732 = vmatpush.bf16.msra.mxu1 %v7739_v62  ;;  %v4138_v6 = vld [vmem:[%s11735_s4] sm:$0x3] }
 0x27b   :  { %v4140_v0 = vperm.slane %v4138_v6, 0 }
 0x27c   :  { %4565 = vmatpush.bf16.msrb.mxu3 %v7063_v29  ;;  %v7738_v29 = vld [vmem:[%s11736_s5 + $0x50] sm:$0xff] }
 0x27d   :  { %4716 = vmatpush.bf16.msra.mxu0 %v7733_v61 }
 0x27e   :  { %4733 = vmatpush.bf16.msra.mxu1 %v7738_v29 }
 0x27f   :  { %v3989_v38 = vpop.f32.mrf.mxu2  ;;  %v4003_v3 = vpop.f32.mrf.mxu3 }
 0x280   :  { %4566 = vmatpush.bf16.msrb.mxu3 %v7055_v19  ;;  %v3990_v32 = vadd.f32 %v3989_v38, %v3976_v33 }
 0x281   :  { %4717 = vmatpush.bf16.msra.mxu0 %v7732_v41 }
 0x282   :  { %v4004_v22 = vadd.f32 %v4003_v3, %v3990_v32  ;;  %4734 = vmatpush.bf16.msra.mxu1 %v7737_v24 }
 0x284   :  { %4567 = vmatpush.bf16.msrb.mxu3 %v7047_v60 }
 0x285   :  { %4718 = vmatpush.bf16.msra.mxu0 %v7731_v1 }
 0x286   :  { %4735 = vmatpush.bf16.msra.mxu1 %v7736_v50 }
 0x288   :  { %4568 = vmatpush.bf16.msrb.mxu3 %v7039_v30 }
 0x289   :  { %4719 = vmatpush.bf16.msra.mxu0 %v7730_v11 }
 0x28c   :  { %4569 = vmatpush.bf16.msrb.mxu3 %v7031_v14 }
 0x28d   :  { %4720 = vmatpush.bf16.msra.mxu0 %v7729_v17 }
 0x28e   :  { %v4015_v43 = vpop.f32.mrf.mxu0  ;;  %v4029_v9 = vpop.f32.mrf.mxu1 }
 0x28f   :  { %v4016_v5 = vadd.f32 %v4015_v43, %v4002_v42  ;;  %v4141_v43 = vperm.slane %v4138_v6, 1 }
 0x291   :  { %v4030_v54 = vadd.f32 %v4029_v9, %v4016_v5  ;;  %4721 = vmatpush.bf16.msra.mxu0 %v7728_v23 }
 0x296   :  { %v4057_v39 = vpop.f32.mrf.mxu3  ;;  %v4017_v47 = vpop.f32.mrf.mxu0 }
 0x297   :  { %v4043_v31 = vpop.f32.mrf.mxu2  ;;  %v4018_v48 = vadd.f32 %v4017_v47, %v4004_v22  ;;  %v4031_v44 = vpop.f32.mrf.mxu1 }
 0x298   :  { %v4044_v21 = vadd.f32 %v4043_v31, %v4030_v54 }
 0x299   :  { %v4032_v45 = vadd.f32 %v4031_v44, %v4018_v48 }
 0x29a   :  { %v4058_v63 = vadd.f32 %v4057_v39, %v4044_v21 }
 0x29c   :  { %v4065_v36 = vmax.f32 %v4058_v63, 0.0  ;;  %v4746_v63 = vld [vmem:[#allocation2] sm:$0x1] }
 0x29e   :  { %v4059_v59 = vpop.f32.mrf.mxu3 }
 0x29f   :  { %v4045_v4 = vpop.f32.mrf.mxu2 }
 0x2a0   :  { %v4046_v26 = vadd.f32 %v4045_v4, %v4032_v45 }
 0x2a2   :  { %v4060_v2 = vadd.f32 %v4059_v59, %v4046_v26  ;;  %v7776_v26 = vmov 0  }
 0x2a3   :  { %7746 = vset.pattern.permute.xlu0 %v7776_v26 }
 0x2a4   :  { %v4069_v55 = vmax.f32 %v4060_v2, 0.0  ;;  %4749 = vperm.xlu0 %7746, %v4746_v63  }
 0x2a6   :  { %v4073_v37 = vpack.c.bf16 %v4069_v55, %v4065_v36  ;;  %v7747_v36 = vld [vmem:[%s11737_s6] ss:$0 sm:$0xff] }
 0x2a8   :  { %4514 = vmatmul.bf16.vlgmr.msra.gmra.mxu3 %v4073_v37 }
 0x2ae   :  { %v4473_v10 = vpop.f32.mrf.mxu0  ;;  %v4487_v7 = vpop.f32.mrf.mxu1 }
 0x2af   :  { %v4474_v57 = vadd.f32 %v4473_v10, %v4140_v0 }
 0x2b1   :  { %v4488_v60 = vadd.f32 %v4487_v7, %v4474_v57 }
 0x2b6   :  { %v4475_v58 = vpop.f32.mrf.mxu0  ;;  %v4489_v15 = vpop.f32.mrf.mxu1 }
 0x2b7   :  { %v4501_v34 = vpop.f32.mrf.mxu2  ;;  %v4476_v49 = vadd.f32 %v4475_v58, %v4140_v0 }
 0x2b8   :  { %4570 = vmatmul.bf16.vlgmr.msrb.gmra.mxu3 %v4073_v37  ;;  %v4502_v28 = vadd.f32 %v4501_v34, %v4488_v60 }
 0x2b9   :  { %v4490_v46 = vadd.f32 %v4489_v15, %v4476_v49 }
 0x2bf   :  { %v4503_v56 = vpop.f32.mrf.mxu2 }
 0x2c0   :  { %v4504_v40 = vadd.f32 %v4503_v56, %v4490_v46 }
 0x2ce   :  { %v4529_v35 = vpop.f32.mrf.mxu0  ;;  %v4543_v52 = vpop.f32.mrf.mxu1 }
 0x2cf   :  { %v4530_v14 = vadd.f32 %v4529_v35, %v4141_v43 }
 0x2d1   :  { %v4544_v32 = vadd.f32 %v4543_v52, %v4530_v14 }
 0x2d5   :  { %v4557_v25 = vpop.f32.mrf.mxu2 }
 0x2d6   :  { %v4531_v33 = vpop.f32.mrf.mxu0  ;;  %v4545_v5 = vpop.f32.mrf.mxu1  ;;  %v4558_v39 = vadd.f32 %v4557_v25, %v4544_v32 }
 0x2d7   :  { %v4532_v42 = vadd.f32 %v4531_v33, %v4141_v43 }
 0x2d9   :  { %v4546_v22 = vadd.f32 %v4545_v5, %v4532_v42 }
 0x2dd   :  { %v4559_v31 = vpop.f32.mrf.mxu2 }
 0x2de   :  { %v4560_v47 = vadd.f32 %v4559_v31, %v4546_v22 }
 0x316   :  { %v4750_v17 = vpop.permute.xlu0 %4749 }
 0x317   :  { %v4752_v53 = vperm.slane %v4750_v17, 0 }
 0x32b   :  { %v4515_v19 = vpop.f32.mrf.mxu3 }
 0x32c   :  { %v4516_v38 = vadd.f32 %v4515_v19, %v4502_v28 }
 0x32e   :  { %v4576_v30 = vmax.f32 %v4516_v38, 0.0 }
 0x333   :  { %v4517_v3 = vpop.f32.mrf.mxu3 }
 0x334   :  { %v4518_v8 = vadd.f32 %v4517_v3, %v4504_v40 }
 0x336   :  { %v4578_v12 = vmax.f32 %v4518_v8, 0.0 }
 0x338   :  { %v4580_v20 = vpack.c.bf16 %v4578_v12, %v4576_v30 }
 0x33a   :  { %4722 = vmatmul.bf16.vlgmr.msra.gmra.mxu0 %v4580_v20 }
 0x33b   :  { %v4571_v9 = vpop.f32.mrf.mxu3 }
 0x33c   :  { %v4572_v54 = vadd.f32 %v4571_v9, %v4558_v39 }
 0x33e   :  { %v4577_v44 = vmax.f32 %v4572_v54, 0.0 }
 0x343   :  { %v4573_v48 = vpop.f32.mrf.mxu3 }
 0x344   :  { %v4574_v21 = vadd.f32 %v4573_v48, %v4560_v47 }
 0x346   :  { %v4579_v45 = vmax.f32 %v4574_v21, 0.0 }
 0x348   :  { %v4581_v4 = vpack.c.bf16 %v4579_v45, %v4577_v44 }
 0x34a   :  { %4736 = vmatmul.bf16.vlgmr.msra.gmra.mxu1 %v4581_v4 }
 0x3b7   :  { %v4723_v59 = vpop.f32.mrf.mxu0 }
 0x3b8   :  { %v4724_v37 = vadd.f32 %v7747_v36, %v4723_v59 }
 0x3bf   :  { %v4725_v55 = vpop.f32.mrf.mxu0 }
 0x3c0   :  { %v4726_v13 = vadd.f32 %v7747_v36, %v4725_v55 }
 0x3c7   :  { %v4737_v2 = vpop.f32.mrf.mxu1 }
 0x3c8   :  { %v4738_v16 = vadd.f32 %v4737_v2, %v4724_v37 }
 0x3ca   :  { %v4742_v1 = vmax.f32 %v4738_v16, 0.0 }
 0x3cf   :  { %v4739_v61 = vpop.f32.mrf.mxu1 }
 0x3d0   :  { %v4740_v41 = vadd.f32 %v4739_v61, %v4726_v13 }
 0x3d2   :  { %v4743_v51 = vmax.f32 %v4740_v41, 0.0 }
 0x3d4   :  { %v4745_v11 = vpack.c.bf16 %v4743_v51, %v4742_v1 }
 0x3d6   :  { %4760 = vmatpush.bf16.xpose.msra.mxu2 %v4745_v11 }
 0x3dd   :  { %4761 = vmatmul.bf16.vlgmr.msra.gmra.mxu2 %v4744_v18 }
 0x460   :  { %v4762_v23 = vpop.f32.mrf.mxu2 }
 0x461   :  { %v4763_v27 = vadd.f32 %v4762_v23, %v4752_v53 }
 0x463   :  { %4767 = vst.msk [vmem:[#allocation3] sm:$0x1] %vm4766_vm0, %v4763_v27 }
 0x464   :  { %4778 = dma.vmem_to_hbm [thread:$0]  %s4774_s24, 16, %s4776_s26, [#allocation4]  }
 0x468   :  { %v4764_v62 = vpop.f32.mrf.mxu2 }
 0x469   :  { %7774 = dma.done.wait [#allocation4], 16  }
 0x46a   :  { %7775 = vsyncadd [#allocation4], 4294967280 }
 0x46b   :  { %4783 = vsyncpa [#allocation4], 1 }

</bundles_post_ra>
